<compile_context>
chip_gen: v7x
topology: tpu7x:2x2x1
jax: 0.10.0
libtpu: 0.0.40
codegen_flags: <defaults>
</compile_context>

<pallas_src>
import functools
import math

import jax
import jax.numpy as jnp
from jax.experimental import pallas as pl
from jax.experimental.pallas import tpu as pltpu


# ----------------------------------------------------------------------------
# static layer plan (Python-only; shared by init_params and the forward pass)
# ----------------------------------------------------------------------------
_CHANNELS = [64, 128, 256, 512, 1024]
_STRIDES = [1, 2, 2, 2, 2]


def _round_up(x, m):
    return ((x + m - 1) // m) * m


def _valid_taps(sp, stride):
    """Offsets (dz,dy,dx) in {0,1,2}^3 of the 3x3x3 kernel (pad=1) that can ever
    sample real data for a cube input of side `sp`.  Everything else only ever
    reads zero padding and is statically pruned from im2col + weight packing."""
    out_sp = (sp - 1) // stride + 1

    def ok(d):
        return any(1 <= o * stride + d <= sp for o in range(out_sp))

    valid_1d = [d for d in range(3) if ok(d)]
    taps = [(dz, dy, dx) for dz in valid_1d for dy in valid_1d for dx in valid_1d]
    return taps, out_sp


def _layer_plan(in_channels, grid_size):
    """Purely static per-layer metadata (never goes through jit as a pytree)."""
    plan = []
    cin = in_channels
    cin_p = in_channels          # channel count of the (lane-padded) activation fed in
    sp = grid_size
    for cout, stride in zip(_CHANNELS, _STRIDES):
        taps, out_sp = _valid_taps(sp, stride)
        cout_p = _round_up(cout, 128)
        k_true = len(taps) * cin_p
        kp = _round_up(k_true, 128)
        plan.append(dict(cin=cin, cin_p=cin_p, cout=cout, cout_p=cout_p,
                         stride=stride, in_spatial=sp, out_spatial=out_sp,
                         taps=taps, k_true=k_true, kp=kp))
        cin, cin_p, sp = cout, cout_p, out_sp
    return plan


def _single_tensorcore():
    """Best-effort chip detection.  Falls back to False (keep the 2-program
    split), which is safe on every generation and optimal on dual-TC v7x."""
    try:
        kind = jax.devices()[0].device_kind.lower()
    except Exception:
        return False
    return any(t in kind for t in ("v5 lite", "v5e", "v6 lite", "v6e", "v4 lite"))


# ----------------------------------------------------------------------------
# tile selection
# ----------------------------------------------------------------------------
def _pick_tk(kp, cap):
    """Largest multiple of 128 <= cap that divides kp (kp is a multiple of 128)."""
    best = 128
    d = 128
    while d <= min(kp, cap):
        if kp % d == 0:
            best = d
        d += 128
    return best


def _pick_tm(mp, min_tile=16):
    """M tile: multiple of 16 (bf16 sublane tile) dividing mp, leaving >=2 grid
    programs on the parallel M axis when mp is big enough."""
    if mp <= min_tile:
        return mp
    target = 512 if mp >= 1024 else max(min_tile, mp // 2)
    best = min_tile
    d = min_tile
    while d <= target:
        if mp % d == 0:
            best = d
        d += min_tile
    return best


def _select_tiles(mp, kp, np_, single_tc):
    tm = _pick_tm(mp)
    tn_cap = 1024 if single_tc else 512
    tn = min(np_, tn_cap)
    while np_ % tn:
        tn -= 128
    if not single_tc:
        # If neither M nor N gives >=2 programs, split N so the 2nd TC has work.
        if (mp // tm) < 2 and (np_ // tn) < 2 and np_ >= 256 and (np_ // 2) % 128 == 0:
            tn = np_ // 2
    tk = _pick_tk(kp, cap=6912 if single_tc else 3456)
    return tm, tk, tn


# ----------------------------------------------------------------------------
# Pallas kernels
# ----------------------------------------------------------------------------
def _matmul_bias_relu_kernel(x_ref, w_ref, bias_ref, o_ref, *, apply_relu):
    # single K step: no accumulator scratch, dot -> epilogue -> store
    y = jnp.dot(x_ref[...], w_ref[...],
                preferred_element_type=jnp.float32) + bias_ref[...]
    if apply_relu:
        y = jnp.maximum(y, 0.0)
    o_ref[...] = y.astype(o_ref.dtype)


def _matmul_bias_relu_acc_kernel(x_ref, w_ref, bias_ref, o_ref, acc_ref,
                                 *, apply_relu):
    k = pl.program_id(2)

    @pl.when(k == 0)
    def _():
        acc_ref[...] = jnp.zeros_like(acc_ref)

    acc_ref[...] += jnp.dot(x_ref[...], w_ref[...],
                            preferred_element_type=jnp.float32)

    @pl.when(k == pl.num_programs(2) - 1)
    def _():
        y = acc_ref[...] + bias_ref[...]
        if apply_relu:
            y = jnp.maximum(y, 0.0)
        o_ref[...] = y.astype(o_ref.dtype)


def fused_conv_bn_relu(patches, w, bias, *, single_tc, relu=True):
    """relu((patches @ w) + bias) on the MXU.  `w` already has the BN scale
    folded in, invalid taps pruned, lanes padded and bf16 cast (done once in
    init_params)."""
    M, K = patches.shape
    Kp, Np = w.shape                       # static, already padded to 128 multiples

    Mp = max(16, _round_up(M, 16))         # 16: bf16 output sublane tile
    if Mp != M or Kp != K:
        patches = jnp.pad(patches, ((0, Mp - M), (0, Kp - K)))

    tm, tk, tn = _select_tiles(Mp, Kp, Np, single_tc)
    nk = Kp // tk
    grid = (Mp // tm, Np // tn, nk)

    cost = pl.CostEstimate(
        flops=2 * Mp * Kp * Np,
        transcendentals=0,
        bytes_accessed=Mp * Kp * 2 + Kp * Np * 2 + Mp * Np * 2 + Np * 4)

    if nk == 1:
        kernel = functools.partial(_matmul_bias_relu_kernel, apply_relu=relu)
        scratch = []
    else:
        kernel = functools.partial(_matmul_bias_relu_acc_kernel, apply_relu=relu)
        scratch = [pltpu.VMEM((tm, tn), jnp.float32)]

    out = pl.pallas_call(
        kernel,
        out_shape=jax.ShapeDtypeStruct((Mp, Np), jnp.bfloat16),
        grid_spec=pltpu.PrefetchScalarGridSpec(
            num_scalar_prefetch=0,
            grid=grid,
            in_specs=[
                pl.BlockSpec((tm, tk), lambda i, j, k: (i, k)),
                pl.BlockSpec((tk, tn), lambda i, j, k: (k, j)),
                pl.BlockSpec((1, tn), lambda i, j, k: (0, j)),
            ],
            out_specs=pl.BlockSpec((tm, tn), lambda i, j, k: (i, j)),
            scratch_shapes=scratch,
        ),
        compiler_params=pltpu.CompilerParams(
            dimension_semantics=("parallel", "parallel", "arbitrary"),
            vmem_limit_bytes=32 * 1024 * 1024),
        cost_estimate=cost,
    )(patches, w, bias)
    return out[:M]


def _proj_l2norm_kernel(x_ref, w_ref, b_ref, o_ref):
    y = jnp.dot(x_ref[...], w_ref[...],
                preferred_element_type=jnp.float32) + b_ref[...]
    # F.normalize(p=2, eps=1e-12): rsqrt goes to the EUP slot instead of sqrt+div
    inv = jax.lax.rsqrt(jnp.sum(y * y, axis=-1, keepdims=True) + 1e-24)
    o_ref[...] = y * inv


def project_and_normalize(x, w, b):
    M, K = x.shape
    N = w.shape[1]
    Mp = max(8, _round_up(M, 8))
    if Mp != M:
        x = jnp.pad(x, ((0, Mp - M), (0, 0)))
    out = pl.pallas_call(
        _proj_l2norm_kernel,
        out_shape=jax.ShapeDtypeStruct((Mp, N), jnp.float32),
        in_specs=[pl.BlockSpec(memory_space=pltpu.MemorySpace.VMEM)] * 3,
        out_specs=pl.BlockSpec(memory_space=pltpu.MemorySpace.VMEM),
    )(x, w, b)
    return out[:M]


# ----------------------------------------------------------------------------
# plain-JAX glue: voxelization + tap-pruned im2col (data movement only)
# ----------------------------------------------------------------------------
def voxelize(points, voxel_size, grid_size):
    """points: (B, Npts, C) with xyz in the first 3 channels -> dense grid.
    TODO(synk): duplicate voxel indices pick an unspecified 'winner' (XLA scatter);
                MinkowskiEngine deduplicates coordinates on quantization."""
    B, Np, C = points.shape
    coords = jnp.floor(points[..., :3] / voxel_size).astype(jnp.int32)
    coords = jnp.clip(coords, 0, grid_size - 1)
    grid = jnp.zeros((B, grid_size, grid_size, grid_size, C), jnp.float32)
    b_idx = jnp.broadcast_to(jnp.arange(B, dtype=jnp.int32)[:, None], (B, Np))
    grid = grid.at[b_idx, coords[..., 0], coords[..., 1], coords[..., 2]].set(
        points.astype(jnp.float32))
    return grid


def im2col_taps(x, stride, taps):
    """x: (B, D, H, W, C) bf16.  Gathers ONLY the statically valid 3x3x3 taps
    (pad 1) -> (B*Do*Ho*Wo, len(taps)*C) patches plus the output spatial shape."""
    B, D, H, W, C = x.shape
    g = jnp.pad(x, ((0, 0), (1, 1), (1, 1), (1, 1), (0, 0)))
    Do = (D - 1) // stride + 1
    Ho = (H - 1) // stride + 1
    Wo = (W - 1) // stride + 1
    slabs = []
    for (dz, dy, dx) in taps:
        sl = g[:,
               dz:dz + (Do - 1) * stride + 1:stride,
               dy:dy + (Ho - 1) * stride + 1:stride,
               dx:dx + (Wo - 1) * stride + 1:stride, :]
        slabs.append(sl)
    patches = jnp.stack(slabs, axis=4)                 # (B,Do,Ho,Wo,ntap,C)
    patches = patches.reshape(B * Do * Ho * Wo, len(taps) * C)
    return patches, (Do, Ho, Wo)


# ----------------------------------------------------------------------------
# deterministic parameter init + one-time weight packing (synthetic weights)
# ----------------------------------------------------------------------------
def init_params(key, in_channels=6, feature_dim=512, grid_size=8):
    plan = _layer_plan(in_channels, grid_size)
    keys = jax.random.split(key, 5 * 5 + 2)
    eps = 1e-5
    convs = []
    for i, lp in enumerate(plan):
        cin, cout = lp["cin"], lp["cout"]
        cin_p, cout_p = lp["cin_p"], lp["cout_p"]
        kw, kg, kb, km, kv = keys[5 * i:5 * i + 5]
        w = jax.random.normal(kw, (27, cin, cout), jnp.float32) / math.sqrt(27 * cin)
        gamma = 1.0 + 0.1 * jax.random.normal(kg, (cout,), jnp.float32)
        beta = 0.1 * jax.random.normal(kb, (cout,), jnp.float32)
        mean = 0.1 * jax.random.normal(km, (cout,), jnp.float32)
        var = jnp.abs(1.0 + 0.1 * jax.random.normal(kv, (cout,), jnp.float32))
        scale = gamma / jnp.sqrt(var + eps)          # BN folded into scale/bias
        bias = beta - mean * scale

        # ---- one-time packing for the Pallas kernel (hoisted out of forward) ----
        # 1) prune taps that never touch data, 2) fold BN scale into the weight,
        # 3) pad cin/cout to lane-dense widths, 4) bf16-cast the HBM weight stream.
        tap_ids = jnp.array([dz * 9 + dy * 3 + dx for (dz, dy, dx) in lp["taps"]],
                            dtype=jnp.int32)
        w_sel = w[tap_ids] * scale[None, None, :]    # (ntap, cin, cout)
        w_full = jnp.zeros((len(lp["taps"]), cin_p, cout_p), jnp.float32)
        w_full = w_full.at[:, :cin, :cout].set(w_sel)
        w2d = w_full.reshape(lp["k_true"], cout_p)
        if lp["kp"] != lp["k_true"]:
            w2d = jnp.pad(w2d, ((0, lp["kp"] - lp["k_true"]), (0, 0)))
        w2d = w2d.astype(jnp.bfloat16)
        bias_p = jnp.zeros((1, cout_p), jnp.float32).at[0, :cout].set(bias)
        convs.append({"w": w2d, "bias": bias_p})     # arrays only (jit-safe)

    combined = sum(_CHANNELS)                        # 1984 == 1792 + 64 + 128
    combined_p = sum(_round_up(c, 128) for c in _CHANNELS)   # 2048 (padded concat)
    kpw, kpb = keys[-2:]
    proj_w = jax.random.normal(kpw, (combined, feature_dim), jnp.float32) / math.sqrt(combined)
    proj_b = 0.01 * jax.random.normal(kpb, (feature_dim,), jnp.float32)
    # repack proj_w rows to the padded-concat layout (zero rows under padded chans)
    proj_w_p = jnp.zeros((combined_p, feature_dim), jnp.float32)
    src = dst = 0
    for c in _CHANNELS:
        proj_w_p = proj_w_p.at[dst:dst + c].set(proj_w[src:src + c])
        src += c
        dst += _round_up(c, 128)
    return {"convs": convs,
            "proj_w": proj_w_p.astype(jnp.bfloat16),
            "proj_b": proj_b.reshape(1, feature_dim)}


# ----------------------------------------------------------------------------
# forward pass
# ----------------------------------------------------------------------------
def voxel_feature_extractor(points, params, voxel_size=0.02, grid_size=8):
    in_channels = points.shape[-1]
    plan = _layer_plan(in_channels, grid_size)       # static metadata (Python ints)
    single_tc = _single_tensorcore()

    x = voxelize(points, voxel_size, grid_size).astype(jnp.bfloat16)
    B = x.shape[0]
    pooled = []
    for layer, lp in zip(params["convs"], plan):
        patches, (Do, Ho, Wo) = im2col_taps(x, lp["stride"], lp["taps"])
        y = fused_conv_bn_relu(patches, layer["w"], layer["bias"],
                               single_tc=single_tc, relu=True)   # (M, cout_p) bf16
        x = y.reshape(B, Do, Ho, Wo, lp["cout_p"])
        # Global max pooling: trivial reduction, left to XLA so it fuses with the
        # reshape instead of paying an extra kernel launch + HBM round trip.
        pooled.append(jnp.max(x.reshape(B, Do * Ho * Wo, lp["cout_p"]), axis=1))
    combined = jnp.concatenate(pooled, axis=1)       # (B, 2048) padded-concat, bf16
    return project_and_normalize(combined, params["proj_w"], params["proj_b"])


# ----------------------------------------------------------------------------
if __name__ == "__main__":
    key = jax.random.PRNGKey(0)
    B, NPTS, CIN, GRID = 2, 64, 6, 8
    VOXEL_SIZE, FEAT_DIM = 0.02, 512

    kpts, kparams = jax.random.split(key)
    points = jax.random.uniform(kpts, (B, NPTS, CIN), jnp.float32)
    # place xyz inside the voxel grid extent
    points = points.at[..., :3].multiply(GRID * VOXEL_SIZE * 0.999)

    params = init_params(kparams, in_channels=CIN, feature_dim=FEAT_DIM,
                         grid_size=GRID)

    fwd = jax.jit(functools.partial(voxel_feature_extractor,
                                    voxel_size=VOXEL_SIZE, grid_size=GRID))
    out = fwd(points, params)
    out = jax.block_until_ready(out)
    assert out.shape == (B, FEAT_DIM), out.shape
    # rows are L2-normalized
    norms = jnp.linalg.norm(out, axis=1)
    assert bool(jnp.all(jnp.abs(norms - 1.0) < 1e-2)), norms
    print("KERNEL_OK")
</pallas_src>

<mosaic_0001>
module attributes {stable_mosaic.version = 11 : i64} {
  func.func @_matmul_bias_relu_kernel(%arg0: i32, %arg1: i32, %arg2: i32, %arg3: memref<512x256xbf16, #tpu.memory_space<vmem>>, %arg4: memref<256x128xbf16, #tpu.memory_space<vmem>>, %arg5: memref<1x128xf32, #tpu.memory_space<vmem>>, %arg6: memref<512x128xbf16, #tpu.memory_space<vmem>>) attributes {dimension_semantics = [#tpu.dimension_semantics<parallel>, #tpu.dimension_semantics<parallel>, #tpu.dimension_semantics<arbitrary>], iteration_bounds = array<i64: 2, 1, 1>, scalar_prefetch = 0 : i64, scratch_operands = 0 : i64, tpu.core_type = #tpu.core_type<tc>, window_params = [{transform_indices = @transform_0, window_bounds = array<i64: 512, 256>}, {transform_indices = @transform_1, window_bounds = array<i64: 256, 128>}, {transform_indices = @transform_2, window_bounds = array<i64: 1, 128>}, {transform_indices = @transform_3, window_bounds = array<i64: 512, 128>}]} {
    %c0 = arith.constant 0 : index
    %c0_0 = arith.constant 0 : index
    %0 = vector.load %arg3[%c0, %c0_0] : memref<512x256xbf16, #tpu.memory_space<vmem>>, vector<512x256xbf16>
    %c0_1 = arith.constant 0 : index
    %c0_2 = arith.constant 0 : index
    %1 = vector.load %arg4[%c0_1, %c0_2] : memref<256x128xbf16, #tpu.memory_space<vmem>>, vector<256x128xbf16>
    %cst = arith.constant dense<0.000000e+00> : vector<512x128xf32>
    %2 = tpu.matmul %0, %1, %cst {dimension_numbers = #tpu.dot_dimension_numbers<[1], [0], [0], [1], [0, 0, 1, 1], [], []>} : vector<512x256xbf16>, vector<256x128xbf16>, vector<512x128xf32> -> vector<512x128xf32>
    %c0_3 = arith.constant 0 : index
    %c0_4 = arith.constant 0 : index
    %3 = vector.load %arg5[%c0_3, %c0_4] : memref<1x128xf32, #tpu.memory_space<vmem>>, vector<1x128xf32>
    %4 = vector.broadcast %3 : vector<1x128xf32> to vector<512x128xf32>
    %5 = arith.addf %2, %4 : vector<512x128xf32>
    %cst_5 = arith.constant 0.000000e+00 : f32
    %6 = vector.broadcast %cst_5 : f32 to vector<512x128xf32>
    %7 = arith.maximumf %5, %6 : vector<512x128xf32>
    %8 = arith.truncf %7 : vector<512x128xf32> to vector<512x128xbf16>
    %c0_6 = arith.constant 0 : index
    %c0_7 = arith.constant 0 : index
    %9 = vector.load %arg6[%c0_6, %c0_7] : memref<512x128xbf16, #tpu.memory_space<vmem>>, vector<512x128xbf16>
    tpu.vector_store %arg6[%c0_6, %c0_7], %8 {strides = array<i32>} : memref<512x128xbf16, #tpu.memory_space<vmem>>, vector<512x128xbf16>,
    return
  }
  func.func @transform_0(%arg0: i32, %arg1: i32, %arg2: i32) -> (i32, i32) {
    %c0_i32 = arith.constant 0 : i32
    return %arg0, %arg2 : i32, i32
  }
  func.func @transform_1(%arg0: i32, %arg1: i32, %arg2: i32) -> (i32, i32) {
    %c0_i32 = arith.constant 0 : i32
    return %arg2, %arg1 : i32, i32
  }
  func.func @transform_2(%arg0: i32, %arg1: i32, %arg2: i32) -> (i32, i32) {
    %c0_i32 = arith.constant 0 : i32
    %c0_i32_0 = arith.constant 0 : i32
    return %c0_i32, %arg1 : i32, i32
  }
  func.func @transform_3(%arg0: i32, %arg1: i32, %arg2: i32) -> (i32, i32) {
    %c0_i32 = arith.constant 0 : i32
    return %arg0, %arg1 : i32, i32
  }
}

module attributes {stable_mosaic.version = 11 : i64} {
  func.func @_matmul_bias_relu_kernel(%arg0: i32, %arg1: i32, %arg2: i32, %arg3: memref<64x3456xbf16, #tpu.memory_space<vmem>>, %arg4: memref<3456x128xbf16, #tpu.memory_space<vmem>>, %arg5: memref<1x128xf32, #tpu.memory_space<vmem>>, %arg6: memref<64x128xbf16, #tpu.memory_space<vmem>>) attributes {dimension_semantics = [#tpu.dimension_semantics<parallel>, #tpu.dimension_semantics<parallel>, #tpu.dimension_semantics<arbitrary>], iteration_bounds = array<i64: 2, 1, 1>, scalar_prefetch = 0 : i64, scratch_operands = 0 : i64, tpu.core_type = #tpu.core_type<tc>, window_params = [{transform_indices = @transform_0, window_bounds = array<i64: 64, 3456>}, {transform_indices = @transform_1, window_bounds = array<i64: 3456, 128>}, {transform_indices = @transform_2, window_bounds = array<i64: 1, 128>}, {transform_indices = @transform_3, window_bounds = array<i64: 64, 128>}]} {
    %c0 = arith.constant 0 : index
    %c0_0 = arith.constant 0 : index
    %0 = vector.load %arg3[%c0, %c0_0] : memref<64x3456xbf16, #tpu.memory_space<vmem>>, vector<64x3456xbf16>
    %c0_1 = arith.constant 0 : index
    %c0_2 = arith.constant 0 : index
    %1 = vector.load %arg4[%c0_1, %c0_2] : memref<3456x128xbf16, #tpu.memory_space<vmem>>, vector<3456x128xbf16>
    %cst = arith.constant dense<0.000000e+00> : vector<64x128xf32>
    %2 = tpu.matmul %0, %1, %cst {dimension_numbers = #tpu.dot_dimension_numbers<[1], [0], [0], [1], [0, 0, 1, 1], [], []>} : vector<64x3456xbf16>, vector<3456x128xbf16>, vector<64x128xf32> -> vector<64x128xf32>
    %c0_3 = arith.constant 0 : index
    %c0_4 = arith.constant 0 : index
    %3 = vector.load %arg5[%c0_3, %c0_4] : memref<1x128xf32, #tpu.memory_space<vmem>>, vector<1x128xf32>
    %4 = vector.broadcast %3 : vector<1x128xf32> to vector<64x128xf32>
    %5 = arith.addf %2, %4 : vector<64x128xf32>
    %cst_5 = arith.constant 0.000000e+00 : f32
    %6 = vector.broadcast %cst_5 : f32 to vector<64x128xf32>
    %7 = arith.maximumf %5, %6 : vector<64x128xf32>
    %8 = arith.truncf %7 : vector<64x128xf32> to vector<64x128xbf16>
    %c0_6 = arith.constant 0 : index
    %c0_7 = arith.constant 0 : index
    %9 = vector.load %arg6[%c0_6, %c0_7] : memref<64x128xbf16, #tpu.memory_space<vmem>>, vector<64x128xbf16>
    tpu.vector_store %arg6[%c0_6, %c0_7], %8 {strides = array<i32>} : memref<64x128xbf16, #tpu.memory_space<vmem>>, vector<64x128xbf16>,
    return
  }
  func.func @transform_0(%arg0: i32, %arg1: i32, %arg2: i32) -> (i32, i32) {
    %c0_i32 = arith.constant 0 : i32
    return %arg0, %arg2 : i32, i32
  }
  func.func @transform_1(%arg0: i32, %arg1: i32, %arg2: i32) -> (i32, i32) {
    %c0_i32 = arith.constant 0 : i32
    return %arg2, %arg1 : i32, i32
  }
  func.func @transform_2(%arg0: i32, %arg1: i32, %arg2: i32) -> (i32, i32) {
    %c0_i32 = arith.constant 0 : i32
    %c0_i32_0 = arith.constant 0 : i32
    return %c0_i32, %arg1 : i32, i32
  }
  func.func @transform_3(%arg0: i32, %arg1: i32, %arg2: i32) -> (i32, i32) {
    %c0_i32 = arith.constant 0 : i32
    return %arg0, %arg1 : i32, i32
  }
}

module attributes {stable_mosaic.version = 11 : i64} {
  func.func @_matmul_bias_relu_kernel(%arg0: i32, %arg1: i32, %arg2: i32, %arg3: memref<16x3456xbf16, #tpu.memory_space<vmem>>, %arg4: memref<3456x128xbf16, #tpu.memory_space<vmem>>, %arg5: memref<1x128xf32, #tpu.memory_space<vmem>>, %arg6: memref<16x128xbf16, #tpu.memory_space<vmem>>) attributes {dimension_semantics = [#tpu.dimension_semantics<parallel>, #tpu.dimension_semantics<parallel>, #tpu.dimension_semantics<arbitrary>], iteration_bounds = array<i64: 1, 2, 1>, scalar_prefetch = 0 : i64, scratch_operands = 0 : i64, tpu.core_type = #tpu.core_type<tc>, window_params = [{transform_indices = @transform_0, window_bounds = array<i64: 16, 3456>}, {transform_indices = @transform_1, window_bounds = array<i64: 3456, 128>}, {transform_indices = @transform_2, window_bounds = array<i64: 1, 128>}, {transform_indices = @transform_3, window_bounds = array<i64: 16, 128>}]} {
    %c0 = arith.constant 0 : index
    %c0_0 = arith.constant 0 : index
    %0 = vector.load %arg3[%c0, %c0_0] : memref<16x3456xbf16, #tpu.memory_space<vmem>>, vector<16x3456xbf16>
    %c0_1 = arith.constant 0 : index
    %c0_2 = arith.constant 0 : index
    %1 = vector.load %arg4[%c0_1, %c0_2] : memref<3456x128xbf16, #tpu.memory_space<vmem>>, vector<3456x128xbf16>
    %cst = arith.constant dense<0.000000e+00> : vector<16x128xf32>
    %2 = tpu.matmul %0, %1, %cst {dimension_numbers = #tpu.dot_dimension_numbers<[1], [0], [0], [1], [0, 0, 1, 1], [], []>} : vector<16x3456xbf16>, vector<3456x128xbf16>, vector<16x128xf32> -> vector<16x128xf32>
    %c0_3 = arith.constant 0 : index
    %c0_4 = arith.constant 0 : index
    %3 = vector.load %arg5[%c0_3, %c0_4] : memref<1x128xf32, #tpu.memory_space<vmem>>, vector<1x128xf32>
    %4 = vector.broadcast %3 : vector<1x128xf32> to vector<16x128xf32>
    %5 = arith.addf %2, %4 : vector<16x128xf32>
    %cst_5 = arith.constant 0.000000e+00 : f32
    %6 = vector.broadcast %cst_5 : f32 to vector<16x128xf32>
    %7 = arith.maximumf %5, %6 : vector<16x128xf32>
    %8 = arith.truncf %7 : vector<16x128xf32> to vector<16x128xbf16>
    %c0_6 = arith.constant 0 : index
    %c0_7 = arith.constant 0 : index
    %9 = vector.load %arg6[%c0_6, %c0_7] : memref<16x128xbf16, #tpu.memory_space<vmem>>, vector<16x128xbf16>
    tpu.vector_store %arg6[%c0_6, %c0_7], %8 {strides = array<i32>} : memref<16x128xbf16, #tpu.memory_space<vmem>>, vector<16x128xbf16>,
    return
  }
  func.func @transform_0(%arg0: i32, %arg1: i32, %arg2: i32) -> (i32, i32) {
    %c0_i32 = arith.constant 0 : i32
    return %arg0, %arg2 : i32, i32
  }
  func.func @transform_1(%arg0: i32, %arg1: i32, %arg2: i32) -> (i32, i32) {
    %c0_i32 = arith.constant 0 : i32
    return %arg2, %arg1 : i32, i32
  }
  func.func @transform_2(%arg0: i32, %arg1: i32, %arg2: i32) -> (i32, i32) {
    %c0_i32 = arith.constant 0 : i32
    %c0_i32_0 = arith.constant 0 : i32
    return %c0_i32, %arg1 : i32, i32
  }
  func.func @transform_3(%arg0: i32, %arg1: i32, %arg2: i32) -> (i32, i32) {
    %c0_i32 = arith.constant 0 : i32
    return %arg0, %arg1 : i32, i32
  }
}

module attributes {stable_mosaic.version = 11 : i64} {
  func.func @_matmul_bias_relu_kernel(%arg0: i32, %arg1: i32, %arg2: i32, %arg3: memref<16x2048xbf16, #tpu.memory_space<vmem>>, %arg4: memref<2048x256xbf16, #tpu.memory_space<vmem>>, %arg5: memref<1x256xf32, #tpu.memory_space<vmem>>, %arg6: memref<16x256xbf16, #tpu.memory_space<vmem>>) attributes {dimension_semantics = [#tpu.dimension_semantics<parallel>, #tpu.dimension_semantics<parallel>, #tpu.dimension_semantics<arbitrary>], iteration_bounds = array<i64: 1, 2, 1>, scalar_prefetch = 0 : i64, scratch_operands = 0 : i64, tpu.core_type = #tpu.core_type<tc>, window_params = [{transform_indices = @transform_0, window_bounds = array<i64: 16, 2048>}, {transform_indices = @transform_1, window_bounds = array<i64: 2048, 256>}, {transform_indices = @transform_2, window_bounds = array<i64: 1, 256>}, {transform_indices = @transform_3, window_bounds = array<i64: 16, 256>}]} {
    %c0 = arith.constant 0 : index
    %c0_0 = arith.constant 0 : index
    %0 = vector.load %arg3[%c0, %c0_0] : memref<16x2048xbf16, #tpu.memory_space<vmem>>, vector<16x2048xbf16>
    %c0_1 = arith.constant 0 : index
    %c0_2 = arith.constant 0 : index
    %1 = vector.load %arg4[%c0_1, %c0_2] : memref<2048x256xbf16, #tpu.memory_space<vmem>>, vector<2048x256xbf16>
    %cst = arith.constant dense<0.000000e+00> : vector<16x256xf32>
    %2 = tpu.matmul %0, %1, %cst {dimension_numbers = #tpu.dot_dimension_numbers<[1], [0], [0], [1], [0, 0, 1, 1], [], []>} : vector<16x2048xbf16>, vector<2048x256xbf16>, vector<16x256xf32> -> vector<16x256xf32>
    %c0_3 = arith.constant 0 : index
    %c0_4 = arith.constant 0 : index
    %3 = vector.load %arg5[%c0_3, %c0_4] : memref<1x256xf32, #tpu.memory_space<vmem>>, vector<1x256xf32>
    %4 = vector.broadcast %3 : vector<1x256xf32> to vector<16x256xf32>
    %5 = arith.addf %2, %4 : vector<16x256xf32>
    %cst_5 = arith.constant 0.000000e+00 : f32
    %6 = vector.broadcast %cst_5 : f32 to vector<16x256xf32>
    %7 = arith.maximumf %5, %6 : vector<16x256xf32>
    %8 = arith.truncf %7 : vector<16x256xf32> to vector<16x256xbf16>
    %c0_6 = arith.constant 0 : index
    %c0_7 = arith.constant 0 : index
    %9 = vector.load %arg6[%c0_6, %c0_7] : memref<16x256xbf16, #tpu.memory_space<vmem>>, vector<16x256xbf16>
    tpu.vector_store %arg6[%c0_6, %c0_7], %8 {strides = array<i32>} : memref<16x256xbf16, #tpu.memory_space<vmem>>, vector<16x256xbf16>,
    return
  }
  func.func @transform_0(%arg0: i32, %arg1: i32, %arg2: i32) -> (i32, i32) {
    %c0_i32 = arith.constant 0 : i32
    return %arg0, %arg2 : i32, i32
  }
  func.func @transform_1(%arg0: i32, %arg1: i32, %arg2: i32) -> (i32, i32) {
    %c0_i32 = arith.constant 0 : i32
    return %arg2, %arg1 : i32, i32
  }
  func.func @transform_2(%arg0: i32, %arg1: i32, %arg2: i32) -> (i32, i32) {
    %c0_i32 = arith.constant 0 : i32
    %c0_i32_0 = arith.constant 0 : i32
    return %c0_i32, %arg1 : i32, i32
  }
  func.func @transform_3(%arg0: i32, %arg1: i32, %arg2: i32) -> (i32, i32) {
    %c0_i32 = arith.constant 0 : i32
    return %arg0, %arg1 : i32, i32
  }
}

module attributes {stable_mosaic.version = 11 : i64} {
  func.func @_matmul_bias_relu_kernel(%arg0: i32, %arg1: i32, %arg2: i32, %arg3: memref<16x512xbf16, #tpu.memory_space<vmem>>, %arg4: memref<512x512xbf16, #tpu.memory_space<vmem>>, %arg5: memref<1x512xf32, #tpu.memory_space<vmem>>, %arg6: memref<16x512xbf16, #tpu.memory_space<vmem>>) attributes {dimension_semantics = [#tpu.dimension_semantics<parallel>, #tpu.dimension_semantics<parallel>, #tpu.dimension_semantics<arbitrary>], iteration_bounds = array<i64: 1, 2, 1>, scalar_prefetch = 0 : i64, scratch_operands = 0 : i64, tpu.core_type = #tpu.core_type<tc>, window_params = [{transform_indices = @transform_0, window_bounds = array<i64: 16, 512>}, {transform_indices = @transform_1, window_bounds = array<i64: 512, 512>}, {transform_indices = @transform_2, window_bounds = array<i64: 1, 512>}, {transform_indices = @transform_3, window_bounds = array<i64: 16, 512>}]} {
    %c0 = arith.constant 0 : index
    %c0_0 = arith.constant 0 : index
    %0 = vector.load %arg3[%c0, %c0_0] : memref<16x512xbf16, #tpu.memory_space<vmem>>, vector<16x512xbf16>
    %c0_1 = arith.constant 0 : index
    %c0_2 = arith.constant 0 : index
    %1 = vector.load %arg4[%c0_1, %c0_2] : memref<512x512xbf16, #tpu.memory_space<vmem>>, vector<512x512xbf16>
    %cst = arith.constant dense<0.000000e+00> : vector<16x512xf32>
    %2 = tpu.matmul %0, %1, %cst {dimension_numbers = #tpu.dot_dimension_numbers<[1], [0], [0], [1], [0, 0, 1, 1], [], []>} : vector<16x512xbf16>, vector<512x512xbf16>, vector<16x512xf32> -> vector<16x512xf32>
    %c0_3 = arith.constant 0 : index
    %c0_4 = arith.constant 0 : index
    %3 = vector.load %arg5[%c0_3, %c0_4] : memref<1x512xf32, #tpu.memory_space<vmem>>, vector<1x512xf32>
    %4 = vector.broadcast %3 : vector<1x512xf32> to vector<16x512xf32>
    %5 = arith.addf %2, %4 : vector<16x512xf32>
    %cst_5 = arith.constant 0.000000e+00 : f32
    %6 = vector.broadcast %cst_5 : f32 to vector<16x512xf32>
    %7 = arith.maximumf %5, %6 : vector<16x512xf32>
    %8 = arith.truncf %7 : vector<16x512xf32> to vector<16x512xbf16>
    %c0_6 = arith.constant 0 : index
    %c0_7 = arith.constant 0 : index
    %9 = vector.load %arg6[%c0_6, %c0_7] : memref<16x512xbf16, #tpu.memory_space<vmem>>, vector<16x512xbf16>
    tpu.vector_store %arg6[%c0_6, %c0_7], %8 {strides = array<i32>} : memref<16x512xbf16, #tpu.memory_space<vmem>>, vector<16x512xbf16>,
    return
  }
  func.func @transform_0(%arg0: i32, %arg1: i32, %arg2: i32) -> (i32, i32) {
    %c0_i32 = arith.constant 0 : i32
    return %arg0, %arg2 : i32, i32
  }
  func.func @transform_1(%arg0: i32, %arg1: i32, %arg2: i32) -> (i32, i32) {
    %c0_i32 = arith.constant 0 : i32
    return %arg2, %arg1 : i32, i32
  }
  func.func @transform_2(%arg0: i32, %arg1: i32, %arg2: i32) -> (i32, i32) {
    %c0_i32 = arith.constant 0 : i32
    %c0_i32_0 = arith.constant 0 : i32
    return %c0_i32, %arg1 : i32, i32
  }
  func.func @transform_3(%arg0: i32, %arg1: i32, %arg2: i32) -> (i32, i32) {
    %c0_i32 = arith.constant 0 : i32
    return %arg0, %arg1 : i32, i32
  }
}

module attributes {stable_mosaic.version = 11 : i64} {
  func.func @_proj_l2norm_kernel(%arg0: memref<8x2048xbf16, #tpu.memory_space<vmem>>, %arg1: memref<2048x512xbf16, #tpu.memory_space<vmem>>, %arg2: memref<1x512xf32, #tpu.memory_space<vmem>>, %arg3: memref<8x512xf32, #tpu.memory_space<vmem>>) attributes {dimension_semantics = [], scalar_prefetch = 0 : i64, scratch_operands = 0 : i64, tpu.core_type = #tpu.core_type<tc>} {
    %c0 = arith.constant 0 : index
    %c0_0 = arith.constant 0 : index
    %0 = vector.load %arg0[%c0, %c0_0] : memref<8x2048xbf16, #tpu.memory_space<vmem>>, vector<8x2048xbf16>
    %c0_1 = arith.constant 0 : index
    %c0_2 = arith.constant 0 : index
    %1 = vector.load %arg1[%c0_1, %c0_2] : memref<2048x512xbf16, #tpu.memory_space<vmem>>, vector<2048x512xbf16>
    %cst = arith.constant dense<0.000000e+00> : vector<8x512xf32>
    %2 = tpu.matmul %0, %1, %cst {dimension_numbers = #tpu.dot_dimension_numbers<[1], [0], [0], [1], [0, 0, 1, 1], [], []>} : vector<8x2048xbf16>, vector<2048x512xbf16>, vector<8x512xf32> -> vector<8x512xf32>
    %c0_3 = arith.constant 0 : index
    %c0_4 = arith.constant 0 : index
    %3 = vector.load %arg2[%c0_3, %c0_4] : memref<1x512xf32, #tpu.memory_space<vmem>>, vector<1x512xf32>
    %4 = vector.broadcast %3 : vector<1x512xf32> to vector<8x512xf32>
    %5 = arith.addf %2, %4 : vector<8x512xf32>
    %6 = arith.mulf %5, %5 : vector<8x512xf32>
    %cst_5 = arith.constant dense<0.000000e+00> : vector<8xf32>
    %7 = vector.multi_reduction <add>, %6, %cst_5 [1] : vector<8x512xf32> to vector<8xf32>
    %8 = vector.shape_cast %7 : vector<8xf32> to vector<8x1xf32>
    %cst_6 = arith.constant 1.000000e-24 : f32
    %9 = vector.broadcast %cst_6 : f32 to vector<8x1xf32>
    %10 = arith.addf %8, %9 : vector<8x1xf32>
    %11 = math.rsqrt %10 : vector<8x1xf32>
    %12 = vector.broadcast %11 : vector<8x1xf32> to vector<8x512xf32>
    %13 = arith.mulf %5, %12 : vector<8x512xf32>
    %c0_7 = arith.constant 0 : index
    %c0_8 = arith.constant 0 : index
    %14 = vector.load %arg3[%c0_7, %c0_8] : memref<8x512xf32, #tpu.memory_space<vmem>>, vector<8x512xf32>
    tpu.vector_store %arg3[%c0_7, %c0_8], %13 {strides = array<i32>} : memref<8x512xf32, #tpu.memory_space<vmem>>, vector<8x512xf32>,
    return
  }
}

</mosaic_0001>

<bundles_post_ra>
// kernel: voxel_feature_extractor.6
= control target key start
LH: loop header
LB: loop body
LE: loop exit
PB: predicated region body
PF: predicated region fallthrough
CT: control target
= control target key end

     0   :  { %s2203_s12 = smov 0   ;;  %s2205_s13 = smov 0   ;;  %s2489_s0 = inlined_call_operand.vmem [shape: bf16[1024,256], index: 0, kind: input, shape index: {}]   ;;  %s2490_s1 = inlined_call_operand.vmem [shape: bf16[256,128], index: 1, kind: input, shape index: {}]   ;;  %s2491_s2 = inlined_call_operand.vmem [shape: f32[1,128], index: 2, kind: input, shape index: {}]   ;;  %s2492_s3 = inlined_call_operand.vmem [shape: bf16[1024,128], index: 3, kind: output, shape index: {}]  }
   0x1   :  { %s2207_s14 = smov 0  }
   0x2 LB: > { %s32_s15 = sadd.s32 1, %s2176_s13  ;;  %p1580_p0 = scmp.ge.s32.totalorder %s2180_s14, 1  ;;  %s2180_s14 = sphi %s2207_s14, %s13_s14   ;;  %s2176_s13 = sphi %s2205_s13, %s2494_s13   ;;  %s2172_s12 = sphi %s2203_s12, %s2493_s12  }
   0x3   : > { %p34_p1 = scmp.ge.s32.totalorder %s32_s15, 2  ;;  %p191_p2 = scmp.lt.s32.totalorder %s2180_s14, 3 }
   0x5   : > { %s2496_s15 = smov (%p34_p1, %s32_s15), 0  ;;  %p192_p3 = pnand %p1580_p0, %p191_p2 }
   0x6   : > { %v2046_v0 = vld [vmem:[%s2490_s1] sm:$0xff] (!%p192_p3)   ;;  %v2182_v1 = vmov (!%p192_p3), 0   ;;  %s1581_s18 = sshll.u32 (!%p192_p3), %s2172_s12, 6  ;;  %v2047_v2 = vld [vmem:[%s2490_s1 + $0x8] sm:$0xff] (!%p192_p3)   ;;  %v2048_v3 = vld [vmem:[%s2490_s1 + $0x10] sm:$0xff] (!%p192_p3)  }
   0x7   : > { %195 = sbr.rel (%p192_p3) target bundleno = 412 (0x19c), region = 32  ;;  %787 = vmatprep.subr.bf16.mxu0 (!%p192_p3), %v2182_v1  ;;  %1989 = vmatprep.subr.bf16.mxu1 (!%p192_p3), %v2182_v1  ;;  %p236_p4 = scmp.lt.s32.totalorder (!%p192_p3), %s1581_s18, 127  ;;  %v2049_v4 = vld [vmem:[%s2490_s1 + $0x18] sm:$0xff] (!%p192_p3)   ;;  %v2050_v5 = vld [vmem:[%s2490_s1 + $0x20] sm:$0xff] (!%p192_p3)   ;;  %v2051_v7 = vld [vmem:[%s2490_s1 + $0x28] sm:$0xff] (!%p192_p3)  }
   0x8   : > { %788 = vmatpush1.bf16.msra.mxu0 (!%p192_p3), %v2046_v0  ;;  %2005 = vmatpush1.bf16.msra.mxu1 (!%p192_p3), %v2046_v0  ;;  %v2052_v9 = vld [vmem:[%s2490_s1 + $0x30] sm:$0xff] (!%p192_p3)   ;;  %v2053_v10 = vld [vmem:[%s2490_s1 + $0x38] sm:$0xff] (!%p192_p3)   ;;  %v2054_v11 = vld [vmem:[%s2490_s1 + $0x40] sm:$0xff] (!%p192_p3)  }
   0x9   : > { %789 = vmatprep.subr.bf16.mxu0 (!%p192_p3), %v2182_v1  ;;  %1990 = vmatprep.subr.bf16.mxu1 (!%p192_p3), %v2182_v1  ;;  %v2055_v12 = vld [vmem:[%s2490_s1 + $0x48] sm:$0xff] (!%p192_p3)   ;;  %v2056_v13 = vld [vmem:[%s2490_s1 + $0x50] sm:$0xff] (!%p192_p3)   ;;  %v2057_v14 = vld [vmem:[%s2490_s1 + $0x58] sm:$0xff] (!%p192_p3)  }
   0xa   : > { %v2058_v15 = vld [vmem:[%s2490_s1 + $0x60] sm:$0xff] (!%p192_p3)   ;;  %v2059_v16 = vld [vmem:[%s2490_s1 + $0x68] sm:$0xff] (!%p192_p3)   ;;  %v2060_v17 = vld [vmem:[%s2490_s1 + $0x70] sm:$0xff] (!%p192_p3)  }
   0xb   : > { %v2061_v18 = vld [vmem:[%s2490_s1 + $0x78] sm:$0xff] (!%p192_p3)  }
   0xc   : > { %790 = vmatpush1.bf16.msra.mxu0 (!%p192_p3), %v2047_v2  ;;  %2006 = vmatpush1.bf16.msra.mxu1 (!%p192_p3), %v2047_v2 }
   0xd   : > { %791 = vmatprep.subr.bf16.mxu0 (!%p192_p3), %v2182_v1  ;;  %1991 = vmatprep.subr.bf16.mxu1 (!%p192_p3), %v2182_v1 }
   0xe   : > { %s2498_s18 = smov (!%p236_p4, %s1581_s18), 127 }
   0xf   : > { %s1733_s25 = sshll.u32 %s2498_s18, 3  ;;  %s1585_s6 = sshll.u32 %s2498_s18, 2 }
  0x10   : > { %792 = vmatpush1.bf16.msra.mxu0 %v2048_v3  ;;  %2007 = vmatpush1.bf16.msra.mxu1 %v2048_v3  ;;  %s2250_s30 = scalar_lea.vmem %s2489_s0, %s1733_s25  ;;  %s2386_s8 = scalar_lea.vmem %s2492_s3, %s1585_s6 }
  0x11   : > { %793 = vmatprep.subr.bf16.mxu0 %v2182_v1  ;;  %1992 = vmatprep.subr.bf16.mxu1 %v2182_v1  ;;  %v2064_v6 = vld [vmem:[%s2250_s30 + $0x4] ss:$8 sps:$4 sm:$0xff]   ;;  %v2062_v19 = vld [vmem:[%s2250_s30] ss:$8 sps:$4 sm:$0xff]   ;;  %v2068_v21 = vld [vmem:[%s2250_s30 + $0x14] ss:$8 sps:$4 sm:$0xff]  }
  0x12   : > { %v2067_v8 = vld [vmem:[%s2250_s30 + $0x104] ss:$8 sps:$4 sm:$0xff]   ;;  %819 = vmatprep.mubr.bf16.mxu0 %v2064_v6  ;;  %v2065_v20 = vld [vmem:[%s2250_s30 + $0x100] ss:$8 sps:$4 sm:$0xff]   ;;  %v2070_v22 = vld [vmem:[%s2250_s30 + $0x114] ss:$8 sps:$4 sm:$0xff]  }
  0x13   : > { %947 = vmatprep.mubr.bf16.mxu1 %v2067_v8  ;;  %v2072_v23 = vld [vmem:[%s2250_s30 + $0x10] ss:$8 sps:$4 sm:$0xff]   ;;  %v2074_v25 = vld [vmem:[%s2250_s30 + $0x24] ss:$8 sps:$4 sm:$0xff]   ;;  %v2078_v27 = vld [vmem:[%s2250_s30 + $0x20] ss:$8 sps:$4 sm:$0xff]  }
  0x14   : > { %794 = vmatpush1.bf16.msra.mxu0 %v2049_v4  ;;  %2008 = vmatpush1.bf16.msra.mxu1 %v2049_v4  ;;  %v2073_v24 = vld [vmem:[%s2250_s30 + $0x110] ss:$8 sps:$4 sm:$0xff]   ;;  %v2076_v26 = vld [vmem:[%s2250_s30 + $0x124] ss:$8 sps:$4 sm:$0xff]   ;;  %v2079_v28 = vld [vmem:[%s2250_s30 + $0x120] ss:$8 sps:$4 sm:$0xff]  }
  0x15   : > { %795 = vmatprep.subr.bf16.mxu0 %v2182_v1  ;;  %1993 = vmatprep.subr.bf16.mxu1 %v2182_v1  ;;  %v2080_v29 = vld [vmem:[%s2250_s30 + $0x34] ss:$8 sps:$4 sm:$0xff]   ;;  %v2084_v31 = vld [vmem:[%s2250_s30 + $0x30] ss:$8 sps:$4 sm:$0xff]   ;;  %v2086_v33 = vld [vmem:[%s2250_s30 + $0x44] ss:$8 sps:$4 sm:$0xff]  }
  0x16   : > { %v2082_v30 = vld [vmem:[%s2250_s30 + $0x134] ss:$8 sps:$4 sm:$0xff]   ;;  %v2085_v32 = vld [vmem:[%s2250_s30 + $0x130] ss:$8 sps:$4 sm:$0xff]   ;;  %v2088_v34 = vld [vmem:[%s2250_s30 + $0x144] ss:$8 sps:$4 sm:$0xff]  }
  0x17   : > { %v2090_v35 = vld [vmem:[%s2250_s30 + $0x40] ss:$8 sps:$4 sm:$0xff]   ;;  %v2092_v37 = vld [vmem:[%s2250_s30 + $0x54] ss:$8 sps:$4 sm:$0xff]   ;;  %v2096_v39 = vld [vmem:[%s2250_s30 + $0x50] ss:$8 sps:$4 sm:$0xff]  }
  0x18   : > { %796 = vmatpush1.bf16.msra.mxu0 %v2050_v5  ;;  %2009 = vmatpush1.bf16.msra.mxu1 %v2050_v5  ;;  %v2091_v36 = vld [vmem:[%s2250_s30 + $0x140] ss:$8 sps:$4 sm:$0xff]   ;;  %v2094_v38 = vld [vmem:[%s2250_s30 + $0x154] ss:$8 sps:$4 sm:$0xff]   ;;  %v2097_v40 = vld [vmem:[%s2250_s30 + $0x150] ss:$8 sps:$4 sm:$0xff]  }
  0x19   : > { %797 = vmatprep.subr.bf16.mxu0 %v2182_v1  ;;  %1994 = vmatprep.subr.bf16.mxu1 %v2182_v1  ;;  %v2098_v41 = vld [vmem:[%s2250_s30 + $0x64] ss:$8 sps:$4 sm:$0xff]   ;;  %v2102_v43 = vld [vmem:[%s2250_s30 + $0x60] ss:$8 sps:$4 sm:$0xff]   ;;  %v2104_v45 = vld [vmem:[%s2250_s30 + $0x74] ss:$8 sps:$4 sm:$0xff]  }
  0x1a   : > { %v2100_v42 = vld [vmem:[%s2250_s30 + $0x164] ss:$8 sps:$4 sm:$0xff]   ;;  %v2103_v44 = vld [vmem:[%s2250_s30 + $0x160] ss:$8 sps:$4 sm:$0xff]   ;;  %v2106_v46 = vld [vmem:[%s2250_s30 + $0x174] ss:$8 sps:$4 sm:$0xff]  }
  0x1b   : > { %v2108_v47 = vld [vmem:[%s2250_s30 + $0x70] ss:$8 sps:$4 sm:$0xff]   ;;  %v2110_v49 = vld [vmem:[%s2250_s30 + $0x84] ss:$8 sps:$4 sm:$0xff]   ;;  %v2114_v51 = vld [vmem:[%s2250_s30 + $0x80] ss:$8 sps:$4 sm:$0xff]  }
  0x1c   : > { %798 = vmatpush1.bf16.msra.mxu0 %v2051_v7  ;;  %2010 = vmatpush1.bf16.msra.mxu1 %v2051_v7  ;;  %v2109_v48 = vld [vmem:[%s2250_s30 + $0x170] ss:$8 sps:$4 sm:$0xff]   ;;  %v2112_v50 = vld [vmem:[%s2250_s30 + $0x184] ss:$8 sps:$4 sm:$0xff]   ;;  %v2115_v52 = vld [vmem:[%s2250_s30 + $0x180] ss:$8 sps:$4 sm:$0xff]  }
  0x1d   : > { %799 = vmatprep.subr.bf16.mxu0 %v2182_v1  ;;  %1995 = vmatprep.subr.bf16.mxu1 %v2182_v1  ;;  %v2116_v53 = vld [vmem:[%s2250_s30 + $0x94] ss:$8 sps:$4 sm:$0xff]   ;;  %v2120_v55 = vld [vmem:[%s2250_s30 + $0x90] ss:$8 sps:$4 sm:$0xff]   ;;  %v2122_v57 = vld [vmem:[%s2250_s30 + $0xa4] ss:$8 sps:$4 sm:$0xff]  }
  0x1e   : > { %v2118_v54 = vld [vmem:[%s2250_s30 + $0x194] ss:$8 sps:$4 sm:$0xff]   ;;  %v2121_v56 = vld [vmem:[%s2250_s30 + $0x190] ss:$8 sps:$4 sm:$0xff]   ;;  %v2124_v58 = vld [vmem:[%s2250_s30 + $0x1a4] ss:$8 sps:$4 sm:$0xff]  }
  0x1f   : > { %v2126_v59 = vld [vmem:[%s2250_s30 + $0xa0] ss:$8 sps:$4 sm:$0xff]   ;;  %v2128_v61 = vld [vmem:[%s2250_s30 + $0xb4] ss:$8 sps:$4 sm:$0xff]   ;;  %v2132_v63 = vld [vmem:[%s2250_s30 + $0xb0] ss:$8 sps:$4 sm:$0xff]  }
  0x20   : > { %800 = vmatpush1.bf16.msra.mxu0 %v2052_v9  ;;  %2011 = vmatpush1.bf16.msra.mxu1 %v2052_v9  ;;  %v2127_v60 = vld [vmem:[%s2250_s30 + $0x1a0] ss:$8 sps:$4 sm:$0xff]   ;;  %v2130_v62 = vld [vmem:[%s2250_s30 + $0x1b4] ss:$8 sps:$4 sm:$0xff]   ;;  %v2133_v0 = vld [vmem:[%s2250_s30 + $0x1b0] ss:$8 sps:$4 sm:$0xff]  }
  0x21   : > { %801 = vmatprep.subr.bf16.mxu0 %v2182_v1  ;;  %1996 = vmatprep.subr.bf16.mxu1 %v2182_v1  ;;  %v2136_v2 = vld [vmem:[%s2250_s30 + $0x1c4] ss:$8 sps:$4 sm:$0xff]   ;;  %v2138_v3 = vld [vmem:[%s2250_s30 + $0xc0] ss:$8 sps:$4 sm:$0xff]   ;;  %v2140_v5 = vld [vmem:[%s2250_s30 + $0xd4] ss:$8 sps:$4 sm:$0xff]  }
  0x22   : > { %v2139_v4 = vld [vmem:[%s2250_s30 + $0x1c0] ss:$8 sps:$4 sm:$0xff]   ;;  %v2142_v6 = vld [vmem:[%s2250_s30 + $0x1d4] ss:$8 sps:$4 sm:$0xff]   ;;  %v2144_v7 = vld [vmem:[%s2250_s30 + $0xd0] ss:$8 sps:$4 sm:$0xff]  }
  0x23   : > { %v2145_v8 = vld [vmem:[%s2250_s30 + $0x1d0] ss:$8 sps:$4 sm:$0xff]   ;;  %v2146_v9 = vld [vmem:[%s2250_s30 + $0xe4] ss:$8 sps:$4 sm:$0xff]  }
  0x24   : > { %802 = vmatpush1.bf16.msra.mxu0 %v2053_v10  ;;  %2012 = vmatpush1.bf16.msra.mxu1 %v2053_v10  ;;  %v2148_v10 = vld [vmem:[%s2250_s30 + $0x1e4] ss:$8 sps:$4 sm:$0xff]  }
  0x25   : > { %803 = vmatprep.subr.bf16.mxu0 %v2182_v1  ;;  %1997 = vmatprep.subr.bf16.mxu1 %v2182_v1 }
  0x28   : > { %804 = vmatpush1.bf16.msra.mxu0 %v2054_v11  ;;  %2013 = vmatpush1.bf16.msra.mxu1 %v2054_v11  ;;  %v2150_v11 = vld [vmem:[%s2250_s30 + $0xe0] ss:$8 sps:$4 sm:$0xff]  }
  0x29   : > { %805 = vmatprep.subr.bf16.mxu0 %v2182_v1  ;;  %1998 = vmatprep.subr.bf16.mxu1 %v2182_v1 }
  0x2c   : > { %806 = vmatpush1.bf16.msra.mxu0 %v2055_v12  ;;  %2014 = vmatpush1.bf16.msra.mxu1 %v2055_v12  ;;  %v2151_v12 = vld [vmem:[%s2250_s30 + $0x1e0] ss:$8 sps:$4 sm:$0xff]  }
  0x2d   : > { %807 = vmatprep.subr.bf16.mxu0 %v2182_v1  ;;  %1999 = vmatprep.subr.bf16.mxu1 %v2182_v1 }
  0x30   : > { %808 = vmatpush1.bf16.msra.mxu0 %v2056_v13  ;;  %2015 = vmatpush1.bf16.msra.mxu1 %v2056_v13  ;;  %v2152_v13 = vld [vmem:[%s2250_s30 + $0xf4] ss:$8 sps:$4 sm:$0xff]  }
  0x31   : > { %809 = vmatprep.subr.bf16.mxu0 %v2182_v1  ;;  %2000 = vmatprep.subr.bf16.mxu1 %v2182_v1 }
  0x34   : > { %810 = vmatpush1.bf16.msra.mxu0 %v2057_v14  ;;  %2016 = vmatpush1.bf16.msra.mxu1 %v2057_v14  ;;  %v2154_v14 = vld [vmem:[%s2250_s30 + $0x1f4] ss:$8 sps:$4 sm:$0xff]  }
  0x35   : > { %811 = vmatprep.subr.bf16.mxu0 %v2182_v1  ;;  %2001 = vmatprep.subr.bf16.mxu1 %v2182_v1 }
  0x38   : > { %812 = vmatpush1.bf16.msra.mxu0 %v2058_v15  ;;  %2017 = vmatpush1.bf16.msra.mxu1 %v2058_v15  ;;  %v2156_v15 = vld [vmem:[%s2250_s30 + $0xf0] ss:$8 sps:$4 sm:$0xff]  }
  0x39   : > { %813 = vmatprep.subr.bf16.mxu0 %v2182_v1  ;;  %2002 = vmatprep.subr.bf16.mxu1 %v2182_v1 }
  0x3c   : > { %814 = vmatpush1.bf16.msra.mxu0 %v2059_v16  ;;  %2018 = vmatpush1.bf16.msra.mxu1 %v2059_v16  ;;  %v2157_v16 = vld [vmem:[%s2250_s30 + $0x1f0] ss:$8 sps:$4 sm:$0xff]  }
  0x3d   : > { %815 = vmatprep.subr.bf16.mxu0 %v2182_v1  ;;  %2003 = vmatprep.subr.bf16.mxu1 %v2182_v1 }
  0x40   : > { %816 = vmatpush1.bf16.msra.mxu0 %v2060_v17  ;;  %2019 = vmatpush1.bf16.msra.mxu1 %v2060_v17  ;;  %v2376_v17 = vld [vmem:[%s2491_s2] ss:$0 sm:$0xff] }
  0x41   : > { %817 = vmatprep.subr.bf16.mxu0 %v2182_v1  ;;  %2004 = vmatprep.subr.bf16.mxu1 %v2182_v1  ;;  %v2134_v1 = vld [vmem:[%s2250_s30 + $0xc4] ss:$8 sps:$4 sm:$0xff]  }
  0x44   : > { %818 = vmatpush1.bf16.msra.mxu0 %v2061_v18  ;;  %2020 = vmatpush1.bf16.msra.mxu1 %v2061_v18 }
  0x47   : > { %820 = vmatmul.mubr.bf16.vlgmr.msra.gmra.mrb[0].mxu0 %v2062_v19  ;;  %948 = vmatmul.mubr.bf16.vlgmr.msra.gmra.mrb[0].mxu1 %v2065_v20 }
  0x48   : > { %827 = vmatprep.mubr.bf16.mxu0 %v2068_v21  ;;  %955 = vmatprep.mubr.bf16.mxu1 %v2070_v22 }
  0x4f   : > { %828 = vmatmul.mubr.bf16.gmra.mrb[4].mxu0 %v2072_v23  ;;  %956 = vmatmul.mubr.bf16.gmra.mrb[4].mxu1 %v2073_v24 }
  0x50   : > { %835 = vmatprep.mubr.bf16.mxu0 %v2074_v25  ;;  %963 = vmatprep.mubr.bf16.mxu1 %v2076_v26 }
  0x57   : > { %836 = vmatmul.mubr.bf16.gmra.mrb[8].mxu0 %v2078_v27  ;;  %964 = vmatmul.mubr.bf16.gmra.mrb[8].mxu1 %v2079_v28 }
  0x58   : > { %843 = vmatprep.mubr.bf16.mxu0 %v2080_v29  ;;  %971 = vmatprep.mubr.bf16.mxu1 %v2082_v30 }
  0x5f   : > { %844 = vmatmul.mubr.bf16.gmra.mrb[12].mxu0 %v2084_v31  ;;  %972 = vmatmul.mubr.bf16.gmra.mrb[12].mxu1 %v2085_v32 }
  0x60   : > { %851 = vmatprep.mubr.bf16.mxu0 %v2086_v33  ;;  %979 = vmatprep.mubr.bf16.mxu1 %v2088_v34 }
  0x67   : > { %852 = vmatmul.mubr.bf16.gmra.mrb[16].mxu0 %v2090_v35  ;;  %980 = vmatmul.mubr.bf16.gmra.mrb[16].mxu1 %v2091_v36 }
  0x68   : > { %859 = vmatprep.mubr.bf16.mxu0 %v2092_v37  ;;  %987 = vmatprep.mubr.bf16.mxu1 %v2094_v38 }
  0x6f   : > { %860 = vmatmul.mubr.bf16.gmra.mrb[20].mxu0 %v2096_v39  ;;  %988 = vmatmul.mubr.bf16.gmra.mrb[20].mxu1 %v2097_v40 }
  0x70   : > { %867 = vmatprep.mubr.bf16.mxu0 %v2098_v41  ;;  %995 = vmatprep.mubr.bf16.mxu1 %v2100_v42 }
  0x77   : > { %868 = vmatmul.mubr.bf16.gmra.mrb[24].mxu0 %v2102_v43  ;;  %996 = vmatmul.mubr.bf16.gmra.mrb[24].mxu1 %v2103_v44 }
  0x78   : > { %875 = vmatprep.mubr.bf16.mxu0 %v2104_v45  ;;  %1003 = vmatprep.mubr.bf16.mxu1 %v2106_v46 }
  0x7f   : > { %876 = vmatmul.mubr.bf16.gmra.mrb[28].mxu0 %v2108_v47  ;;  %1004 = vmatmul.mubr.bf16.gmra.mrb[28].mxu1 %v2109_v48 }
  0x80   : > { %883 = vmatprep.mubr.bf16.mxu0 %v2110_v49  ;;  %1011 = vmatprep.mubr.bf16.mxu1 %v2112_v50 }
  0x87   : > { %884 = vmatmul.mubr.bf16.gmra.mrb[32].mxu0 %v2114_v51  ;;  %1012 = vmatmul.mubr.bf16.gmra.mrb[32].mxu1 %v2115_v52 }
  0x88   : > { %891 = vmatprep.mubr.bf16.mxu0 %v2116_v53  ;;  %1019 = vmatprep.mubr.bf16.mxu1 %v2118_v54 }
  0x8f   : > { %892 = vmatmul.mubr.bf16.gmra.mrb[36].mxu0 %v2120_v55  ;;  %1020 = vmatmul.mubr.bf16.gmra.mrb[36].mxu1 %v2121_v56 }
  0x90   : > { %899 = vmatprep.mubr.bf16.mxu0 %v2122_v57  ;;  %1027 = vmatprep.mubr.bf16.mxu1 %v2124_v58 }
  0x97   : > { %900 = vmatmul.mubr.bf16.gmra.mrb[40].mxu0 %v2126_v59  ;;  %1028 = vmatmul.mubr.bf16.gmra.mrb[40].mxu1 %v2127_v60 }
  0x98   : > { %907 = vmatprep.mubr.bf16.mxu0 %v2128_v61  ;;  %1035 = vmatprep.mubr.bf16.mxu1 %v2130_v62 }
  0x9f   : > { %908 = vmatmul.mubr.bf16.gmra.mrb[44].mxu0 %v2132_v63  ;;  %1036 = vmatmul.mubr.bf16.gmra.mrb[44].mxu1 %v2133_v0 }
  0xa0   : > { %915 = vmatprep.mubr.bf16.mxu0 %v2134_v1  ;;  %1043 = vmatprep.mubr.bf16.mxu1 %v2136_v2 }
  0xa7   : > { %916 = vmatmul.mubr.bf16.gmra.mrb[48].mxu0 %v2138_v3  ;;  %1044 = vmatmul.mubr.bf16.gmra.mrb[48].mxu1 %v2139_v4 }
  0xa8   : > { %923 = vmatprep.mubr.bf16.mxu0 %v2140_v5  ;;  %1051 = vmatprep.mubr.bf16.mxu1 %v2142_v6 }
  0xaf   : > { %924 = vmatmul.mubr.bf16.gmra.mrb[52].mxu0 %v2144_v7  ;;  %1052 = vmatmul.mubr.bf16.gmra.mrb[52].mxu1 %v2145_v8 }
  0xb0   : > { %931 = vmatprep.mubr.bf16.mxu0 %v2146_v9  ;;  %1059 = vmatprep.mubr.bf16.mxu1 %v2148_v10 }
  0xb7   : > { %932 = vmatmul.mubr.bf16.gmra.mrb[56].mxu0 %v2150_v11  ;;  %1060 = vmatmul.mubr.bf16.gmra.mrb[56].mxu1 %v2151_v12 }
  0xb8   : > { %939 = vmatprep.mubr.bf16.mxu0 %v2152_v13  ;;  %1067 = vmatprep.mubr.bf16.mxu1 %v2154_v14 }
  0xbf   : > { %940 = vmatmul.mubr.bf16.gmra.mrb[60].mxu0 %v2156_v15  ;;  %1068 = vmatmul.mubr.bf16.gmra.mrb[60].mxu1 %v2157_v16 }
 0x11a   : > { %v821_v18 = vpop.f32.mrb[0].mxu0  ;;  %v949_v19 = vpop.f32.mrb[0].mxu1 }
 0x11b   : > { %v822_v20 = vadd.f32 %v2376_v17, %v821_v18  ;;  %v950_v21 = vadd.f32 %v2376_v17, %v949_v19  ;;  %v823_v22 = vpop.f32.mrb[1].mxu0  ;;  %v951_v23 = vpop.f32.mrb[1].mxu1 }
 0x11c   : > { %v824_v24 = vpop.f32.mrb[2].mxu0  ;;  %v952_v25 = vpop.f32.mrb[2].mxu1 }
 0x11d   : > { %v825_v26 = vadd.f32 %v2376_v17, %v824_v24  ;;  %v953_v27 = vadd.f32 %v2376_v17, %v952_v25  ;;  %v826_v28 = vpop.f32.mrb[3].mxu0  ;;  %v954_v29 = vpop.f32.mrb[3].mxu1  ;;  %v1076_v30 = vmax.f32 %v822_v20, 0.0  ;;  %v1108_v31 = vmax.f32 %v950_v21, 0.0 }
 0x11f   : > { %v1077_v32 = vmax.f32 %v825_v26, 0.0  ;;  %v1109_v33 = vmax.f32 %v953_v27, 0.0 }
 0x121   : > { %v1801_v34 = vpack.c.bf16 %v1077_v32, %v1076_v30  ;;  %v1881_v35 = vpack.c.bf16 %v1109_v33, %v1108_v31 }
 0x122   : > { %v829_v36 = vpop.f32.mrb[4].mxu0  ;;  %v957_v37 = vpop.f32.mrb[4].mxu1 }
 0x123   : > { %1802 = vst [vmem:[%s2386_s8] sm:$0xff] %v1801_v34   ;;  %1973 = vst [vmem:[%s2386_s8 + $0x80] sm:$0xff] %v1881_v35   ;;  %v830_v38 = vadd.f32 %v2376_v17, %v829_v36  ;;  %v958_v39 = vadd.f32 %v2376_v17, %v957_v37  ;;  %v831_v40 = vpop.f32.mrb[5].mxu0  ;;  %v959_v41 = vpop.f32.mrb[5].mxu1 }
 0x124   : > { %v832_v42 = vpop.f32.mrb[6].mxu0  ;;  %v960_v43 = vpop.f32.mrb[6].mxu1 }
 0x125   : > { %v833_v44 = vadd.f32 %v2376_v17, %v832_v42  ;;  %v961_v45 = vadd.f32 %v2376_v17, %v960_v43  ;;  %v834_v46 = vpop.f32.mrb[7].mxu0  ;;  %v962_v47 = vpop.f32.mrb[7].mxu1  ;;  %v1078_v48 = vmax.f32 %v830_v38, 0.0  ;;  %v1110_v49 = vmax.f32 %v958_v39, 0.0 }
 0x127   : > { %v1079_v50 = vmax.f32 %v833_v44, 0.0  ;;  %v1111_v51 = vmax.f32 %v961_v45, 0.0 }
 0x129   : > { %v1806_v52 = vpack.c.bf16 %v1079_v50, %v1078_v48  ;;  %v1886_v53 = vpack.c.bf16 %v1111_v51, %v1110_v49 }
 0x12a   : > { %v837_v54 = vpop.f32.mrb[8].mxu0  ;;  %v965_v55 = vpop.f32.mrb[8].mxu1 }
 0x12b   : > { %1958 = vst [vmem:[%s2386_s8 + $0x8] sm:$0xff] %v1806_v52   ;;  %1974 = vst [vmem:[%s2386_s8 + $0x88] sm:$0xff] %v1886_v53   ;;  %v838_v56 = vadd.f32 %v2376_v17, %v837_v54  ;;  %v966_v57 = vadd.f32 %v2376_v17, %v965_v55  ;;  %v839_v58 = vpop.f32.mrb[9].mxu0  ;;  %v967_v59 = vpop.f32.mrb[9].mxu1 }
 0x12c   : > { %v840_v60 = vpop.f32.mrb[10].mxu0  ;;  %v968_v61 = vpop.f32.mrb[10].mxu1 }
 0x12d   : > { %v841_v62 = vadd.f32 %v2376_v17, %v840_v60  ;;  %v969_v63 = vadd.f32 %v2376_v17, %v968_v61  ;;  %v842_v0 = vpop.f32.mrb[11].mxu0  ;;  %v970_v1 = vpop.f32.mrb[11].mxu1  ;;  %v1080_v2 = vmax.f32 %v838_v56, 0.0  ;;  %v1112_v3 = vmax.f32 %v966_v57, 0.0 }
 0x12f   : > { %v1081_v4 = vmax.f32 %v841_v62, 0.0  ;;  %v1113_v5 = vmax.f32 %v969_v63, 0.0 }
 0x131   : > { %v1811_v6 = vpack.c.bf16 %v1081_v4, %v1080_v2  ;;  %v1891_v7 = vpack.c.bf16 %v1113_v5, %v1112_v3 }
 0x132   : > { %v845_v8 = vpop.f32.mrb[12].mxu0  ;;  %v973_v9 = vpop.f32.mrb[12].mxu1 }
 0x133   : > { %1959 = vst [vmem:[%s2386_s8 + $0x10] sm:$0xff] %v1811_v6   ;;  %1975 = vst [vmem:[%s2386_s8 + $0x90] sm:$0xff] %v1891_v7   ;;  %v846_v10 = vadd.f32 %v2376_v17, %v845_v8  ;;  %v974_v11 = vadd.f32 %v2376_v17, %v973_v9  ;;  %v847_v12 = vpop.f32.mrb[13].mxu0  ;;  %v975_v13 = vpop.f32.mrb[13].mxu1 }
 0x134   : > { %v848_v14 = vpop.f32.mrb[14].mxu0  ;;  %v976_v15 = vpop.f32.mrb[14].mxu1 }
 0x135   : > { %v849_v16 = vadd.f32 %v2376_v17, %v848_v14  ;;  %v977_v18 = vadd.f32 %v2376_v17, %v976_v15  ;;  %v850_v19 = vpop.f32.mrb[15].mxu0  ;;  %v978_v20 = vpop.f32.mrb[15].mxu1  ;;  %v1082_v21 = vmax.f32 %v846_v10, 0.0  ;;  %v1114_v22 = vmax.f32 %v974_v11, 0.0 }
 0x137   : > { %v1083_v23 = vmax.f32 %v849_v16, 0.0  ;;  %v1115_v24 = vmax.f32 %v977_v18, 0.0 }
 0x139   : > { %v1816_v25 = vpack.c.bf16 %v1083_v23, %v1082_v21  ;;  %v1896_v26 = vpack.c.bf16 %v1115_v24, %v1114_v22 }
 0x13a   : > { %v853_v27 = vpop.f32.mrb[16].mxu0  ;;  %v981_v28 = vpop.f32.mrb[16].mxu1 }
 0x13b   : > { %1960 = vst [vmem:[%s2386_s8 + $0x18] sm:$0xff] %v1816_v25   ;;  %1976 = vst [vmem:[%s2386_s8 + $0x98] sm:$0xff] %v1896_v26   ;;  %v854_v29 = vadd.f32 %v2376_v17, %v853_v27  ;;  %v982_v30 = vadd.f32 %v2376_v17, %v981_v28  ;;  %v855_v31 = vpop.f32.mrb[17].mxu0  ;;  %v983_v32 = vpop.f32.mrb[17].mxu1 }
 0x13c   : > { %v856_v33 = vpop.f32.mrb[18].mxu0  ;;  %v984_v34 = vpop.f32.mrb[18].mxu1 }
 0x13d   : > { %v857_v35 = vadd.f32 %v2376_v17, %v856_v33  ;;  %v985_v36 = vadd.f32 %v2376_v17, %v984_v34  ;;  %v858_v37 = vpop.f32.mrb[19].mxu0  ;;  %v986_v38 = vpop.f32.mrb[19].mxu1  ;;  %v1084_v39 = vmax.f32 %v854_v29, 0.0  ;;  %v1116_v40 = vmax.f32 %v982_v30, 0.0 }
 0x13f   : > { %v1085_v41 = vmax.f32 %v857_v35, 0.0  ;;  %v1117_v42 = vmax.f32 %v985_v36, 0.0 }
 0x141   : > { %v1821_v43 = vpack.c.bf16 %v1085_v41, %v1084_v39  ;;  %v1901_v44 = vpack.c.bf16 %v1117_v42, %v1116_v40 }
 0x142   : > { %v861_v45 = vpop.f32.mrb[20].mxu0  ;;  %v989_v46 = vpop.f32.mrb[20].mxu1 }
 0x143   : > { %1961 = vst [vmem:[%s2386_s8 + $0x20] sm:$0xff] %v1821_v43   ;;  %1977 = vst [vmem:[%s2386_s8 + $0xa0] sm:$0xff] %v1901_v44   ;;  %v862_v47 = vadd.f32 %v2376_v17, %v861_v45  ;;  %v990_v48 = vadd.f32 %v2376_v17, %v989_v46  ;;  %v863_v49 = vpop.f32.mrb[21].mxu0  ;;  %v991_v50 = vpop.f32.mrb[21].mxu1 }
 0x144   : > { %v864_v51 = vpop.f32.mrb[22].mxu0  ;;  %v992_v52 = vpop.f32.mrb[22].mxu1 }
 0x145   : > { %v865_v53 = vadd.f32 %v2376_v17, %v864_v51  ;;  %v993_v54 = vadd.f32 %v2376_v17, %v992_v52  ;;  %v866_v55 = vpop.f32.mrb[23].mxu0  ;;  %v994_v56 = vpop.f32.mrb[23].mxu1  ;;  %v1086_v57 = vmax.f32 %v862_v47, 0.0  ;;  %v1118_v58 = vmax.f32 %v990_v48, 0.0 }
 0x147   : > { %v1087_v59 = vmax.f32 %v865_v53, 0.0  ;;  %v1119_v60 = vmax.f32 %v993_v54, 0.0 }
 0x149   : > { %v1826_v61 = vpack.c.bf16 %v1087_v59, %v1086_v57  ;;  %v1906_v62 = vpack.c.bf16 %v1119_v60, %v1118_v58 }
 0x14a   : > { %v869_v63 = vpop.f32.mrb[24].mxu0  ;;  %v997_v0 = vpop.f32.mrb[24].mxu1 }
 0x14b   : > { %1962 = vst [vmem:[%s2386_s8 + $0x28] sm:$0xff] %v1826_v61   ;;  %1978 = vst [vmem:[%s2386_s8 + $0xa8] sm:$0xff] %v1906_v62   ;;  %v870_v1 = vadd.f32 %v2376_v17, %v869_v63  ;;  %v998_v2 = vadd.f32 %v2376_v17, %v997_v0  ;;  %v871_v3 = vpop.f32.mrb[25].mxu0  ;;  %v999_v4 = vpop.f32.mrb[25].mxu1 }
 0x14c   : > { %v872_v5 = vpop.f32.mrb[26].mxu0  ;;  %v1000_v6 = vpop.f32.mrb[26].mxu1 }
 0x14d   : > { %v873_v7 = vadd.f32 %v2376_v17, %v872_v5  ;;  %v1001_v8 = vadd.f32 %v2376_v17, %v1000_v6  ;;  %v874_v9 = vpop.f32.mrb[27].mxu0  ;;  %v1002_v10 = vpop.f32.mrb[27].mxu1  ;;  %v1088_v11 = vmax.f32 %v870_v1, 0.0  ;;  %v1120_v12 = vmax.f32 %v998_v2, 0.0 }
 0x14f   : > { %v1089_v13 = vmax.f32 %v873_v7, 0.0  ;;  %v1121_v14 = vmax.f32 %v1001_v8, 0.0 }
 0x151   : > { %v1831_v15 = vpack.c.bf16 %v1089_v13, %v1088_v11  ;;  %v1911_v16 = vpack.c.bf16 %v1121_v14, %v1120_v12 }
 0x152   : > { %v877_v18 = vpop.f32.mrb[28].mxu0  ;;  %v1005_v19 = vpop.f32.mrb[28].mxu1 }
 0x153   : > { %1963 = vst [vmem:[%s2386_s8 + $0x30] sm:$0xff] %v1831_v15   ;;  %1979 = vst [vmem:[%s2386_s8 + $0xb0] sm:$0xff] %v1911_v16   ;;  %v878_v20 = vadd.f32 %v2376_v17, %v877_v18  ;;  %v1006_v21 = vadd.f32 %v2376_v17, %v1005_v19  ;;  %v879_v22 = vpop.f32.mrb[29].mxu0  ;;  %v1007_v23 = vpop.f32.mrb[29].mxu1 }
 0x154   : > { %v880_v24 = vpop.f32.mrb[30].mxu0  ;;  %v1008_v25 = vpop.f32.mrb[30].mxu1 }
 0x155   : > { %v881_v26 = vadd.f32 %v2376_v17, %v880_v24  ;;  %v1009_v27 = vadd.f32 %v2376_v17, %v1008_v25  ;;  %v882_v28 = vpop.f32.mrb[31].mxu0  ;;  %v1010_v29 = vpop.f32.mrb[31].mxu1  ;;  %v1090_v30 = vmax.f32 %v878_v20, 0.0  ;;  %v1122_v31 = vmax.f32 %v1006_v21, 0.0 }
 0x157   : > { %v1091_v32 = vmax.f32 %v881_v26, 0.0  ;;  %v1123_v33 = vmax.f32 %v1009_v27, 0.0 }
 0x159   : > { %v1836_v34 = vpack.c.bf16 %v1091_v32, %v1090_v30  ;;  %v1916_v35 = vpack.c.bf16 %v1123_v33, %v1122_v31 }
 0x15a   : > { %v885_v36 = vpop.f32.mrb[32].mxu0  ;;  %v1013_v37 = vpop.f32.mrb[32].mxu1 }
 0x15b   : > { %1964 = vst [vmem:[%s2386_s8 + $0x38] sm:$0xff] %v1836_v34   ;;  %1980 = vst [vmem:[%s2386_s8 + $0xb8] sm:$0xff] %v1916_v35   ;;  %v886_v38 = vadd.f32 %v2376_v17, %v885_v36  ;;  %v1014_v39 = vadd.f32 %v2376_v17, %v1013_v37  ;;  %v887_v40 = vpop.f32.mrb[33].mxu0  ;;  %v1015_v41 = vpop.f32.mrb[33].mxu1 }
 0x15c   : > { %v888_v42 = vpop.f32.mrb[34].mxu0  ;;  %v1016_v43 = vpop.f32.mrb[34].mxu1 }
 0x15d   : > { %v889_v44 = vadd.f32 %v2376_v17, %v888_v42  ;;  %v1017_v45 = vadd.f32 %v2376_v17, %v1016_v43  ;;  %v890_v46 = vpop.f32.mrb[35].mxu0  ;;  %v1018_v47 = vpop.f32.mrb[35].mxu1  ;;  %v1092_v48 = vmax.f32 %v886_v38, 0.0  ;;  %v1124_v49 = vmax.f32 %v1014_v39, 0.0 }
 0x15f   : > { %v1093_v50 = vmax.f32 %v889_v44, 0.0  ;;  %v1125_v51 = vmax.f32 %v1017_v45, 0.0 }
 0x161   : > { %v1841_v52 = vpack.c.bf16 %v1093_v50, %v1092_v48  ;;  %v1921_v53 = vpack.c.bf16 %v1125_v51, %v1124_v49 }
 0x162   : > { %v893_v54 = vpop.f32.mrb[36].mxu0  ;;  %v1021_v55 = vpop.f32.mrb[36].mxu1 }
 0x163   : > { %1965 = vst [vmem:[%s2386_s8 + $0x40] sm:$0xff] %v1841_v52   ;;  %1981 = vst [vmem:[%s2386_s8 + $0xc0] sm:$0xff] %v1921_v53   ;;  %v894_v56 = vadd.f32 %v2376_v17, %v893_v54  ;;  %v1022_v57 = vadd.f32 %v2376_v17, %v1021_v55  ;;  %v895_v58 = vpop.f32.mrb[37].mxu0  ;;  %v1023_v59 = vpop.f32.mrb[37].mxu1 }
 0x164   : > { %v896_v60 = vpop.f32.mrb[38].mxu0  ;;  %v1024_v61 = vpop.f32.mrb[38].mxu1 }
 0x165   : > { %v897_v62 = vadd.f32 %v2376_v17, %v896_v60  ;;  %v1025_v63 = vadd.f32 %v2376_v17, %v1024_v61  ;;  %v898_v0 = vpop.f32.mrb[39].mxu0  ;;  %v1026_v1 = vpop.f32.mrb[39].mxu1  ;;  %v1094_v2 = vmax.f32 %v894_v56, 0.0  ;;  %v1126_v3 = vmax.f32 %v1022_v57, 0.0 }
 0x167   : > { %v1095_v4 = vmax.f32 %v897_v62, 0.0  ;;  %v1127_v5 = vmax.f32 %v1025_v63, 0.0 }
 0x169   : > { %v1846_v6 = vpack.c.bf16 %v1095_v4, %v1094_v2  ;;  %v1926_v7 = vpack.c.bf16 %v1127_v5, %v1126_v3 }
 0x16a   : > { %v901_v8 = vpop.f32.mrb[40].mxu0  ;;  %v1029_v9 = vpop.f32.mrb[40].mxu1 }
 0x16b   : > { %1966 = vst [vmem:[%s2386_s8 + $0x48] sm:$0xff] %v1846_v6   ;;  %1982 = vst [vmem:[%s2386_s8 + $0xc8] sm:$0xff] %v1926_v7   ;;  %v902_v10 = vadd.f32 %v2376_v17, %v901_v8  ;;  %v1030_v11 = vadd.f32 %v2376_v17, %v1029_v9  ;;  %v903_v12 = vpop.f32.mrb[41].mxu0  ;;  %v1031_v13 = vpop.f32.mrb[41].mxu1 }
 0x16c   : > { %v904_v14 = vpop.f32.mrb[42].mxu0  ;;  %v1032_v15 = vpop.f32.mrb[42].mxu1 }
 0x16d   : > { %v905_v16 = vadd.f32 %v2376_v17, %v904_v14  ;;  %v1033_v18 = vadd.f32 %v2376_v17, %v1032_v15  ;;  %v906_v19 = vpop.f32.mrb[43].mxu0  ;;  %v1034_v20 = vpop.f32.mrb[43].mxu1  ;;  %v1096_v21 = vmax.f32 %v902_v10, 0.0  ;;  %v1128_v22 = vmax.f32 %v1030_v11, 0.0 }
 0x16f   : > { %v1097_v23 = vmax.f32 %v905_v16, 0.0  ;;  %v1129_v24 = vmax.f32 %v1033_v18, 0.0 }
 0x171   : > { %v1851_v25 = vpack.c.bf16 %v1097_v23, %v1096_v21  ;;  %v1931_v26 = vpack.c.bf16 %v1129_v24, %v1128_v22 }
 0x172   : > { %v909_v27 = vpop.f32.mrb[44].mxu0  ;;  %v1037_v28 = vpop.f32.mrb[44].mxu1 }
 0x173   : > { %1967 = vst [vmem:[%s2386_s8 + $0x50] sm:$0xff] %v1851_v25   ;;  %1983 = vst [vmem:[%s2386_s8 + $0xd0] sm:$0xff] %v1931_v26   ;;  %v910_v29 = vadd.f32 %v2376_v17, %v909_v27  ;;  %v1038_v30 = vadd.f32 %v2376_v17, %v1037_v28  ;;  %v911_v31 = vpop.f32.mrb[45].mxu0  ;;  %v1039_v32 = vpop.f32.mrb[45].mxu1 }
 0x174   : > { %v912_v33 = vpop.f32.mrb[46].mxu0  ;;  %v1040_v34 = vpop.f32.mrb[46].mxu1 }
 0x175   : > { %v913_v35 = vadd.f32 %v2376_v17, %v912_v33  ;;  %v1041_v36 = vadd.f32 %v2376_v17, %v1040_v34  ;;  %v914_v37 = vpop.f32.mrb[47].mxu0  ;;  %v1042_v38 = vpop.f32.mrb[47].mxu1  ;;  %v1098_v39 = vmax.f32 %v910_v29, 0.0  ;;  %v1130_v40 = vmax.f32 %v1038_v30, 0.0 }
 0x177   : > { %v1099_v41 = vmax.f32 %v913_v35, 0.0  ;;  %v1131_v42 = vmax.f32 %v1041_v36, 0.0 }
 0x179   : > { %v1856_v43 = vpack.c.bf16 %v1099_v41, %v1098_v39  ;;  %v1936_v44 = vpack.c.bf16 %v1131_v42, %v1130_v40 }
 0x17a   : > { %v917_v45 = vpop.f32.mrb[48].mxu0  ;;  %v1045_v46 = vpop.f32.mrb[48].mxu1 }
 0x17b   : > { %1968 = vst [vmem:[%s2386_s8 + $0x58] sm:$0xff] %v1856_v43   ;;  %1984 = vst [vmem:[%s2386_s8 + $0xd8] sm:$0xff] %v1936_v44   ;;  %v918_v47 = vadd.f32 %v2376_v17, %v917_v45  ;;  %v1046_v48 = vadd.f32 %v2376_v17, %v1045_v46  ;;  %v919_v49 = vpop.f32.mrb[49].mxu0  ;;  %v1047_v50 = vpop.f32.mrb[49].mxu1 }
 0x17c   : > { %v920_v51 = vpop.f32.mrb[50].mxu0  ;;  %v1048_v52 = vpop.f32.mrb[50].mxu1 }
 0x17d   : > { %v921_v53 = vadd.f32 %v2376_v17, %v920_v51  ;;  %v1049_v54 = vadd.f32 %v2376_v17, %v1048_v52  ;;  %v922_v55 = vpop.f32.mrb[51].mxu0  ;;  %v1050_v56 = vpop.f32.mrb[51].mxu1  ;;  %v1100_v57 = vmax.f32 %v918_v47, 0.0  ;;  %v1132_v58 = vmax.f32 %v1046_v48, 0.0 }
 0x17f   : > { %v1101_v59 = vmax.f32 %v921_v53, 0.0  ;;  %v1133_v60 = vmax.f32 %v1049_v54, 0.0 }
 0x181   : > { %v1861_v61 = vpack.c.bf16 %v1101_v59, %v1100_v57  ;;  %v1941_v62 = vpack.c.bf16 %v1133_v60, %v1132_v58 }
 0x182   : > { %v925_v63 = vpop.f32.mrb[52].mxu0  ;;  %v1053_v0 = vpop.f32.mrb[52].mxu1 }
 0x183   : > { %1969 = vst [vmem:[%s2386_s8 + $0x60] sm:$0xff] %v1861_v61   ;;  %1985 = vst [vmem:[%s2386_s8 + $0xe0] sm:$0xff] %v1941_v62   ;;  %v926_v1 = vadd.f32 %v2376_v17, %v925_v63  ;;  %v1054_v2 = vadd.f32 %v2376_v17, %v1053_v0  ;;  %v927_v3 = vpop.f32.mrb[53].mxu0  ;;  %v1055_v4 = vpop.f32.mrb[53].mxu1 }
 0x184   : > { %v928_v5 = vpop.f32.mrb[54].mxu0  ;;  %v1056_v6 = vpop.f32.mrb[54].mxu1 }
 0x185   : > { %v929_v7 = vadd.f32 %v2376_v17, %v928_v5  ;;  %v1057_v8 = vadd.f32 %v2376_v17, %v1056_v6  ;;  %v930_v9 = vpop.f32.mrb[55].mxu0  ;;  %v1058_v10 = vpop.f32.mrb[55].mxu1  ;;  %v1102_v11 = vmax.f32 %v926_v1, 0.0  ;;  %v1134_v12 = vmax.f32 %v1054_v2, 0.0 }
 0x187   : > { %v1103_v13 = vmax.f32 %v929_v7, 0.0  ;;  %v1135_v14 = vmax.f32 %v1057_v8, 0.0 }
 0x189   : > { %v1866_v15 = vpack.c.bf16 %v1103_v13, %v1102_v11  ;;  %v1946_v16 = vpack.c.bf16 %v1135_v14, %v1134_v12 }
 0x18a   : > { %v933_v18 = vpop.f32.mrb[56].mxu0  ;;  %v1061_v19 = vpop.f32.mrb[56].mxu1 }
 0x18b   : > { %1970 = vst [vmem:[%s2386_s8 + $0x68] sm:$0xff] %v1866_v15   ;;  %1986 = vst [vmem:[%s2386_s8 + $0xe8] sm:$0xff] %v1946_v16   ;;  %v934_v20 = vadd.f32 %v2376_v17, %v933_v18  ;;  %v1062_v21 = vadd.f32 %v2376_v17, %v1061_v19  ;;  %v935_v22 = vpop.f32.mrb[57].mxu0  ;;  %v1063_v23 = vpop.f32.mrb[57].mxu1 }
 0x18c   : > { %v936_v24 = vpop.f32.mrb[58].mxu0  ;;  %v1064_v25 = vpop.f32.mrb[58].mxu1 }
 0x18d   : > { %v937_v26 = vadd.f32 %v2376_v17, %v936_v24  ;;  %v1065_v27 = vadd.f32 %v2376_v17, %v1064_v25  ;;  %v938_v28 = vpop.f32.mrb[59].mxu0  ;;  %v1066_v29 = vpop.f32.mrb[59].mxu1  ;;  %v1104_v30 = vmax.f32 %v934_v20, 0.0  ;;  %v1136_v31 = vmax.f32 %v1062_v21, 0.0 }
 0x18f   : > { %v1105_v32 = vmax.f32 %v937_v26, 0.0  ;;  %v1137_v33 = vmax.f32 %v1065_v27, 0.0 }
 0x191   : > { %v1871_v34 = vpack.c.bf16 %v1105_v32, %v1104_v30  ;;  %v1951_v35 = vpack.c.bf16 %v1137_v33, %v1136_v31 }
 0x192   : > { %v941_v36 = vpop.f32.mrb[60].mxu0  ;;  %v1069_v37 = vpop.f32.mrb[60].mxu1 }
 0x193   : > { %1971 = vst [vmem:[%s2386_s8 + $0x70] sm:$0xff] %v1871_v34   ;;  %1987 = vst [vmem:[%s2386_s8 + $0xf0] sm:$0xff] %v1951_v35   ;;  %v942_v38 = vadd.f32 %v2376_v17, %v941_v36  ;;  %v1070_v39 = vadd.f32 %v2376_v17, %v1069_v37  ;;  %v943_v40 = vpop.f32.mrb[61].mxu0  ;;  %v1071_v41 = vpop.f32.mrb[61].mxu1 }
 0x194   : > { %v944_v42 = vpop.f32.mrb[62].mxu0  ;;  %v1072_v43 = vpop.f32.mrb[62].mxu1 }
 0x195   : > { %v945_v44 = vadd.f32 %v2376_v17, %v944_v42  ;;  %v1073_v45 = vadd.f32 %v2376_v17, %v1072_v43  ;;  %v946_v46 = vpop.f32.mrb[63].mxu0  ;;  %v1074_v47 = vpop.f32.mrb[63].mxu1  ;;  %v1106_v48 = vmax.f32 %v942_v38, 0.0  ;;  %v1138_v49 = vmax.f32 %v1070_v39, 0.0 }
 0x197   : > { %v1107_v50 = vmax.f32 %v945_v44, 0.0  ;;  %v1139_v51 = vmax.f32 %v1073_v45, 0.0 }
 0x199   : > { %v1876_v52 = vpack.c.bf16 %v1107_v50, %v1106_v48  ;;  %v1956_v53 = vpack.c.bf16 %v1139_v51, %v1138_v49 }
 0x19b   : > { %1972 = vst [vmem:[%s2386_s8 + $0x78] sm:$0xff] %v1876_v52   ;;  %1988 = vst [vmem:[%s2386_s8 + $0xf8] sm:$0xff] %v1956_v53  }
 0x19c PF: > { %s13_s14 = sadd.s32 1, %s2180_s14   ;;  %s2493_s12 = smov %s2176_s13 }
 0x19d   : > { %p10_p5 = scmp.ge.s32.totalorder %s13_s14, 4   ;;  %s2494_s13 = smov %s2496_s15 }
 0x19f   :  { %12 = sbr.rel (!%p10_p5) target bundleno = 2 (0x2), region = 68 }

// kernel: voxel_feature_extractor.7
= control target key start
LH: loop header
LB: loop body
LE: loop exit
PB: predicated region body
PF: predicated region fallthrough
CT: control target
= control target key end

     0   :  { %s5109_s12 = smov 0   ;;  %s5111_s13 = smov 0   ;;  %s5952_s0 = inlined_call_operand.vmem [shape: bf16[128,3456], index: 0, kind: input, shape index: {}]   ;;  %s5953_s1 = inlined_call_operand.vmem [shape: bf16[3456,128], index: 1, kind: input, shape index: {}]   ;;  %s5954_s2 = inlined_call_operand.vmem [shape: f32[1,128], index: 2, kind: input, shape index: {}]   ;;  %s5955_s3 = inlined_call_operand.vmem [shape: bf16[128,128], index: 3, kind: output, shape index: {}]  }
   0x1   :  { %s5113_s14 = smov 0  }
   0x2 LB: > { %s32_s15 = sadd.s32 1, %s5083_s13  ;;  %p3737_p0 = scmp.ge.s32.totalorder %s5087_s14, 1  ;;  %s5087_s14 = sphi %s5113_s14, %s13_s14   ;;  %s5083_s13 = sphi %s5111_s13, %s5957_s13   ;;  %s5079_s12 = sphi %s5109_s12, %s5956_s12  }
   0x3   : > { %p34_p1 = scmp.ge.s32.totalorder %s32_s15, 2  ;;  %p191_p2 = scmp.lt.s32.totalorder %s5087_s14, 3 }
   0x5   : > { %s5959_s15 = smov (%p34_p1, %s32_s15), 0  ;;  %p192_p3 = pnand %p3737_p0, %p191_p2 }
   0x6   : > { %v4689_v0 = vld [vmem:[%s5953_s1 + $0x40] sm:$0xff] (!%p192_p3)   ;;  %v4693_v4 = vld [vmem:[%s5953_s1 + $0x48] sm:$0xff] (!%p192_p3)   ;;  %v4697_v8 = vld [vmem:[%s5953_s1 + $0x50] sm:$0xff] (!%p192_p3)   ;;  %s3738_s21 = sshll.u32 (!%p192_p3), %s5079_s12, 3 }
   0x7   : > { %195 = sbr.rel (%p192_p3) target bundleno = 510 (0x1fe), region = 32  ;;  %v4690_v1 = vld [vmem:[%s5953_s1] sm:$0xff] (!%p192_p3)   ;;  %4108 = vmatprep.subr.bf16.mxu0 (!%p192_p3), %v4689_v0  ;;  %v4694_v5 = vld [vmem:[%s5953_s1 + $0x8] sm:$0xff] (!%p192_p3)   ;;  %v4698_v9 = vld [vmem:[%s5953_s1 + $0x10] sm:$0xff] (!%p192_p3)   ;;  %p236_p4 = scmp.lt.s32.totalorder (!%p192_p3), %s3738_s21, 15 }
   0x8   : > { %v4691_v2 = vld [vmem:[%s5953_s1 + $0xc0] sm:$0xff] (!%p192_p3)   ;;  %4109 = vmatpush3.bf16.msra.mxu0 (!%p192_p3), %v4690_v1  ;;  %v4695_v6 = vld [vmem:[%s5953_s1 + $0xc8] sm:$0xff] (!%p192_p3)   ;;  %v4699_v10 = vld [vmem:[%s5953_s1 + $0xd0] sm:$0xff] (!%p192_p3)  }
   0x9   : > { %v4692_v3 = vld [vmem:[%s5953_s1 + $0x80] sm:$0xff] (!%p192_p3)   ;;  %4148 = vmatprep.subr.bf16.mxu1 (!%p192_p3), %v4691_v2  ;;  %4110 = vmatprep.subr.bf16.mxu0 (!%p192_p3), %v4693_v4  ;;  %v4696_v7 = vld [vmem:[%s5953_s1 + $0x88] sm:$0xff] (!%p192_p3)   ;;  %v4700_v11 = vld [vmem:[%s5953_s1 + $0x90] sm:$0xff] (!%p192_p3)  }
   0xa   : > { %4149 = vmatpush3.bf16.msra.mxu1 (!%p192_p3), %v4692_v3  ;;  %v4701_v12 = vld [vmem:[%s5953_s1 + $0x58] sm:$0xff] (!%p192_p3)   ;;  %v4705_v16 = vld [vmem:[%s5953_s1 + $0x60] sm:$0xff] (!%p192_p3)   ;;  %v4709_v20 = vld [vmem:[%s5953_s1 + $0x68] sm:$0xff] (!%p192_p3)  }
   0xb   : > { %4150 = vmatprep.subr.bf16.mxu1 (!%p192_p3), %v4695_v6  ;;  %v4702_v13 = vld [vmem:[%s5953_s1 + $0x18] sm:$0xff] (!%p192_p3)   ;;  %v4706_v17 = vld [vmem:[%s5953_s1 + $0x20] sm:$0xff] (!%p192_p3)   ;;  %v4710_v21 = vld [vmem:[%s5953_s1 + $0x28] sm:$0xff] (!%p192_p3)  }
   0xc   : > { %4111 = vmatpush3.bf16.msra.mxu0 (!%p192_p3), %v4694_v5  ;;  %v4703_v14 = vld [vmem:[%s5953_s1 + $0xd8] sm:$0xff] (!%p192_p3)   ;;  %v4707_v18 = vld [vmem:[%s5953_s1 + $0xe0] sm:$0xff] (!%p192_p3)   ;;  %v4711_v22 = vld [vmem:[%s5953_s1 + $0xe8] sm:$0xff] (!%p192_p3)  }
   0xd   : > { %4112 = vmatprep.subr.bf16.mxu0 (!%p192_p3), %v4697_v8  ;;  %v4704_v15 = vld [vmem:[%s5953_s1 + $0x98] sm:$0xff] (!%p192_p3)   ;;  %v4708_v19 = vld [vmem:[%s5953_s1 + $0xa0] sm:$0xff] (!%p192_p3)   ;;  %v4712_v23 = vld [vmem:[%s5953_s1 + $0xa8] sm:$0xff] (!%p192_p3)  }
   0xe   : > { %4151 = vmatpush3.bf16.msra.mxu1 %v4696_v7  ;;  %s5961_s21 = smov (!%p236_p4, %s3738_s21), 15  ;;  %v4713_v24 = vld [vmem:[%s5953_s1 + $0x70] sm:$0xff]   ;;  %v4717_v28 = vld [vmem:[%s5953_s1 + $0x78] sm:$0xff]   ;;  %v4724_v34 = vld [vmem:[%s5953_s1 + $0x140] sm:$0xff]  }
   0xf   : > { %4152 = vmatprep.subr.bf16.mxu1 %v4699_v10  ;;  %s4664_s20 = smul.u32 108, %s5961_s21  ;;  %v4714_v25 = vld [vmem:[%s5953_s1 + $0x30] sm:$0xff]   ;;  %v4718_v29 = vld [vmem:[%s5953_s1 + $0x38] sm:$0xff]   ;;  %v4728_v37 = vld [vmem:[%s5953_s1 + $0x100] sm:$0xff]  }
  0x10   : > { %4113 = vmatpush3.bf16.msra.mxu0 %v4698_v9  ;;  %v4715_v26 = vld [vmem:[%s5953_s1 + $0xf0] sm:$0xff]   ;;  %v4719_v30 = vld [vmem:[%s5953_s1 + $0xf8] sm:$0xff]   ;;  %v4729_v38 = vld [vmem:[%s5953_s1 + $0x1c0] sm:$0xff]  }
  0x11   : > { %4114 = vmatprep.subr.bf16.mxu0 %v4701_v12  ;;  %v4716_v27 = vld [vmem:[%s5953_s1 + $0xb0] sm:$0xff]   ;;  %s5223_s4 = scalar_lea.vmem %s5952_s0, %s4664_s20  ;;  %v4723_v33 = vld [vmem:[%s5953_s1 + $0xb8] sm:$0xff]   ;;  %v4730_v39 = vld [vmem:[%s5953_s1 + $0x180] sm:$0xff]  }
  0x12   : > { %4153 = vmatpush3.bf16.msra.mxu1 %v4700_v11  ;;  %v4720_v31 = vld [vmem:[%s5223_s4] ss:$108 sps:$4 sm:$0xff]   ;;  %v4722_v32 = vld [vmem:[%s5223_s4 + $0x4] ss:$108 sps:$4 sm:$0xff]   ;;  %v4725_v35 = vld [vmem:[%s5223_s4 + $0x8] ss:$108 sps:$4 sm:$0xff]  }
  0x13   : > { %4154 = vmatprep.subr.bf16.mxu1 %v4703_v14  ;;  %2691 = vmatprep.mubr.bf16.mxu0 %v4722_v32  ;;  %v4727_v36 = vld [vmem:[%s5223_s4 + $0xc] ss:$108 sps:$4 sm:$0xff]   ;;  %v4734_v43 = vld [vmem:[%s5223_s4 + $0xdc] ss:$108 sps:$4 sm:$0xff]   ;;  %v4738_v46 = vld [vmem:[%s5953_s1 + $0x150] sm:$0xff]  }
  0x14   : > { %4115 = vmatpush3.bf16.msra.mxu0 %v4702_v13  ;;  %2756 = vmatprep.mubr.bf16.mxu1 %v4727_v36  ;;  %v4731_v40 = vld [vmem:[%s5953_s1 + $0x148] sm:$0xff]   ;;  %v4737_v45 = vld [vmem:[%s5223_s4 + $0xd8] ss:$108 sps:$4 sm:$0xff]   ;;  %v4741_v48 = vld [vmem:[%s5953_s1 + $0x110] sm:$0xff]  }
  0x15   : > { %4116 = vmatprep.subr.bf16.mxu0 %v4705_v16  ;;  %v4732_v41 = vld [vmem:[%s5953_s1 + $0x108] sm:$0xff]   ;;  %v4739_v47 = vld [vmem:[%s5223_s4 + $0xe4] ss:$108 sps:$4 sm:$0xff]   ;;  %v4745_v52 = vld [vmem:[%s5953_s1 + $0x158] sm:$0xff]  }
  0x16   : > { %4155 = vmatpush3.bf16.msra.mxu1 %v4704_v15  ;;  %v4733_v42 = vld [vmem:[%s5953_s1 + $0x1c8] sm:$0xff]   ;;  %v4743_v50 = vld [vmem:[%s5953_s1 + $0x1d0] sm:$0xff]   ;;  %v4746_v53 = vld [vmem:[%s5953_s1 + $0x118] sm:$0xff]  }
  0x17   : > { %4156 = vmatprep.subr.bf16.mxu1 %v4707_v18  ;;  %v4736_v44 = vld [vmem:[%s5953_s1 + $0x188] sm:$0xff]   ;;  %v4744_v51 = vld [vmem:[%s5953_s1 + $0x190] sm:$0xff]   ;;  %v4747_v54 = vld [vmem:[%s5953_s1 + $0x1d8] sm:$0xff]  }
  0x18   : > { %4117 = vmatpush3.bf16.msra.mxu0 %v4706_v17  ;;  %v4742_v49 = vld [vmem:[%s5223_s4 + $0xe0] ss:$108 sps:$4 sm:$0xff]   ;;  %v4750_v56 = vld [vmem:[%s5953_s1 + $0x198] sm:$0xff]   ;;  %v4765_v5 = vld [vmem:[%s5223_s4 + $0x288] ss:$108 sps:$4 sm:$0xff]  }
  0x19   : > { %4118 = vmatprep.subr.bf16.mxu0 %v4709_v20  ;;  %v4748_v55 = vld [vmem:[%s5223_s4 + $0x1b4] ss:$108 sps:$4 sm:$0xff]   ;;  %v4751_v57 = vld [vmem:[%s5223_s4 + $0x1b0] ss:$108 sps:$4 sm:$0xff]   ;;  %v4756_v61 = vld [vmem:[%s5223_s4 + $0x1b8] ss:$108 sps:$4 sm:$0xff]  }
  0x1a   : > { %4157 = vmatpush3.bf16.msra.mxu1 %v4708_v19  ;;  %v4752_v58 = vld [vmem:[%s5953_s1 + $0x160] sm:$0xff]   ;;  %v4753_v59 = vld [vmem:[%s5223_s4 + $0x1bc] ss:$108 sps:$4 sm:$0xff]   ;;  %v4762_v3 = vld [vmem:[%s5223_s4 + $0x28c] ss:$108 sps:$4 sm:$0xff]  }
  0x1b   : > { %4158 = vmatprep.subr.bf16.mxu1 %v4711_v22  ;;  %v4755_v60 = vld [vmem:[%s5953_s1 + $0x120] sm:$0xff]   ;;  %v4759_v0 = vld [vmem:[%s5953_s1 + $0x168] sm:$0xff]   ;;  %v4766_v6 = vld [vmem:[%s5953_s1 + $0x170] sm:$0xff]  }
  0x1c   : > { %4119 = vmatpush3.bf16.msra.mxu0 %v4710_v21  ;;  %v4757_v62 = vld [vmem:[%s5953_s1 + $0x1e0] sm:$0xff]   ;;  %v4760_v1 = vld [vmem:[%s5953_s1 + $0x128] sm:$0xff]   ;;  %v4769_v8 = vld [vmem:[%s5953_s1 + $0x130] sm:$0xff]  }
  0x1d   : > { %4120 = vmatprep.subr.bf16.mxu0 %v4713_v24  ;;  %v4758_v63 = vld [vmem:[%s5953_s1 + $0x1a0] sm:$0xff]   ;;  %v4761_v2 = vld [vmem:[%s5953_s1 + $0x1e8] sm:$0xff]   ;;  %v4770_v9 = vld [vmem:[%s5223_s4 + $0x290] ss:$108 sps:$4 sm:$0xff]  }
  0x1e   : > { %4159 = vmatpush3.bf16.msra.mxu1 %v4712_v23  ;;  %v4764_v4 = vld [vmem:[%s5953_s1 + $0x1a8] sm:$0xff]   ;;  %v4767_v7 = vld [vmem:[%s5223_s4 + $0x294] ss:$108 sps:$4 sm:$0xff]   ;;  %v4773_v12 = vld [vmem:[%s5953_s1 + $0x178] sm:$0xff]  }
  0x1f   : > { %4160 = vmatprep.subr.bf16.mxu1 %v4715_v26  ;;  %v4771_v10 = vld [vmem:[%s5953_s1 + $0x1f0] sm:$0xff]   ;;  %v4774_v13 = vld [vmem:[%s5953_s1 + $0x138] sm:$0xff]   ;;  %v4780_v18 = vld [vmem:[%s5953_s1 + $0x240] sm:$0xff]  }
  0x20   : > { %4121 = vmatpush3.bf16.msra.mxu0 %v4714_v25  ;;  %v4772_v11 = vld [vmem:[%s5953_s1 + $0x1b0] sm:$0xff]   ;;  %v4775_v14 = vld [vmem:[%s5953_s1 + $0x1f8] sm:$0xff]   ;;  %v4784_v21 = vld [vmem:[%s5953_s1 + $0x200] sm:$0xff]  }
  0x21   : > { %4122 = vmatprep.subr.bf16.mxu0 %v4717_v28  ;;  %v4776_v15 = vld [vmem:[%s5223_s4 + $0x10] ss:$108 sps:$4 sm:$0xff]   ;;  %v4778_v16 = vld [vmem:[%s5223_s4 + $0x14] ss:$108 sps:$4 sm:$0xff]   ;;  %v4781_v19 = vld [vmem:[%s5223_s4 + $0x18] ss:$108 sps:$4 sm:$0xff]  }
  0x22   : > { %4161 = vmatpush3.bf16.msra.mxu1 %v4716_v27  ;;  %v4779_v17 = vld [vmem:[%s5953_s1 + $0x1b8] sm:$0xff]   ;;  %v4785_v22 = vld [vmem:[%s5953_s1 + $0x2c0] sm:$0xff]   ;;  %v4787_v24 = vld [vmem:[%s5953_s1 + $0x248] sm:$0xff]  }
  0x23   : > { %4162 = vmatprep.subr.bf16.mxu1 %v4719_v30  ;;  %v4783_v20 = vld [vmem:[%s5223_s4 + $0x1c] ss:$108 sps:$4 sm:$0xff]   ;;  %v4786_v23 = vld [vmem:[%s5953_s1 + $0x280] sm:$0xff]   ;;  %v4790_v27 = vld [vmem:[%s5223_s4 + $0xec] ss:$108 sps:$4 sm:$0xff]  }
  0x24   : > { %4123 = vmatpush3.bf16.msra.mxu0 %v4718_v29  ;;  %v4788_v25 = vld [vmem:[%s5953_s1 + $0x208] sm:$0xff]   ;;  %v4794_v30 = vld [vmem:[%s5953_s1 + $0x250] sm:$0xff]   ;;  %v4801_v36 = vld [vmem:[%s5953_s1 + $0x258] sm:$0xff]  }
  0x25   : > { %4188 = vmatprep.subr.bf16.mxu0 %v4724_v34  ;;  %v4789_v26 = vld [vmem:[%s5953_s1 + $0x2c8] sm:$0xff]   ;;  %v4797_v32 = vld [vmem:[%s5953_s1 + $0x210] sm:$0xff]  }
  0x26   : > { %4163 = vmatpush3.bf16.msra.mxu1 %v4723_v33  ;;  %v4792_v28 = vld [vmem:[%s5953_s1 + $0x288] sm:$0xff]   ;;  %v4798_v33 = vld [vmem:[%s5223_s4 + $0xf0] ss:$108 sps:$4 sm:$0xff]  }
  0x27   : > { %2692 = vmatmul.mubr.bf16.vlgmr.msra.gmra.mrb[0].mxu0 %v4720_v31  ;;  %4228 = vmatprep.subr.bf16.mxu1 %v4729_v38  ;;  %v4793_v29 = vld [vmem:[%s5223_s4 + $0xe8] ss:$108 sps:$4 sm:$0xff]   ;;  %v4803_v38 = vld [vmem:[%s5953_s1 + $0x2d8] sm:$0xff]  }
  0x28   : > { %4189 = vmatpush3.bf16.msra.mxu0 %v4728_v37  ;;  %2699 = vmatprep.mubr.bf16.mxu0 %v4734_v43  ;;  %v4795_v31 = vld [vmem:[%s5223_s4 + $0xf4] ss:$108 sps:$4 sm:$0xff]   ;;  %v4802_v37 = vld [vmem:[%s5953_s1 + $0x218] sm:$0xff]  }
  0x29   : > { %2757 = vmatmul.mubr.bf16.vlgmr.msra.gmra.mrb[0].mxu1 %v4725_v35  ;;  %4190 = vmatprep.subr.bf16.mxu0 %v4731_v40  ;;  %v4799_v34 = vld [vmem:[%s5953_s1 + $0x2d0] sm:$0xff]   ;;  %v4806_v40 = vld [vmem:[%s5953_s1 + $0x298] sm:$0xff]  }
  0x2a   : > { %4229 = vmatpush3.bf16.msra.mxu1 %v4730_v39  ;;  %2764 = vmatprep.mubr.bf16.mxu1 %v4739_v47  ;;  %v4800_v35 = vld [vmem:[%s5953_s1 + $0x290] sm:$0xff]   ;;  %v4809_v43 = vld [vmem:[%s5223_s4 + $0x1cc] ss:$108 sps:$4 sm:$0xff]   ;;  %v4814_v47 = vld [vmem:[%s5953_s1 + $0x2a0] sm:$0xff]  }
  0x2b   : > { %4230 = vmatprep.subr.bf16.mxu1 %v4733_v42  ;;  %v4804_v39 = vld [vmem:[%s5223_s4 + $0x1c4] ss:$108 sps:$4 sm:$0xff]  }
  0x2c   : > { %4191 = vmatpush3.bf16.msra.mxu0 %v4732_v41  ;;  %v4807_v41 = vld [vmem:[%s5223_s4 + $0x1c0] ss:$108 sps:$4 sm:$0xff]  }
  0x2d   : > { %4192 = vmatprep.subr.bf16.mxu0 %v4738_v46  ;;  %v4808_v42 = vld [vmem:[%s5953_s1 + $0x260] sm:$0xff]  }
  0x2e   : > { %4231 = vmatpush3.bf16.msra.mxu1 %v4736_v44  ;;  %v4811_v44 = vld [vmem:[%s5953_s1 + $0x220] sm:$0xff]  }
  0x2f   : > { %2700 = vmatmul.mubr.bf16.gmra.mrb[4].mxu0 %v4737_v45  ;;  %4232 = vmatprep.subr.bf16.mxu1 %v4743_v50  ;;  %v4812_v45 = vld [vmem:[%s5223_s4 + $0x1c8] ss:$108 sps:$4 sm:$0xff]   ;;  %v4813_v46 = vld [vmem:[%s5953_s1 + $0x2e0] sm:$0xff]  }
  0x30   : > { %4193 = vmatpush3.bf16.msra.mxu0 %v4741_v48  ;;  %2707 = vmatprep.mubr.bf16.mxu0 %v4748_v55  ;;  %v4815_v48 = vld [vmem:[%s5953_s1 + $0x268] sm:$0xff]   ;;  %v4823_v55 = vld [vmem:[%s5223_s4 + $0x2a4] ss:$108 sps:$4 sm:$0xff]  }
  0x31   : > { %2765 = vmatmul.mubr.bf16.gmra.mrb[4].mxu1 %v4742_v49  ;;  %4194 = vmatprep.subr.bf16.mxu0 %v4745_v52  ;;  %v4816_v49 = vld [vmem:[%s5953_s1 + $0x228] sm:$0xff]  }
  0x32   : > { %4233 = vmatpush3.bf16.msra.mxu1 %v4744_v51  ;;  %2772 = vmatprep.mubr.bf16.mxu1 %v4753_v59  ;;  %v4817_v50 = vld [vmem:[%s5953_s1 + $0x2e8] sm:$0xff]   ;;  %v4828_v59 = vld [vmem:[%s5953_s1 + $0x2b0] sm:$0xff]  }
  0x33   : > { %4234 = vmatprep.subr.bf16.mxu1 %v4747_v54  ;;  %v4818_v51 = vld [vmem:[%s5223_s4 + $0x29c] ss:$108 sps:$4 sm:$0xff]   ;;  %v4822_v54 = vld [vmem:[%s5953_s1 + $0x270] sm:$0xff]  }
  0x34   : > { %4195 = vmatpush3.bf16.msra.mxu0 %v4746_v53  ;;  %v4820_v52 = vld [vmem:[%s5953_s1 + $0x2a8] sm:$0xff]   ;;  %v4821_v53 = vld [vmem:[%s5223_s4 + $0x298] ss:$108 sps:$4 sm:$0xff]  }
  0x35   : > { %4196 = vmatprep.subr.bf16.mxu0 %v4752_v58  ;;  %v4827_v58 = vld [vmem:[%s5953_s1 + $0x2f0] sm:$0xff]  }
  0x36   : > { %4235 = vmatpush3.bf16.msra.mxu1 %v4750_v56  ;;  %v4825_v56 = vld [vmem:[%s5953_s1 + $0x230] sm:$0xff]  }
  0x37   : > { %2708 = vmatmul.mubr.bf16.gmra.mrb[8].mxu0 %v4751_v57  ;;  %4236 = vmatprep.subr.bf16.mxu1 %v4757_v62  ;;  %v4826_v57 = vld [vmem:[%s5223_s4 + $0x2a0] ss:$108 sps:$4 sm:$0xff]   ;;  %v4831_v62 = vld [vmem:[%s5953_s1 + $0x2f8] sm:$0xff]  }
  0x38   : > { %4197 = vmatpush3.bf16.msra.mxu0 %v4755_v60  ;;  %2715 = vmatprep.mubr.bf16.mxu0 %v4762_v3  ;;  %v4829_v60 = vld [vmem:[%s5953_s1 + $0x278] sm:$0xff]   ;;  %v4837_v3 = vld [vmem:[%s5223_s4 + $0x28] ss:$108 sps:$4 sm:$0xff]  }
  0x39   : > { %2773 = vmatmul.mubr.bf16.gmra.mrb[8].mxu1 %v4756_v61  ;;  %4198 = vmatprep.subr.bf16.mxu0 %v4759_v0  ;;  %v4830_v61 = vld [vmem:[%s5953_s1 + $0x238] sm:$0xff]   ;;  %v4834_v0 = vld [vmem:[%s5223_s4 + $0x24] ss:$108 sps:$4 sm:$0xff]  }
  0x3a   : > { %4237 = vmatpush3.bf16.msra.mxu1 %v4758_v63  ;;  %2780 = vmatprep.mubr.bf16.mxu1 %v4767_v7  ;;  %v4832_v63 = vld [vmem:[%s5223_s4 + $0x20] ss:$108 sps:$4 sm:$0xff]  }
  0x3b   : > { %4238 = vmatprep.subr.bf16.mxu1 %v4761_v2  ;;  %v4836_v2 = vld [vmem:[%s5953_s1 + $0x340] sm:$0xff]  }
  0x3c   : > { %4199 = vmatpush3.bf16.msra.mxu0 %v4760_v1  ;;  %v4835_v1 = vld [vmem:[%s5953_s1 + $0x2b8] sm:$0xff]   ;;  %v4842_v7 = vld [vmem:[%s5953_s1 + $0x380] sm:$0xff]  }
  0x3d   : > { %4200 = vmatprep.subr.bf16.mxu0 %v4766_v6  ;;  %v4841_v6 = vld [vmem:[%s5953_s1 + $0x3c0] sm:$0xff]  }
  0x3e   : > { %4239 = vmatpush3.bf16.msra.mxu1 %v4764_v4  ;;  %v4839_v4 = vld [vmem:[%s5223_s4 + $0x2c] ss:$108 sps:$4 sm:$0xff]  }
  0x3f   : > { %2716 = vmatmul.mubr.bf16.gmra.mrb[12].mxu0 %v4765_v5  ;;  %4240 = vmatprep.subr.bf16.mxu1 %v4771_v10  ;;  %v4840_v5 = vld [vmem:[%s5953_s1 + $0x300] sm:$0xff]   ;;  %v4845_v10 = vld [vmem:[%s5953_s1 + $0x3c8] sm:$0xff]  }
  0x40   : > { %4201 = vmatpush3.bf16.msra.mxu0 %v4769_v8  ;;  %2821 = vmatprep.mubr.bf16.mxu0 %v4778_v16  ;;  %v4843_v8 = vld [vmem:[%s5953_s1 + $0x348] sm:$0xff]   ;;  %v4853_v16 = vld [vmem:[%s5953_s1 + $0x310] sm:$0xff]  }
  0x41   : > { %2781 = vmatmul.mubr.bf16.gmra.mrb[12].mxu1 %v4770_v9  ;;  %4202 = vmatprep.subr.bf16.mxu0 %v4773_v12  ;;  %v4844_v9 = vld [vmem:[%s5953_s1 + $0x308] sm:$0xff]  }
  0x42   : > { %4241 = vmatpush3.bf16.msra.mxu1 %v4772_v11  ;;  %2886 = vmatprep.mubr.bf16.mxu1 %v4783_v20  ;;  %v4846_v11 = vld [vmem:[%s5223_s4 + $0xfc] ss:$108 sps:$4 sm:$0xff]  }
  0x43   : > { %4242 = vmatprep.subr.bf16.mxu1 %v4775_v14  ;;  %v4848_v12 = vld [vmem:[%s5953_s1 + $0x388] sm:$0xff]   ;;  %v4850_v14 = vld [vmem:[%s5953_s1 + $0x350] sm:$0xff]   ;;  %v4857_v20 = vld [vmem:[%s5953_s1 + $0x358] sm:$0xff]  }
  0x44   : > { %4203 = vmatpush3.bf16.msra.mxu0 %v4774_v13  ;;  %v4849_v13 = vld [vmem:[%s5223_s4 + $0xf8] ss:$108 sps:$4 sm:$0xff]  }
  0x45   : > { %4268 = vmatprep.subr.bf16.mxu0 %v4780_v18  ;;  %v4855_v18 = vld [vmem:[%s5953_s1 + $0x3d0] sm:$0xff]  }
  0x46   : > { %4243 = vmatpush3.bf16.msra.mxu1 %v4779_v17  ;;  %v4854_v17 = vld [vmem:[%s5223_s4 + $0x100] ss:$108 sps:$4 sm:$0xff]  }
  0x47   : > { %2822 = vmatmul.mubr.bf16.vlgmr.msra.gmra.mrb[16].mxu0 %v4776_v15  ;;  %4308 = vmatprep.subr.bf16.mxu1 %v4785_v22  ;;  %v4851_v15 = vld [vmem:[%s5223_s4 + $0x104] ss:$108 sps:$4 sm:$0xff]   ;;  %v4859_v22 = vld [vmem:[%s5953_s1 + $0x3d8] sm:$0xff]  }
  0x48   : > { %4269 = vmatpush3.bf16.msra.mxu0 %v4784_v21  ;;  %2829 = vmatprep.mubr.bf16.mxu0 %v4790_v27  ;;  %v4858_v21 = vld [vmem:[%s5953_s1 + $0x318] sm:$0xff]  }
  0x49   : > { %2887 = vmatmul.mubr.bf16.vlgmr.msra.gmra.mrb[16].mxu1 %v4781_v19  ;;  %4270 = vmatprep.subr.bf16.mxu0 %v4787_v24  ;;  %v4856_v19 = vld [vmem:[%s5953_s1 + $0x390] sm:$0xff]   ;;  %v4862_v24 = vld [vmem:[%s5953_s1 + $0x398] sm:$0xff]  }
  0x4a   : > { %4309 = vmatpush3.bf16.msra.mxu1 %v4786_v23  ;;  %2894 = vmatprep.mubr.bf16.mxu1 %v4795_v31  ;;  %v4860_v23 = vld [vmem:[%s5223_s4 + $0x1d4] ss:$108 sps:$4 sm:$0xff]   ;;  %v4865_v27 = vld [vmem:[%s5223_s4 + $0x1dc] ss:$108 sps:$4 sm:$0xff]  }
  0x4b   : > { %4310 = vmatprep.subr.bf16.mxu1 %v4789_v26  ;;  %v4864_v26 = vld [vmem:[%s5953_s1 + $0x360] sm:$0xff]  }
  0x4c   : > { %4271 = vmatpush3.bf16.msra.mxu0 %v4788_v25  ;;  %v4863_v25 = vld [vmem:[%s5223_s4 + $0x1d0] ss:$108 sps:$4 sm:$0xff]   ;;  %v4870_v31 = vld [vmem:[%s5953_s1 + $0x3a0] sm:$0xff]  }
  0x4d   : > { %4272 = vmatprep.subr.bf16.mxu0 %v4794_v30  ;;  %v4869_v30 = vld [vmem:[%s5953_s1 + $0x3e0] sm:$0xff]  }
  0x4e   : > { %4311 = vmatpush3.bf16.msra.mxu1 %v4792_v28  ;;  %v4867_v28 = vld [vmem:[%s5953_s1 + $0x320] sm:$0xff]  }
  0x4f   : > { %2830 = vmatmul.mubr.bf16.gmra.mrb[20].mxu0 %v4793_v29  ;;  %4312 = vmatprep.subr.bf16.mxu1 %v4799_v34  ;;  %v4868_v29 = vld [vmem:[%s5223_s4 + $0x1d8] ss:$108 sps:$4 sm:$0xff]   ;;  %v4873_v34 = vld [vmem:[%s5953_s1 + $0x3e8] sm:$0xff]  }
  0x50   : > { %4273 = vmatpush3.bf16.msra.mxu0 %v4797_v32  ;;  %2837 = vmatprep.mubr.bf16.mxu0 %v4804_v39  ;;  %v4871_v32 = vld [vmem:[%s5953_s1 + $0x368] sm:$0xff]   ;;  %v4879_v39 = vld [vmem:[%s5223_s4 + $0x2b4] ss:$108 sps:$4 sm:$0xff]  }
  0x51   : > { %2895 = vmatmul.mubr.bf16.gmra.mrb[20].mxu1 %v4798_v33  ;;  %4274 = vmatprep.subr.bf16.mxu0 %v4801_v36  ;;  %v4872_v33 = vld [vmem:[%s5953_s1 + $0x328] sm:$0xff]  }
  0x52   : > { %4313 = vmatpush3.bf16.msra.mxu1 %v4800_v35  ;;  %2902 = vmatprep.mubr.bf16.mxu1 %v4809_v43  ;;  %v4874_v35 = vld [vmem:[%s5223_s4 + $0x2ac] ss:$108 sps:$4 sm:$0xff]   ;;  %v4884_v43 = vld [vmem:[%s5953_s1 + $0x3b0] sm:$0xff]  }
  0x53   : > { %4314 = vmatprep.subr.bf16.mxu1 %v4803_v38  ;;  %v4876_v36 = vld [vmem:[%s5953_s1 + $0x3a8] sm:$0xff]   ;;  %v4878_v38 = vld [vmem:[%s5953_s1 + $0x370] sm:$0xff]  }
  0x54   : > { %4275 = vmatpush3.bf16.msra.mxu0 %v4802_v37  ;;  %v4877_v37 = vld [vmem:[%s5223_s4 + $0x2a8] ss:$108 sps:$4 sm:$0xff]  }
  0x55   : > { %4276 = vmatprep.subr.bf16.mxu0 %v4808_v42  ;;  %v4883_v42 = vld [vmem:[%s5953_s1 + $0x3f0] sm:$0xff]  }
  0x56   : > { %4315 = vmatpush3.bf16.msra.mxu1 %v4806_v40  ;;  %v4881_v40 = vld [vmem:[%s5953_s1 + $0x330] sm:$0xff]  }
  0x57   : > { %2838 = vmatmul.mubr.bf16.gmra.mrb[24].mxu0 %v4807_v41  ;;  %4316 = vmatprep.subr.bf16.mxu1 %v4813_v46  ;;  %v4882_v41 = vld [vmem:[%s5223_s4 + $0x2b0] ss:$108 sps:$4 sm:$0xff]  }
  0x58   : > { %4277 = vmatpush3.bf16.msra.mxu0 %v4811_v44  ;;  %2845 = vmatprep.mubr.bf16.mxu0 %v4818_v51  ;;  %v4885_v44 = vld [vmem:[%s5953_s1 + $0x378] sm:$0xff]  }
  0x59   : > { %2903 = vmatmul.mubr.bf16.gmra.mrb[24].mxu1 %v4812_v45  ;;  %4278 = vmatprep.subr.bf16.mxu0 %v4815_v48  ;;  %v4886_v45 = vld [vmem:[%s5953_s1 + $0x338] sm:$0xff]   ;;  %v4890_v48 = vld [vmem:[%s5223_s4 + $0x34] ss:$108 sps:$4 sm:$0xff]  }
  0x5a   : > { %4317 = vmatpush3.bf16.msra.mxu1 %v4814_v47  ;;  %2910 = vmatprep.mubr.bf16.mxu1 %v4823_v55  ;;  %v4887_v46 = vld [vmem:[%s5953_s1 + $0x3f8] sm:$0xff]   ;;  %v4898_v55 = vld [vmem:[%s5953_s1 + $0x480] sm:$0xff]  }
  0x5b   : > { %4318 = vmatprep.subr.bf16.mxu1 %v4817_v50  ;;  %v4888_v47 = vld [vmem:[%s5223_s4 + $0x30] ss:$108 sps:$4 sm:$0xff]   ;;  %v4892_v50 = vld [vmem:[%s5953_s1 + $0x440] sm:$0xff]  }
  0x5c   : > { %4279 = vmatpush3.bf16.msra.mxu0 %v4816_v49  ;;  %v4891_v49 = vld [vmem:[%s5953_s1 + $0x3b8] sm:$0xff]  }
  0x5d   : > { %4280 = vmatprep.subr.bf16.mxu0 %v4822_v54  ;;  %v4893_v51 = vld [vmem:[%s5223_s4 + $0x38] ss:$108 sps:$4 sm:$0xff]  }
  0x5e   : > { %4319 = vmatpush3.bf16.msra.mxu1 %v4820_v52  ;;  %v4895_v52 = vld [vmem:[%s5223_s4 + $0x3c] ss:$108 sps:$4 sm:$0xff]   ;;  %v4897_v54 = vld [vmem:[%s5953_s1 + $0x4c0] sm:$0xff]  }
  0x5f   : > { %2846 = vmatmul.mubr.bf16.gmra.mrb[28].mxu0 %v4821_v53  ;;  %4320 = vmatprep.subr.bf16.mxu1 %v4827_v58  ;;  %v4896_v53 = vld [vmem:[%s5953_s1 + $0x400] sm:$0xff]   ;;  %v4901_v58 = vld [vmem:[%s5953_s1 + $0x4c8] sm:$0xff]  }
  0x60   : > { %4281 = vmatpush3.bf16.msra.mxu0 %v4825_v56  ;;  %2951 = vmatprep.mubr.bf16.mxu0 %v4834_v0  ;;  %v4899_v56 = vld [vmem:[%s5953_s1 + $0x448] sm:$0xff]   ;;  %v4909_v0 = vld [vmem:[%s5953_s1 + $0x410] sm:$0xff]  }
  0x61   : > { %2911 = vmatmul.mubr.bf16.gmra.mrb[28].mxu1 %v4826_v57  ;;  %4282 = vmatprep.subr.bf16.mxu0 %v4829_v60  ;;  %v4900_v57 = vld [vmem:[%s5953_s1 + $0x408] sm:$0xff]  }
  0x62   : > { %4321 = vmatpush3.bf16.msra.mxu1 %v4828_v59  ;;  %3016 = vmatprep.mubr.bf16.mxu1 %v4839_v4  ;;  %v4902_v59 = vld [vmem:[%s5223_s4 + $0x10c] ss:$108 sps:$4 sm:$0xff]  }
  0x63   : > { %4322 = vmatprep.subr.bf16.mxu1 %v4831_v62  ;;  %v4904_v60 = vld [vmem:[%s5953_s1 + $0x488] sm:$0xff]   ;;  %v4906_v62 = vld [vmem:[%s5953_s1 + $0x450] sm:$0xff]   ;;  %v4913_v4 = vld [vmem:[%s5953_s1 + $0x458] sm:$0xff]  }
  0x64   : > { %4283 = vmatpush3.bf16.msra.mxu0 %v4830_v61  ;;  %v4905_v61 = vld [vmem:[%s5223_s4 + $0x108] ss:$108 sps:$4 sm:$0xff]  }
  0x65   : > { %4348 = vmatprep.subr.bf16.mxu0 %v4836_v2  ;;  %v4911_v2 = vld [vmem:[%s5953_s1 + $0x4d0] sm:$0xff]  }
  0x66   : > { %4323 = vmatpush3.bf16.msra.mxu1 %v4835_v1  ;;  %v4910_v1 = vld [vmem:[%s5223_s4 + $0x110] ss:$108 sps:$4 sm:$0xff]  }
  0x67   : > { %2952 = vmatmul.mubr.bf16.vlgmr.msra.gmra.mrb[32].mxu0 %v4832_v63  ;;  %4388 = vmatprep.subr.bf16.mxu1 %v4841_v6  ;;  %v4907_v63 = vld [vmem:[%s5223_s4 + $0x114] ss:$108 sps:$4 sm:$0xff]   ;;  %v4915_v6 = vld [vmem:[%s5953_s1 + $0x4d8] sm:$0xff]  }
  0x68   : > { %4349 = vmatpush3.bf16.msra.mxu0 %v4840_v5  ;;  %2959 = vmatprep.mubr.bf16.mxu0 %v4846_v11  ;;  %v4914_v5 = vld [vmem:[%s5953_s1 + $0x418] sm:$0xff]  }
  0x69   : > { %3017 = vmatmul.mubr.bf16.vlgmr.msra.gmra.mrb[32].mxu1 %v4837_v3  ;;  %4350 = vmatprep.subr.bf16.mxu0 %v4843_v8  ;;  %v4912_v3 = vld [vmem:[%s5953_s1 + $0x490] sm:$0xff]   ;;  %v4918_v8 = vld [vmem:[%s5953_s1 + $0x498] sm:$0xff]  }
  0x6a   : > { %4389 = vmatpush3.bf16.msra.mxu1 %v4842_v7  ;;  %3024 = vmatprep.mubr.bf16.mxu1 %v4851_v15  ;;  %v4916_v7 = vld [vmem:[%s5223_s4 + $0x1e4] ss:$108 sps:$4 sm:$0xff]   ;;  %v4921_v11 = vld [vmem:[%s5223_s4 + $0x1ec] ss:$108 sps:$4 sm:$0xff]  }
  0x6b   : > { %4390 = vmatprep.subr.bf16.mxu1 %v4845_v10  ;;  %v4920_v10 = vld [vmem:[%s5953_s1 + $0x460] sm:$0xff]  }
  0x6c   : > { %4351 = vmatpush3.bf16.msra.mxu0 %v4844_v9  ;;  %v4919_v9 = vld [vmem:[%s5223_s4 + $0x1e0] ss:$108 sps:$4 sm:$0xff]  }
  0x6d   : > { %4352 = vmatprep.subr.bf16.mxu0 %v4850_v14  ;;  %v4925_v14 = vld [vmem:[%s5953_s1 + $0x4e0] sm:$0xff]  }
  0x6e   : > { %4391 = vmatpush3.bf16.msra.mxu1 %v4848_v12  ;;  %v4923_v12 = vld [vmem:[%s5953_s1 + $0x420] sm:$0xff]  }
  0x6f   : > { %2960 = vmatmul.mubr.bf16.gmra.mrb[36].mxu0 %v4849_v13  ;;  %4392 = vmatprep.subr.bf16.mxu1 %v4855_v18  ;;  %v4924_v13 = vld [vmem:[%s5223_s4 + $0x1e8] ss:$108 sps:$4 sm:$0xff]   ;;  %v4926_v15 = vld [vmem:[%s5953_s1 + $0x4a0] sm:$0xff]  }
  0x70   : > { %4353 = vmatpush3.bf16.msra.mxu0 %v4853_v16  ;;  %2967 = vmatprep.mubr.bf16.mxu0 %v4860_v23  ;;  %v4927_v16 = vld [vmem:[%s5953_s1 + $0x468] sm:$0xff]   ;;  %v4935_v23 = vld [vmem:[%s5223_s4 + $0x2c4] ss:$108 sps:$4 sm:$0xff]  }
  0x71   : > { %3025 = vmatmul.mubr.bf16.gmra.mrb[36].mxu1 %v4854_v17  ;;  %4354 = vmatprep.subr.bf16.mxu0 %v4857_v20  ;;  %v4928_v17 = vld [vmem:[%s5953_s1 + $0x428] sm:$0xff]  }
  0x72   : > { %4393 = vmatpush3.bf16.msra.mxu1 %v4856_v19  ;;  %3032 = vmatprep.mubr.bf16.mxu1 %v4865_v27  ;;  %v4929_v18 = vld [vmem:[%s5953_s1 + $0x4e8] sm:$0xff]   ;;  %v4940_v27 = vld [vmem:[%s5953_s1 + $0x4b0] sm:$0xff]  }
  0x73   : > { %4394 = vmatprep.subr.bf16.mxu1 %v4859_v22  ;;  %v4930_v19 = vld [vmem:[%s5223_s4 + $0x2bc] ss:$108 sps:$4 sm:$0xff]   ;;  %v4934_v22 = vld [vmem:[%s5953_s1 + $0x470] sm:$0xff]  }
  0x74   : > { %4355 = vmatpush3.bf16.msra.mxu0 %v4858_v21  ;;  %v4932_v20 = vld [vmem:[%s5953_s1 + $0x4a8] sm:$0xff]   ;;  %v4933_v21 = vld [vmem:[%s5223_s4 + $0x2b8] ss:$108 sps:$4 sm:$0xff]  }
  0x75   : > { %4356 = vmatprep.subr.bf16.mxu0 %v4864_v26  ;;  %v4939_v26 = vld [vmem:[%s5953_s1 + $0x4f0] sm:$0xff]  }
  0x76   : > { %4395 = vmatpush3.bf16.msra.mxu1 %v4862_v24  ;;  %v4937_v24 = vld [vmem:[%s5953_s1 + $0x430] sm:$0xff]  }
  0x77   : > { %2968 = vmatmul.mubr.bf16.gmra.mrb[40].mxu0 %v4863_v25  ;;  %4396 = vmatprep.subr.bf16.mxu1 %v4869_v30  ;;  %v4938_v25 = vld [vmem:[%s5223_s4 + $0x2c0] ss:$108 sps:$4 sm:$0xff]   ;;  %v4943_v30 = vld [vmem:[%s5953_s1 + $0x4f8] sm:$0xff]  }
  0x78   : > { %4357 = vmatpush3.bf16.msra.mxu0 %v4867_v28  ;;  %2975 = vmatprep.mubr.bf16.mxu0 %v4874_v35  ;;  %v4941_v28 = vld [vmem:[%s5953_s1 + $0x478] sm:$0xff]   ;;  %v4949_v35 = vld [vmem:[%s5223_s4 + $0x48] ss:$108 sps:$4 sm:$0xff]  }
  0x79   : > { %3033 = vmatmul.mubr.bf16.gmra.mrb[40].mxu1 %v4868_v29  ;;  %4358 = vmatprep.subr.bf16.mxu0 %v4871_v32  ;;  %v4942_v29 = vld [vmem:[%s5953_s1 + $0x438] sm:$0xff]   ;;  %v4946_v32 = vld [vmem:[%s5223_s4 + $0x44] ss:$108 sps:$4 sm:$0xff]  }
  0x7a   : > { %4397 = vmatpush3.bf16.msra.mxu1 %v4870_v31  ;;  %3040 = vmatprep.mubr.bf16.mxu1 %v4879_v39  ;;  %v4944_v31 = vld [vmem:[%s5223_s4 + $0x40] ss:$108 sps:$4 sm:$0xff]  }
  0x7b   : > { %4398 = vmatprep.subr.bf16.mxu1 %v4873_v34  ;;  %v4948_v34 = vld [vmem:[%s5953_s1 + $0x540] sm:$0xff]  }
  0x7c   : > { %4359 = vmatpush3.bf16.msra.mxu0 %v4872_v33  ;;  %v4947_v33 = vld [vmem:[%s5953_s1 + $0x4b8] sm:$0xff]   ;;  %v4954_v39 = vld [vmem:[%s5953_s1 + $0x580] sm:$0xff]  }
  0x7d   : > { %4360 = vmatprep.subr.bf16.mxu0 %v4878_v38  ;;  %v4953_v38 = vld [vmem:[%s5953_s1 + $0x5c0] sm:$0xff]  }
  0x7e   : > { %4399 = vmatpush3.bf16.msra.mxu1 %v4876_v36  ;;  %v4951_v36 = vld [vmem:[%s5223_s4 + $0x4c] ss:$108 sps:$4 sm:$0xff]  }
  0x7f   : > { %2976 = vmatmul.mubr.bf16.gmra.mrb[44].mxu0 %v4877_v37  ;;  %4400 = vmatprep.subr.bf16.mxu1 %v4883_v42  ;;  %v4952_v37 = vld [vmem:[%s5953_s1 + $0x500] sm:$0xff]   ;;  %v4957_v42 = vld [vmem:[%s5953_s1 + $0x5c8] sm:$0xff]  }
  0x80   : > { %4361 = vmatpush3.bf16.msra.mxu0 %v4881_v40  ;;  %3081 = vmatprep.mubr.bf16.mxu0 %v4890_v48  ;;  %v4955_v40 = vld [vmem:[%s5953_s1 + $0x548] sm:$0xff]   ;;  %v4965_v48 = vld [vmem:[%s5953_s1 + $0x510] sm:$0xff]  }
  0x81   : > { %3041 = vmatmul.mubr.bf16.gmra.mrb[44].mxu1 %v4882_v41  ;;  %4362 = vmatprep.subr.bf16.mxu0 %v4885_v44  ;;  %v4956_v41 = vld [vmem:[%s5953_s1 + $0x508] sm:$0xff]  }
  0x82   : > { %4401 = vmatpush3.bf16.msra.mxu1 %v4884_v43  ;;  %3146 = vmatprep.mubr.bf16.mxu1 %v4895_v52  ;;  %v4958_v43 = vld [vmem:[%s5223_s4 + $0x11c] ss:$108 sps:$4 sm:$0xff]  }
  0x83   : > { %4402 = vmatprep.subr.bf16.mxu1 %v4887_v46  ;;  %v4960_v44 = vld [vmem:[%s5953_s1 + $0x588] sm:$0xff]   ;;  %v4962_v46 = vld [vmem:[%s5953_s1 + $0x550] sm:$0xff]   ;;  %v4969_v52 = vld [vmem:[%s5953_s1 + $0x558] sm:$0xff]  }
  0x84   : > { %4363 = vmatpush3.bf16.msra.mxu0 %v4886_v45  ;;  %v4961_v45 = vld [vmem:[%s5223_s4 + $0x118] ss:$108 sps:$4 sm:$0xff]  }
  0x85   : > { %4428 = vmatprep.subr.bf16.mxu0 %v4892_v50  ;;  %v4967_v50 = vld [vmem:[%s5953_s1 + $0x5d0] sm:$0xff]  }
  0x86   : > { %4403 = vmatpush3.bf16.msra.mxu1 %v4891_v49  ;;  %v4966_v49 = vld [vmem:[%s5223_s4 + $0x120] ss:$108 sps:$4 sm:$0xff]  }
  0x87   : > { %3082 = vmatmul.mubr.bf16.vlgmr.msra.gmra.mrb[48].mxu0 %v4888_v47  ;;  %4468 = vmatprep.subr.bf16.mxu1 %v4897_v54  ;;  %v4963_v47 = vld [vmem:[%s5223_s4 + $0x124] ss:$108 sps:$4 sm:$0xff]   ;;  %v4971_v54 = vld [vmem:[%s5953_s1 + $0x5d8] sm:$0xff]  }
  0x88   : > { %4429 = vmatpush3.bf16.msra.mxu0 %v4896_v53  ;;  %3089 = vmatprep.mubr.bf16.mxu0 %v4902_v59  ;;  %v4970_v53 = vld [vmem:[%s5953_s1 + $0x518] sm:$0xff]  }
  0x89   : > { %3147 = vmatmul.mubr.bf16.vlgmr.msra.gmra.mrb[48].mxu1 %v4893_v51  ;;  %4430 = vmatprep.subr.bf16.mxu0 %v4899_v56  ;;  %v4968_v51 = vld [vmem:[%s5953_s1 + $0x590] sm:$0xff]   ;;  %v4974_v56 = vld [vmem:[%s5953_s1 + $0x598] sm:$0xff]  }
  0x8a   : > { %4469 = vmatpush3.bf16.msra.mxu1 %v4898_v55  ;;  %3154 = vmatprep.mubr.bf16.mxu1 %v4907_v63  ;;  %v4972_v55 = vld [vmem:[%s5223_s4 + $0x1f4] ss:$108 sps:$4 sm:$0xff]   ;;  %v4977_v59 = vld [vmem:[%s5223_s4 + $0x1fc] ss:$108 sps:$4 sm:$0xff]  }
  0x8b   : > { %4470 = vmatprep.subr.bf16.mxu1 %v4901_v58  ;;  %v4976_v58 = vld [vmem:[%s5953_s1 + $0x560] sm:$0xff]  }
  0x8c   : > { %4431 = vmatpush3.bf16.msra.mxu0 %v4900_v57  ;;  %v4975_v57 = vld [vmem:[%s5223_s4 + $0x1f0] ss:$108 sps:$4 sm:$0xff]   ;;  %v4982_v63 = vld [vmem:[%s5953_s1 + $0x5a0] sm:$0xff]  }
  0x8d   : > { %4432 = vmatprep.subr.bf16.mxu0 %v4906_v62  ;;  %v4981_v62 = vld [vmem:[%s5953_s1 + $0x5e0] sm:$0xff]  }
  0x8e   : > { %4471 = vmatpush3.bf16.msra.mxu1 %v4904_v60  ;;  %v4979_v60 = vld [vmem:[%s5953_s1 + $0x520] sm:$0xff]  }
  0x8f   : > { %3090 = vmatmul.mubr.bf16.gmra.mrb[52].mxu0 %v4905_v61  ;;  %4472 = vmatprep.subr.bf16.mxu1 %v4911_v2  ;;  %v4980_v61 = vld [vmem:[%s5223_s4 + $0x1f8] ss:$108 sps:$4 sm:$0xff]   ;;  %v4985_v2 = vld [vmem:[%s5953_s1 + $0x5e8] sm:$0xff]  }
  0x90   : > { %4433 = vmatpush3.bf16.msra.mxu0 %v4909_v0  ;;  %3097 = vmatprep.mubr.bf16.mxu0 %v4916_v7  ;;  %v4983_v0 = vld [vmem:[%s5953_s1 + $0x568] sm:$0xff]   ;;  %v4991_v7 = vld [vmem:[%s5223_s4 + $0x2d4] ss:$108 sps:$4 sm:$0xff]  }
  0x91   : > { %3155 = vmatmul.mubr.bf16.gmra.mrb[52].mxu1 %v4910_v1  ;;  %4434 = vmatprep.subr.bf16.mxu0 %v4913_v4  ;;  %v4984_v1 = vld [vmem:[%s5953_s1 + $0x528] sm:$0xff]  }
  0x92   : > { %4473 = vmatpush3.bf16.msra.mxu1 %v4912_v3  ;;  %3162 = vmatprep.mubr.bf16.mxu1 %v4921_v11  ;;  %v4986_v3 = vld [vmem:[%s5223_s4 + $0x2cc] ss:$108 sps:$4 sm:$0xff]   ;;  %v4996_v11 = vld [vmem:[%s5953_s1 + $0x5b0] sm:$0xff]  }
  0x93   : > { %4474 = vmatprep.subr.bf16.mxu1 %v4915_v6  ;;  %v4988_v4 = vld [vmem:[%s5953_s1 + $0x5a8] sm:$0xff]   ;;  %v4990_v6 = vld [vmem:[%s5953_s1 + $0x570] sm:$0xff]  }
  0x94   : > { %4435 = vmatpush3.bf16.msra.mxu0 %v4914_v5  ;;  %v4989_v5 = vld [vmem:[%s5223_s4 + $0x2c8] ss:$108 sps:$4 sm:$0xff]  }
  0x95   : > { %4436 = vmatprep.subr.bf16.mxu0 %v4920_v10  ;;  %v4995_v10 = vld [vmem:[%s5953_s1 + $0x5f0] sm:$0xff]  }
  0x96   : > { %4475 = vmatpush3.bf16.msra.mxu1 %v4918_v8  ;;  %v4993_v8 = vld [vmem:[%s5953_s1 + $0x530] sm:$0xff]  }
  0x97   : > { %3098 = vmatmul.mubr.bf16.gmra.mrb[56].mxu0 %v4919_v9  ;;  %4476 = vmatprep.subr.bf16.mxu1 %v4925_v14  ;;  %v4994_v9 = vld [vmem:[%s5223_s4 + $0x2d0] ss:$108 sps:$4 sm:$0xff]  }
  0x98   : > { %4437 = vmatpush3.bf16.msra.mxu0 %v4923_v12  ;;  %3105 = vmatprep.mubr.bf16.mxu0 %v4930_v19  ;;  %v4997_v12 = vld [vmem:[%s5953_s1 + $0x578] sm:$0xff]   ;;  %v5004_v19 = vld [vmem:[%s5953_s1 + $0x640] sm:$0xff]  }
  0x99   : > { %3163 = vmatmul.mubr.bf16.gmra.mrb[56].mxu1 %v4924_v13  ;;  %4438 = vmatprep.subr.bf16.mxu0 %v4927_v16  ;;  %v4998_v13 = vld [vmem:[%s5953_s1 + $0x538] sm:$0xff]   ;;  %v5002_v16 = vld [vmem:[%s5223_s4 + $0x54] ss:$108 sps:$4 sm:$0xff]  }
  0x9a   : > { %4477 = vmatpush3.bf16.msra.mxu1 %v4926_v15  ;;  %3170 = vmatprep.mubr.bf16.mxu1 %v4935_v23  ;;  %v4999_v14 = vld [vmem:[%s5953_s1 + $0x5f8] sm:$0xff]  }
  0x9b   : > { %4478 = vmatprep.subr.bf16.mxu1 %v4929_v18  ;;  %v5000_v15 = vld [vmem:[%s5223_s4 + $0x50] ss:$108 sps:$4 sm:$0xff]  }
  0x9c   : > { %4439 = vmatpush3.bf16.msra.mxu0 %v4928_v17  ;;  %v5003_v17 = vld [vmem:[%s5953_s1 + $0x5b8] sm:$0xff]  }
  0x9d   : > { %4440 = vmatprep.subr.bf16.mxu0 %v4934_v22  ;;  %v5007_v22 = vld [vmem:[%s5223_s4 + $0x5c] ss:$108 sps:$4 sm:$0xff]  }
  0x9e   : > { %4479 = vmatpush3.bf16.msra.mxu1 %v4932_v20 }
  0x9f   : > { %3106 = vmatmul.mubr.bf16.gmra.mrb[60].mxu0 %v4933_v21  ;;  %4480 = vmatprep.subr.bf16.mxu1 %v4939_v26  ;;  %v5005_v21 = vld [vmem:[%s5223_s4 + $0x58] ss:$108 sps:$4 sm:$0xff]  }
  0xa0   : > { %4441 = vmatpush3.bf16.msra.mxu0 %v4937_v24  ;;  %3211 = vmatprep.mubr.bf16.mxu0 %v4946_v32  ;;  %v5011_v32 = vld [vmem:[%s5953_s1 + $0x608] sm:$0xff]  }
  0xa1   : > { %3171 = vmatmul.mubr.bf16.gmra.mrb[60].mxu1 %v4938_v25  ;;  %4442 = vmatprep.subr.bf16.mxu0 %v4941_v28  ;;  %v5008_v25 = vld [vmem:[%s5953_s1 + $0x600] sm:$0xff]  }
  0xa2   : > { %4481 = vmatpush3.bf16.msra.mxu1 %v4940_v27  ;;  %3276 = vmatprep.mubr.bf16.mxu1 %v4951_v36  ;;  %v5009_v27 = vld [vmem:[%s5953_s1 + $0x648] sm:$0xff]  }
  0xa3   : > { %4482 = vmatprep.subr.bf16.mxu1 %v4943_v30 }
  0xa4   : > { %4443 = vmatpush3.bf16.msra.mxu0 %v4942_v29  ;;  %v5010_v29 = vld [vmem:[%s5953_s1 + $0x680] sm:$0xff]  }
  0xa5   : > { %4508 = vmatprep.subr.bf16.mxu0 %v4948_v34 }
  0xa6   : > { %4483 = vmatpush3.bf16.msra.mxu1 %v4947_v33 }
  0xa7   : > { %3212 = vmatmul.mubr.bf16.vlgmr.msra.gmra.mrb[64].mxu0 %v4944_v31  ;;  %4548 = vmatprep.subr.bf16.mxu1 %v4953_v38 }
  0xa8   : > { %4509 = vmatpush3.bf16.msra.mxu0 %v4952_v37  ;;  %3219 = vmatprep.mubr.bf16.mxu0 %v4958_v43  ;;  %v5014_v37 = vld [vmem:[%s5223_s4 + $0x128] ss:$108 sps:$4 sm:$0xff]  }
  0xa9   : > { %3277 = vmatmul.mubr.bf16.vlgmr.msra.gmra.mrb[64].mxu1 %v4949_v35  ;;  %4510 = vmatprep.subr.bf16.mxu0 %v4955_v40  ;;  %v5012_v35 = vld [vmem:[%s5223_s4 + $0x12c] ss:$108 sps:$4 sm:$0xff]   ;;  %v5019_v43 = vld [vmem:[%s5953_s1 + $0x610] sm:$0xff]  }
  0xaa   : > { %4549 = vmatpush3.bf16.msra.mxu1 %v4954_v39  ;;  %3284 = vmatprep.mubr.bf16.mxu1 %v4963_v47  ;;  %v5015_v39 = vld [vmem:[%s5953_s1 + $0x650] sm:$0xff]   ;;  %v5016_v40 = vld [vmem:[%s5953_s1 + $0x688] sm:$0xff]  }
  0xab   : > { %4550 = vmatprep.subr.bf16.mxu1 %v4957_v42  ;;  %v5017_v42 = vld [vmem:[%s5223_s4 + $0x134] ss:$108 sps:$4 sm:$0xff]  }
  0xac   : > { %4511 = vmatpush3.bf16.msra.mxu0 %v4956_v41 }
  0xad   : > { %4512 = vmatprep.subr.bf16.mxu0 %v4962_v46  ;;  %v5021_v46 = vld [vmem:[%s5953_s1 + $0x658] sm:$0xff]  }
  0xae   : > { %4551 = vmatpush3.bf16.msra.mxu1 %v4960_v44  ;;  %v5020_v44 = vld [vmem:[%s5223_s4 + $0x130] ss:$108 sps:$4 sm:$0xff]  }
  0xaf   : > { %3220 = vmatmul.mubr.bf16.gmra.mrb[68].mxu0 %v4961_v45  ;;  %4552 = vmatprep.subr.bf16.mxu1 %v4967_v50 }
  0xb0   : > { %4513 = vmatpush3.bf16.msra.mxu0 %v4965_v48  ;;  %3227 = vmatprep.mubr.bf16.mxu0 %v4972_v55  ;;  %v5026_v55 = vld [vmem:[%s5223_s4 + $0x200] ss:$108 sps:$4 sm:$0xff]  }
  0xb1   : > { %3285 = vmatmul.mubr.bf16.gmra.mrb[68].mxu1 %v4966_v49  ;;  %4514 = vmatprep.subr.bf16.mxu0 %v4969_v52  ;;  %v5022_v49 = vld [vmem:[%s5953_s1 + $0x690] sm:$0xff]  }
  0xb2   : > { %4553 = vmatpush3.bf16.msra.mxu1 %v4968_v51  ;;  %3292 = vmatprep.mubr.bf16.mxu1 %v4977_v59  ;;  %v5023_v51 = vld [vmem:[%s5953_s1 + $0x618] sm:$0xff]   ;;  %v5027_v59 = vld [vmem:[%s5953_s1 + $0x660] sm:$0xff]  }
  0xb3   : > { %4554 = vmatprep.subr.bf16.mxu1 %v4971_v54  ;;  %v5024_v54 = vld [vmem:[%s5223_s4 + $0x204] ss:$108 sps:$4 sm:$0xff]  }
  0xb4   : > { %4515 = vmatpush3.bf16.msra.mxu0 %v4970_v53 }
  0xb5   : > { %4516 = vmatprep.subr.bf16.mxu0 %v4976_v58 }
  0xb6   : > { %4555 = vmatpush3.bf16.msra.mxu1 %v4974_v56 }
  0xb7   : > { %3228 = vmatmul.mubr.bf16.gmra.mrb[72].mxu0 %v4975_v57  ;;  %4556 = vmatprep.subr.bf16.mxu1 %v4981_v62 }
  0xb8   : > { %4517 = vmatpush3.bf16.msra.mxu0 %v4979_v60  ;;  %3235 = vmatprep.mubr.bf16.mxu0 %v4986_v3 }
  0xb9   : > { %3293 = vmatmul.mubr.bf16.gmra.mrb[72].mxu1 %v4980_v61  ;;  %4518 = vmatprep.subr.bf16.mxu0 %v4983_v0  ;;  %v5028_v61 = vld [vmem:[%s5953_s1 + $0x698] sm:$0xff]   ;;  %v5031_v0 = vld [vmem:[%s5953_s1 + $0x620] sm:$0xff]  }
  0xba   : > { %4557 = vmatpush3.bf16.msra.mxu1 %v4982_v63  ;;  %3300 = vmatprep.mubr.bf16.mxu1 %v4991_v7  ;;  %v5029_v63 = vld [vmem:[%s5223_s4 + $0x20c] ss:$108 sps:$4 sm:$0xff]  }
  0xbb   : > { %4558 = vmatprep.subr.bf16.mxu1 %v4985_v2  ;;  %v5033_v2 = vld [vmem:[%s5953_s1 + $0x668] sm:$0xff]  }
  0xbc   : > { %4519 = vmatpush3.bf16.msra.mxu0 %v4984_v1  ;;  %v5032_v1 = vld [vmem:[%s5223_s4 + $0x208] ss:$108 sps:$4 sm:$0xff]  }
  0xbd   : > { %4520 = vmatprep.subr.bf16.mxu0 %v4990_v6  ;;  %v5035_v6 = vld [vmem:[%s5953_s1 + $0x628] sm:$0xff]  }
  0xbe   : > { %4559 = vmatpush3.bf16.msra.mxu1 %v4988_v4  ;;  %v5034_v4 = vld [vmem:[%s5953_s1 + $0x6a0] sm:$0xff]  }
  0xbf   : > { %3236 = vmatmul.mubr.bf16.gmra.mrb[76].mxu0 %v4989_v5  ;;  %4560 = vmatprep.subr.bf16.mxu1 %v4995_v10  ;;  %v5036_v10 = vld [vmem:[%s5223_s4 + $0x2dc] ss:$108 sps:$4 sm:$0xff]  }
  0xc0   : > { %4521 = vmatpush3.bf16.msra.mxu0 %v4993_v8  ;;  %3341 = vmatprep.mubr.bf16.mxu0 %v5002_v16 }
  0xc1   : > { %3301 = vmatmul.mubr.bf16.gmra.mrb[76].mxu1 %v4994_v9  ;;  %4522 = vmatprep.subr.bf16.mxu0 %v4997_v12  ;;  %v5039_v12 = vld [vmem:[%s5953_s1 + $0x670] sm:$0xff]  }
  0xc2   : > { %4561 = vmatpush3.bf16.msra.mxu1 %v4996_v11  ;;  %3406 = vmatprep.mubr.bf16.mxu1 %v5007_v22  ;;  %v5038_v11 = vld [vmem:[%s5223_s4 + $0x2d8] ss:$108 sps:$4 sm:$0xff]  }
  0xc3   : > { %4562 = vmatprep.subr.bf16.mxu1 %v4999_v14  ;;  %v5040_v14 = vld [vmem:[%s5953_s1 + $0x6a8] sm:$0xff]  }
  0xc4   : > { %4523 = vmatpush3.bf16.msra.mxu0 %v4998_v13 }
  0xc5   : > { %4588 = vmatprep.subr.bf16.mxu0 %v5004_v19 }
  0xc6   : > { %4563 = vmatpush3.bf16.msra.mxu1 %v5003_v17  ;;  %v5041_v17 = vld [vmem:[%s5223_s4 + $0x2e4] ss:$108 sps:$4 sm:$0xff]  }
  0xc7   : > { %3342 = vmatmul.mubr.bf16.vlgmr.msra.gmra.mrb[80].mxu0 %v5000_v15  ;;  %4640 = vmatprep.subr.bf16.mxu1 %v5010_v29 }
  0xc8   : > { %4589 = vmatpush3.bf16.msra.mxu0 %v5008_v25  ;;  %3349 = vmatprep.mubr.bf16.mxu0 %v5012_v35  ;;  %v5051_v35 = vld [vmem:[%s5953_s1 + $0x6b8] sm:$0xff]  }
  0xc9   : > { %3407 = vmatmul.mubr.bf16.vlgmr.msra.gmra.mrb[80].mxu1 %v5005_v21  ;;  %4590 = vmatprep.subr.bf16.mxu0 %v5009_v27  ;;  %v5044_v21 = vld [vmem:[%s5223_s4 + $0x2e0] ss:$108 sps:$4 sm:$0xff]   ;;  %v5047_v27 = vld [vmem:[%s5953_s1 + $0x638] sm:$0xff]  }
  0xca   : > { %4641 = vmatpush3.bf16.msra.mxu1 %v5010_v29  ;;  %3414 = vmatprep.mubr.bf16.mxu1 %v5017_v42  ;;  %v5048_v29 = vld [vmem:[%s5223_s4 + $0x60] ss:$108 sps:$4 sm:$0xff]   ;;  %v5054_v42 = vld [vmem:[%s5223_s4 + $0x13c] ss:$108 sps:$4 sm:$0xff]  }
  0xcb   : > { %4642 = vmatprep.subr.bf16.mxu1 %v5016_v40 }
  0xcc   : > { %4591 = vmatpush3.bf16.msra.mxu0 %v5011_v32  ;;  %v5050_v32 = vld [vmem:[%s5223_s4 + $0x64] ss:$108 sps:$4 sm:$0xff]  }
  0xcd   : > { %4592 = vmatprep.subr.bf16.mxu0 %v5015_v39  ;;  %v5053_v39 = vld [vmem:[%s5223_s4 + $0x140] ss:$108 sps:$4 sm:$0xff]  }
  0xce   : > { %4643 = vmatpush3.bf16.msra.mxu1 %v5016_v40 }
  0xcf   : > { %3350 = vmatmul.mubr.bf16.gmra.mrb[84].mxu0 %v5014_v37  ;;  %4644 = vmatprep.subr.bf16.mxu1 %v5022_v49  ;;  %v5052_v37 = vld [vmem:[%s5223_s4 + $0x68] ss:$108 sps:$4 sm:$0xff]  }
  0xd0   : > { %4593 = vmatpush3.bf16.msra.mxu0 %v5019_v43  ;;  %3357 = vmatprep.mubr.bf16.mxu0 %v5024_v54 }
  0xd1   : > { %3415 = vmatmul.mubr.bf16.gmra.mrb[84].mxu1 %v5020_v44  ;;  %4594 = vmatprep.subr.bf16.mxu0 %v5021_v46 }
  0xd2   : > { %4645 = vmatpush3.bf16.msra.mxu1 %v5022_v49  ;;  %3422 = vmatprep.mubr.bf16.mxu1 %v5029_v63  ;;  %v3742_v49 = vld [vmem:[%s5954_s2] ss:$0 sm:$0xff] }
  0xd3   : > { %4646 = vmatprep.subr.bf16.mxu1 %v5028_v61 }
  0xd4   : > { %4595 = vmatpush3.bf16.msra.mxu0 %v5023_v51 }
  0xd5   : > { %4596 = vmatprep.subr.bf16.mxu0 %v5027_v59  ;;  %v5057_v59 = vld [vmem:[%s5223_s4 + $0x214] ss:$108 sps:$4 sm:$0xff]  }
  0xd6   : > { %4647 = vmatpush3.bf16.msra.mxu1 %v5028_v61 }
  0xd7   : > { %3358 = vmatmul.mubr.bf16.gmra.mrb[88].mxu0 %v5026_v55  ;;  %4648 = vmatprep.subr.bf16.mxu1 %v5034_v4 }
  0xd8   : > { %4597 = vmatpush3.bf16.msra.mxu0 %v5031_v0  ;;  %3365 = vmatprep.mubr.bf16.mxu0 %v5036_v10 }
  0xd9   : > { %3423 = vmatmul.mubr.bf16.gmra.mrb[88].mxu1 %v5032_v1  ;;  %4598 = vmatprep.subr.bf16.mxu0 %v5033_v2 }
  0xda   : > { %4649 = vmatpush3.bf16.msra.mxu1 %v5034_v4  ;;  %3430 = vmatprep.mubr.bf16.mxu1 %v5041_v17  ;;  %v5061_v4 = vld [vmem:[%s5223_s4 + $0x2f0] ss:$108 sps:$4 sm:$0xff]  }
  0xdb   : > { %4650 = vmatprep.subr.bf16.mxu1 %v5040_v14 }
  0xdc   : > { %4599 = vmatpush3.bf16.msra.mxu0 %v5035_v6 }
  0xdd   : > { %4600 = vmatprep.subr.bf16.mxu0 %v5039_v12 }
  0xde   : > { %4651 = vmatpush3.bf16.msra.mxu1 %v5040_v14 }
  0xdf   : > { %3366 = vmatmul.mubr.bf16.gmra.mrb[92].mxu0 %v5038_v11 }
  0xe0   : > { %3471 = vmatprep.mubr.bf16.mxu0 %v5050_v32 }
  0xe1   : > { %3431 = vmatmul.mubr.bf16.gmra.mrb[92].mxu1 %v5044_v21 }
  0xe2   : > { %4656 = vmatprep.mubr.bf16.mxu1 %v5052_v37 }
  0xfa   : > { %v4124_v18 = vpop.f32.mrb[0].mxu0 }
  0xfb   : > { %v4125_v20 = vpop.f32.mrb[1].mxu0 }
  0xfc   : > { %v5801_v23 = vadd.f32 %v4125_v20, %v4124_v18  ;;  %v4127_v24 = vpop.f32.mrb[2].mxu0  ;;  %v4164_v26 = vpop.f32.mrb[0].mxu1  ;;  %v5043_v20 = vld [vmem:[%s5953_s1 + $0x630] sm:$0xff]  }
  0xfd   : > { %v4128_v28 = vpop.f32.mrb[3].mxu0  ;;  %v4165_v31 = vpop.f32.mrb[1].mxu1  ;;  %4601 = vmatpush3.bf16.msra.mxu0 %v5043_v20 }
  0xfe   : > { %v5812_v30 = vadd.f32 %v4128_v28, %v4127_v24  ;;  %v5817_v33 = vadd.f32 %v4165_v31, %v4164_v26  ;;  %v4167_v34 = vpop.f32.mrb[2].mxu1  ;;  %v5045_v24 = vld [vmem:[%s5953_s1 + $0x678] sm:$0xff]   ;;  %v5046_v26 = vld [vmem:[%s5953_s1 + $0x6b0] sm:$0xff]   ;;  %v2694_v51 = vadd.f32 %v5801_v23, %v3742_v49 }
  0xff   : > { %v4168_v36 = vpop.f32.mrb[3].mxu1  ;;  %4602 = vmatprep.subr.bf16.mxu0 %v5045_v24  ;;  %4652 = vmatprep.subr.bf16.mxu1 %v5046_v26 }
 0x100   : > { %v5821_v38 = vadd.f32 %v4168_v36, %v4167_v34  ;;  %4653 = vmatpush3.bf16.msra.mxu1 %v5046_v26  ;;  %v2759_v2 = vadd.f32 %v5817_v33, %v2694_v51 }
 0x101   : > { %4603 = vmatpush3.bf16.msra.mxu0 %v5047_v27  ;;  %4654 = vmatprep.subr.bf16.mxu1 %v5051_v35 }
 0x102   : > { %v4130_v41 = vpop.f32.mrb[4].mxu0 }
 0x103   : > { %v4131_v45 = vpop.f32.mrb[5].mxu0 }
 0x104   : > { %v5837_v47 = vadd.f32 %v4131_v45, %v4130_v41  ;;  %v4133_v48 = vpop.f32.mrb[6].mxu0  ;;  %v4170_v50 = vpop.f32.mrb[4].mxu1  ;;  %3472 = vmatmul.mubr.bf16.vlgmr.msra.gmra.mrb[96].mxu0 %v5048_v29  ;;  %4655 = vmatpush3.bf16.msra.mxu1 %v5051_v35 }
 0x105   : > { %v4134_v52 = vpop.f32.mrb[7].mxu0  ;;  %v4171_v53 = vpop.f32.mrb[5].mxu1  ;;  %3479 = vmatprep.mubr.bf16.mxu0 %v5054_v42 }
 0x106   : > { %v5847_v56 = vadd.f32 %v4134_v52, %v4133_v48  ;;  %v5849_v57 = vadd.f32 %v4171_v53, %v4170_v50  ;;  %v4173_v58 = vpop.f32.mrb[6].mxu1  ;;  %v5060_v48 = vld [vmem:[%s5223_s4 + $0x218] ss:$108 sps:$4 sm:$0xff]   ;;  %v2697_v52 = vadd.f32 %v5812_v30, %v3742_v49  ;;  %v2702_v53 = vadd.f32 %v5837_v47, %v3742_v49 }
 0x107   : > { %v4174_v60 = vpop.f32.mrb[7].mxu1  ;;  %4657 = vmatmul.mubr.bf16.vlgmr.msra.gmra.mrb[96].mxu1 %v5053_v39  ;;  %v5056_v50 = vld [vmem:[%s5223_s4 + $0x138] ss:$108 sps:$4 sm:$0xff]  }
 0x108   : > { %v5857_v62 = vadd.f32 %v4174_v60, %v4173_v58  ;;  %4660 = vmatprep.mubr.bf16.mxu1 %v5060_v48  ;;  %v2705_v54 = vadd.f32 %v5847_v56, %v3742_v49  ;;  %v2762_v23 = vadd.f32 %v5821_v38, %v2697_v52  ;;  %v2767_v30 = vadd.f32 %v5849_v57, %v2702_v53 }
 0x10a   : > { %v4136_v3 = vpop.f32.mrb[8].mxu0 }
 0x10b   : > { %v4137_v5 = vpop.f32.mrb[9].mxu0 }
 0x10c   : > { %v5873_v7 = vadd.f32 %v4137_v5, %v4136_v3  ;;  %v4139_v8 = vpop.f32.mrb[10].mxu0  ;;  %v4176_v9 = vpop.f32.mrb[8].mxu1  ;;  %v2770_v3 = vadd.f32 %v5857_v62, %v2705_v54  ;;  %3480 = vmatmul.mubr.bf16.gmra.mrb[100].mxu0 %v5056_v50 }
 0x10d   : > { %v4140_v13 = vpop.f32.mrb[11].mxu0  ;;  %v4177_v16 = vpop.f32.mrb[9].mxu1  ;;  %3487 = vmatprep.mubr.bf16.mxu0 %v5057_v59 }
 0x10e   : > { %v4141_v15 = vadd.f32 %v4140_v13, %v4139_v8  ;;  %v5884_v18 = vadd.f32 %v4177_v16, %v4176_v9  ;;  %v4179_v19 = vpop.f32.mrb[10].mxu1  ;;  %v2710_v60 = vadd.f32 %v5873_v7, %v3742_v49 }
 0x10f   : > { %v4180_v22 = vpop.f32.mrb[11].mxu1  ;;  %4661 = vmatmul.mubr.bf16.gmra.mrb[100].mxu1 %v5061_v4 }
 0x110   : > { %v4181_v25 = vadd.f32 %v4180_v22, %v4179_v19  ;;  %v2713_v61 = vadd.f32 %v4141_v15, %v3742_v49  ;;  %v2775_v56 = vadd.f32 %v5884_v18, %v2710_v60  ;;  %v5059_v15 = vld [vmem:[%s5223_s4 + $0x210] ss:$108 sps:$4 sm:$0xff]   ;;  %v5062_v18 = vld [vmem:[%s5223_s4 + $0x2ec] ss:$108 sps:$4 sm:$0xff]  }
 0x112   : > { %v4142_v28 = vpop.f32.mrb[12].mxu0  ;;  %v2778_v5 = vadd.f32 %v4181_v25, %v2713_v61 }
 0x113   : > { %v4143_v31 = vpop.f32.mrb[13].mxu0 }
 0x114   : > { %v4144_v34 = vadd.f32 %v4143_v31, %v4142_v28  ;;  %v4145_v36 = vpop.f32.mrb[14].mxu0  ;;  %v4182_v40 = vpop.f32.mrb[12].mxu1  ;;  %3488 = vmatmul.mubr.bf16.gmra.mrb[104].mxu0 %v5059_v15  ;;  %v5064_v31 = vld [vmem:[%s5223_s4 + $0x2e8] ss:$108 sps:$4 sm:$0xff]   ;;  %s3741_s4 = sshll.u32 %s5961_s21, 2 }
 0x115   : > { %v4146_v41 = vpop.f32.mrb[15].mxu0  ;;  %v4183_v44 = vpop.f32.mrb[13].mxu1  ;;  %3495 = vmatprep.mubr.bf16.mxu0 %v5062_v18  ;;  %s5936_s9 = scalar_lea.vmem %s5955_s3, %s3741_s4 }
 0x116   : > { %v4147_v43 = vadd.f32 %v4146_v41, %v4145_v36  ;;  %v4184_v45 = vadd.f32 %v4183_v44, %v4182_v40  ;;  %v4185_v46 = vpop.f32.mrb[14].mxu1  ;;  %v2718_v63 = vadd.f32 %v4144_v34, %v3742_v49 }
 0x117   : > { %v4186_v55 = vpop.f32.mrb[15].mxu1 }
 0x118   : > { %v2721_v0 = vadd.f32 %v4147_v43, %v3742_v49  ;;  %v2783_v6 = vadd.f32 %v4184_v45, %v2718_v63  ;;  %v4187_v7 = vadd.f32 %v4186_v55, %v4185_v46 }
 0x11a   : > { %v4204_v58 = vpop.f32.mrb[16].mxu0  ;;  %v2786_v38 = vadd.f32 %v4187_v7, %v2721_v0 }
 0x11b   : > { %v4205_v1 = vpop.f32.mrb[17].mxu0 }
 0x11c   : > { %v4207_v47 = vpop.f32.mrb[18].mxu0  ;;  %v4206_v9 = vadd.f32 %v4205_v1, %v4204_v58  ;;  %v4244_v10 = vpop.f32.mrb[16].mxu1  ;;  %3496 = vmatmul.mubr.bf16.gmra.mrb[108].mxu0 %v5064_v31 }
 0x11d   : > { %v4208_v8 = vpop.f32.mrb[19].mxu0  ;;  %v4245_v11 = vpop.f32.mrb[17].mxu1 }
 0x11e   : > { %v4209_v33 = vadd.f32 %v4208_v8, %v4207_v47  ;;  %v2824_v57 = vadd.f32 %v4206_v9, %v2759_v2  ;;  %v4246_v62 = vadd.f32 %v4245_v11, %v4244_v10  ;;  %v4247_v13 = vpop.f32.mrb[18].mxu1 }
 0x11f   : > { %v4248_v14 = vpop.f32.mrb[19].mxu1 }
 0x120   : > { %v2827_v12 = vadd.f32 %v4209_v33, %v2762_v23  ;;  %v2889_v16 = vadd.f32 %v4246_v62, %v2824_v57  ;;  %v4249_v17 = vadd.f32 %v4248_v14, %v4247_v13 }
 0x122   : > { %v5926_v19 = vadd.f32 %v4249_v17, %v2827_v12  ;;  %v4210_v20 = vpop.f32.mrb[20].mxu0 }
 0x123   : > { %v4211_v21 = vpop.f32.mrb[21].mxu0 }
 0x124   : > { %v4212_v22 = vadd.f32 %v4211_v21, %v4210_v20  ;;  %v4213_v24 = vpop.f32.mrb[22].mxu0  ;;  %v4250_v25 = vpop.f32.mrb[20].mxu1 }
 0x125   : > { %v4214_v26 = vpop.f32.mrb[23].mxu0  ;;  %v4251_v29 = vpop.f32.mrb[21].mxu1 }
 0x126   : > { %v2832_v27 = vadd.f32 %v4212_v22, %v2767_v30  ;;  %v4215_v28 = vadd.f32 %v4214_v26, %v4213_v24  ;;  %v4252_v32 = vadd.f32 %v4251_v29, %v4250_v25  ;;  %v4253_v34 = vpop.f32.mrb[22].mxu1 }
 0x127   : > { %v4254_v36 = vpop.f32.mrb[23].mxu1 }
 0x128   : > { %v2835_v35 = vadd.f32 %v4215_v28, %v2770_v3  ;;  %v2897_v37 = vadd.f32 %v4252_v32, %v2832_v27  ;;  %v4255_v39 = vadd.f32 %v4254_v36, %v4253_v34 }
 0x12a   : > { %v2900_v40 = vadd.f32 %v4255_v39, %v2835_v35  ;;  %v4216_v41 = vpop.f32.mrb[24].mxu0 }
 0x12b   : > { %v4217_v42 = vpop.f32.mrb[25].mxu0 }
 0x12c   : > { %v4218_v43 = vadd.f32 %v4217_v42, %v4216_v41  ;;  %v4219_v44 = vpop.f32.mrb[26].mxu0  ;;  %v4256_v45 = vpop.f32.mrb[24].mxu1 }
 0x12d   : > { %v4220_v46 = vpop.f32.mrb[27].mxu0  ;;  %v4257_v50 = vpop.f32.mrb[25].mxu1 }
 0x12e   : > { %v2840_v48 = vadd.f32 %v4218_v43, %v2775_v56  ;;  %v4221_v49 = vadd.f32 %v4220_v46, %v4219_v44  ;;  %v4258_v51 = vadd.f32 %v4257_v50, %v4256_v45  ;;  %v4259_v52 = vpop.f32.mrb[26].mxu1 }
 0x12f   : > { %v4260_v54 = vpop.f32.mrb[27].mxu1 }
 0x130   : > { %v2843_v53 = vadd.f32 %v4221_v49, %v2778_v5  ;;  %v2905_v55 = vadd.f32 %v4258_v51, %v2840_v48  ;;  %v4261_v58 = vadd.f32 %v4260_v54, %v4259_v52 }
 0x132   : > { %v2908_v59 = vadd.f32 %v4261_v58, %v2843_v53  ;;  %v4222_v60 = vpop.f32.mrb[28].mxu0 }
 0x133   : > { %v4223_v61 = vpop.f32.mrb[29].mxu0 }
 0x134   : > { %v4224_v63 = vadd.f32 %v4223_v61, %v4222_v60  ;;  %v4225_v0 = vpop.f32.mrb[30].mxu0  ;;  %v4262_v23 = vpop.f32.mrb[28].mxu1 }
 0x135   : > { %v4226_v1 = vpop.f32.mrb[31].mxu0  ;;  %v4263_v3 = vpop.f32.mrb[29].mxu1 }
 0x136   : > { %v2848_v2 = vadd.f32 %v4224_v63, %v2783_v6  ;;  %v4227_v30 = vadd.f32 %v4226_v1, %v4225_v0  ;;  %v4264_v4 = vadd.f32 %v4263_v3, %v4262_v23  ;;  %v4265_v56 = vpop.f32.mrb[30].mxu1 }
 0x137   : > { %v4266_v7 = vpop.f32.mrb[31].mxu1 }
 0x138   : > { %v2851_v47 = vadd.f32 %v4227_v30, %v2786_v38  ;;  %v2913_v8 = vadd.f32 %v4264_v4, %v2848_v2  ;;  %v4267_v9 = vadd.f32 %v4266_v7, %v4265_v56 }
 0x13a   : > { %v2916_v5 = vadd.f32 %v4267_v9, %v2851_v47  ;;  %v4284_v10 = vpop.f32.mrb[32].mxu0 }
 0x13b   : > { %v4285_v33 = vpop.f32.mrb[33].mxu0 }
 0x13c   : > { %v4286_v11 = vadd.f32 %v4285_v33, %v4284_v10  ;;  %v4287_v57 = vpop.f32.mrb[34].mxu0  ;;  %v4324_v12 = vpop.f32.mrb[32].mxu1 }
 0x13d   : > { %v4288_v62 = vpop.f32.mrb[35].mxu0  ;;  %v4325_v15 = vpop.f32.mrb[33].mxu1 }
 0x13e   : > { %v2954_v13 = vadd.f32 %v4286_v11, %v2889_v16  ;;  %v4289_v14 = vadd.f32 %v4288_v62, %v4287_v57  ;;  %v4326_v6 = vadd.f32 %v4325_v15, %v4324_v12  ;;  %v4327_v17 = vpop.f32.mrb[34].mxu1 }
 0x13f   : > { %v4328_v38 = vpop.f32.mrb[35].mxu1 }
 0x140   : > { %v2957_v18 = vadd.f32 %v4289_v14, %v5926_v19  ;;  %v3019_v20 = vadd.f32 %v4326_v6, %v2954_v13  ;;  %v4329_v21 = vadd.f32 %v4328_v38, %v4327_v17 }
 0x142   : > { %v3022_v22 = vadd.f32 %v4329_v21, %v2957_v18  ;;  %v4290_v24 = vpop.f32.mrb[36].mxu0 }
 0x143   : > { %v4291_v25 = vpop.f32.mrb[37].mxu0 }
 0x144   : > { %v4292_v26 = vadd.f32 %v4291_v25, %v4290_v24  ;;  %v4293_v27 = vpop.f32.mrb[38].mxu0  ;;  %v4330_v28 = vpop.f32.mrb[36].mxu1 }
 0x145   : > { %v4294_v29 = vpop.f32.mrb[39].mxu0  ;;  %v4331_v34 = vpop.f32.mrb[37].mxu1 }
 0x146   : > { %v2962_v31 = vadd.f32 %v4292_v26, %v2897_v37  ;;  %v4295_v32 = vadd.f32 %v4294_v29, %v4293_v27  ;;  %v4332_v16 = vadd.f32 %v4331_v34, %v4330_v28  ;;  %v4333_v35 = vpop.f32.mrb[38].mxu1 }
 0x147   : > { %v4334_v39 = vpop.f32.mrb[39].mxu1 }
 0x148   : > { %v2965_v36 = vadd.f32 %v4295_v32, %v2900_v40  ;;  %v3027_v41 = vadd.f32 %v4332_v16, %v2962_v31  ;;  %v4335_v42 = vadd.f32 %v4334_v39, %v4333_v35 }
 0x14a   : > { %v3030_v19 = vadd.f32 %v4335_v42, %v2965_v36  ;;  %v4296_v43 = vpop.f32.mrb[40].mxu0 }
 0x14b   : > { %v4297_v44 = vpop.f32.mrb[41].mxu0 }
 0x14c   : > { %v4298_v45 = vadd.f32 %v4297_v44, %v4296_v43  ;;  %v4299_v46 = vpop.f32.mrb[42].mxu0  ;;  %v4336_v50 = vpop.f32.mrb[40].mxu1 }
 0x14d   : > { %v4300_v48 = vpop.f32.mrb[43].mxu0  ;;  %v4337_v52 = vpop.f32.mrb[41].mxu1 }
 0x14e   : > { %v2970_v49 = vadd.f32 %v4298_v45, %v2905_v55  ;;  %v4301_v51 = vadd.f32 %v4300_v48, %v4299_v46  ;;  %v4338_v37 = vadd.f32 %v4337_v52, %v4336_v50  ;;  %v4339_v54 = vpop.f32.mrb[42].mxu1 }
 0x14f   : > { %v4340_v58 = vpop.f32.mrb[43].mxu1 }
 0x150   : > { %v2973_v53 = vadd.f32 %v4301_v51, %v2908_v59  ;;  %v3035_v60 = vadd.f32 %v4338_v37, %v2970_v49  ;;  %v4341_v61 = vadd.f32 %v4340_v58, %v4339_v54 }
 0x152   : > { %v3038_v40 = vadd.f32 %v4341_v61, %v2973_v53  ;;  %v4302_v63 = vpop.f32.mrb[44].mxu0 }
 0x153   : > { %v4303_v0 = vpop.f32.mrb[45].mxu0 }
 0x154   : > { %v4304_v1 = vadd.f32 %v4303_v0, %v4302_v63  ;;  %v4305_v2 = vpop.f32.mrb[46].mxu0  ;;  %v4342_v23 = vpop.f32.mrb[44].mxu1 }
 0x155   : > { %v4306_v30 = vpop.f32.mrb[47].mxu0  ;;  %v4343_v4 = vpop.f32.mrb[45].mxu1 }
 0x156   : > { %v2978_v3 = vadd.f32 %v4304_v1, %v2913_v8  ;;  %v4307_v47 = vadd.f32 %v4306_v30, %v4305_v2  ;;  %v4344_v55 = vadd.f32 %v4343_v4, %v4342_v23  ;;  %v4345_v56 = vpop.f32.mrb[46].mxu1 }
 0x157   : > { %v4346_v9 = vpop.f32.mrb[47].mxu1 }
 0x158   : > { %v2981_v7 = vadd.f32 %v4307_v47, %v2916_v5  ;;  %v3043_v59 = vadd.f32 %v4344_v55, %v2978_v3  ;;  %v4347_v10 = vadd.f32 %v4346_v9, %v4345_v56 }
 0x15a   : > { %v3046_v33 = vadd.f32 %v4347_v10, %v2981_v7  ;;  %v4364_v11 = vpop.f32.mrb[48].mxu0 }
 0x15b   : > { %v4365_v57 = vpop.f32.mrb[49].mxu0 }
 0x15c   : > { %v4366_v12 = vadd.f32 %v4365_v57, %v4364_v11  ;;  %v4367_v62 = vpop.f32.mrb[50].mxu0  ;;  %v4404_v13 = vpop.f32.mrb[48].mxu1 }
 0x15d   : > { %v4368_v14 = vpop.f32.mrb[51].mxu0  ;;  %v4405_v17 = vpop.f32.mrb[49].mxu1 }
 0x15e   : > { %v3084_v15 = vadd.f32 %v4366_v12, %v3019_v20  ;;  %v4369_v6 = vadd.f32 %v4368_v14, %v4367_v62  ;;  %v4406_v18 = vadd.f32 %v4405_v17, %v4404_v13  ;;  %v4407_v8 = vpop.f32.mrb[50].mxu1 }
 0x15f   : > { %v4408_v21 = vpop.f32.mrb[51].mxu1 }
 0x160   : > { %v3087_v38 = vadd.f32 %v4369_v6, %v3022_v22  ;;  %v3149_v24 = vadd.f32 %v4406_v18, %v3084_v15  ;;  %v4409_v25 = vadd.f32 %v4408_v21, %v4407_v8 }
 0x162   : > { %v3152_v5 = vadd.f32 %v4409_v25, %v3087_v38  ;;  %v4370_v26 = vpop.f32.mrb[52].mxu0 }
 0x163   : > { %v4371_v27 = vpop.f32.mrb[53].mxu0 }
 0x164   : > { %v4372_v28 = vadd.f32 %v4371_v27, %v4370_v26  ;;  %v4373_v29 = vpop.f32.mrb[54].mxu0  ;;  %v4410_v34 = vpop.f32.mrb[52].mxu1 }
 0x165   : > { %v4374_v31 = vpop.f32.mrb[55].mxu0  ;;  %v4411_v35 = vpop.f32.mrb[53].mxu1 }
 0x166   : > { %v3092_v32 = vadd.f32 %v4372_v28, %v3027_v41  ;;  %v4375_v16 = vadd.f32 %v4374_v31, %v4373_v29  ;;  %v4412_v20 = vadd.f32 %v4411_v35, %v4410_v34  ;;  %v4413_v39 = vpop.f32.mrb[54].mxu1 }
 0x167   : > { %v4414_v42 = vpop.f32.mrb[55].mxu1 }
 0x168   : > { %v3095_v36 = vadd.f32 %v4375_v16, %v3030_v19  ;;  %v3157_v43 = vadd.f32 %v4412_v20, %v3092_v32  ;;  %v4415_v44 = vadd.f32 %v4414_v42, %v4413_v39 }
 0x16a   : > { %v3160_v22 = vadd.f32 %v4415_v44, %v3095_v36  ;;  %v4376_v45 = vpop.f32.mrb[56].mxu0 }
 0x16b   : > { %v4377_v46 = vpop.f32.mrb[57].mxu0 }
 0x16c   : > { %v4378_v48 = vadd.f32 %v4377_v46, %v4376_v45  ;;  %v4379_v49 = vpop.f32.mrb[58].mxu0  ;;  %v4416_v50 = vpop.f32.mrb[56].mxu1 }
 0x16d   : > { %v4380_v51 = vpop.f32.mrb[59].mxu0  ;;  %v4417_v37 = vpop.f32.mrb[57].mxu1 }
 0x16e   : > { %v3100_v52 = vadd.f32 %v4378_v48, %v3035_v60  ;;  %v4381_v53 = vadd.f32 %v4380_v51, %v4379_v49  ;;  %v4418_v41 = vadd.f32 %v4417_v37, %v4416_v50  ;;  %v4419_v54 = vpop.f32.mrb[58].mxu1 }
 0x16f   : > { %v4420_v61 = vpop.f32.mrb[59].mxu1 }
 0x170   : > { %v3103_v58 = vadd.f32 %v4381_v53, %v3038_v40  ;;  %v3165_v19 = vadd.f32 %v4418_v41, %v3100_v52  ;;  %v4421_v63 = vadd.f32 %v4420_v61, %v4419_v54 }
 0x172   : > { %v3168_v0 = vadd.f32 %v4421_v63, %v3103_v58  ;;  %v4382_v1 = vpop.f32.mrb[60].mxu0 }
 0x173   : > { %v4383_v2 = vpop.f32.mrb[61].mxu0 }
 0x174   : > { %v4384_v23 = vadd.f32 %v4383_v2, %v4382_v1  ;;  %v4385_v30 = vpop.f32.mrb[62].mxu0  ;;  %v4422_v3 = vpop.f32.mrb[60].mxu1 }
 0x175   : > { %v4386_v47 = vpop.f32.mrb[63].mxu0  ;;  %v4423_v56 = vpop.f32.mrb[61].mxu1 }
 0x176   : > { %v3108_v4 = vadd.f32 %v4384_v23, %v3043_v59  ;;  %v4387_v55 = vadd.f32 %v4386_v47, %v4385_v30  ;;  %v4424_v7 = vadd.f32 %v4423_v56, %v4422_v3  ;;  %v4425_v60 = vpop.f32.mrb[62].mxu1 }
 0x177   : > { %v4426_v10 = vpop.f32.mrb[63].mxu1 }
 0x178   : > { %v3111_v9 = vadd.f32 %v4387_v55, %v3046_v33  ;;  %v3173_v11 = vadd.f32 %v4424_v7, %v3108_v4  ;;  %v4427_v57 = vadd.f32 %v4426_v10, %v4425_v60 }
 0x17a   : > { %v3176_v40 = vadd.f32 %v4427_v57, %v3111_v9  ;;  %v4444_v12 = vpop.f32.mrb[64].mxu0 }
 0x17b   : > { %v4445_v62 = vpop.f32.mrb[65].mxu0 }
 0x17c   : > { %v4446_v13 = vadd.f32 %v4445_v62, %v4444_v12  ;;  %v4447_v14 = vpop.f32.mrb[66].mxu0  ;;  %v4484_v17 = vpop.f32.mrb[64].mxu1 }
 0x17d   : > { %v4448_v15 = vpop.f32.mrb[67].mxu0  ;;  %v4485_v8 = vpop.f32.mrb[65].mxu1 }
 0x17e   : > { %v3214_v6 = vadd.f32 %v4446_v13, %v3149_v24  ;;  %v4449_v18 = vadd.f32 %v4448_v15, %v4447_v14  ;;  %v4486_v59 = vadd.f32 %v4485_v8, %v4484_v17  ;;  %v4487_v21 = vpop.f32.mrb[66].mxu1 }
 0x17f   : > { %v4488_v25 = vpop.f32.mrb[67].mxu1 }
 0x180   : > { %v3217_v38 = vadd.f32 %v4449_v18, %v3152_v5  ;;  %v3279_v26 = vadd.f32 %v4486_v59, %v3214_v6  ;;  %v4489_v27 = vadd.f32 %v4488_v25, %v4487_v21 }
 0x182   : > { %v3282_v33 = vadd.f32 %v4489_v27, %v3217_v38  ;;  %v4450_v28 = vpop.f32.mrb[68].mxu0 }
 0x183   : > { %v4451_v29 = vpop.f32.mrb[69].mxu0 }
 0x184   : > { %v4452_v31 = vadd.f32 %v4451_v29, %v4450_v28  ;;  %v4453_v32 = vpop.f32.mrb[70].mxu0  ;;  %v4490_v34 = vpop.f32.mrb[68].mxu1 }
 0x185   : > { %v4454_v16 = vpop.f32.mrb[71].mxu0  ;;  %v4491_v20 = vpop.f32.mrb[69].mxu1 }
 0x186   : > { %v3222_v35 = vadd.f32 %v4452_v31, %v3157_v43  ;;  %v4455_v36 = vadd.f32 %v4454_v16, %v4453_v32  ;;  %v4492_v24 = vadd.f32 %v4491_v20, %v4490_v34  ;;  %v4493_v39 = vpop.f32.mrb[70].mxu1 }
 0x187   : > { %v4494_v44 = vpop.f32.mrb[71].mxu1 }
 0x188   : > { %v3225_v42 = vadd.f32 %v4455_v36, %v3160_v22  ;;  %v3287_v5 = vadd.f32 %v4492_v24, %v3222_v35  ;;  %v4495_v45 = vadd.f32 %v4494_v44, %v4493_v39 }
 0x18a   : > { %v3290_v46 = vadd.f32 %v4495_v45, %v3225_v42  ;;  %v4456_v48 = vpop.f32.mrb[72].mxu0 }
 0x18b   : > { %v4457_v49 = vpop.f32.mrb[73].mxu0 }
 0x18c   : > { %v4458_v50 = vadd.f32 %v4457_v49, %v4456_v48  ;;  %v4459_v51 = vpop.f32.mrb[74].mxu0  ;;  %v4496_v52 = vpop.f32.mrb[72].mxu1 }
 0x18d   : > { %v4460_v53 = vpop.f32.mrb[75].mxu0  ;;  %v4497_v54 = vpop.f32.mrb[73].mxu1 }
 0x18e   : > { %v3230_v37 = vadd.f32 %v4458_v50, %v3165_v19  ;;  %v4461_v41 = vadd.f32 %v4460_v53, %v4459_v51  ;;  %v4498_v58 = vadd.f32 %v4497_v54, %v4496_v52  ;;  %v4499_v43 = vpop.f32.mrb[74].mxu1 }
 0x18f   : > { %v4500_v63 = vpop.f32.mrb[75].mxu1 }
 0x190   : > { %v3233_v61 = vadd.f32 %v4461_v41, %v3168_v0  ;;  %v3295_v1 = vadd.f32 %v4498_v58, %v3230_v37  ;;  %v4501_v2 = vadd.f32 %v4500_v63, %v4499_v43 }
 0x192   : > { %v3298_v22 = vadd.f32 %v4501_v2, %v3233_v61  ;;  %v4462_v23 = vpop.f32.mrb[76].mxu0 }
 0x193   : > { %v4463_v30 = vpop.f32.mrb[77].mxu0 }
 0x194   : > { %v4464_v3 = vadd.f32 %v4463_v30, %v4462_v23  ;;  %v4465_v47 = vpop.f32.mrb[78].mxu0  ;;  %v4502_v56 = vpop.f32.mrb[76].mxu1 }
 0x195   : > { %v4466_v4 = vpop.f32.mrb[79].mxu0  ;;  %v4503_v60 = vpop.f32.mrb[77].mxu1 }
 0x196   : > { %v3238_v55 = vadd.f32 %v4464_v3, %v3173_v11  ;;  %v4467_v7 = vadd.f32 %v4466_v4, %v4465_v47  ;;  %v4504_v19 = vadd.f32 %v4503_v60, %v4502_v56  ;;  %v4505_v10 = vpop.f32.mrb[78].mxu1 }
 0x197   : > { %v4506_v57 = vpop.f32.mrb[79].mxu1 }
 0x198   : > { %v3241_v9 = vadd.f32 %v4467_v7, %v3176_v40  ;;  %v3303_v12 = vadd.f32 %v4504_v19, %v3238_v55  ;;  %v4507_v62 = vadd.f32 %v4506_v57, %v4505_v10 }
 0x19a   : > { %v3306_v0 = vadd.f32 %v4507_v62, %v3241_v9  ;;  %v4524_v13 = vpop.f32.mrb[80].mxu0 }
 0x19b   : > { %v4525_v14 = vpop.f32.mrb[81].mxu0 }
 0x19c   : > { %v4526_v15 = vadd.f32 %v4525_v14, %v4524_v13  ;;  %v4527_v6 = vpop.f32.mrb[82].mxu0  ;;  %v4564_v17 = vpop.f32.mrb[80].mxu1 }
 0x19d   : > { %v4528_v18 = vpop.f32.mrb[83].mxu0  ;;  %v4565_v59 = vpop.f32.mrb[81].mxu1 }
 0x19e   : > { %v3344_v8 = vadd.f32 %v4526_v15, %v3279_v26  ;;  %v4529_v38 = vadd.f32 %v4528_v18, %v4527_v6  ;;  %v4566_v11 = vadd.f32 %v4565_v59, %v4564_v17  ;;  %v4567_v21 = vpop.f32.mrb[82].mxu1 }
 0x19f   : > { %v4568_v27 = vpop.f32.mrb[83].mxu1 }
 0x1a0   : > { %v3347_v25 = vadd.f32 %v4529_v38, %v3282_v33  ;;  %v3409_v40 = vadd.f32 %v4566_v11, %v3344_v8  ;;  %v4569_v28 = vadd.f32 %v4568_v27, %v4567_v21 }
 0x1a2   : > { %v4530_v29 = vpop.f32.mrb[84].mxu0  ;;  %v3412_v31 = vadd.f32 %v4569_v28, %v3347_v25 }
 0x1a3   : > { %v4531_v32 = vpop.f32.mrb[85].mxu0 }
 0x1a4   : > { %v4532_v34 = vadd.f32 %v4531_v32, %v4530_v29  ;;  %v4533_v16 = vpop.f32.mrb[86].mxu0  ;;  %v4570_v20 = vpop.f32.mrb[84].mxu1 }
 0x1a5   : > { %v4534_v35 = vpop.f32.mrb[87].mxu0  ;;  %v4571_v39 = vpop.f32.mrb[85].mxu1 }
 0x1a6   : > { %v3352_v36 = vadd.f32 %v4532_v34, %v3287_v5  ;;  %v4535_v24 = vadd.f32 %v4534_v35, %v4533_v16  ;;  %v4572_v26 = vadd.f32 %v4571_v39, %v4570_v20  ;;  %v4573_v44 = vpop.f32.mrb[86].mxu1 }
 0x1a7   : > { %v4574_v45 = vpop.f32.mrb[87].mxu1 }
 0x1a8   : > { %v3355_v42 = vadd.f32 %v4535_v24, %v3290_v46  ;;  %v3417_v48 = vadd.f32 %v4572_v26, %v3352_v36  ;;  %v4575_v49 = vadd.f32 %v4574_v45, %v4573_v44 }
 0x1aa   : > { %v4536_v33 = vpop.f32.mrb[88].mxu0  ;;  %v5930_v50 = vadd.f32 %v4575_v49, %v3355_v42 }
 0x1ab   : > { %v4537_v51 = vpop.f32.mrb[89].mxu0 }
 0x1ac   : > { %v4538_v52 = vadd.f32 %v4537_v51, %v4536_v33  ;;  %v4539_v53 = vpop.f32.mrb[90].mxu0  ;;  %v4576_v54 = vpop.f32.mrb[88].mxu1 }
 0x1ad   : > { %v4540_v37 = vpop.f32.mrb[91].mxu0  ;;  %v4577_v5 = vpop.f32.mrb[89].mxu1 }
 0x1ae   : > { %v3360_v41 = vadd.f32 %v4538_v52, %v3295_v1  ;;  %v4541_v58 = vadd.f32 %v4540_v37, %v4539_v53  ;;  %v4578_v61 = vadd.f32 %v4577_v5, %v4576_v54  ;;  %v4579_v63 = vpop.f32.mrb[90].mxu1 }
 0x1af   : > { %v4580_v46 = vpop.f32.mrb[91].mxu1 }
 0x1b0   : > { %v3363_v43 = vadd.f32 %v4541_v58, %v3298_v22  ;;  %v3425_v2 = vadd.f32 %v4578_v61, %v3360_v41  ;;  %v4581_v23 = vadd.f32 %v4580_v46, %v4579_v63 }
 0x1b2   : > { %v4542_v30 = vpop.f32.mrb[92].mxu0  ;;  %v3428_v3 = vadd.f32 %v4581_v23, %v3363_v43 }
 0x1b3   : > { %v4543_v47 = vpop.f32.mrb[93].mxu0 }
 0x1b4   : > { %v4544_v4 = vadd.f32 %v4543_v47, %v4542_v30  ;;  %v4545_v55 = vpop.f32.mrb[94].mxu0  ;;  %v4582_v56 = vpop.f32.mrb[92].mxu1 }
 0x1b5   : > { %v4546_v7 = vpop.f32.mrb[95].mxu0  ;;  %v4583_v19 = vpop.f32.mrb[93].mxu1 }
 0x1b6   : > { %v3368_v60 = vadd.f32 %v4544_v4, %v3303_v12  ;;  %v4547_v9 = vadd.f32 %v4546_v7, %v4545_v55  ;;  %v4584_v1 = vadd.f32 %v4583_v19, %v4582_v56  ;;  %v4585_v10 = vpop.f32.mrb[94].mxu1 }
 0x1b7   : > { %v4586_v62 = vpop.f32.mrb[95].mxu1 }
 0x1b8   : > { %v3371_v57 = vadd.f32 %v4547_v9, %v3306_v0  ;;  %v3433_v22 = vadd.f32 %v4584_v1, %v3368_v60  ;;  %v4587_v13 = vadd.f32 %v4586_v62, %v4585_v10 }
 0x1ba   : > { %v3436_v14 = vadd.f32 %v4587_v13, %v3371_v57 }
 0x1d7   : > { %v4604_v15 = vpop.f32.mrb[96].mxu0 }
 0x1d8   : > { %v4605_v6 = vpop.f32.mrb[97].mxu0 }
 0x1d9   : > { %v4606_v17 = vadd.f32 %v4605_v6, %v4604_v15  ;;  %v4607_v18 = vpop.f32.mrb[98].mxu0 }
 0x1da   : > { %v4608_v8 = vpop.f32.mrb[99].mxu0  ;;  %v4658_v38 = vpop.f32.mrb[96].mxu1 }
 0x1db   : > { %v4609_v59 = vadd.f32 %v4608_v8, %v4607_v18  ;;  %v3474_v11 = vadd.f32 %v4606_v17, %v3409_v40  ;;  %v3538_v21 = vpop.f32.mrb[97].mxu1 }
 0x1dc   : > { %v4659_v12 = vpop.f32.mrb[98].mxu1 }
 0x1dd   : > { %v3539_v25 = vadd.f32 %v3538_v21, %v3474_v11  ;;  %v3477_v27 = vadd.f32 %v4609_v59, %v3412_v31  ;;  %v3541_v28 = vpop.f32.mrb[99].mxu1 }
 0x1df   : > { %v3542_v0 = vadd.f32 %v3541_v28, %v3477_v27  ;;  %v4610_v29 = vpop.f32.mrb[100].mxu0  ;;  %v3569_v34 = vmax.f32 %v3539_v25, 0.0 }
 0x1e0   : > { %v4611_v32 = vpop.f32.mrb[101].mxu0 }
 0x1e1   : > { %v3570_v16 = vmax.f32 %v3542_v0, 0.0  ;;  %v4612_v35 = vadd.f32 %v4611_v32, %v4610_v29  ;;  %v4613_v36 = vpop.f32.mrb[102].mxu0 }
 0x1e2   : > { %v4614_v40 = vpop.f32.mrb[103].mxu0  ;;  %v4662_v20 = vpop.f32.mrb[100].mxu1 }
 0x1e3   : > { %v4088_v24 = vpack.c.bf16 %v3570_v16, %v3569_v34  ;;  %v3482_v39 = vadd.f32 %v4612_v35, %v3417_v48  ;;  %v4615_v31 = vadd.f32 %v4614_v40, %v4613_v36  ;;  %v3554_v42 = vpop.f32.mrb[101].mxu1 }
 0x1e4   : > { %v4663_v26 = vpop.f32.mrb[102].mxu1 }
 0x1e5   : > { %4089 = vst [vmem:[%s5936_s9] sm:$0xff] %v4088_v24   ;;  %v3547_v44 = vadd.f32 %v4658_v38, %v3482_v39  ;;  %v3485_v45 = vadd.f32 %v4615_v31, %v5930_v50  ;;  %v3557_v49 = vpop.f32.mrb[103].mxu1 }
 0x1e7   : > { %v3550_v33 = vadd.f32 %v4659_v12, %v3485_v45  ;;  %v4616_v51 = vpop.f32.mrb[104].mxu0  ;;  %v3571_v53 = vmax.f32 %v3547_v44, 0.0 }
 0x1e8   : > { %v4617_v52 = vpop.f32.mrb[105].mxu0 }
 0x1e9   : > { %v3572_v37 = vmax.f32 %v3550_v33, 0.0  ;;  %v4618_v41 = vadd.f32 %v4617_v52, %v4616_v51  ;;  %v4619_v54 = vpop.f32.mrb[106].mxu0 }
 0x1ea   : > { %v4620_v58 = vpop.f32.mrb[107].mxu0 }
 0x1eb   : > { %v4093_v5 = vpack.c.bf16 %v3572_v37, %v3571_v53  ;;  %v4621_v43 = vadd.f32 %v4620_v58, %v4619_v54  ;;  %v3490_v48 = vadd.f32 %v4618_v41, %v3425_v2 }
 0x1ed   : > { %4105 = vst [vmem:[%s5936_s9 + $0x8] sm:$0xff] %v4093_v5   ;;  %v3555_v61 = vadd.f32 %v3554_v42, %v3490_v48  ;;  %v3493_v63 = vadd.f32 %v4621_v43, %v3428_v3 }
 0x1ef   : > { %v3558_v46 = vadd.f32 %v3557_v49, %v3493_v63  ;;  %v4622_v23 = vpop.f32.mrb[108].mxu0  ;;  %v3573_v50 = vmax.f32 %v3555_v61, 0.0 }
 0x1f0   : > { %v4623_v30 = vpop.f32.mrb[109].mxu0 }
 0x1f1   : > { %v3574_v47 = vmax.f32 %v3558_v46, 0.0  ;;  %v4624_v4 = vadd.f32 %v4623_v30, %v4622_v23  ;;  %v4625_v55 = vpop.f32.mrb[110].mxu0 }
 0x1f2   : > { %v4626_v56 = vpop.f32.mrb[111].mxu0 }
 0x1f3   : > { %v4098_v7 = vpack.c.bf16 %v3574_v47, %v3573_v50  ;;  %v3498_v60 = vadd.f32 %v4624_v4, %v3433_v22  ;;  %v4627_v9 = vadd.f32 %v4626_v56, %v4625_v55 }
 0x1f5   : > { %4106 = vst [vmem:[%s5936_s9 + $0x10] sm:$0xff] %v4098_v7   ;;  %v3563_v19 = vadd.f32 %v4662_v20, %v3498_v60  ;;  %v3501_v1 = vadd.f32 %v4627_v9, %v3436_v14 }
 0x1f7   : > { %v3566_v10 = vadd.f32 %v4663_v26, %v3501_v1  ;;  %v3575_v2 = vmax.f32 %v3563_v19, 0.0 }
 0x1f9   : > { %v3576_v57 = vmax.f32 %v3566_v10, 0.0 }
 0x1fb   : > { %v4103_v62 = vpack.c.bf16 %v3576_v57, %v3575_v2 }
 0x1fd   : > { %4107 = vst [vmem:[%s5936_s9 + $0x18] sm:$0xff] %v4103_v62  }
 0x1fe PF: > { %s13_s14 = sadd.s32 1, %s5087_s14   ;;  %s5956_s12 = smov %s5083_s13 }
 0x1ff   : > { %p10_p5 = scmp.ge.s32.totalorder %s13_s14, 4   ;;  %s5957_s13 = smov %s5959_s15 }
 0x201   :  { %12 = sbr.rel (!%p10_p5) target bundleno = 2 (0x2), region = 68 }

// kernel: voxel_feature_extractor.8
= control target key start
LH: loop header
LB: loop body
LE: loop exit
PB: predicated region body
PF: predicated region fallthrough
CT: control target
= control target key end

     0   :  { %s5598_s12 = smov 0   ;;  %s5600_s13 = smov 0   ;;  %s6846_s0 = inlined_call_operand.vmem [shape: bf16[16,3456], index: 0, kind: input, shape index: {}]   ;;  %s6847_s1 = inlined_call_operand.vmem [shape: bf16[3456,256], index: 1, kind: input, shape index: {}]   ;;  %s6848_s2 = inlined_call_operand.vmem [shape: f32[1,256], index: 2, kind: input, shape index: {}]   ;;  %s6849_s3 = inlined_call_operand.vmem [shape: bf16[16,256], index: 3, kind: output, shape index: {}]  }
   0x1   :  { %s5602_s14 = smov 0   ;;  %s5604_s15 = smov 0  }
   0x2   :  { %s5606_s16 = smov 0  }
   0x3 LB: > { %s28_s17 = sadd.s32 1, %s5570_s15  ;;  %s4656_s18 = sadd.s32 4294967295, %s5574_s16   ;;  %s5574_s16 = sphi %s5606_s16, %s13_s16   ;;  %s5570_s15 = sphi %s5604_s15, %s6854_s15   ;;  %s5566_s14 = sphi %s5602_s14, %s6853_s14   ;;  %s5562_s13 = sphi %s5600_s13, %s6852_s13   ;;  %s5558_s12 = sphi %s5598_s12, %s6851_s12  }
   0x4   : > { %p30_p0 = scmp.ge.s32.totalorder %s28_s17, 2  ;;  %p76_p1 = scmp.ne.s32.totalorder %s5562_s13, %s5558_s12 }
   0x5   : > { %p77_p2 = scmp.eq.s32.totalorder %s5574_s16, 0  ;;  %p134_p4 = scmp.eq.s32.totalorder %s4656_s18, 1 }
   0x6   : > { %s6856_s17 = smov (%p30_p0, %s28_s17), 0  ;;  %s69_s20 = sadd.s32 1, %s5562_s13 }
   0x7   : > { %p78_p3 = por %p77_p2, %p76_p1  ;;  %s65_s19 = ssub.s32 %s5570_s15, %s6856_s17 }
   0x8   : > { %p67_p5 = scmp.eq.s32.totalorder %s65_s19, 0  ;;  %p5633_p6 = por %p134_p4, %p76_p1 }
   0x9   : > { %p4660_p7 = scmp.ge.s32.totalorder %s5574_s16, 2 }
   0xa   : > { %s5638_s22 = scalar_select %p67_p5, %s5562_s13, %s69_s20  }
   0xb   : > { %171 = sbr.rel (%p4660_p7) target bundleno = 310 (0x136), region = 20 }
  0x12   : > { %174 = sbr.rel (!%p78_p3) target bundleno = 310 (0x136), region = 24  ;;  %s176_s23 = sand.u32 (%p78_p3), 1, %s5562_s13  }
  0x13   : > { %s4661_s24 = sshll.u32 (%p78_p3), %s5570_s15, 2  ;;  %s5236_s25 = smul.u32 (%p78_p3), 1728, %s176_s23 }
  0x14   : > { %s5646_s28 = scalar_lea.vmem (%p78_p3), %s6847_s1, %s4661_s24 }
  0x15   : > { %v199_v0 = vld [vmem:[%s5646_s28] sm:$0xf] (%p78_p3)  ;;  %v201_v1 = vld [vmem:[%s5646_s28 + $0x8] sm:$0xf] (%p78_p3)  ;;  %v203_v2 = vld [vmem:[%s5646_s28 + $0x10] sm:$0xf] (%p78_p3) }
  0x16   : > { %v205_v3 = vld [vmem:[%s5646_s28 + $0x18] sm:$0xf] (%p78_p3)  ;;  %v207_v4 = vld [vmem:[%s5646_s28 + $0x20] sm:$0xf] (%p78_p3)  ;;  %s5653_s29 = scalar_lea.vmem (%p78_p3), [#allocation2], %s5236_s25 }
  0x17   : > { %200 = vst [vmem:[%s5653_s29] sm:$0xf] (%p78_p3), %v199_v0  ;;  %202 = vst [vmem:[%s5653_s29 + $0x4] sm:$0xf] (%p78_p3), %v201_v1  ;;  %v209_v5 = vld [vmem:[%s5646_s28 + $0x28] sm:$0xf] (%p78_p3) }
  0x18   : > { %204 = vst [vmem:[%s5653_s29 + $0x8] sm:$0xf] (%p78_p3), %v203_v2  ;;  %206 = vst [vmem:[%s5653_s29 + $0xc] sm:$0xf] (%p78_p3), %v205_v3  ;;  %v211_v6 = vld [vmem:[%s5646_s28 + $0x30] sm:$0xf] (%p78_p3) }
  0x19   : > { %208 = vst [vmem:[%s5653_s29 + $0x10] sm:$0xf] %v207_v4  ;;  %v213_v7 = vld [vmem:[%s5646_s28 + $0x38] sm:$0xf]  ;;  %210 = vst [vmem:[%s5653_s29 + $0x14] sm:$0xf] %v209_v5 }
  0x1a   : > { %212 = vst [vmem:[%s5653_s29 + $0x18] sm:$0xf] %v211_v6  ;;  %214 = vst [vmem:[%s5653_s29 + $0x1c] sm:$0xf] %v213_v7  ;;  %v215_v8 = vld [vmem:[%s5646_s28 + $0x40] sm:$0xf] }
  0x1b   : > { %v217_v9 = vld [vmem:[%s5646_s28 + $0x48] sm:$0xf]  ;;  %v219_v10 = vld [vmem:[%s5646_s28 + $0x50] sm:$0xf]  ;;  %216 = vst [vmem:[%s5653_s29 + $0x20] sm:$0xf] %v215_v8 }
  0x1c   : > { %218 = vst [vmem:[%s5653_s29 + $0x24] sm:$0xf] %v217_v9  ;;  %220 = vst [vmem:[%s5653_s29 + $0x28] sm:$0xf] %v219_v10  ;;  %v221_v11 = vld [vmem:[%s5646_s28 + $0x58] sm:$0xf] }
  0x1d   : > { %v223_v12 = vld [vmem:[%s5646_s28 + $0x60] sm:$0xf]  ;;  %v225_v13 = vld [vmem:[%s5646_s28 + $0x68] sm:$0xf]  ;;  %222 = vst [vmem:[%s5653_s29 + $0x2c] sm:$0xf] %v221_v11 }
  0x1e   : > { %224 = vst [vmem:[%s5653_s29 + $0x30] sm:$0xf] %v223_v12  ;;  %226 = vst [vmem:[%s5653_s29 + $0x34] sm:$0xf] %v225_v13  ;;  %v227_v14 = vld [vmem:[%s5646_s28 + $0x70] sm:$0xf] }
  0x1f   : > { %v229_v15 = vld [vmem:[%s5646_s28 + $0x78] sm:$0xf]  ;;  %v231_v16 = vld [vmem:[%s5646_s28 + $0x80] sm:$0xf]  ;;  %228 = vst [vmem:[%s5653_s29 + $0x38] sm:$0xf] %v227_v14 }
  0x20   : > { %230 = vst [vmem:[%s5653_s29 + $0x3c] sm:$0xf] %v229_v15  ;;  %232 = vst [vmem:[%s5653_s29 + $0x40] sm:$0xf] %v231_v16  ;;  %v233_v17 = vld [vmem:[%s5646_s28 + $0x88] sm:$0xf] }
  0x21   : > { %v235_v18 = vld [vmem:[%s5646_s28 + $0x90] sm:$0xf]  ;;  %v237_v19 = vld [vmem:[%s5646_s28 + $0x98] sm:$0xf]  ;;  %234 = vst [vmem:[%s5653_s29 + $0x44] sm:$0xf] %v233_v17 }
  0x22   : > { %236 = vst [vmem:[%s5653_s29 + $0x48] sm:$0xf] %v235_v18  ;;  %238 = vst [vmem:[%s5653_s29 + $0x4c] sm:$0xf] %v237_v19  ;;  %v239_v20 = vld [vmem:[%s5646_s28 + $0xa0] sm:$0xf] }
  0x23   : > { %v241_v21 = vld [vmem:[%s5646_s28 + $0xa8] sm:$0xf]  ;;  %v243_v22 = vld [vmem:[%s5646_s28 + $0xb0] sm:$0xf]  ;;  %240 = vst [vmem:[%s5653_s29 + $0x50] sm:$0xf] %v239_v20 }
  0x24   : > { %242 = vst [vmem:[%s5653_s29 + $0x54] sm:$0xf] %v241_v21  ;;  %244 = vst [vmem:[%s5653_s29 + $0x58] sm:$0xf] %v243_v22  ;;  %v245_v23 = vld [vmem:[%s5646_s28 + $0xb8] sm:$0xf] }
  0x25   : > { %v247_v24 = vld [vmem:[%s5646_s28 + $0xc0] sm:$0xf]  ;;  %v249_v25 = vld [vmem:[%s5646_s28 + $0xc8] sm:$0xf]  ;;  %246 = vst [vmem:[%s5653_s29 + $0x5c] sm:$0xf] %v245_v23 }
  0x26   : > { %248 = vst [vmem:[%s5653_s29 + $0x60] sm:$0xf] %v247_v24  ;;  %250 = vst [vmem:[%s5653_s29 + $0x64] sm:$0xf] %v249_v25  ;;  %v251_v26 = vld [vmem:[%s5646_s28 + $0xd0] sm:$0xf] }
  0x27   : > { %v253_v27 = vld [vmem:[%s5646_s28 + $0xd8] sm:$0xf]  ;;  %v255_v28 = vld [vmem:[%s5646_s28 + $0xe0] sm:$0xf]  ;;  %252 = vst [vmem:[%s5653_s29 + $0x68] sm:$0xf] %v251_v26 }
  0x28   : > { %254 = vst [vmem:[%s5653_s29 + $0x6c] sm:$0xf] %v253_v27  ;;  %256 = vst [vmem:[%s5653_s29 + $0x70] sm:$0xf] %v255_v28  ;;  %v257_v29 = vld [vmem:[%s5646_s28 + $0xe8] sm:$0xf] }
  0x29   : > { %v259_v30 = vld [vmem:[%s5646_s28 + $0xf0] sm:$0xf]  ;;  %v261_v31 = vld [vmem:[%s5646_s28 + $0xf8] sm:$0xf]  ;;  %258 = vst [vmem:[%s5653_s29 + $0x74] sm:$0xf] %v257_v29 }
  0x2a   : > { %260 = vst [vmem:[%s5653_s29 + $0x78] sm:$0xf] %v259_v30  ;;  %262 = vst [vmem:[%s5653_s29 + $0x7c] sm:$0xf] %v261_v31  ;;  %v263_v32 = vld [vmem:[%s5646_s28 + $0x100] sm:$0xf] }
  0x2b   : > { %v265_v33 = vld [vmem:[%s5646_s28 + $0x108] sm:$0xf]  ;;  %v267_v34 = vld [vmem:[%s5646_s28 + $0x110] sm:$0xf]  ;;  %264 = vst [vmem:[%s5653_s29 + $0x80] sm:$0xf] %v263_v32 }
  0x2c   : > { %266 = vst [vmem:[%s5653_s29 + $0x84] sm:$0xf] %v265_v33  ;;  %268 = vst [vmem:[%s5653_s29 + $0x88] sm:$0xf] %v267_v34  ;;  %v269_v35 = vld [vmem:[%s5646_s28 + $0x118] sm:$0xf] }
  0x2d   : > { %v271_v36 = vld [vmem:[%s5646_s28 + $0x120] sm:$0xf]  ;;  %v273_v37 = vld [vmem:[%s5646_s28 + $0x128] sm:$0xf]  ;;  %270 = vst [vmem:[%s5653_s29 + $0x8c] sm:$0xf] %v269_v35 }
  0x2e   : > { %272 = vst [vmem:[%s5653_s29 + $0x90] sm:$0xf] %v271_v36  ;;  %274 = vst [vmem:[%s5653_s29 + $0x94] sm:$0xf] %v273_v37  ;;  %v275_v38 = vld [vmem:[%s5646_s28 + $0x130] sm:$0xf] }
  0x2f   : > { %v277_v39 = vld [vmem:[%s5646_s28 + $0x138] sm:$0xf]  ;;  %v279_v40 = vld [vmem:[%s5646_s28 + $0x140] sm:$0xf]  ;;  %276 = vst [vmem:[%s5653_s29 + $0x98] sm:$0xf] %v275_v38 }
  0x30   : > { %278 = vst [vmem:[%s5653_s29 + $0x9c] sm:$0xf] %v277_v39  ;;  %280 = vst [vmem:[%s5653_s29 + $0xa0] sm:$0xf] %v279_v40  ;;  %v281_v41 = vld [vmem:[%s5646_s28 + $0x148] sm:$0xf] }
  0x31   : > { %v283_v42 = vld [vmem:[%s5646_s28 + $0x150] sm:$0xf]  ;;  %v285_v43 = vld [vmem:[%s5646_s28 + $0x158] sm:$0xf]  ;;  %282 = vst [vmem:[%s5653_s29 + $0xa4] sm:$0xf] %v281_v41 }
  0x32   : > { %284 = vst [vmem:[%s5653_s29 + $0xa8] sm:$0xf] %v283_v42  ;;  %286 = vst [vmem:[%s5653_s29 + $0xac] sm:$0xf] %v285_v43  ;;  %v287_v44 = vld [vmem:[%s5646_s28 + $0x160] sm:$0xf] }
  0x33   : > { %v289_v45 = vld [vmem:[%s5646_s28 + $0x168] sm:$0xf]  ;;  %v291_v46 = vld [vmem:[%s5646_s28 + $0x170] sm:$0xf]  ;;  %288 = vst [vmem:[%s5653_s29 + $0xb0] sm:$0xf] %v287_v44 }
  0x34   : > { %290 = vst [vmem:[%s5653_s29 + $0xb4] sm:$0xf] %v289_v45  ;;  %292 = vst [vmem:[%s5653_s29 + $0xb8] sm:$0xf] %v291_v46  ;;  %v293_v47 = vld [vmem:[%s5646_s28 + $0x178] sm:$0xf] }
  0x35   : > { %v295_v48 = vld [vmem:[%s5646_s28 + $0x180] sm:$0xf]  ;;  %v297_v49 = vld [vmem:[%s5646_s28 + $0x188] sm:$0xf]  ;;  %294 = vst [vmem:[%s5653_s29 + $0xbc] sm:$0xf] %v293_v47 }
  0x36   : > { %296 = vst [vmem:[%s5653_s29 + $0xc0] sm:$0xf] %v295_v48  ;;  %298 = vst [vmem:[%s5653_s29 + $0xc4] sm:$0xf] %v297_v49  ;;  %v299_v50 = vld [vmem:[%s5646_s28 + $0x190] sm:$0xf] }
  0x37   : > { %v301_v51 = vld [vmem:[%s5646_s28 + $0x198] sm:$0xf]  ;;  %v303_v52 = vld [vmem:[%s5646_s28 + $0x1a0] sm:$0xf]  ;;  %300 = vst [vmem:[%s5653_s29 + $0xc8] sm:$0xf] %v299_v50 }
  0x38   : > { %302 = vst [vmem:[%s5653_s29 + $0xcc] sm:$0xf] %v301_v51  ;;  %304 = vst [vmem:[%s5653_s29 + $0xd0] sm:$0xf] %v303_v52  ;;  %v305_v53 = vld [vmem:[%s5646_s28 + $0x1a8] sm:$0xf] }
  0x39   : > { %v307_v54 = vld [vmem:[%s5646_s28 + $0x1b0] sm:$0xf]  ;;  %v309_v55 = vld [vmem:[%s5646_s28 + $0x1b8] sm:$0xf]  ;;  %306 = vst [vmem:[%s5653_s29 + $0xd4] sm:$0xf] %v305_v53 }
  0x3a   : > { %308 = vst [vmem:[%s5653_s29 + $0xd8] sm:$0xf] %v307_v54  ;;  %310 = vst [vmem:[%s5653_s29 + $0xdc] sm:$0xf] %v309_v55  ;;  %v311_v56 = vld [vmem:[%s5646_s28 + $0x1c0] sm:$0xf] }
  0x3b   : > { %v313_v57 = vld [vmem:[%s5646_s28 + $0x1c8] sm:$0xf]  ;;  %v315_v58 = vld [vmem:[%s5646_s28 + $0x1d0] sm:$0xf]  ;;  %312 = vst [vmem:[%s5653_s29 + $0xe0] sm:$0xf] %v311_v56 }
  0x3c   : > { %314 = vst [vmem:[%s5653_s29 + $0xe4] sm:$0xf] %v313_v57  ;;  %316 = vst [vmem:[%s5653_s29 + $0xe8] sm:$0xf] %v315_v58  ;;  %v317_v59 = vld [vmem:[%s5646_s28 + $0x1d8] sm:$0xf] }
  0x3d   : > { %v319_v60 = vld [vmem:[%s5646_s28 + $0x1e0] sm:$0xf]  ;;  %v321_v61 = vld [vmem:[%s5646_s28 + $0x1e8] sm:$0xf]  ;;  %318 = vst [vmem:[%s5653_s29 + $0xec] sm:$0xf] %v317_v59 }
  0x3e   : > { %320 = vst [vmem:[%s5653_s29 + $0xf0] sm:$0xf] %v319_v60  ;;  %322 = vst [vmem:[%s5653_s29 + $0xf4] sm:$0xf] %v321_v61  ;;  %v323_v62 = vld [vmem:[%s5646_s28 + $0x1f0] sm:$0xf] }
  0x3f   : > { %v325_v63 = vld [vmem:[%s5646_s28 + $0x1f8] sm:$0xf]  ;;  %v327_v0 = vld [vmem:[%s5646_s28 + $0x200] sm:$0xf]  ;;  %324 = vst [vmem:[%s5653_s29 + $0xf8] sm:$0xf] %v323_v62 }
  0x40   : > { %326 = vst [vmem:[%s5653_s29 + $0xfc] sm:$0xf] %v325_v63  ;;  %328 = vst [vmem:[%s5653_s29 + $0x100] sm:$0xf] %v327_v0  ;;  %v329_v1 = vld [vmem:[%s5646_s28 + $0x208] sm:$0xf] }
  0x41   : > { %v331_v2 = vld [vmem:[%s5646_s28 + $0x210] sm:$0xf]  ;;  %v333_v3 = vld [vmem:[%s5646_s28 + $0x218] sm:$0xf]  ;;  %330 = vst [vmem:[%s5653_s29 + $0x104] sm:$0xf] %v329_v1 }
  0x42   : > { %332 = vst [vmem:[%s5653_s29 + $0x108] sm:$0xf] %v331_v2  ;;  %334 = vst [vmem:[%s5653_s29 + $0x10c] sm:$0xf] %v333_v3  ;;  %v335_v4 = vld [vmem:[%s5646_s28 + $0x220] sm:$0xf] }
  0x43   : > { %v337_v5 = vld [vmem:[%s5646_s28 + $0x228] sm:$0xf]  ;;  %v339_v6 = vld [vmem:[%s5646_s28 + $0x230] sm:$0xf]  ;;  %336 = vst [vmem:[%s5653_s29 + $0x110] sm:$0xf] %v335_v4 }
  0x44   : > { %338 = vst [vmem:[%s5653_s29 + $0x114] sm:$0xf] %v337_v5  ;;  %340 = vst [vmem:[%s5653_s29 + $0x118] sm:$0xf] %v339_v6  ;;  %v341_v7 = vld [vmem:[%s5646_s28 + $0x238] sm:$0xf] }
  0x45   : > { %v343_v8 = vld [vmem:[%s5646_s28 + $0x240] sm:$0xf]  ;;  %v345_v9 = vld [vmem:[%s5646_s28 + $0x248] sm:$0xf]  ;;  %342 = vst [vmem:[%s5653_s29 + $0x11c] sm:$0xf] %v341_v7 }
  0x46   : > { %344 = vst [vmem:[%s5653_s29 + $0x120] sm:$0xf] %v343_v8  ;;  %346 = vst [vmem:[%s5653_s29 + $0x124] sm:$0xf] %v345_v9  ;;  %v347_v10 = vld [vmem:[%s5646_s28 + $0x250] sm:$0xf] }
  0x47   : > { %v349_v11 = vld [vmem:[%s5646_s28 + $0x258] sm:$0xf]  ;;  %v351_v12 = vld [vmem:[%s5646_s28 + $0x260] sm:$0xf]  ;;  %348 = vst [vmem:[%s5653_s29 + $0x128] sm:$0xf] %v347_v10 }
  0x48   : > { %350 = vst [vmem:[%s5653_s29 + $0x12c] sm:$0xf] %v349_v11  ;;  %352 = vst [vmem:[%s5653_s29 + $0x130] sm:$0xf] %v351_v12  ;;  %v353_v13 = vld [vmem:[%s5646_s28 + $0x268] sm:$0xf] }
  0x49   : > { %v355_v14 = vld [vmem:[%s5646_s28 + $0x270] sm:$0xf]  ;;  %v357_v15 = vld [vmem:[%s5646_s28 + $0x278] sm:$0xf]  ;;  %354 = vst [vmem:[%s5653_s29 + $0x134] sm:$0xf] %v353_v13 }
  0x4a   : > { %356 = vst [vmem:[%s5653_s29 + $0x138] sm:$0xf] %v355_v14  ;;  %358 = vst [vmem:[%s5653_s29 + $0x13c] sm:$0xf] %v357_v15  ;;  %v359_v16 = vld [vmem:[%s5646_s28 + $0x280] sm:$0xf] }
  0x4b   : > { %v361_v17 = vld [vmem:[%s5646_s28 + $0x288] sm:$0xf]  ;;  %v363_v18 = vld [vmem:[%s5646_s28 + $0x290] sm:$0xf]  ;;  %360 = vst [vmem:[%s5653_s29 + $0x140] sm:$0xf] %v359_v16 }
  0x4c   : > { %362 = vst [vmem:[%s5653_s29 + $0x144] sm:$0xf] %v361_v17  ;;  %364 = vst [vmem:[%s5653_s29 + $0x148] sm:$0xf] %v363_v18  ;;  %v365_v19 = vld [vmem:[%s5646_s28 + $0x298] sm:$0xf] }
  0x4d   : > { %v367_v20 = vld [vmem:[%s5646_s28 + $0x2a0] sm:$0xf]  ;;  %v369_v21 = vld [vmem:[%s5646_s28 + $0x2a8] sm:$0xf]  ;;  %366 = vst [vmem:[%s5653_s29 + $0x14c] sm:$0xf] %v365_v19 }
  0x4e   : > { %368 = vst [vmem:[%s5653_s29 + $0x150] sm:$0xf] %v367_v20  ;;  %370 = vst [vmem:[%s5653_s29 + $0x154] sm:$0xf] %v369_v21  ;;  %v371_v22 = vld [vmem:[%s5646_s28 + $0x2b0] sm:$0xf] }
  0x4f   : > { %v373_v23 = vld [vmem:[%s5646_s28 + $0x2b8] sm:$0xf]  ;;  %v375_v24 = vld [vmem:[%s5646_s28 + $0x2c0] sm:$0xf]  ;;  %372 = vst [vmem:[%s5653_s29 + $0x158] sm:$0xf] %v371_v22 }
  0x50   : > { %374 = vst [vmem:[%s5653_s29 + $0x15c] sm:$0xf] %v373_v23  ;;  %376 = vst [vmem:[%s5653_s29 + $0x160] sm:$0xf] %v375_v24  ;;  %v377_v25 = vld [vmem:[%s5646_s28 + $0x2c8] sm:$0xf] }
  0x51   : > { %v379_v26 = vld [vmem:[%s5646_s28 + $0x2d0] sm:$0xf]  ;;  %v381_v27 = vld [vmem:[%s5646_s28 + $0x2d8] sm:$0xf]  ;;  %378 = vst [vmem:[%s5653_s29 + $0x164] sm:$0xf] %v377_v25 }
  0x52   : > { %380 = vst [vmem:[%s5653_s29 + $0x168] sm:$0xf] %v379_v26  ;;  %382 = vst [vmem:[%s5653_s29 + $0x16c] sm:$0xf] %v381_v27  ;;  %v383_v28 = vld [vmem:[%s5646_s28 + $0x2e0] sm:$0xf] }
  0x53   : > { %v385_v29 = vld [vmem:[%s5646_s28 + $0x2e8] sm:$0xf]  ;;  %v387_v30 = vld [vmem:[%s5646_s28 + $0x2f0] sm:$0xf]  ;;  %384 = vst [vmem:[%s5653_s29 + $0x170] sm:$0xf] %v383_v28 }
  0x54   : > { %386 = vst [vmem:[%s5653_s29 + $0x174] sm:$0xf] %v385_v29  ;;  %388 = vst [vmem:[%s5653_s29 + $0x178] sm:$0xf] %v387_v30  ;;  %v389_v31 = vld [vmem:[%s5646_s28 + $0x2f8] sm:$0xf] }
  0x55   : > { %v391_v32 = vld [vmem:[%s5646_s28 + $0x300] sm:$0xf]  ;;  %v393_v33 = vld [vmem:[%s5646_s28 + $0x308] sm:$0xf]  ;;  %390 = vst [vmem:[%s5653_s29 + $0x17c] sm:$0xf] %v389_v31 }
  0x56   : > { %392 = vst [vmem:[%s5653_s29 + $0x180] sm:$0xf] %v391_v32  ;;  %394 = vst [vmem:[%s5653_s29 + $0x184] sm:$0xf] %v393_v33  ;;  %v395_v34 = vld [vmem:[%s5646_s28 + $0x310] sm:$0xf] }
  0x57   : > { %v397_v35 = vld [vmem:[%s5646_s28 + $0x318] sm:$0xf]  ;;  %v399_v36 = vld [vmem:[%s5646_s28 + $0x320] sm:$0xf]  ;;  %396 = vst [vmem:[%s5653_s29 + $0x188] sm:$0xf] %v395_v34 }
  0x58   : > { %398 = vst [vmem:[%s5653_s29 + $0x18c] sm:$0xf] %v397_v35  ;;  %400 = vst [vmem:[%s5653_s29 + $0x190] sm:$0xf] %v399_v36  ;;  %v401_v37 = vld [vmem:[%s5646_s28 + $0x328] sm:$0xf] }
  0x59   : > { %v403_v38 = vld [vmem:[%s5646_s28 + $0x330] sm:$0xf]  ;;  %v405_v39 = vld [vmem:[%s5646_s28 + $0x338] sm:$0xf]  ;;  %402 = vst [vmem:[%s5653_s29 + $0x194] sm:$0xf] %v401_v37 }
  0x5a   : > { %404 = vst [vmem:[%s5653_s29 + $0x198] sm:$0xf] %v403_v38  ;;  %406 = vst [vmem:[%s5653_s29 + $0x19c] sm:$0xf] %v405_v39  ;;  %v407_v40 = vld [vmem:[%s5646_s28 + $0x340] sm:$0xf] }
  0x5b   : > { %v409_v41 = vld [vmem:[%s5646_s28 + $0x348] sm:$0xf]  ;;  %v411_v42 = vld [vmem:[%s5646_s28 + $0x350] sm:$0xf]  ;;  %408 = vst [vmem:[%s5653_s29 + $0x1a0] sm:$0xf] %v407_v40 }
  0x5c   : > { %410 = vst [vmem:[%s5653_s29 + $0x1a4] sm:$0xf] %v409_v41  ;;  %412 = vst [vmem:[%s5653_s29 + $0x1a8] sm:$0xf] %v411_v42  ;;  %v413_v43 = vld [vmem:[%s5646_s28 + $0x358] sm:$0xf] }
  0x5d   : > { %v415_v44 = vld [vmem:[%s5646_s28 + $0x360] sm:$0xf]  ;;  %v417_v45 = vld [vmem:[%s5646_s28 + $0x368] sm:$0xf]  ;;  %414 = vst [vmem:[%s5653_s29 + $0x1ac] sm:$0xf] %v413_v43 }
  0x5e   : > { %416 = vst [vmem:[%s5653_s29 + $0x1b0] sm:$0xf] %v415_v44  ;;  %418 = vst [vmem:[%s5653_s29 + $0x1b4] sm:$0xf] %v417_v45  ;;  %v419_v46 = vld [vmem:[%s5646_s28 + $0x370] sm:$0xf] }
  0x5f   : > { %v421_v47 = vld [vmem:[%s5646_s28 + $0x378] sm:$0xf]  ;;  %v423_v48 = vld [vmem:[%s5646_s28 + $0x380] sm:$0xf]  ;;  %420 = vst [vmem:[%s5653_s29 + $0x1b8] sm:$0xf] %v419_v46 }
  0x60   : > { %422 = vst [vmem:[%s5653_s29 + $0x1bc] sm:$0xf] %v421_v47  ;;  %424 = vst [vmem:[%s5653_s29 + $0x1c0] sm:$0xf] %v423_v48  ;;  %v425_v49 = vld [vmem:[%s5646_s28 + $0x388] sm:$0xf] }
  0x61   : > { %v427_v50 = vld [vmem:[%s5646_s28 + $0x390] sm:$0xf]  ;;  %v429_v51 = vld [vmem:[%s5646_s28 + $0x398] sm:$0xf]  ;;  %426 = vst [vmem:[%s5653_s29 + $0x1c4] sm:$0xf] %v425_v49 }
  0x62   : > { %428 = vst [vmem:[%s5653_s29 + $0x1c8] sm:$0xf] %v427_v50  ;;  %430 = vst [vmem:[%s5653_s29 + $0x1cc] sm:$0xf] %v429_v51  ;;  %v431_v52 = vld [vmem:[%s5646_s28 + $0x3a0] sm:$0xf] }
  0x63   : > { %v433_v53 = vld [vmem:[%s5646_s28 + $0x3a8] sm:$0xf]  ;;  %v435_v54 = vld [vmem:[%s5646_s28 + $0x3b0] sm:$0xf]  ;;  %432 = vst [vmem:[%s5653_s29 + $0x1d0] sm:$0xf] %v431_v52 }
  0x64   : > { %434 = vst [vmem:[%s5653_s29 + $0x1d4] sm:$0xf] %v433_v53  ;;  %436 = vst [vmem:[%s5653_s29 + $0x1d8] sm:$0xf] %v435_v54  ;;  %v437_v55 = vld [vmem:[%s5646_s28 + $0x3b8] sm:$0xf] }
  0x65   : > { %v439_v56 = vld [vmem:[%s5646_s28 + $0x3c0] sm:$0xf]  ;;  %v441_v57 = vld [vmem:[%s5646_s28 + $0x3c8] sm:$0xf]  ;;  %438 = vst [vmem:[%s5653_s29 + $0x1dc] sm:$0xf] %v437_v55 }
  0x66   : > { %440 = vst [vmem:[%s5653_s29 + $0x1e0] sm:$0xf] %v439_v56  ;;  %442 = vst [vmem:[%s5653_s29 + $0x1e4] sm:$0xf] %v441_v57  ;;  %v443_v58 = vld [vmem:[%s5646_s28 + $0x3d0] sm:$0xf] }
  0x67   : > { %v445_v59 = vld [vmem:[%s5646_s28 + $0x3d8] sm:$0xf]  ;;  %v447_v60 = vld [vmem:[%s5646_s28 + $0x3e0] sm:$0xf]  ;;  %444 = vst [vmem:[%s5653_s29 + $0x1e8] sm:$0xf] %v443_v58 }
  0x68   : > { %446 = vst [vmem:[%s5653_s29 + $0x1ec] sm:$0xf] %v445_v59  ;;  %448 = vst [vmem:[%s5653_s29 + $0x1f0] sm:$0xf] %v447_v60  ;;  %v449_v61 = vld [vmem:[%s5646_s28 + $0x3e8] sm:$0xf] }
  0x69   : > { %v451_v62 = vld [vmem:[%s5646_s28 + $0x3f0] sm:$0xf]  ;;  %v453_v63 = vld [vmem:[%s5646_s28 + $0x3f8] sm:$0xf]  ;;  %450 = vst [vmem:[%s5653_s29 + $0x1f4] sm:$0xf] %v449_v61 }
  0x6a   : > { %452 = vst [vmem:[%s5653_s29 + $0x1f8] sm:$0xf] %v451_v62  ;;  %454 = vst [vmem:[%s5653_s29 + $0x1fc] sm:$0xf] %v453_v63  ;;  %v455_v0 = vld [vmem:[%s5646_s28 + $0x400] sm:$0xf] }
  0x6b   : > { %v457_v1 = vld [vmem:[%s5646_s28 + $0x408] sm:$0xf]  ;;  %v459_v2 = vld [vmem:[%s5646_s28 + $0x410] sm:$0xf]  ;;  %456 = vst [vmem:[%s5653_s29 + $0x200] sm:$0xf] %v455_v0 }
  0x6c   : > { %458 = vst [vmem:[%s5653_s29 + $0x204] sm:$0xf] %v457_v1  ;;  %460 = vst [vmem:[%s5653_s29 + $0x208] sm:$0xf] %v459_v2  ;;  %v461_v3 = vld [vmem:[%s5646_s28 + $0x418] sm:$0xf] }
  0x6d   : > { %v463_v4 = vld [vmem:[%s5646_s28 + $0x420] sm:$0xf]  ;;  %v465_v5 = vld [vmem:[%s5646_s28 + $0x428] sm:$0xf]  ;;  %462 = vst [vmem:[%s5653_s29 + $0x20c] sm:$0xf] %v461_v3 }
  0x6e   : > { %464 = vst [vmem:[%s5653_s29 + $0x210] sm:$0xf] %v463_v4  ;;  %466 = vst [vmem:[%s5653_s29 + $0x214] sm:$0xf] %v465_v5  ;;  %v467_v6 = vld [vmem:[%s5646_s28 + $0x430] sm:$0xf] }
  0x6f   : > { %v469_v7 = vld [vmem:[%s5646_s28 + $0x438] sm:$0xf]  ;;  %v471_v8 = vld [vmem:[%s5646_s28 + $0x440] sm:$0xf]  ;;  %468 = vst [vmem:[%s5653_s29 + $0x218] sm:$0xf] %v467_v6 }
  0x70   : > { %470 = vst [vmem:[%s5653_s29 + $0x21c] sm:$0xf] %v469_v7  ;;  %472 = vst [vmem:[%s5653_s29 + $0x220] sm:$0xf] %v471_v8  ;;  %v473_v9 = vld [vmem:[%s5646_s28 + $0x448] sm:$0xf] }
  0x71   : > { %v475_v10 = vld [vmem:[%s5646_s28 + $0x450] sm:$0xf]  ;;  %v477_v11 = vld [vmem:[%s5646_s28 + $0x458] sm:$0xf]  ;;  %474 = vst [vmem:[%s5653_s29 + $0x224] sm:$0xf] %v473_v9 }
  0x72   : > { %476 = vst [vmem:[%s5653_s29 + $0x228] sm:$0xf] %v475_v10  ;;  %478 = vst [vmem:[%s5653_s29 + $0x22c] sm:$0xf] %v477_v11  ;;  %v479_v12 = vld [vmem:[%s5646_s28 + $0x460] sm:$0xf] }
  0x73   : > { %v481_v13 = vld [vmem:[%s5646_s28 + $0x468] sm:$0xf]  ;;  %v483_v14 = vld [vmem:[%s5646_s28 + $0x470] sm:$0xf]  ;;  %480 = vst [vmem:[%s5653_s29 + $0x230] sm:$0xf] %v479_v12 }
  0x74   : > { %482 = vst [vmem:[%s5653_s29 + $0x234] sm:$0xf] %v481_v13  ;;  %484 = vst [vmem:[%s5653_s29 + $0x238] sm:$0xf] %v483_v14  ;;  %v485_v15 = vld [vmem:[%s5646_s28 + $0x478] sm:$0xf] }
  0x75   : > { %v487_v16 = vld [vmem:[%s5646_s28 + $0x480] sm:$0xf]  ;;  %v489_v17 = vld [vmem:[%s5646_s28 + $0x488] sm:$0xf]  ;;  %486 = vst [vmem:[%s5653_s29 + $0x23c] sm:$0xf] %v485_v15 }
  0x76   : > { %488 = vst [vmem:[%s5653_s29 + $0x240] sm:$0xf] %v487_v16  ;;  %490 = vst [vmem:[%s5653_s29 + $0x244] sm:$0xf] %v489_v17  ;;  %v491_v18 = vld [vmem:[%s5646_s28 + $0x490] sm:$0xf] }
  0x77   : > { %v493_v19 = vld [vmem:[%s5646_s28 + $0x498] sm:$0xf]  ;;  %v495_v20 = vld [vmem:[%s5646_s28 + $0x4a0] sm:$0xf]  ;;  %492 = vst [vmem:[%s5653_s29 + $0x248] sm:$0xf] %v491_v18 }
  0x78   : > { %494 = vst [vmem:[%s5653_s29 + $0x24c] sm:$0xf] %v493_v19  ;;  %496 = vst [vmem:[%s5653_s29 + $0x250] sm:$0xf] %v495_v20  ;;  %v497_v21 = vld [vmem:[%s5646_s28 + $0x4a8] sm:$0xf] }
  0x79   : > { %v499_v22 = vld [vmem:[%s5646_s28 + $0x4b0] sm:$0xf]  ;;  %v501_v23 = vld [vmem:[%s5646_s28 + $0x4b8] sm:$0xf]  ;;  %498 = vst [vmem:[%s5653_s29 + $0x254] sm:$0xf] %v497_v21 }
  0x7a   : > { %500 = vst [vmem:[%s5653_s29 + $0x258] sm:$0xf] %v499_v22  ;;  %502 = vst [vmem:[%s5653_s29 + $0x25c] sm:$0xf] %v501_v23  ;;  %v503_v24 = vld [vmem:[%s5646_s28 + $0x4c0] sm:$0xf] }
  0x7b   : > { %v505_v25 = vld [vmem:[%s5646_s28 + $0x4c8] sm:$0xf]  ;;  %v507_v26 = vld [vmem:[%s5646_s28 + $0x4d0] sm:$0xf]  ;;  %504 = vst [vmem:[%s5653_s29 + $0x260] sm:$0xf] %v503_v24 }
  0x7c   : > { %506 = vst [vmem:[%s5653_s29 + $0x264] sm:$0xf] %v505_v25  ;;  %508 = vst [vmem:[%s5653_s29 + $0x268] sm:$0xf] %v507_v26  ;;  %v509_v27 = vld [vmem:[%s5646_s28 + $0x4d8] sm:$0xf] }
  0x7d   : > { %v511_v28 = vld [vmem:[%s5646_s28 + $0x4e0] sm:$0xf]  ;;  %v513_v29 = vld [vmem:[%s5646_s28 + $0x4e8] sm:$0xf]  ;;  %510 = vst [vmem:[%s5653_s29 + $0x26c] sm:$0xf] %v509_v27 }
  0x7e   : > { %512 = vst [vmem:[%s5653_s29 + $0x270] sm:$0xf] %v511_v28  ;;  %514 = vst [vmem:[%s5653_s29 + $0x274] sm:$0xf] %v513_v29  ;;  %v515_v30 = vld [vmem:[%s5646_s28 + $0x4f0] sm:$0xf] }
  0x7f   : > { %v517_v31 = vld [vmem:[%s5646_s28 + $0x4f8] sm:$0xf]  ;;  %v519_v32 = vld [vmem:[%s5646_s28 + $0x500] sm:$0xf]  ;;  %516 = vst [vmem:[%s5653_s29 + $0x278] sm:$0xf] %v515_v30 }
  0x80   : > { %518 = vst [vmem:[%s5653_s29 + $0x27c] sm:$0xf] %v517_v31  ;;  %520 = vst [vmem:[%s5653_s29 + $0x280] sm:$0xf] %v519_v32  ;;  %v521_v33 = vld [vmem:[%s5646_s28 + $0x508] sm:$0xf] }
  0x81   : > { %v523_v34 = vld [vmem:[%s5646_s28 + $0x510] sm:$0xf]  ;;  %v525_v35 = vld [vmem:[%s5646_s28 + $0x518] sm:$0xf]  ;;  %522 = vst [vmem:[%s5653_s29 + $0x284] sm:$0xf] %v521_v33 }
  0x82   : > { %524 = vst [vmem:[%s5653_s29 + $0x288] sm:$0xf] %v523_v34  ;;  %526 = vst [vmem:[%s5653_s29 + $0x28c] sm:$0xf] %v525_v35  ;;  %v527_v36 = vld [vmem:[%s5646_s28 + $0x520] sm:$0xf] }
  0x83   : > { %v529_v37 = vld [vmem:[%s5646_s28 + $0x528] sm:$0xf]  ;;  %v531_v38 = vld [vmem:[%s5646_s28 + $0x530] sm:$0xf]  ;;  %528 = vst [vmem:[%s5653_s29 + $0x290] sm:$0xf] %v527_v36 }
  0x84   : > { %530 = vst [vmem:[%s5653_s29 + $0x294] sm:$0xf] %v529_v37  ;;  %532 = vst [vmem:[%s5653_s29 + $0x298] sm:$0xf] %v531_v38  ;;  %v533_v39 = vld [vmem:[%s5646_s28 + $0x538] sm:$0xf] }
  0x85   : > { %v535_v40 = vld [vmem:[%s5646_s28 + $0x540] sm:$0xf]  ;;  %v537_v41 = vld [vmem:[%s5646_s28 + $0x548] sm:$0xf]  ;;  %534 = vst [vmem:[%s5653_s29 + $0x29c] sm:$0xf] %v533_v39 }
  0x86   : > { %536 = vst [vmem:[%s5653_s29 + $0x2a0] sm:$0xf] %v535_v40  ;;  %538 = vst [vmem:[%s5653_s29 + $0x2a4] sm:$0xf] %v537_v41  ;;  %v539_v42 = vld [vmem:[%s5646_s28 + $0x550] sm:$0xf] }
  0x87   : > { %v541_v43 = vld [vmem:[%s5646_s28 + $0x558] sm:$0xf]  ;;  %v543_v44 = vld [vmem:[%s5646_s28 + $0x560] sm:$0xf]  ;;  %540 = vst [vmem:[%s5653_s29 + $0x2a8] sm:$0xf] %v539_v42 }
  0x88   : > { %542 = vst [vmem:[%s5653_s29 + $0x2ac] sm:$0xf] %v541_v43  ;;  %544 = vst [vmem:[%s5653_s29 + $0x2b0] sm:$0xf] %v543_v44  ;;  %v545_v45 = vld [vmem:[%s5646_s28 + $0x568] sm:$0xf] }
  0x89   : > { %v547_v46 = vld [vmem:[%s5646_s28 + $0x570] sm:$0xf]  ;;  %v549_v47 = vld [vmem:[%s5646_s28 + $0x578] sm:$0xf]  ;;  %546 = vst [vmem:[%s5653_s29 + $0x2b4] sm:$0xf] %v545_v45 }
  0x8a   : > { %548 = vst [vmem:[%s5653_s29 + $0x2b8] sm:$0xf] %v547_v46  ;;  %550 = vst [vmem:[%s5653_s29 + $0x2bc] sm:$0xf] %v549_v47  ;;  %v551_v48 = vld [vmem:[%s5646_s28 + $0x580] sm:$0xf] }
  0x8b   : > { %v553_v49 = vld [vmem:[%s5646_s28 + $0x588] sm:$0xf]  ;;  %v555_v50 = vld [vmem:[%s5646_s28 + $0x590] sm:$0xf]  ;;  %552 = vst [vmem:[%s5653_s29 + $0x2c0] sm:$0xf] %v551_v48 }
  0x8c   : > { %554 = vst [vmem:[%s5653_s29 + $0x2c4] sm:$0xf] %v553_v49  ;;  %556 = vst [vmem:[%s5653_s29 + $0x2c8] sm:$0xf] %v555_v50  ;;  %v557_v51 = vld [vmem:[%s5646_s28 + $0x598] sm:$0xf] }
  0x8d   : > { %v559_v52 = vld [vmem:[%s5646_s28 + $0x5a0] sm:$0xf]  ;;  %v561_v53 = vld [vmem:[%s5646_s28 + $0x5a8] sm:$0xf]  ;;  %558 = vst [vmem:[%s5653_s29 + $0x2cc] sm:$0xf] %v557_v51 }
  0x8e   : > { %560 = vst [vmem:[%s5653_s29 + $0x2d0] sm:$0xf] %v559_v52  ;;  %562 = vst [vmem:[%s5653_s29 + $0x2d4] sm:$0xf] %v561_v53  ;;  %v563_v54 = vld [vmem:[%s5646_s28 + $0x5b0] sm:$0xf] }
  0x8f   : > { %v565_v55 = vld [vmem:[%s5646_s28 + $0x5b8] sm:$0xf]  ;;  %v567_v56 = vld [vmem:[%s5646_s28 + $0x5c0] sm:$0xf]  ;;  %564 = vst [vmem:[%s5653_s29 + $0x2d8] sm:$0xf] %v563_v54 }
  0x90   : > { %566 = vst [vmem:[%s5653_s29 + $0x2dc] sm:$0xf] %v565_v55  ;;  %568 = vst [vmem:[%s5653_s29 + $0x2e0] sm:$0xf] %v567_v56  ;;  %v569_v57 = vld [vmem:[%s5646_s28 + $0x5c8] sm:$0xf] }
  0x91   : > { %v571_v58 = vld [vmem:[%s5646_s28 + $0x5d0] sm:$0xf]  ;;  %v573_v59 = vld [vmem:[%s5646_s28 + $0x5d8] sm:$0xf]  ;;  %570 = vst [vmem:[%s5653_s29 + $0x2e4] sm:$0xf] %v569_v57 }
  0x92   : > { %572 = vst [vmem:[%s5653_s29 + $0x2e8] sm:$0xf] %v571_v58  ;;  %574 = vst [vmem:[%s5653_s29 + $0x2ec] sm:$0xf] %v573_v59  ;;  %v575_v60 = vld [vmem:[%s5646_s28 + $0x5e0] sm:$0xf] }
  0x93   : > { %v577_v61 = vld [vmem:[%s5646_s28 + $0x5e8] sm:$0xf]  ;;  %v579_v62 = vld [vmem:[%s5646_s28 + $0x5f0] sm:$0xf]  ;;  %576 = vst [vmem:[%s5653_s29 + $0x2f0] sm:$0xf] %v575_v60 }
  0x94   : > { %578 = vst [vmem:[%s5653_s29 + $0x2f4] sm:$0xf] %v577_v61  ;;  %580 = vst [vmem:[%s5653_s29 + $0x2f8] sm:$0xf] %v579_v62  ;;  %v581_v63 = vld [vmem:[%s5646_s28 + $0x5f8] sm:$0xf] }
  0x95   : > { %v583_v0 = vld [vmem:[%s5646_s28 + $0x600] sm:$0xf]  ;;  %v585_v1 = vld [vmem:[%s5646_s28 + $0x608] sm:$0xf]  ;;  %582 = vst [vmem:[%s5653_s29 + $0x2fc] sm:$0xf] %v581_v63 }
  0x96   : > { %584 = vst [vmem:[%s5653_s29 + $0x300] sm:$0xf] %v583_v0  ;;  %586 = vst [vmem:[%s5653_s29 + $0x304] sm:$0xf] %v585_v1  ;;  %v587_v2 = vld [vmem:[%s5646_s28 + $0x610] sm:$0xf] }
  0x97   : > { %v589_v3 = vld [vmem:[%s5646_s28 + $0x618] sm:$0xf]  ;;  %v591_v4 = vld [vmem:[%s5646_s28 + $0x620] sm:$0xf]  ;;  %588 = vst [vmem:[%s5653_s29 + $0x308] sm:$0xf] %v587_v2 }
  0x98   : > { %590 = vst [vmem:[%s5653_s29 + $0x30c] sm:$0xf] %v589_v3  ;;  %592 = vst [vmem:[%s5653_s29 + $0x310] sm:$0xf] %v591_v4  ;;  %v593_v5 = vld [vmem:[%s5646_s28 + $0x628] sm:$0xf] }
  0x99   : > { %v595_v6 = vld [vmem:[%s5646_s28 + $0x630] sm:$0xf]  ;;  %v597_v7 = vld [vmem:[%s5646_s28 + $0x638] sm:$0xf]  ;;  %594 = vst [vmem:[%s5653_s29 + $0x314] sm:$0xf] %v593_v5 }
  0x9a   : > { %596 = vst [vmem:[%s5653_s29 + $0x318] sm:$0xf] %v595_v6  ;;  %598 = vst [vmem:[%s5653_s29 + $0x31c] sm:$0xf] %v597_v7  ;;  %v599_v8 = vld [vmem:[%s5646_s28 + $0x640] sm:$0xf] }
  0x9b   : > { %v601_v9 = vld [vmem:[%s5646_s28 + $0x648] sm:$0xf]  ;;  %v603_v10 = vld [vmem:[%s5646_s28 + $0x650] sm:$0xf]  ;;  %600 = vst [vmem:[%s5653_s29 + $0x320] sm:$0xf] %v599_v8 }
  0x9c   : > { %602 = vst [vmem:[%s5653_s29 + $0x324] sm:$0xf] %v601_v9  ;;  %604 = vst [vmem:[%s5653_s29 + $0x328] sm:$0xf] %v603_v10  ;;  %v605_v11 = vld [vmem:[%s5646_s28 + $0x658] sm:$0xf] }
  0x9d   : > { %v607_v12 = vld [vmem:[%s5646_s28 + $0x660] sm:$0xf]  ;;  %v609_v13 = vld [vmem:[%s5646_s28 + $0x668] sm:$0xf]  ;;  %606 = vst [vmem:[%s5653_s29 + $0x32c] sm:$0xf] %v605_v11 }
  0x9e   : > { %608 = vst [vmem:[%s5653_s29 + $0x330] sm:$0xf] %v607_v12  ;;  %610 = vst [vmem:[%s5653_s29 + $0x334] sm:$0xf] %v609_v13  ;;  %v611_v14 = vld [vmem:[%s5646_s28 + $0x670] sm:$0xf] }
  0x9f   : > { %v613_v15 = vld [vmem:[%s5646_s28 + $0x678] sm:$0xf]  ;;  %v615_v16 = vld [vmem:[%s5646_s28 + $0x680] sm:$0xf]  ;;  %612 = vst [vmem:[%s5653_s29 + $0x338] sm:$0xf] %v611_v14 }
  0xa0   : > { %614 = vst [vmem:[%s5653_s29 + $0x33c] sm:$0xf] %v613_v15  ;;  %616 = vst [vmem:[%s5653_s29 + $0x340] sm:$0xf] %v615_v16  ;;  %v617_v17 = vld [vmem:[%s5646_s28 + $0x688] sm:$0xf] }
  0xa1   : > { %v619_v18 = vld [vmem:[%s5646_s28 + $0x690] sm:$0xf]  ;;  %v621_v19 = vld [vmem:[%s5646_s28 + $0x698] sm:$0xf]  ;;  %618 = vst [vmem:[%s5653_s29 + $0x344] sm:$0xf] %v617_v17 }
  0xa2   : > { %620 = vst [vmem:[%s5653_s29 + $0x348] sm:$0xf] %v619_v18  ;;  %622 = vst [vmem:[%s5653_s29 + $0x34c] sm:$0xf] %v621_v19  ;;  %v623_v20 = vld [vmem:[%s5646_s28 + $0x6a0] sm:$0xf] }
  0xa3   : > { %v625_v21 = vld [vmem:[%s5646_s28 + $0x6a8] sm:$0xf]  ;;  %v627_v22 = vld [vmem:[%s5646_s28 + $0x6b0] sm:$0xf]  ;;  %624 = vst [vmem:[%s5653_s29 + $0x350] sm:$0xf] %v623_v20 }
  0xa4   : > { %626 = vst [vmem:[%s5653_s29 + $0x354] sm:$0xf] %v625_v21  ;;  %628 = vst [vmem:[%s5653_s29 + $0x358] sm:$0xf] %v627_v22  ;;  %v629_v23 = vld [vmem:[%s5646_s28 + $0x6b8] sm:$0xf] }
  0xa5   : > { %v631_v24 = vld [vmem:[%s5646_s28 + $0x6c0] sm:$0xf]  ;;  %v633_v25 = vld [vmem:[%s5646_s28 + $0x6c8] sm:$0xf]  ;;  %630 = vst [vmem:[%s5653_s29 + $0x35c] sm:$0xf] %v629_v23 }
  0xa6   : > { %632 = vst [vmem:[%s5653_s29 + $0x360] sm:$0xf] %v631_v24  ;;  %634 = vst [vmem:[%s5653_s29 + $0x364] sm:$0xf] %v633_v25  ;;  %v635_v26 = vld [vmem:[%s5646_s28 + $0x6d0] sm:$0xf] }
  0xa7   : > { %v637_v27 = vld [vmem:[%s5646_s28 + $0x6d8] sm:$0xf]  ;;  %v639_v28 = vld [vmem:[%s5646_s28 + $0x6e0] sm:$0xf]  ;;  %636 = vst [vmem:[%s5653_s29 + $0x368] sm:$0xf] %v635_v26 }
  0xa8   : > { %638 = vst [vmem:[%s5653_s29 + $0x36c] sm:$0xf] %v637_v27  ;;  %640 = vst [vmem:[%s5653_s29 + $0x370] sm:$0xf] %v639_v28  ;;  %v641_v29 = vld [vmem:[%s5646_s28 + $0x6e8] sm:$0xf] }
  0xa9   : > { %v643_v30 = vld [vmem:[%s5646_s28 + $0x6f0] sm:$0xf]  ;;  %v645_v31 = vld [vmem:[%s5646_s28 + $0x6f8] sm:$0xf]  ;;  %642 = vst [vmem:[%s5653_s29 + $0x374] sm:$0xf] %v641_v29 }
  0xaa   : > { %644 = vst [vmem:[%s5653_s29 + $0x378] sm:$0xf] %v643_v30  ;;  %646 = vst [vmem:[%s5653_s29 + $0x37c] sm:$0xf] %v645_v31  ;;  %v647_v32 = vld [vmem:[%s5646_s28 + $0x700] sm:$0xf] }
  0xab   : > { %v649_v33 = vld [vmem:[%s5646_s28 + $0x708] sm:$0xf]  ;;  %v651_v34 = vld [vmem:[%s5646_s28 + $0x710] sm:$0xf]  ;;  %648 = vst [vmem:[%s5653_s29 + $0x380] sm:$0xf] %v647_v32 }
  0xac   : > { %650 = vst [vmem:[%s5653_s29 + $0x384] sm:$0xf] %v649_v33  ;;  %652 = vst [vmem:[%s5653_s29 + $0x388] sm:$0xf] %v651_v34  ;;  %v653_v35 = vld [vmem:[%s5646_s28 + $0x718] sm:$0xf] }
  0xad   : > { %v655_v36 = vld [vmem:[%s5646_s28 + $0x720] sm:$0xf]  ;;  %v657_v37 = vld [vmem:[%s5646_s28 + $0x728] sm:$0xf]  ;;  %654 = vst [vmem:[%s5653_s29 + $0x38c] sm:$0xf] %v653_v35 }
  0xae   : > { %656 = vst [vmem:[%s5653_s29 + $0x390] sm:$0xf] %v655_v36  ;;  %658 = vst [vmem:[%s5653_s29 + $0x394] sm:$0xf] %v657_v37  ;;  %v659_v38 = vld [vmem:[%s5646_s28 + $0x730] sm:$0xf] }
  0xaf   : > { %v661_v39 = vld [vmem:[%s5646_s28 + $0x738] sm:$0xf]  ;;  %v663_v40 = vld [vmem:[%s5646_s28 + $0x740] sm:$0xf]  ;;  %660 = vst [vmem:[%s5653_s29 + $0x398] sm:$0xf] %v659_v38 }
  0xb0   : > { %662 = vst [vmem:[%s5653_s29 + $0x39c] sm:$0xf] %v661_v39  ;;  %664 = vst [vmem:[%s5653_s29 + $0x3a0] sm:$0xf] %v663_v40  ;;  %v665_v41 = vld [vmem:[%s5646_s28 + $0x748] sm:$0xf] }
  0xb1   : > { %v667_v42 = vld [vmem:[%s5646_s28 + $0x750] sm:$0xf]  ;;  %v669_v43 = vld [vmem:[%s5646_s28 + $0x758] sm:$0xf]  ;;  %666 = vst [vmem:[%s5653_s29 + $0x3a4] sm:$0xf] %v665_v41 }
  0xb2   : > { %668 = vst [vmem:[%s5653_s29 + $0x3a8] sm:$0xf] %v667_v42  ;;  %670 = vst [vmem:[%s5653_s29 + $0x3ac] sm:$0xf] %v669_v43  ;;  %v671_v44 = vld [vmem:[%s5646_s28 + $0x760] sm:$0xf] }
  0xb3   : > { %v673_v45 = vld [vmem:[%s5646_s28 + $0x768] sm:$0xf]  ;;  %v675_v46 = vld [vmem:[%s5646_s28 + $0x770] sm:$0xf]  ;;  %672 = vst [vmem:[%s5653_s29 + $0x3b0] sm:$0xf] %v671_v44 }
  0xb4   : > { %674 = vst [vmem:[%s5653_s29 + $0x3b4] sm:$0xf] %v673_v45  ;;  %676 = vst [vmem:[%s5653_s29 + $0x3b8] sm:$0xf] %v675_v46  ;;  %v677_v47 = vld [vmem:[%s5646_s28 + $0x778] sm:$0xf] }
  0xb5   : > { %v679_v48 = vld [vmem:[%s5646_s28 + $0x780] sm:$0xf]  ;;  %v681_v49 = vld [vmem:[%s5646_s28 + $0x788] sm:$0xf]  ;;  %678 = vst [vmem:[%s5653_s29 + $0x3bc] sm:$0xf] %v677_v47 }
  0xb6   : > { %680 = vst [vmem:[%s5653_s29 + $0x3c0] sm:$0xf] %v679_v48  ;;  %682 = vst [vmem:[%s5653_s29 + $0x3c4] sm:$0xf] %v681_v49  ;;  %v683_v50 = vld [vmem:[%s5646_s28 + $0x790] sm:$0xf] }
  0xb7   : > { %v685_v51 = vld [vmem:[%s5646_s28 + $0x798] sm:$0xf]  ;;  %v687_v52 = vld [vmem:[%s5646_s28 + $0x7a0] sm:$0xf]  ;;  %684 = vst [vmem:[%s5653_s29 + $0x3c8] sm:$0xf] %v683_v50 }
  0xb8   : > { %686 = vst [vmem:[%s5653_s29 + $0x3cc] sm:$0xf] %v685_v51  ;;  %688 = vst [vmem:[%s5653_s29 + $0x3d0] sm:$0xf] %v687_v52  ;;  %v689_v53 = vld [vmem:[%s5646_s28 + $0x7a8] sm:$0xf] }
  0xb9   : > { %v691_v54 = vld [vmem:[%s5646_s28 + $0x7b0] sm:$0xf]  ;;  %v693_v55 = vld [vmem:[%s5646_s28 + $0x7b8] sm:$0xf]  ;;  %690 = vst [vmem:[%s5653_s29 + $0x3d4] sm:$0xf] %v689_v53 }
  0xba   : > { %692 = vst [vmem:[%s5653_s29 + $0x3d8] sm:$0xf] %v691_v54  ;;  %694 = vst [vmem:[%s5653_s29 + $0x3dc] sm:$0xf] %v693_v55  ;;  %v695_v56 = vld [vmem:[%s5646_s28 + $0x7c0] sm:$0xf] }
  0xbb   : > { %v697_v57 = vld [vmem:[%s5646_s28 + $0x7c8] sm:$0xf]  ;;  %v699_v58 = vld [vmem:[%s5646_s28 + $0x7d0] sm:$0xf]  ;;  %696 = vst [vmem:[%s5653_s29 + $0x3e0] sm:$0xf] %v695_v56 }
  0xbc   : > { %698 = vst [vmem:[%s5653_s29 + $0x3e4] sm:$0xf] %v697_v57  ;;  %700 = vst [vmem:[%s5653_s29 + $0x3e8] sm:$0xf] %v699_v58  ;;  %v701_v59 = vld [vmem:[%s5646_s28 + $0x7d8] sm:$0xf] }
  0xbd   : > { %v703_v60 = vld [vmem:[%s5646_s28 + $0x7e0] sm:$0xf]  ;;  %v705_v61 = vld [vmem:[%s5646_s28 + $0x7e8] sm:$0xf]  ;;  %702 = vst [vmem:[%s5653_s29 + $0x3ec] sm:$0xf] %v701_v59 }
  0xbe   : > { %704 = vst [vmem:[%s5653_s29 + $0x3f0] sm:$0xf] %v703_v60  ;;  %706 = vst [vmem:[%s5653_s29 + $0x3f4] sm:$0xf] %v705_v61  ;;  %v707_v62 = vld [vmem:[%s5646_s28 + $0x7f0] sm:$0xf] }
  0xbf   : > { %v709_v63 = vld [vmem:[%s5646_s28 + $0x7f8] sm:$0xf]  ;;  %v711_v0 = vld [vmem:[%s5646_s28 + $0x800] sm:$0xf]  ;;  %708 = vst [vmem:[%s5653_s29 + $0x3f8] sm:$0xf] %v707_v62 }
  0xc0   : > { %710 = vst [vmem:[%s5653_s29 + $0x3fc] sm:$0xf] %v709_v63  ;;  %712 = vst [vmem:[%s5653_s29 + $0x400] sm:$0xf] %v711_v0  ;;  %v713_v1 = vld [vmem:[%s5646_s28 + $0x808] sm:$0xf] }
  0xc1   : > { %v715_v2 = vld [vmem:[%s5646_s28 + $0x810] sm:$0xf]  ;;  %v717_v3 = vld [vmem:[%s5646_s28 + $0x818] sm:$0xf]  ;;  %714 = vst [vmem:[%s5653_s29 + $0x404] sm:$0xf] %v713_v1 }
  0xc2   : > { %716 = vst [vmem:[%s5653_s29 + $0x408] sm:$0xf] %v715_v2  ;;  %718 = vst [vmem:[%s5653_s29 + $0x40c] sm:$0xf] %v717_v3  ;;  %v719_v4 = vld [vmem:[%s5646_s28 + $0x820] sm:$0xf] }
  0xc3   : > { %v721_v5 = vld [vmem:[%s5646_s28 + $0x828] sm:$0xf]  ;;  %v723_v6 = vld [vmem:[%s5646_s28 + $0x830] sm:$0xf]  ;;  %720 = vst [vmem:[%s5653_s29 + $0x410] sm:$0xf] %v719_v4 }
  0xc4   : > { %722 = vst [vmem:[%s5653_s29 + $0x414] sm:$0xf] %v721_v5  ;;  %724 = vst [vmem:[%s5653_s29 + $0x418] sm:$0xf] %v723_v6  ;;  %v725_v7 = vld [vmem:[%s5646_s28 + $0x838] sm:$0xf] }
  0xc5   : > { %v727_v8 = vld [vmem:[%s5646_s28 + $0x840] sm:$0xf]  ;;  %v729_v9 = vld [vmem:[%s5646_s28 + $0x848] sm:$0xf]  ;;  %726 = vst [vmem:[%s5653_s29 + $0x41c] sm:$0xf] %v725_v7 }
  0xc6   : > { %728 = vst [vmem:[%s5653_s29 + $0x420] sm:$0xf] %v727_v8  ;;  %730 = vst [vmem:[%s5653_s29 + $0x424] sm:$0xf] %v729_v9  ;;  %v731_v10 = vld [vmem:[%s5646_s28 + $0x850] sm:$0xf] }
  0xc7   : > { %v733_v11 = vld [vmem:[%s5646_s28 + $0x858] sm:$0xf]  ;;  %v735_v12 = vld [vmem:[%s5646_s28 + $0x860] sm:$0xf]  ;;  %732 = vst [vmem:[%s5653_s29 + $0x428] sm:$0xf] %v731_v10 }
  0xc8   : > { %734 = vst [vmem:[%s5653_s29 + $0x42c] sm:$0xf] %v733_v11  ;;  %736 = vst [vmem:[%s5653_s29 + $0x430] sm:$0xf] %v735_v12  ;;  %v737_v13 = vld [vmem:[%s5646_s28 + $0x868] sm:$0xf] }
  0xc9   : > { %v739_v14 = vld [vmem:[%s5646_s28 + $0x870] sm:$0xf]  ;;  %v741_v15 = vld [vmem:[%s5646_s28 + $0x878] sm:$0xf]  ;;  %738 = vst [vmem:[%s5653_s29 + $0x434] sm:$0xf] %v737_v13 }
  0xca   : > { %740 = vst [vmem:[%s5653_s29 + $0x438] sm:$0xf] %v739_v14  ;;  %742 = vst [vmem:[%s5653_s29 + $0x43c] sm:$0xf] %v741_v15  ;;  %v743_v16 = vld [vmem:[%s5646_s28 + $0x880] sm:$0xf] }
  0xcb   : > { %v745_v17 = vld [vmem:[%s5646_s28 + $0x888] sm:$0xf]  ;;  %v747_v18 = vld [vmem:[%s5646_s28 + $0x890] sm:$0xf]  ;;  %744 = vst [vmem:[%s5653_s29 + $0x440] sm:$0xf] %v743_v16 }
  0xcc   : > { %746 = vst [vmem:[%s5653_s29 + $0x444] sm:$0xf] %v745_v17  ;;  %748 = vst [vmem:[%s5653_s29 + $0x448] sm:$0xf] %v747_v18  ;;  %v749_v19 = vld [vmem:[%s5646_s28 + $0x898] sm:$0xf] }
  0xcd   : > { %v751_v20 = vld [vmem:[%s5646_s28 + $0x8a0] sm:$0xf]  ;;  %v753_v21 = vld [vmem:[%s5646_s28 + $0x8a8] sm:$0xf]  ;;  %750 = vst [vmem:[%s5653_s29 + $0x44c] sm:$0xf] %v749_v19 }
  0xce   : > { %752 = vst [vmem:[%s5653_s29 + $0x450] sm:$0xf] %v751_v20  ;;  %754 = vst [vmem:[%s5653_s29 + $0x454] sm:$0xf] %v753_v21  ;;  %v755_v22 = vld [vmem:[%s5646_s28 + $0x8b0] sm:$0xf] }
  0xcf   : > { %v757_v23 = vld [vmem:[%s5646_s28 + $0x8b8] sm:$0xf]  ;;  %v759_v24 = vld [vmem:[%s5646_s28 + $0x8c0] sm:$0xf]  ;;  %756 = vst [vmem:[%s5653_s29 + $0x458] sm:$0xf] %v755_v22 }
  0xd0   : > { %758 = vst [vmem:[%s5653_s29 + $0x45c] sm:$0xf] %v757_v23  ;;  %760 = vst [vmem:[%s5653_s29 + $0x460] sm:$0xf] %v759_v24  ;;  %v761_v25 = vld [vmem:[%s5646_s28 + $0x8c8] sm:$0xf] }
  0xd1   : > { %v763_v26 = vld [vmem:[%s5646_s28 + $0x8d0] sm:$0xf]  ;;  %v765_v27 = vld [vmem:[%s5646_s28 + $0x8d8] sm:$0xf]  ;;  %762 = vst [vmem:[%s5653_s29 + $0x464] sm:$0xf] %v761_v25 }
  0xd2   : > { %764 = vst [vmem:[%s5653_s29 + $0x468] sm:$0xf] %v763_v26  ;;  %766 = vst [vmem:[%s5653_s29 + $0x46c] sm:$0xf] %v765_v27  ;;  %v767_v28 = vld [vmem:[%s5646_s28 + $0x8e0] sm:$0xf] }
  0xd3   : > { %v769_v29 = vld [vmem:[%s5646_s28 + $0x8e8] sm:$0xf]  ;;  %v771_v30 = vld [vmem:[%s5646_s28 + $0x8f0] sm:$0xf]  ;;  %768 = vst [vmem:[%s5653_s29 + $0x470] sm:$0xf] %v767_v28 }
  0xd4   : > { %770 = vst [vmem:[%s5653_s29 + $0x474] sm:$0xf] %v769_v29  ;;  %772 = vst [vmem:[%s5653_s29 + $0x478] sm:$0xf] %v771_v30  ;;  %v773_v31 = vld [vmem:[%s5646_s28 + $0x8f8] sm:$0xf] }
  0xd5   : > { %v775_v32 = vld [vmem:[%s5646_s28 + $0x900] sm:$0xf]  ;;  %v777_v33 = vld [vmem:[%s5646_s28 + $0x908] sm:$0xf]  ;;  %774 = vst [vmem:[%s5653_s29 + $0x47c] sm:$0xf] %v773_v31 }
  0xd6   : > { %776 = vst [vmem:[%s5653_s29 + $0x480] sm:$0xf] %v775_v32  ;;  %778 = vst [vmem:[%s5653_s29 + $0x484] sm:$0xf] %v777_v33  ;;  %v779_v34 = vld [vmem:[%s5646_s28 + $0x910] sm:$0xf] }
  0xd7   : > { %v781_v35 = vld [vmem:[%s5646_s28 + $0x918] sm:$0xf]  ;;  %v783_v36 = vld [vmem:[%s5646_s28 + $0x920] sm:$0xf]  ;;  %780 = vst [vmem:[%s5653_s29 + $0x488] sm:$0xf] %v779_v34 }
  0xd8   : > { %782 = vst [vmem:[%s5653_s29 + $0x48c] sm:$0xf] %v781_v35  ;;  %784 = vst [vmem:[%s5653_s29 + $0x490] sm:$0xf] %v783_v36  ;;  %v785_v37 = vld [vmem:[%s5646_s28 + $0x928] sm:$0xf] }
  0xd9   : > { %v787_v38 = vld [vmem:[%s5646_s28 + $0x930] sm:$0xf]  ;;  %v789_v39 = vld [vmem:[%s5646_s28 + $0x938] sm:$0xf]  ;;  %786 = vst [vmem:[%s5653_s29 + $0x494] sm:$0xf] %v785_v37 }
  0xda   : > { %788 = vst [vmem:[%s5653_s29 + $0x498] sm:$0xf] %v787_v38  ;;  %790 = vst [vmem:[%s5653_s29 + $0x49c] sm:$0xf] %v789_v39  ;;  %v791_v40 = vld [vmem:[%s5646_s28 + $0x940] sm:$0xf] }
  0xdb   : > { %v793_v41 = vld [vmem:[%s5646_s28 + $0x948] sm:$0xf]  ;;  %v795_v42 = vld [vmem:[%s5646_s28 + $0x950] sm:$0xf]  ;;  %792 = vst [vmem:[%s5653_s29 + $0x4a0] sm:$0xf] %v791_v40 }
  0xdc   : > { %794 = vst [vmem:[%s5653_s29 + $0x4a4] sm:$0xf] %v793_v41  ;;  %796 = vst [vmem:[%s5653_s29 + $0x4a8] sm:$0xf] %v795_v42  ;;  %v797_v43 = vld [vmem:[%s5646_s28 + $0x958] sm:$0xf] }
  0xdd   : > { %v799_v44 = vld [vmem:[%s5646_s28 + $0x960] sm:$0xf]  ;;  %v801_v45 = vld [vmem:[%s5646_s28 + $0x968] sm:$0xf]  ;;  %798 = vst [vmem:[%s5653_s29 + $0x4ac] sm:$0xf] %v797_v43 }
  0xde   : > { %800 = vst [vmem:[%s5653_s29 + $0x4b0] sm:$0xf] %v799_v44  ;;  %802 = vst [vmem:[%s5653_s29 + $0x4b4] sm:$0xf] %v801_v45  ;;  %v803_v46 = vld [vmem:[%s5646_s28 + $0x970] sm:$0xf] }
  0xdf   : > { %v805_v47 = vld [vmem:[%s5646_s28 + $0x978] sm:$0xf]  ;;  %v807_v48 = vld [vmem:[%s5646_s28 + $0x980] sm:$0xf]  ;;  %804 = vst [vmem:[%s5653_s29 + $0x4b8] sm:$0xf] %v803_v46 }
  0xe0   : > { %806 = vst [vmem:[%s5653_s29 + $0x4bc] sm:$0xf] %v805_v47  ;;  %808 = vst [vmem:[%s5653_s29 + $0x4c0] sm:$0xf] %v807_v48  ;;  %v809_v49 = vld [vmem:[%s5646_s28 + $0x988] sm:$0xf] }
  0xe1   : > { %v811_v50 = vld [vmem:[%s5646_s28 + $0x990] sm:$0xf]  ;;  %v813_v51 = vld [vmem:[%s5646_s28 + $0x998] sm:$0xf]  ;;  %810 = vst [vmem:[%s5653_s29 + $0x4c4] sm:$0xf] %v809_v49 }
  0xe2   : > { %812 = vst [vmem:[%s5653_s29 + $0x4c8] sm:$0xf] %v811_v50  ;;  %814 = vst [vmem:[%s5653_s29 + $0x4cc] sm:$0xf] %v813_v51  ;;  %v815_v52 = vld [vmem:[%s5646_s28 + $0x9a0] sm:$0xf] }
  0xe3   : > { %v817_v53 = vld [vmem:[%s5646_s28 + $0x9a8] sm:$0xf]  ;;  %v819_v54 = vld [vmem:[%s5646_s28 + $0x9b0] sm:$0xf]  ;;  %816 = vst [vmem:[%s5653_s29 + $0x4d0] sm:$0xf] %v815_v52 }
  0xe4   : > { %818 = vst [vmem:[%s5653_s29 + $0x4d4] sm:$0xf] %v817_v53  ;;  %820 = vst [vmem:[%s5653_s29 + $0x4d8] sm:$0xf] %v819_v54  ;;  %v821_v55 = vld [vmem:[%s5646_s28 + $0x9b8] sm:$0xf] }
  0xe5   : > { %v823_v56 = vld [vmem:[%s5646_s28 + $0x9c0] sm:$0xf]  ;;  %v825_v57 = vld [vmem:[%s5646_s28 + $0x9c8] sm:$0xf]  ;;  %822 = vst [vmem:[%s5653_s29 + $0x4dc] sm:$0xf] %v821_v55 }
  0xe6   : > { %824 = vst [vmem:[%s5653_s29 + $0x4e0] sm:$0xf] %v823_v56  ;;  %826 = vst [vmem:[%s5653_s29 + $0x4e4] sm:$0xf] %v825_v57  ;;  %v827_v58 = vld [vmem:[%s5646_s28 + $0x9d0] sm:$0xf] }
  0xe7   : > { %v829_v59 = vld [vmem:[%s5646_s28 + $0x9d8] sm:$0xf]  ;;  %v831_v60 = vld [vmem:[%s5646_s28 + $0x9e0] sm:$0xf]  ;;  %828 = vst [vmem:[%s5653_s29 + $0x4e8] sm:$0xf] %v827_v58 }
  0xe8   : > { %830 = vst [vmem:[%s5653_s29 + $0x4ec] sm:$0xf] %v829_v59  ;;  %832 = vst [vmem:[%s5653_s29 + $0x4f0] sm:$0xf] %v831_v60  ;;  %v833_v61 = vld [vmem:[%s5646_s28 + $0x9e8] sm:$0xf] }
  0xe9   : > { %v835_v62 = vld [vmem:[%s5646_s28 + $0x9f0] sm:$0xf]  ;;  %v837_v63 = vld [vmem:[%s5646_s28 + $0x9f8] sm:$0xf]  ;;  %834 = vst [vmem:[%s5653_s29 + $0x4f4] sm:$0xf] %v833_v61 }
  0xea   : > { %836 = vst [vmem:[%s5653_s29 + $0x4f8] sm:$0xf] %v835_v62  ;;  %838 = vst [vmem:[%s5653_s29 + $0x4fc] sm:$0xf] %v837_v63  ;;  %v839_v0 = vld [vmem:[%s5646_s28 + $0xa00] sm:$0xf] }
  0xeb   : > { %v841_v1 = vld [vmem:[%s5646_s28 + $0xa08] sm:$0xf]  ;;  %v843_v2 = vld [vmem:[%s5646_s28 + $0xa10] sm:$0xf]  ;;  %840 = vst [vmem:[%s5653_s29 + $0x500] sm:$0xf] %v839_v0 }
  0xec   : > { %842 = vst [vmem:[%s5653_s29 + $0x504] sm:$0xf] %v841_v1  ;;  %844 = vst [vmem:[%s5653_s29 + $0x508] sm:$0xf] %v843_v2  ;;  %v845_v3 = vld [vmem:[%s5646_s28 + $0xa18] sm:$0xf] }
  0xed   : > { %v847_v4 = vld [vmem:[%s5646_s28 + $0xa20] sm:$0xf]  ;;  %v849_v5 = vld [vmem:[%s5646_s28 + $0xa28] sm:$0xf]  ;;  %846 = vst [vmem:[%s5653_s29 + $0x50c] sm:$0xf] %v845_v3 }
  0xee   : > { %848 = vst [vmem:[%s5653_s29 + $0x510] sm:$0xf] %v847_v4  ;;  %850 = vst [vmem:[%s5653_s29 + $0x514] sm:$0xf] %v849_v5  ;;  %v851_v6 = vld [vmem:[%s5646_s28 + $0xa30] sm:$0xf] }
  0xef   : > { %v853_v7 = vld [vmem:[%s5646_s28 + $0xa38] sm:$0xf]  ;;  %v855_v8 = vld [vmem:[%s5646_s28 + $0xa40] sm:$0xf]  ;;  %852 = vst [vmem:[%s5653_s29 + $0x518] sm:$0xf] %v851_v6 }
  0xf0   : > { %854 = vst [vmem:[%s5653_s29 + $0x51c] sm:$0xf] %v853_v7  ;;  %856 = vst [vmem:[%s5653_s29 + $0x520] sm:$0xf] %v855_v8  ;;  %v857_v9 = vld [vmem:[%s5646_s28 + $0xa48] sm:$0xf] }
  0xf1   : > { %v859_v10 = vld [vmem:[%s5646_s28 + $0xa50] sm:$0xf]  ;;  %v861_v11 = vld [vmem:[%s5646_s28 + $0xa58] sm:$0xf]  ;;  %858 = vst [vmem:[%s5653_s29 + $0x524] sm:$0xf] %v857_v9 }
  0xf2   : > { %860 = vst [vmem:[%s5653_s29 + $0x528] sm:$0xf] %v859_v10  ;;  %862 = vst [vmem:[%s5653_s29 + $0x52c] sm:$0xf] %v861_v11  ;;  %v863_v12 = vld [vmem:[%s5646_s28 + $0xa60] sm:$0xf] }
  0xf3   : > { %v865_v13 = vld [vmem:[%s5646_s28 + $0xa68] sm:$0xf]  ;;  %v867_v14 = vld [vmem:[%s5646_s28 + $0xa70] sm:$0xf]  ;;  %864 = vst [vmem:[%s5653_s29 + $0x530] sm:$0xf] %v863_v12 }
  0xf4   : > { %866 = vst [vmem:[%s5653_s29 + $0x534] sm:$0xf] %v865_v13  ;;  %868 = vst [vmem:[%s5653_s29 + $0x538] sm:$0xf] %v867_v14  ;;  %v869_v15 = vld [vmem:[%s5646_s28 + $0xa78] sm:$0xf] }
  0xf5   : > { %v871_v16 = vld [vmem:[%s5646_s28 + $0xa80] sm:$0xf]  ;;  %v873_v17 = vld [vmem:[%s5646_s28 + $0xa88] sm:$0xf]  ;;  %870 = vst [vmem:[%s5653_s29 + $0x53c] sm:$0xf] %v869_v15 }
  0xf6   : > { %872 = vst [vmem:[%s5653_s29 + $0x540] sm:$0xf] %v871_v16  ;;  %874 = vst [vmem:[%s5653_s29 + $0x544] sm:$0xf] %v873_v17  ;;  %v875_v18 = vld [vmem:[%s5646_s28 + $0xa90] sm:$0xf] }
  0xf7   : > { %v877_v19 = vld [vmem:[%s5646_s28 + $0xa98] sm:$0xf]  ;;  %v879_v20 = vld [vmem:[%s5646_s28 + $0xaa0] sm:$0xf]  ;;  %876 = vst [vmem:[%s5653_s29 + $0x548] sm:$0xf] %v875_v18 }
  0xf8   : > { %878 = vst [vmem:[%s5653_s29 + $0x54c] sm:$0xf] %v877_v19  ;;  %880 = vst [vmem:[%s5653_s29 + $0x550] sm:$0xf] %v879_v20  ;;  %v881_v21 = vld [vmem:[%s5646_s28 + $0xaa8] sm:$0xf] }
  0xf9   : > { %v883_v22 = vld [vmem:[%s5646_s28 + $0xab0] sm:$0xf]  ;;  %v885_v23 = vld [vmem:[%s5646_s28 + $0xab8] sm:$0xf]  ;;  %882 = vst [vmem:[%s5653_s29 + $0x554] sm:$0xf] %v881_v21 }
  0xfa   : > { %884 = vst [vmem:[%s5653_s29 + $0x558] sm:$0xf] %v883_v22  ;;  %886 = vst [vmem:[%s5653_s29 + $0x55c] sm:$0xf] %v885_v23  ;;  %v887_v24 = vld [vmem:[%s5646_s28 + $0xac0] sm:$0xf] }
  0xfb   : > { %v889_v25 = vld [vmem:[%s5646_s28 + $0xac8] sm:$0xf]  ;;  %v891_v26 = vld [vmem:[%s5646_s28 + $0xad0] sm:$0xf]  ;;  %888 = vst [vmem:[%s5653_s29 + $0x560] sm:$0xf] %v887_v24 }
  0xfc   : > { %890 = vst [vmem:[%s5653_s29 + $0x564] sm:$0xf] %v889_v25  ;;  %892 = vst [vmem:[%s5653_s29 + $0x568] sm:$0xf] %v891_v26  ;;  %v893_v27 = vld [vmem:[%s5646_s28 + $0xad8] sm:$0xf] }
  0xfd   : > { %v895_v28 = vld [vmem:[%s5646_s28 + $0xae0] sm:$0xf]  ;;  %v897_v29 = vld [vmem:[%s5646_s28 + $0xae8] sm:$0xf]  ;;  %894 = vst [vmem:[%s5653_s29 + $0x56c] sm:$0xf] %v893_v27 }
  0xfe   : > { %896 = vst [vmem:[%s5653_s29 + $0x570] sm:$0xf] %v895_v28  ;;  %898 = vst [vmem:[%s5653_s29 + $0x574] sm:$0xf] %v897_v29  ;;  %v899_v30 = vld [vmem:[%s5646_s28 + $0xaf0] sm:$0xf] }
  0xff   : > { %v901_v31 = vld [vmem:[%s5646_s28 + $0xaf8] sm:$0xf]  ;;  %v903_v32 = vld [vmem:[%s5646_s28 + $0xb00] sm:$0xf]  ;;  %900 = vst [vmem:[%s5653_s29 + $0x578] sm:$0xf] %v899_v30 }
 0x100   : > { %902 = vst [vmem:[%s5653_s29 + $0x57c] sm:$0xf] %v901_v31  ;;  %904 = vst [vmem:[%s5653_s29 + $0x580] sm:$0xf] %v903_v32  ;;  %v905_v33 = vld [vmem:[%s5646_s28 + $0xb08] sm:$0xf] }
 0x101   : > { %v907_v34 = vld [vmem:[%s5646_s28 + $0xb10] sm:$0xf]  ;;  %v909_v35 = vld [vmem:[%s5646_s28 + $0xb18] sm:$0xf]  ;;  %906 = vst [vmem:[%s5653_s29 + $0x584] sm:$0xf] %v905_v33 }
 0x102   : > { %908 = vst [vmem:[%s5653_s29 + $0x588] sm:$0xf] %v907_v34  ;;  %910 = vst [vmem:[%s5653_s29 + $0x58c] sm:$0xf] %v909_v35  ;;  %v911_v36 = vld [vmem:[%s5646_s28 + $0xb20] sm:$0xf] }
 0x103   : > { %v913_v37 = vld [vmem:[%s5646_s28 + $0xb28] sm:$0xf]  ;;  %v915_v38 = vld [vmem:[%s5646_s28 + $0xb30] sm:$0xf]  ;;  %912 = vst [vmem:[%s5653_s29 + $0x590] sm:$0xf] %v911_v36 }
 0x104   : > { %914 = vst [vmem:[%s5653_s29 + $0x594] sm:$0xf] %v913_v37  ;;  %916 = vst [vmem:[%s5653_s29 + $0x598] sm:$0xf] %v915_v38  ;;  %v917_v39 = vld [vmem:[%s5646_s28 + $0xb38] sm:$0xf] }
 0x105   : > { %v919_v40 = vld [vmem:[%s5646_s28 + $0xb40] sm:$0xf]  ;;  %v921_v41 = vld [vmem:[%s5646_s28 + $0xb48] sm:$0xf]  ;;  %918 = vst [vmem:[%s5653_s29 + $0x59c] sm:$0xf] %v917_v39 }
 0x106   : > { %920 = vst [vmem:[%s5653_s29 + $0x5a0] sm:$0xf] %v919_v40  ;;  %922 = vst [vmem:[%s5653_s29 + $0x5a4] sm:$0xf] %v921_v41  ;;  %v923_v42 = vld [vmem:[%s5646_s28 + $0xb50] sm:$0xf] }
 0x107   : > { %v925_v43 = vld [vmem:[%s5646_s28 + $0xb58] sm:$0xf]  ;;  %v927_v44 = vld [vmem:[%s5646_s28 + $0xb60] sm:$0xf]  ;;  %924 = vst [vmem:[%s5653_s29 + $0x5a8] sm:$0xf] %v923_v42 }
 0x108   : > { %926 = vst [vmem:[%s5653_s29 + $0x5ac] sm:$0xf] %v925_v43  ;;  %928 = vst [vmem:[%s5653_s29 + $0x5b0] sm:$0xf] %v927_v44  ;;  %v929_v45 = vld [vmem:[%s5646_s28 + $0xb68] sm:$0xf] }
 0x109   : > { %v931_v46 = vld [vmem:[%s5646_s28 + $0xb70] sm:$0xf]  ;;  %v933_v47 = vld [vmem:[%s5646_s28 + $0xb78] sm:$0xf]  ;;  %930 = vst [vmem:[%s5653_s29 + $0x5b4] sm:$0xf] %v929_v45 }
 0x10a   : > { %932 = vst [vmem:[%s5653_s29 + $0x5b8] sm:$0xf] %v931_v46  ;;  %934 = vst [vmem:[%s5653_s29 + $0x5bc] sm:$0xf] %v933_v47  ;;  %v935_v48 = vld [vmem:[%s5646_s28 + $0xb80] sm:$0xf] }
 0x10b   : > { %v937_v49 = vld [vmem:[%s5646_s28 + $0xb88] sm:$0xf]  ;;  %v939_v50 = vld [vmem:[%s5646_s28 + $0xb90] sm:$0xf]  ;;  %936 = vst [vmem:[%s5653_s29 + $0x5c0] sm:$0xf] %v935_v48 }
 0x10c   : > { %938 = vst [vmem:[%s5653_s29 + $0x5c4] sm:$0xf] %v937_v49  ;;  %940 = vst [vmem:[%s5653_s29 + $0x5c8] sm:$0xf] %v939_v50  ;;  %v941_v51 = vld [vmem:[%s5646_s28 + $0xb98] sm:$0xf] }
 0x10d   : > { %v943_v52 = vld [vmem:[%s5646_s28 + $0xba0] sm:$0xf]  ;;  %v945_v53 = vld [vmem:[%s5646_s28 + $0xba8] sm:$0xf]  ;;  %942 = vst [vmem:[%s5653_s29 + $0x5cc] sm:$0xf] %v941_v51 }
 0x10e   : > { %944 = vst [vmem:[%s5653_s29 + $0x5d0] sm:$0xf] %v943_v52  ;;  %946 = vst [vmem:[%s5653_s29 + $0x5d4] sm:$0xf] %v945_v53  ;;  %v947_v54 = vld [vmem:[%s5646_s28 + $0xbb0] sm:$0xf] }
 0x10f   : > { %v949_v55 = vld [vmem:[%s5646_s28 + $0xbb8] sm:$0xf]  ;;  %v951_v56 = vld [vmem:[%s5646_s28 + $0xbc0] sm:$0xf]  ;;  %948 = vst [vmem:[%s5653_s29 + $0x5d8] sm:$0xf] %v947_v54 }
 0x110   : > { %950 = vst [vmem:[%s5653_s29 + $0x5dc] sm:$0xf] %v949_v55  ;;  %952 = vst [vmem:[%s5653_s29 + $0x5e0] sm:$0xf] %v951_v56  ;;  %v953_v57 = vld [vmem:[%s5646_s28 + $0xbc8] sm:$0xf] }
 0x111   : > { %v955_v58 = vld [vmem:[%s5646_s28 + $0xbd0] sm:$0xf]  ;;  %v957_v59 = vld [vmem:[%s5646_s28 + $0xbd8] sm:$0xf]  ;;  %954 = vst [vmem:[%s5653_s29 + $0x5e4] sm:$0xf] %v953_v57 }
 0x112   : > { %956 = vst [vmem:[%s5653_s29 + $0x5e8] sm:$0xf] %v955_v58  ;;  %958 = vst [vmem:[%s5653_s29 + $0x5ec] sm:$0xf] %v957_v59  ;;  %v959_v60 = vld [vmem:[%s5646_s28 + $0xbe0] sm:$0xf] }
 0x113   : > { %v961_v61 = vld [vmem:[%s5646_s28 + $0xbe8] sm:$0xf]  ;;  %v963_v62 = vld [vmem:[%s5646_s28 + $0xbf0] sm:$0xf]  ;;  %960 = vst [vmem:[%s5653_s29 + $0x5f0] sm:$0xf] %v959_v60 }
 0x114   : > { %962 = vst [vmem:[%s5653_s29 + $0x5f4] sm:$0xf] %v961_v61  ;;  %964 = vst [vmem:[%s5653_s29 + $0x5f8] sm:$0xf] %v963_v62  ;;  %v965_v63 = vld [vmem:[%s5646_s28 + $0xbf8] sm:$0xf] }
 0x115   : > { %v967_v0 = vld [vmem:[%s5646_s28 + $0xc00] sm:$0xf]  ;;  %v969_v1 = vld [vmem:[%s5646_s28 + $0xc08] sm:$0xf]  ;;  %966 = vst [vmem:[%s5653_s29 + $0x5fc] sm:$0xf] %v965_v63 }
 0x116   : > { %968 = vst [vmem:[%s5653_s29 + $0x600] sm:$0xf] %v967_v0  ;;  %970 = vst [vmem:[%s5653_s29 + $0x604] sm:$0xf] %v969_v1  ;;  %v971_v2 = vld [vmem:[%s5646_s28 + $0xc10] sm:$0xf] }
 0x117   : > { %v973_v3 = vld [vmem:[%s5646_s28 + $0xc18] sm:$0xf]  ;;  %v975_v4 = vld [vmem:[%s5646_s28 + $0xc20] sm:$0xf]  ;;  %972 = vst [vmem:[%s5653_s29 + $0x608] sm:$0xf] %v971_v2 }
 0x118   : > { %974 = vst [vmem:[%s5653_s29 + $0x60c] sm:$0xf] %v973_v3  ;;  %976 = vst [vmem:[%s5653_s29 + $0x610] sm:$0xf] %v975_v4  ;;  %v977_v5 = vld [vmem:[%s5646_s28 + $0xc28] sm:$0xf] }
 0x119   : > { %v979_v6 = vld [vmem:[%s5646_s28 + $0xc30] sm:$0xf]  ;;  %v981_v7 = vld [vmem:[%s5646_s28 + $0xc38] sm:$0xf]  ;;  %978 = vst [vmem:[%s5653_s29 + $0x614] sm:$0xf] %v977_v5 }
 0x11a   : > { %980 = vst [vmem:[%s5653_s29 + $0x618] sm:$0xf] %v979_v6  ;;  %982 = vst [vmem:[%s5653_s29 + $0x61c] sm:$0xf] %v981_v7  ;;  %v983_v8 = vld [vmem:[%s5646_s28 + $0xc40] sm:$0xf] }
 0x11b   : > { %v985_v9 = vld [vmem:[%s5646_s28 + $0xc48] sm:$0xf]  ;;  %v987_v10 = vld [vmem:[%s5646_s28 + $0xc50] sm:$0xf]  ;;  %984 = vst [vmem:[%s5653_s29 + $0x620] sm:$0xf] %v983_v8 }
 0x11c   : > { %986 = vst [vmem:[%s5653_s29 + $0x624] sm:$0xf] %v985_v9  ;;  %988 = vst [vmem:[%s5653_s29 + $0x628] sm:$0xf] %v987_v10  ;;  %v989_v11 = vld [vmem:[%s5646_s28 + $0xc58] sm:$0xf] }
 0x11d   : > { %v991_v12 = vld [vmem:[%s5646_s28 + $0xc60] sm:$0xf]  ;;  %v993_v13 = vld [vmem:[%s5646_s28 + $0xc68] sm:$0xf]  ;;  %990 = vst [vmem:[%s5653_s29 + $0x62c] sm:$0xf] %v989_v11 }
 0x11e   : > { %992 = vst [vmem:[%s5653_s29 + $0x630] sm:$0xf] %v991_v12  ;;  %994 = vst [vmem:[%s5653_s29 + $0x634] sm:$0xf] %v993_v13  ;;  %v995_v14 = vld [vmem:[%s5646_s28 + $0xc70] sm:$0xf] }
 0x11f   : > { %v997_v15 = vld [vmem:[%s5646_s28 + $0xc78] sm:$0xf]  ;;  %v999_v16 = vld [vmem:[%s5646_s28 + $0xc80] sm:$0xf]  ;;  %996 = vst [vmem:[%s5653_s29 + $0x638] sm:$0xf] %v995_v14 }
 0x120   : > { %998 = vst [vmem:[%s5653_s29 + $0x63c] sm:$0xf] %v997_v15  ;;  %1000 = vst [vmem:[%s5653_s29 + $0x640] sm:$0xf] %v999_v16  ;;  %v1001_v17 = vld [vmem:[%s5646_s28 + $0xc88] sm:$0xf] }
 0x121   : > { %v1003_v18 = vld [vmem:[%s5646_s28 + $0xc90] sm:$0xf]  ;;  %v1005_v19 = vld [vmem:[%s5646_s28 + $0xc98] sm:$0xf]  ;;  %1002 = vst [vmem:[%s5653_s29 + $0x644] sm:$0xf] %v1001_v17 }
 0x122   : > { %1004 = vst [vmem:[%s5653_s29 + $0x648] sm:$0xf] %v1003_v18  ;;  %1006 = vst [vmem:[%s5653_s29 + $0x64c] sm:$0xf] %v1005_v19  ;;  %v1007_v20 = vld [vmem:[%s5646_s28 + $0xca0] sm:$0xf] }
 0x123   : > { %v1009_v21 = vld [vmem:[%s5646_s28 + $0xca8] sm:$0xf]  ;;  %v1011_v22 = vld [vmem:[%s5646_s28 + $0xcb0] sm:$0xf]  ;;  %1008 = vst [vmem:[%s5653_s29 + $0x650] sm:$0xf] %v1007_v20 }
 0x124   : > { %1010 = vst [vmem:[%s5653_s29 + $0x654] sm:$0xf] %v1009_v21  ;;  %1012 = vst [vmem:[%s5653_s29 + $0x658] sm:$0xf] %v1011_v22  ;;  %v1013_v23 = vld [vmem:[%s5646_s28 + $0xcb8] sm:$0xf] }
 0x125   : > { %v1015_v24 = vld [vmem:[%s5646_s28 + $0xcc0] sm:$0xf]  ;;  %v1017_v25 = vld [vmem:[%s5646_s28 + $0xcc8] sm:$0xf]  ;;  %1014 = vst [vmem:[%s5653_s29 + $0x65c] sm:$0xf] %v1013_v23 }
 0x126   : > { %1016 = vst [vmem:[%s5653_s29 + $0x660] sm:$0xf] %v1015_v24  ;;  %1018 = vst [vmem:[%s5653_s29 + $0x664] sm:$0xf] %v1017_v25  ;;  %v1019_v26 = vld [vmem:[%s5646_s28 + $0xcd0] sm:$0xf] }
 0x127   : > { %v1021_v27 = vld [vmem:[%s5646_s28 + $0xcd8] sm:$0xf]  ;;  %v1023_v28 = vld [vmem:[%s5646_s28 + $0xce0] sm:$0xf]  ;;  %1020 = vst [vmem:[%s5653_s29 + $0x668] sm:$0xf] %v1019_v26 }
 0x128   : > { %1022 = vst [vmem:[%s5653_s29 + $0x66c] sm:$0xf] %v1021_v27  ;;  %1024 = vst [vmem:[%s5653_s29 + $0x670] sm:$0xf] %v1023_v28  ;;  %v1025_v29 = vld [vmem:[%s5646_s28 + $0xce8] sm:$0xf] }
 0x129   : > { %v1027_v30 = vld [vmem:[%s5646_s28 + $0xcf0] sm:$0xf]  ;;  %v1029_v31 = vld [vmem:[%s5646_s28 + $0xcf8] sm:$0xf]  ;;  %1026 = vst [vmem:[%s5653_s29 + $0x674] sm:$0xf] %v1025_v29 }
 0x12a   : > { %1028 = vst [vmem:[%s5653_s29 + $0x678] sm:$0xf] %v1027_v30  ;;  %1030 = vst [vmem:[%s5653_s29 + $0x67c] sm:$0xf] %v1029_v31  ;;  %v1031_v32 = vld [vmem:[%s5646_s28 + $0xd00] sm:$0xf] }
 0x12b   : > { %v1033_v33 = vld [vmem:[%s5646_s28 + $0xd08] sm:$0xf]  ;;  %v1035_v34 = vld [vmem:[%s5646_s28 + $0xd10] sm:$0xf]  ;;  %1032 = vst [vmem:[%s5653_s29 + $0x680] sm:$0xf] %v1031_v32 }
 0x12c   : > { %1034 = vst [vmem:[%s5653_s29 + $0x684] sm:$0xf] %v1033_v33  ;;  %1036 = vst [vmem:[%s5653_s29 + $0x688] sm:$0xf] %v1035_v34  ;;  %v1037_v35 = vld [vmem:[%s5646_s28 + $0xd18] sm:$0xf] }
 0x12d   : > { %v1039_v36 = vld [vmem:[%s5646_s28 + $0xd20] sm:$0xf]  ;;  %v1041_v37 = vld [vmem:[%s5646_s28 + $0xd28] sm:$0xf]  ;;  %1038 = vst [vmem:[%s5653_s29 + $0x68c] sm:$0xf] %v1037_v35 }
 0x12e   : > { %1040 = vst [vmem:[%s5653_s29 + $0x690] sm:$0xf] %v1039_v36  ;;  %1042 = vst [vmem:[%s5653_s29 + $0x694] sm:$0xf] %v1041_v37  ;;  %v1043_v38 = vld [vmem:[%s5646_s28 + $0xd30] sm:$0xf] }
 0x12f   : > { %v1045_v39 = vld [vmem:[%s5646_s28 + $0xd38] sm:$0xf]  ;;  %v1047_v40 = vld [vmem:[%s5646_s28 + $0xd40] sm:$0xf]  ;;  %1044 = vst [vmem:[%s5653_s29 + $0x698] sm:$0xf] %v1043_v38 }
 0x130   : > { %1046 = vst [vmem:[%s5653_s29 + $0x69c] sm:$0xf] %v1045_v39  ;;  %1048 = vst [vmem:[%s5653_s29 + $0x6a0] sm:$0xf] %v1047_v40  ;;  %v1049_v41 = vld [vmem:[%s5646_s28 + $0xd48] sm:$0xf] }
 0x131   : > { %v1051_v42 = vld [vmem:[%s5646_s28 + $0xd50] sm:$0xf]  ;;  %v1053_v43 = vld [vmem:[%s5646_s28 + $0xd58] sm:$0xf]  ;;  %1050 = vst [vmem:[%s5653_s29 + $0x6a4] sm:$0xf] %v1049_v41 }
 0x132   : > { %1052 = vst [vmem:[%s5653_s29 + $0x6a8] sm:$0xf] %v1051_v42  ;;  %1054 = vst [vmem:[%s5653_s29 + $0x6ac] sm:$0xf] %v1053_v43  ;;  %v1055_v44 = vld [vmem:[%s5646_s28 + $0xd60] sm:$0xf] }
 0x133   : > { %v1057_v45 = vld [vmem:[%s5646_s28 + $0xd68] sm:$0xf]  ;;  %v1059_v46 = vld [vmem:[%s5646_s28 + $0xd70] sm:$0xf]  ;;  %1056 = vst [vmem:[%s5653_s29 + $0x6b0] sm:$0xf] %v1055_v44 }
 0x134   : > { %1058 = vst [vmem:[%s5653_s29 + $0x6b4] sm:$0xf] %v1057_v45  ;;  %1060 = vst [vmem:[%s5653_s29 + $0x6b8] sm:$0xf] %v1059_v46  ;;  %v1061_v47 = vld [vmem:[%s5646_s28 + $0xd78] sm:$0xf] }
 0x135   : > { %1062 = vst [vmem:[%s5653_s29 + $0x6bc] sm:$0xf] %v1061_v47 }
 0x136 PF: > { %p4662_p8 = scmp.ge.s32.totalorder %s5574_s16, 1  ;;  %p1954_p9 = scmp.lt.s32.totalorder %s5574_s16, 3 }
 0x138   : > { %p1955_p10 = pnand %p4662_p8, %p1954_p9 }
 0x139   : > { %s1961_s30 = sand.u32 (!%p1955_p10), 1, %s5558_s12   ;;  %v5313_v48 = vld [vmem:[%s6846_s0 + $0x4] ss:$108 sps:$4 sm:$0xff] (!%p1955_p10)   ;;  %v5318_v49 = vld [vmem:[%s6846_s0 + $0xc] ss:$108 sps:$4 sm:$0xff] (!%p1955_p10)   ;;  %vm5577_vm0 = vmmov (!%p1955_p10), 0  }
 0x13a   : > { %1958 = sbr.rel (%p1955_p10) target bundleno = 777 (0x309), region = 69  ;;  %3945 = vmatprep.mubr.bf16.mxu0 (!%p1955_p10), %v5313_v48  ;;  %3986 = vmatprep.mubr.bf16.mxu1 (!%p1955_p10), %v5318_v49  ;;  %v5311_v15 = vld [vmem:[%s6846_s0] ss:$108 sps:$4 sm:$0xff] (!%p1955_p10)   ;;  %v5316_v19 = vld [vmem:[%s6846_s0 + $0x8] ss:$108 sps:$4 sm:$0xff] (!%p1955_p10)   ;;  %p2009_p11 = scmp.lt.s32.totalorder (!%p1955_p10), %s5566_s14, 1 }
 0x13b   : > { %s5237_s4 = smul.u32 (!%p1955_p10), 1728, %s1961_s30  ;;  %v5351_v17 = vld [vmem:[%s6846_s0 + $0x14] ss:$108 sps:$4 sm:$0xff] (!%p1955_p10)  }
 0x13d   : > { %s6525_s9 = scalar_lea.vmem (!%p1955_p10), [#allocation2], %s5237_s4 }
 0x13e   : > { %v5280_v50 = vld [vmem:[%s6525_s9 + $0x40] sm:$0xff] (!%p1955_p10)   ;;  %v5284_v54 = vld [vmem:[%s6525_s9 + $0x48] sm:$0xff] (!%p1955_p10)   ;;  %v5288_v58 = vld [vmem:[%s6525_s9 + $0x50] sm:$0xff] (!%p1955_p10)  }
 0x13f   : > { %v5281_v51 = vld [vmem:[%s6525_s9] sm:$0xff] (!%p1955_p10)   ;;  %4921 = vmatprep.subr.bf16.mxu0 (!%p1955_p10), %v5280_v50  ;;  %v5285_v55 = vld [vmem:[%s6525_s9 + $0x8] sm:$0xff] (!%p1955_p10)   ;;  %v5289_v59 = vld [vmem:[%s6525_s9 + $0x10] sm:$0xff] (!%p1955_p10)  }
 0x140   : > { %v5282_v52 = vld [vmem:[%s6525_s9 + $0xc0] sm:$0xff] (!%p1955_p10)   ;;  %4922 = vmatpush3.bf16.msra.mxu0 (!%p1955_p10), %v5281_v51  ;;  %v5286_v56 = vld [vmem:[%s6525_s9 + $0xc8] sm:$0xff] (!%p1955_p10)   ;;  %v5290_v60 = vld [vmem:[%s6525_s9 + $0xd0] sm:$0xff] (!%p1955_p10)  }
 0x141   : > { %v5283_v53 = vld [vmem:[%s6525_s9 + $0x80] sm:$0xff]   ;;  %4943 = vmatprep.subr.bf16.mxu1 %v5282_v52  ;;  %4923 = vmatprep.subr.bf16.mxu0 %v5284_v54  ;;  %v5287_v57 = vld [vmem:[%s6525_s9 + $0x88] sm:$0xff]   ;;  %v5291_v61 = vld [vmem:[%s6525_s9 + $0x90] sm:$0xff]   ;;  %s2010_s8 = scalar_select %p2009_p11, %s5566_s14, 1 }
 0x142   : > { %4944 = vmatpush3.bf16.msra.mxu1 %v5283_v53  ;;  %v5292_v62 = vld [vmem:[%s6525_s9 + $0x58] sm:$0xff]   ;;  %v5296_v2 = vld [vmem:[%s6525_s9 + $0x60] sm:$0xff]   ;;  %v5300_v6 = vld [vmem:[%s6525_s9 + $0x68] sm:$0xff]   ;;  %s4911_s20 = sshll.u32 (%p5633_p6), %s5566_s14, 2 }
 0x143   : > { %4945 = vmatprep.subr.bf16.mxu1 %v5286_v56  ;;  %v5293_v63 = vld [vmem:[%s6525_s9 + $0x18] sm:$0xff]   ;;  %v5297_v3 = vld [vmem:[%s6525_s9 + $0x20] sm:$0xff]   ;;  %v5301_v7 = vld [vmem:[%s6525_s9 + $0x28] sm:$0xff]   ;;  %s2011_s18 = scalar_lea.vmem %s6848_s2, %s2010_s8  ;;  %s4510_s25 = scalar_lea.vmem (%p5633_p6), %s6849_s3, %s4911_s20 }
 0x144   : > { %4924 = vmatpush3.bf16.msra.mxu0 %v5285_v55  ;;  %v5294_v0 = vld [vmem:[%s6525_s9 + $0xd8] sm:$0xff]   ;;  %v5298_v4 = vld [vmem:[%s6525_s9 + $0xe0] sm:$0xff]   ;;  %v5302_v8 = vld [vmem:[%s6525_s9 + $0xe8] sm:$0xff]  }
 0x145   : > { %4925 = vmatprep.subr.bf16.mxu0 %v5288_v58  ;;  %v5295_v1 = vld [vmem:[%s6525_s9 + $0x98] sm:$0xff]   ;;  %v5299_v5 = vld [vmem:[%s6525_s9 + $0xa0] sm:$0xff]   ;;  %v5303_v9 = vld [vmem:[%s6525_s9 + $0xa8] sm:$0xff]  }
 0x146   : > { %4946 = vmatpush3.bf16.msra.mxu1 %v5287_v57  ;;  %v5304_v10 = vld [vmem:[%s6525_s9 + $0x70] sm:$0xff]   ;;  %v5308_v14 = vld [vmem:[%s6525_s9 + $0x78] sm:$0xff]   ;;  %v5315_v21 = vld [vmem:[%s6525_s9 + $0x140] sm:$0xff]  }
 0x147   : > { %4947 = vmatprep.subr.bf16.mxu1 %v5290_v60  ;;  %v5305_v11 = vld [vmem:[%s6525_s9 + $0x30] sm:$0xff]   ;;  %v5309_v16 = vld [vmem:[%s6525_s9 + $0x38] sm:$0xff]   ;;  %v5319_v22 = vld [vmem:[%s6525_s9 + $0x100] sm:$0xff]  }
 0x148   : > { %4926 = vmatpush3.bf16.msra.mxu0 %v5289_v59  ;;  %v5306_v12 = vld [vmem:[%s6525_s9 + $0xf0] sm:$0xff]   ;;  %v5310_v18 = vld [vmem:[%s6525_s9 + $0xf8] sm:$0xff]   ;;  %v5320_v23 = vld [vmem:[%s6525_s9 + $0x1c0] sm:$0xff]  }
 0x149   : > { %4927 = vmatprep.subr.bf16.mxu0 %v5292_v62  ;;  %v5307_v13 = vld [vmem:[%s6525_s9 + $0xb0] sm:$0xff]   ;;  %v5314_v20 = vld [vmem:[%s6525_s9 + $0xb8] sm:$0xff]   ;;  %v5321_v24 = vld [vmem:[%s6525_s9 + $0x180] sm:$0xff]  }
 0x14a   : > { %4948 = vmatpush3.bf16.msra.mxu1 %v5291_v61  ;;  %v5322_v25 = vld [vmem:[%s6525_s9 + $0x148] sm:$0xff]   ;;  %v5326_v29 = vld [vmem:[%s6525_s9 + $0x150] sm:$0xff]   ;;  %v5330_v33 = vld [vmem:[%s6525_s9 + $0x158] sm:$0xff]  }
 0x14b   : > { %4949 = vmatprep.subr.bf16.mxu1 %v5294_v0  ;;  %v5323_v26 = vld [vmem:[%s6525_s9 + $0x108] sm:$0xff]   ;;  %v5327_v30 = vld [vmem:[%s6525_s9 + $0x110] sm:$0xff]   ;;  %v5331_v34 = vld [vmem:[%s6525_s9 + $0x118] sm:$0xff]  }
 0x14c   : > { %4928 = vmatpush3.bf16.msra.mxu0 %v5293_v63  ;;  %v5324_v27 = vld [vmem:[%s6525_s9 + $0x1c8] sm:$0xff]   ;;  %v5328_v31 = vld [vmem:[%s6525_s9 + $0x1d0] sm:$0xff]   ;;  %v5332_v35 = vld [vmem:[%s6525_s9 + $0x1d8] sm:$0xff]  }
 0x14d   : > { %4929 = vmatprep.subr.bf16.mxu0 %v5296_v2  ;;  %v5325_v28 = vld [vmem:[%s6525_s9 + $0x188] sm:$0xff]   ;;  %v5329_v32 = vld [vmem:[%s6525_s9 + $0x190] sm:$0xff]   ;;  %v5333_v36 = vld [vmem:[%s6525_s9 + $0x198] sm:$0xff]  }
 0x14e   : > { %4950 = vmatpush3.bf16.msra.mxu1 %v5295_v1  ;;  %v5334_v37 = vld [vmem:[%s6525_s9 + $0x160] sm:$0xff]   ;;  %v5338_v41 = vld [vmem:[%s6525_s9 + $0x168] sm:$0xff]   ;;  %v5342_v45 = vld [vmem:[%s6525_s9 + $0x170] sm:$0xff]  }
 0x14f   : > { %4951 = vmatprep.subr.bf16.mxu1 %v5298_v4  ;;  %v5335_v38 = vld [vmem:[%s6525_s9 + $0x120] sm:$0xff]   ;;  %v5339_v42 = vld [vmem:[%s6525_s9 + $0x128] sm:$0xff]   ;;  %v5343_v46 = vld [vmem:[%s6525_s9 + $0x130] sm:$0xff]  }
 0x150   : > { %4930 = vmatpush3.bf16.msra.mxu0 %v5297_v3  ;;  %v5336_v39 = vld [vmem:[%s6525_s9 + $0x1e0] sm:$0xff]   ;;  %v5340_v43 = vld [vmem:[%s6525_s9 + $0x1e8] sm:$0xff]   ;;  %v5344_v47 = vld [vmem:[%s6525_s9 + $0x1f0] sm:$0xff]  }
 0x151   : > { %4931 = vmatprep.subr.bf16.mxu0 %v5300_v6  ;;  %v5337_v40 = vld [vmem:[%s6525_s9 + $0x1a0] sm:$0xff]   ;;  %v5341_v44 = vld [vmem:[%s6525_s9 + $0x1a8] sm:$0xff]   ;;  %v5345_v48 = vld [vmem:[%s6525_s9 + $0x1b0] sm:$0xff]  }
 0x152   : > { %4952 = vmatpush3.bf16.msra.mxu1 %v5299_v5  ;;  %v5346_v49 = vld [vmem:[%s6525_s9 + $0x178] sm:$0xff]   ;;  %v5353_v54 = vld [vmem:[%s6525_s9 + $0x240] sm:$0xff]   ;;  %v5360_v60 = vld [vmem:[%s6525_s9 + $0x248] sm:$0xff]  }
 0x153   : > { %4953 = vmatprep.subr.bf16.mxu1 %v5302_v8  ;;  %v5349_v50 = vld [vmem:[%s6846_s0 + $0x10] ss:$108 sps:$4 sm:$0xff]   ;;  %v5354_v55 = vld [vmem:[%s6846_s0 + $0x18] ss:$108 sps:$4 sm:$0xff]   ;;  %v5361_v61 = vld [vmem:[%s6525_s9 + $0x208] sm:$0xff]  }
 0x154   : > { %4932 = vmatpush3.bf16.msra.mxu0 %v5301_v7  ;;  %v5347_v51 = vld [vmem:[%s6525_s9 + $0x138] sm:$0xff]   ;;  %v5357_v57 = vld [vmem:[%s6525_s9 + $0x200] sm:$0xff]   ;;  %v5362_v62 = vld [vmem:[%s6525_s9 + $0x2c8] sm:$0xff]  }
 0x155   : > { %4933 = vmatprep.subr.bf16.mxu0 %v5304_v10  ;;  %v5348_v52 = vld [vmem:[%s6525_s9 + $0x1f8] sm:$0xff]   ;;  %v5358_v58 = vld [vmem:[%s6525_s9 + $0x2c0] sm:$0xff]   ;;  %v5363_v63 = vld [vmem:[%s6525_s9 + $0x288] sm:$0xff]  }
 0x156   : > { %4954 = vmatpush3.bf16.msra.mxu1 %v5303_v9  ;;  %v5352_v53 = vld [vmem:[%s6525_s9 + $0x1b8] sm:$0xff]   ;;  %v5359_v59 = vld [vmem:[%s6525_s9 + $0x280] sm:$0xff]   ;;  %v5364_v0 = vld [vmem:[%s6525_s9 + $0x250] sm:$0xff]  }
 0x157   : > { %4955 = vmatprep.subr.bf16.mxu1 %v5306_v12  ;;  %v5356_v56 = vld [vmem:[%s6846_s0 + $0x1c] ss:$108 sps:$4 sm:$0xff]   ;;  %v5365_v1 = vld [vmem:[%s6525_s9 + $0x210] sm:$0xff]   ;;  %v5372_v8 = vld [vmem:[%s6525_s9 + $0x260] sm:$0xff]  }
 0x158   : > { %4934 = vmatpush3.bf16.msra.mxu0 %v5305_v11  ;;  %v5366_v2 = vld [vmem:[%s6525_s9 + $0x2d0] sm:$0xff]   ;;  %v5368_v4 = vld [vmem:[%s6525_s9 + $0x258] sm:$0xff]   ;;  %v5373_v9 = vld [vmem:[%s6525_s9 + $0x220] sm:$0xff]  }
 0x159   : > { %4935 = vmatprep.subr.bf16.mxu0 %v5308_v14  ;;  %v5367_v3 = vld [vmem:[%s6525_s9 + $0x290] sm:$0xff]   ;;  %v5369_v5 = vld [vmem:[%s6525_s9 + $0x218] sm:$0xff]   ;;  %v5374_v10 = vld [vmem:[%s6525_s9 + $0x2e0] sm:$0xff]  }
 0x15a   : > { %4956 = vmatpush3.bf16.msra.mxu1 %v5307_v13  ;;  %v5370_v6 = vld [vmem:[%s6525_s9 + $0x2d8] sm:$0xff]   ;;  %v5375_v11 = vld [vmem:[%s6525_s9 + $0x2a0] sm:$0xff]   ;;  %v5376_v12 = vld [vmem:[%s6525_s9 + $0x268] sm:$0xff]  }
 0x15b   : > { %4957 = vmatprep.subr.bf16.mxu1 %v5310_v18  ;;  %v5371_v7 = vld [vmem:[%s6525_s9 + $0x298] sm:$0xff]   ;;  %v5377_v13 = vld [vmem:[%s6525_s9 + $0x228] sm:$0xff]   ;;  %v5382_v18 = vld [vmem:[%s6525_s9 + $0x2f0] sm:$0xff]  }
 0x15c   : > { %4936 = vmatpush3.bf16.msra.mxu0 %v5309_v16  ;;  %v5378_v14 = vld [vmem:[%s6525_s9 + $0x2e8] sm:$0xff]   ;;  %v5380_v16 = vld [vmem:[%s6525_s9 + $0x270] sm:$0xff]  }
 0x15d   : > { %4965 = vmatprep.subr.bf16.mxu0 %v5315_v21  ;;  %v5385_v21 = vld [vmem:[%s6525_s9 + $0x238] sm:$0xff]  }
 0x15e   : > { %4958 = vmatpush3.bf16.msra.mxu1 %v5314_v20  ;;  %v5384_v20 = vld [vmem:[%s6525_s9 + $0x278] sm:$0xff]  }
 0x15f   : > { %3946 = vmatmul.mubr.bf16.vlgmr.msra.gmra.mrb[0].mxu0 %v5311_v15  ;;  %4987 = vmatprep.subr.bf16.mxu1 %v5320_v23  ;;  %v5379_v15 = vld [vmem:[%s6525_s9 + $0x2a8] sm:$0xff]  }
 0x160   : > { %4966 = vmatpush3.bf16.msra.mxu0 %v5319_v22  ;;  %4027 = vmatprep.mubr.bf16.mxu0 %v5351_v17  ;;  %v5381_v17 = vld [vmem:[%s6525_s9 + $0x230] sm:$0xff]   ;;  %v5386_v22 = vld [vmem:[%s6525_s9 + $0x2f8] sm:$0xff]   ;;  %v5387_v23 = vld [vmem:[%s6846_s0 + $0x20] ss:$108 sps:$4 sm:$0xff]  }
 0x161   : > { %3987 = vmatmul.mubr.bf16.vlgmr.msra.gmra.mrb[0].mxu1 %v5316_v19  ;;  %4967 = vmatprep.subr.bf16.mxu0 %v5322_v25  ;;  %v5383_v19 = vld [vmem:[%s6525_s9 + $0x2b0] sm:$0xff]   ;;  %v5390_v25 = vld [vmem:[%s6525_s9 + $0x2b8] sm:$0xff]  }
 0x162   : > { %4988 = vmatpush3.bf16.msra.mxu1 %v5321_v24  ;;  %4068 = vmatprep.mubr.bf16.mxu1 %v5356_v56  ;;  %v5389_v24 = vld [vmem:[%s6846_s0 + $0x24] ss:$108 sps:$4 sm:$0xff]   ;;  %v5422_v56 = vld [vmem:[%s6525_s9 + $0x378] sm:$0xff]  }
 0x163   : > { %4989 = vmatprep.subr.bf16.mxu1 %v5324_v27  ;;  %v5392_v27 = vld [vmem:[%s6846_s0 + $0x28] ss:$108 sps:$4 sm:$0xff]  }
 0x164   : > { %4968 = vmatpush3.bf16.msra.mxu0 %v5323_v26  ;;  %v5391_v26 = vld [vmem:[%s6525_s9 + $0x340] sm:$0xff]  }
 0x165   : > { %4969 = vmatprep.subr.bf16.mxu0 %v5326_v29  ;;  %v5395_v29 = vld [vmem:[%s6525_s9 + $0x300] sm:$0xff]  }
 0x166   : > { %4990 = vmatpush3.bf16.msra.mxu1 %v5325_v28  ;;  %v5394_v28 = vld [vmem:[%s6846_s0 + $0x2c] ss:$108 sps:$4 sm:$0xff]  }
 0x167   : > { %4991 = vmatprep.subr.bf16.mxu1 %v5328_v31  ;;  %v5397_v31 = vld [vmem:[%s6525_s9 + $0x380] sm:$0xff]  }
 0x168   : > { %4970 = vmatpush3.bf16.msra.mxu0 %v5327_v30  ;;  %v5396_v30 = vld [vmem:[%s6525_s9 + $0x3c0] sm:$0xff]  }
 0x169   : > { %4971 = vmatprep.subr.bf16.mxu0 %v5330_v33  ;;  %v5399_v33 = vld [vmem:[%s6525_s9 + $0x308] sm:$0xff]  }
 0x16a   : > { %4992 = vmatpush3.bf16.msra.mxu1 %v5329_v32  ;;  %v5398_v32 = vld [vmem:[%s6525_s9 + $0x348] sm:$0xff]  }
 0x16b   : > { %4993 = vmatprep.subr.bf16.mxu1 %v5332_v35  ;;  %v5401_v35 = vld [vmem:[%s6525_s9 + $0x388] sm:$0xff]  }
 0x16c   : > { %4972 = vmatpush3.bf16.msra.mxu0 %v5331_v34  ;;  %v5400_v34 = vld [vmem:[%s6525_s9 + $0x3c8] sm:$0xff]  }
 0x16d   : > { %4973 = vmatprep.subr.bf16.mxu0 %v5334_v37  ;;  %v5403_v37 = vld [vmem:[%s6525_s9 + $0x310] sm:$0xff]  }
 0x16e   : > { %4994 = vmatpush3.bf16.msra.mxu1 %v5333_v36  ;;  %v5402_v36 = vld [vmem:[%s6525_s9 + $0x350] sm:$0xff]  }
 0x16f   : > { %4995 = vmatprep.subr.bf16.mxu1 %v5336_v39  ;;  %v5405_v39 = vld [vmem:[%s6525_s9 + $0x390] sm:$0xff]  }
 0x170   : > { %4974 = vmatpush3.bf16.msra.mxu0 %v5335_v38  ;;  %v5404_v38 = vld [vmem:[%s6525_s9 + $0x3d0] sm:$0xff]  }
 0x171   : > { %4975 = vmatprep.subr.bf16.mxu0 %v5338_v41  ;;  %v5407_v41 = vld [vmem:[%s6525_s9 + $0x318] sm:$0xff]  }
 0x172   : > { %4996 = vmatpush3.bf16.msra.mxu1 %v5337_v40  ;;  %v5406_v40 = vld [vmem:[%s6525_s9 + $0x358] sm:$0xff]  }
 0x173   : > { %4997 = vmatprep.subr.bf16.mxu1 %v5340_v43  ;;  %v5409_v43 = vld [vmem:[%s6525_s9 + $0x398] sm:$0xff]  }
 0x174   : > { %4976 = vmatpush3.bf16.msra.mxu0 %v5339_v42  ;;  %v5408_v42 = vld [vmem:[%s6525_s9 + $0x3d8] sm:$0xff]  }
 0x175   : > { %4977 = vmatprep.subr.bf16.mxu0 %v5342_v45  ;;  %v5411_v45 = vld [vmem:[%s6525_s9 + $0x320] sm:$0xff]  }
 0x176   : > { %4998 = vmatpush3.bf16.msra.mxu1 %v5341_v44  ;;  %v5410_v44 = vld [vmem:[%s6525_s9 + $0x360] sm:$0xff]  }
 0x177   : > { %4999 = vmatprep.subr.bf16.mxu1 %v5344_v47  ;;  %v5413_v47 = vld [vmem:[%s6525_s9 + $0x3a0] sm:$0xff]  }
 0x178   : > { %4978 = vmatpush3.bf16.msra.mxu0 %v5343_v46  ;;  %v5412_v46 = vld [vmem:[%s6525_s9 + $0x3e0] sm:$0xff]  }
 0x179   : > { %4979 = vmatprep.subr.bf16.mxu0 %v5346_v49  ;;  %v5415_v49 = vld [vmem:[%s6525_s9 + $0x328] sm:$0xff]  }
 0x17a   : > { %5000 = vmatpush3.bf16.msra.mxu1 %v5345_v48  ;;  %v5414_v48 = vld [vmem:[%s6525_s9 + $0x368] sm:$0xff]  }
 0x17b   : > { %5001 = vmatprep.subr.bf16.mxu1 %v5348_v52  ;;  %v5418_v52 = vld [vmem:[%s6525_s9 + $0x370] sm:$0xff]  }
 0x17c   : > { %4980 = vmatpush3.bf16.msra.mxu0 %v5347_v51  ;;  %v5417_v51 = vld [vmem:[%s6525_s9 + $0x3a8] sm:$0xff]  }
 0x17d   : > { %5009 = vmatprep.subr.bf16.mxu0 %v5353_v54  ;;  %v5420_v54 = vld [vmem:[%s6525_s9 + $0x3f0] sm:$0xff]  }
 0x17e   : > { %5002 = vmatpush3.bf16.msra.mxu1 %v5352_v53  ;;  %v5419_v53 = vld [vmem:[%s6525_s9 + $0x330] sm:$0xff]  }
 0x17f   : > { %4028 = vmatmul.mubr.bf16.vlgmr.msra.gmra.mrb[4].mxu0 %v5349_v50  ;;  %5031 = vmatprep.subr.bf16.mxu1 %v5358_v58  ;;  %v5416_v50 = vld [vmem:[%s6525_s9 + $0x3e8] sm:$0xff]   ;;  %v5424_v58 = vld [vmem:[%s6525_s9 + $0x3f8] sm:$0xff]  }
 0x180   : > { %5010 = vmatpush3.bf16.msra.mxu0 %v5357_v57  ;;  %4109 = vmatprep.mubr.bf16.mxu0 %v5389_v24  ;;  %v5423_v57 = vld [vmem:[%s6525_s9 + $0x338] sm:$0xff]   ;;  %v5456_v24 = vld [vmem:[%s6525_s9 + $0x470] sm:$0xff]  }
 0x181   : > { %4069 = vmatmul.mubr.bf16.vlgmr.msra.gmra.mrb[4].mxu1 %v5354_v55  ;;  %5011 = vmatprep.subr.bf16.mxu0 %v5360_v60  ;;  %v5421_v55 = vld [vmem:[%s6525_s9 + $0x3b0] sm:$0xff]  }
 0x182   : > { %5032 = vmatpush3.bf16.msra.mxu1 %v5359_v59  ;;  %4150 = vmatprep.mubr.bf16.mxu1 %v5394_v28  ;;  %v5425_v59 = vld [vmem:[%s6846_s0 + $0x30] ss:$108 sps:$4 sm:$0xff]   ;;  %v5427_v60 = vld [vmem:[%s6846_s0 + $0x34] ss:$108 sps:$4 sm:$0xff]  }
 0x183   : > { %5033 = vmatprep.subr.bf16.mxu1 %v5362_v62  ;;  %v5429_v62 = vld [vmem:[%s6525_s9 + $0x440] sm:$0xff]   ;;  %v5460_v28 = vld [vmem:[%s6525_s9 + $0x478] sm:$0xff]  }
 0x184   : > { %5012 = vmatpush3.bf16.msra.mxu0 %v5361_v61  ;;  %v5428_v61 = vld [vmem:[%s6525_s9 + $0x3b8] sm:$0xff]  }
 0x185   : > { %5013 = vmatprep.subr.bf16.mxu0 %v5364_v0  ;;  %v5432_v0 = vld [vmem:[%s6846_s0 + $0x3c] ss:$108 sps:$4 sm:$0xff]  }
 0x186   : > { %5034 = vmatpush3.bf16.msra.mxu1 %v5363_v63  ;;  %v5430_v63 = vld [vmem:[%s6846_s0 + $0x38] ss:$108 sps:$4 sm:$0xff]  }
 0x187   : > { %5035 = vmatprep.subr.bf16.mxu1 %v5366_v2  ;;  %v5434_v2 = vld [vmem:[%s6525_s9 + $0x4c0] sm:$0xff]  }
 0x188   : > { %5014 = vmatpush3.bf16.msra.mxu0 %v5365_v1  ;;  %v5433_v1 = vld [vmem:[%s6525_s9 + $0x400] sm:$0xff]  }
 0x189   : > { %5015 = vmatprep.subr.bf16.mxu0 %v5368_v4  ;;  %v5436_v4 = vld [vmem:[%s6525_s9 + $0x448] sm:$0xff]  }
 0x18a   : > { %5036 = vmatpush3.bf16.msra.mxu1 %v5367_v3  ;;  %v5435_v3 = vld [vmem:[%s6525_s9 + $0x480] sm:$0xff]  }
 0x18b   : > { %5037 = vmatprep.subr.bf16.mxu1 %v5370_v6  ;;  %v5438_v6 = vld [vmem:[%s6525_s9 + $0x4c8] sm:$0xff]  }
 0x18c   : > { %5016 = vmatpush3.bf16.msra.mxu0 %v5369_v5  ;;  %v5437_v5 = vld [vmem:[%s6525_s9 + $0x408] sm:$0xff]  }
 0x18d   : > { %5017 = vmatprep.subr.bf16.mxu0 %v5372_v8  ;;  %v5440_v8 = vld [vmem:[%s6525_s9 + $0x450] sm:$0xff]  }
 0x18e   : > { %5038 = vmatpush3.bf16.msra.mxu1 %v5371_v7  ;;  %v5439_v7 = vld [vmem:[%s6525_s9 + $0x488] sm:$0xff]  }
 0x18f   : > { %5039 = vmatprep.subr.bf16.mxu1 %v5374_v10  ;;  %v5442_v10 = vld [vmem:[%s6525_s9 + $0x4d0] sm:$0xff]  }
 0x190   : > { %5018 = vmatpush3.bf16.msra.mxu0 %v5373_v9  ;;  %v5441_v9 = vld [vmem:[%s6525_s9 + $0x410] sm:$0xff]  }
 0x191   : > { %5019 = vmatprep.subr.bf16.mxu0 %v5376_v12  ;;  %v5444_v12 = vld [vmem:[%s6525_s9 + $0x458] sm:$0xff]  }
 0x192   : > { %5040 = vmatpush3.bf16.msra.mxu1 %v5375_v11  ;;  %v5443_v11 = vld [vmem:[%s6525_s9 + $0x490] sm:$0xff]  }
 0x193   : > { %5041 = vmatprep.subr.bf16.mxu1 %v5378_v14  ;;  %v5446_v14 = vld [vmem:[%s6525_s9 + $0x4d8] sm:$0xff]  }
 0x194   : > { %5020 = vmatpush3.bf16.msra.mxu0 %v5377_v13  ;;  %v5445_v13 = vld [vmem:[%s6525_s9 + $0x418] sm:$0xff]  }
 0x195   : > { %5021 = vmatprep.subr.bf16.mxu0 %v5380_v16  ;;  %v5448_v16 = vld [vmem:[%s6525_s9 + $0x460] sm:$0xff]  }
 0x196   : > { %5042 = vmatpush3.bf16.msra.mxu1 %v5379_v15  ;;  %v5447_v15 = vld [vmem:[%s6525_s9 + $0x498] sm:$0xff]  }
 0x197   : > { %5043 = vmatprep.subr.bf16.mxu1 %v5382_v18  ;;  %v5450_v18 = vld [vmem:[%s6525_s9 + $0x4e0] sm:$0xff]  }
 0x198   : > { %5022 = vmatpush3.bf16.msra.mxu0 %v5381_v17  ;;  %v5449_v17 = vld [vmem:[%s6525_s9 + $0x420] sm:$0xff]  }
 0x199   : > { %5023 = vmatprep.subr.bf16.mxu0 %v5384_v20  ;;  %v5452_v20 = vld [vmem:[%s6525_s9 + $0x468] sm:$0xff]  }
 0x19a   : > { %5044 = vmatpush3.bf16.msra.mxu1 %v5383_v19  ;;  %v5451_v19 = vld [vmem:[%s6525_s9 + $0x4a0] sm:$0xff]  }
 0x19b   : > { %5045 = vmatprep.subr.bf16.mxu1 %v5386_v22  ;;  %v5454_v22 = vld [vmem:[%s6525_s9 + $0x4e8] sm:$0xff]  }
 0x19c   : > { %5024 = vmatpush3.bf16.msra.mxu0 %v5385_v21  ;;  %v5453_v21 = vld [vmem:[%s6525_s9 + $0x428] sm:$0xff]  }
 0x19d   : > { %5053 = vmatprep.subr.bf16.mxu0 %v5391_v26  ;;  %v5458_v26 = vld [vmem:[%s6525_s9 + $0x4f0] sm:$0xff]  }
 0x19e   : > { %5046 = vmatpush3.bf16.msra.mxu1 %v5390_v25  ;;  %v5457_v25 = vld [vmem:[%s6525_s9 + $0x430] sm:$0xff]  }
 0x19f   : > { %4110 = vmatmul.mubr.bf16.vlgmr.msra.gmra.mrb[8].mxu0 %v5387_v23  ;;  %5075 = vmatprep.subr.bf16.mxu1 %v5396_v30  ;;  %v5455_v23 = vld [vmem:[%s6525_s9 + $0x4a8] sm:$0xff]   ;;  %v5462_v30 = vld [vmem:[%s6525_s9 + $0x4f8] sm:$0xff]  }
 0x1a0   : > { %5054 = vmatpush3.bf16.msra.mxu0 %v5395_v29  ;;  %4191 = vmatprep.mubr.bf16.mxu0 %v5427_v60  ;;  %v5461_v29 = vld [vmem:[%s6525_s9 + $0x438] sm:$0xff]   ;;  %v5494_v60 = vld [vmem:[%s6525_s9 + $0x570] sm:$0xff]  }
 0x1a1   : > { %4151 = vmatmul.mubr.bf16.vlgmr.msra.gmra.mrb[8].mxu1 %v5392_v27  ;;  %5055 = vmatprep.subr.bf16.mxu0 %v5398_v32  ;;  %v5459_v27 = vld [vmem:[%s6525_s9 + $0x4b0] sm:$0xff]  }
 0x1a2   : > { %5076 = vmatpush3.bf16.msra.mxu1 %v5397_v31  ;;  %4232 = vmatprep.mubr.bf16.mxu1 %v5432_v0  ;;  %v5463_v31 = vld [vmem:[%s6846_s0 + $0x40] ss:$108 sps:$4 sm:$0xff]   ;;  %v5465_v32 = vld [vmem:[%s6846_s0 + $0x44] ss:$108 sps:$4 sm:$0xff]   ;;  %v5498_v0 = vld [vmem:[%s6525_s9 + $0x578] sm:$0xff]  }
 0x1a3   : > { %5077 = vmatprep.subr.bf16.mxu1 %v5400_v34  ;;  %v5467_v34 = vld [vmem:[%s6525_s9 + $0x540] sm:$0xff]  }
 0x1a4   : > { %5056 = vmatpush3.bf16.msra.mxu0 %v5399_v33  ;;  %v5466_v33 = vld [vmem:[%s6525_s9 + $0x4b8] sm:$0xff]  }
 0x1a5   : > { %5057 = vmatprep.subr.bf16.mxu0 %v5402_v36  ;;  %v5470_v36 = vld [vmem:[%s6846_s0 + $0x4c] ss:$108 sps:$4 sm:$0xff]  }
 0x1a6   : > { %5078 = vmatpush3.bf16.msra.mxu1 %v5401_v35  ;;  %v5468_v35 = vld [vmem:[%s6846_s0 + $0x48] ss:$108 sps:$4 sm:$0xff]  }
 0x1a7   : > { %5079 = vmatprep.subr.bf16.mxu1 %v5404_v38  ;;  %v5472_v38 = vld [vmem:[%s6525_s9 + $0x5c0] sm:$0xff]  }
 0x1a8   : > { %5058 = vmatpush3.bf16.msra.mxu0 %v5403_v37  ;;  %v5471_v37 = vld [vmem:[%s6525_s9 + $0x500] sm:$0xff]  }
 0x1a9   : > { %5059 = vmatprep.subr.bf16.mxu0 %v5406_v40  ;;  %v5474_v40 = vld [vmem:[%s6525_s9 + $0x548] sm:$0xff]  }
 0x1aa   : > { %5080 = vmatpush3.bf16.msra.mxu1 %v5405_v39  ;;  %v5473_v39 = vld [vmem:[%s6525_s9 + $0x580] sm:$0xff]  }
 0x1ab   : > { %5081 = vmatprep.subr.bf16.mxu1 %v5408_v42  ;;  %v5476_v42 = vld [vmem:[%s6525_s9 + $0x5c8] sm:$0xff]  }
 0x1ac   : > { %5060 = vmatpush3.bf16.msra.mxu0 %v5407_v41  ;;  %v5475_v41 = vld [vmem:[%s6525_s9 + $0x508] sm:$0xff]  }
 0x1ad   : > { %5061 = vmatprep.subr.bf16.mxu0 %v5410_v44  ;;  %v5478_v44 = vld [vmem:[%s6525_s9 + $0x550] sm:$0xff]  }
 0x1ae   : > { %5082 = vmatpush3.bf16.msra.mxu1 %v5409_v43  ;;  %v5477_v43 = vld [vmem:[%s6525_s9 + $0x588] sm:$0xff]  }
 0x1af   : > { %5083 = vmatprep.subr.bf16.mxu1 %v5412_v46  ;;  %v5480_v46 = vld [vmem:[%s6525_s9 + $0x5d0] sm:$0xff]  }
 0x1b0   : > { %5062 = vmatpush3.bf16.msra.mxu0 %v5411_v45  ;;  %v5479_v45 = vld [vmem:[%s6525_s9 + $0x510] sm:$0xff]  }
 0x1b1   : > { %5063 = vmatprep.subr.bf16.mxu0 %v5414_v48  ;;  %v5482_v48 = vld [vmem:[%s6525_s9 + $0x558] sm:$0xff]  }
 0x1b2   : > { %5084 = vmatpush3.bf16.msra.mxu1 %v5413_v47  ;;  %v5481_v47 = vld [vmem:[%s6525_s9 + $0x590] sm:$0xff]  }
 0x1b3   : > { %5085 = vmatprep.subr.bf16.mxu1 %v5416_v50  ;;  %v5484_v50 = vld [vmem:[%s6525_s9 + $0x5d8] sm:$0xff]  }
 0x1b4   : > { %5064 = vmatpush3.bf16.msra.mxu0 %v5415_v49  ;;  %v5483_v49 = vld [vmem:[%s6525_s9 + $0x518] sm:$0xff]  }
 0x1b5   : > { %5065 = vmatprep.subr.bf16.mxu0 %v5418_v52  ;;  %v5486_v52 = vld [vmem:[%s6525_s9 + $0x560] sm:$0xff]  }
 0x1b6   : > { %5086 = vmatpush3.bf16.msra.mxu1 %v5417_v51  ;;  %v5485_v51 = vld [vmem:[%s6525_s9 + $0x598] sm:$0xff]  }
 0x1b7   : > { %5087 = vmatprep.subr.bf16.mxu1 %v5420_v54  ;;  %v5488_v54 = vld [vmem:[%s6525_s9 + $0x5e0] sm:$0xff]  }
 0x1b8   : > { %5066 = vmatpush3.bf16.msra.mxu0 %v5419_v53  ;;  %v5487_v53 = vld [vmem:[%s6525_s9 + $0x520] sm:$0xff]  }
 0x1b9   : > { %5067 = vmatprep.subr.bf16.mxu0 %v5422_v56  ;;  %v5490_v56 = vld [vmem:[%s6525_s9 + $0x568] sm:$0xff]  }
 0x1ba   : > { %5088 = vmatpush3.bf16.msra.mxu1 %v5421_v55  ;;  %v5489_v55 = vld [vmem:[%s6525_s9 + $0x5a0] sm:$0xff]  }
 0x1bb   : > { %5089 = vmatprep.subr.bf16.mxu1 %v5424_v58  ;;  %v5492_v58 = vld [vmem:[%s6525_s9 + $0x5e8] sm:$0xff]  }
 0x1bc   : > { %5068 = vmatpush3.bf16.msra.mxu0 %v5423_v57  ;;  %v5491_v57 = vld [vmem:[%s6525_s9 + $0x528] sm:$0xff]  }
 0x1bd   : > { %5097 = vmatprep.subr.bf16.mxu0 %v5429_v62  ;;  %v5496_v62 = vld [vmem:[%s6525_s9 + $0x5f0] sm:$0xff]  }
 0x1be   : > { %5090 = vmatpush3.bf16.msra.mxu1 %v5428_v61  ;;  %v5495_v61 = vld [vmem:[%s6525_s9 + $0x530] sm:$0xff]  }
 0x1bf   : > { %4192 = vmatmul.mubr.bf16.vlgmr.msra.gmra.mrb[12].mxu0 %v5425_v59  ;;  %5119 = vmatprep.subr.bf16.mxu1 %v5434_v2  ;;  %v5493_v59 = vld [vmem:[%s6525_s9 + $0x5a8] sm:$0xff]   ;;  %v5500_v2 = vld [vmem:[%s6525_s9 + $0x5f8] sm:$0xff]  }
 0x1c0   : > { %5098 = vmatpush3.bf16.msra.mxu0 %v5433_v1  ;;  %4273 = vmatprep.mubr.bf16.mxu0 %v5465_v32  ;;  %v5499_v1 = vld [vmem:[%s6525_s9 + $0x538] sm:$0xff]  }
 0x1c1   : > { %4233 = vmatmul.mubr.bf16.vlgmr.msra.gmra.mrb[12].mxu1 %v5430_v63  ;;  %5099 = vmatprep.subr.bf16.mxu0 %v5436_v4  ;;  %v5497_v63 = vld [vmem:[%s6525_s9 + $0x5b0] sm:$0xff]   ;;  %v5530_v32 = vld [vmem:[%s6525_s9 + $0x638] sm:$0xff]  }
 0x1c2   : > { %5120 = vmatpush3.bf16.msra.mxu1 %v5435_v3  ;;  %4314 = vmatprep.mubr.bf16.mxu1 %v5470_v36  ;;  %v5501_v3 = vld [vmem:[%s6846_s0 + $0x50] ss:$108 sps:$4 sm:$0xff]   ;;  %v5503_v4 = vld [vmem:[%s6846_s0 + $0x54] ss:$108 sps:$4 sm:$0xff]  }
 0x1c3   : > { %5121 = vmatprep.subr.bf16.mxu1 %v5438_v6  ;;  %v5505_v6 = vld [vmem:[%s6525_s9 + $0x640] sm:$0xff]  }
 0x1c4   : > { %5100 = vmatpush3.bf16.msra.mxu0 %v5437_v5  ;;  %v5504_v5 = vld [vmem:[%s6525_s9 + $0x5b8] sm:$0xff]  }
 0x1c5   : > { %5101 = vmatprep.subr.bf16.mxu0 %v5440_v8  ;;  %v5508_v8 = vld [vmem:[%s6846_s0 + $0x5c] ss:$108 sps:$4 sm:$0xff]  }
 0x1c6   : > { %5122 = vmatpush3.bf16.msra.mxu1 %v5439_v7  ;;  %v5506_v7 = vld [vmem:[%s6846_s0 + $0x58] ss:$108 sps:$4 sm:$0xff]  }
 0x1c7   : > { %5123 = vmatprep.subr.bf16.mxu1 %v5442_v10  ;;  %v5576_v10 = vmov 0.0  }
 0x1c8   : > { %5102 = vmatpush3.bf16.msra.mxu0 %v5441_v9  ;;  %v5509_v9 = vld [vmem:[%s6525_s9 + $0x600] sm:$0xff]  }
 0x1c9   : > { %5103 = vmatprep.subr.bf16.mxu0 %v5444_v12  ;;  %v5511_v12 = vld [vmem:[%s6525_s9 + $0x648] sm:$0xff]  }
 0x1ca   : > { %5124 = vmatpush3.bf16.msra.mxu1 %v5443_v11  ;;  %v5510_v11 = vld [vmem:[%s6525_s9 + $0x680] sm:$0xff]  }
 0x1cb   : > { %5125 = vmatprep.subr.bf16.mxu1 %v5446_v14  ;;  %v5513_v14 = vld [vmem:[%s6525_s9 + $0x688] sm:$0xff]  }
 0x1cc   : > { %5104 = vmatpush3.bf16.msra.mxu0 %v5445_v13  ;;  %v5512_v13 = vld [vmem:[%s6525_s9 + $0x608] sm:$0xff]  }
 0x1cd   : > { %5105 = vmatprep.subr.bf16.mxu0 %v5448_v16  ;;  %v5515_v16 = vld [vmem:[%s6525_s9 + $0x610] sm:$0xff]  }
 0x1ce   : > { %5126 = vmatpush3.bf16.msra.mxu1 %v5447_v15  ;;  %v5514_v15 = vld [vmem:[%s6525_s9 + $0x650] sm:$0xff]  }
 0x1cf   : > { %5127 = vmatprep.subr.bf16.mxu1 %v5450_v18  ;;  %v5517_v18 = vld [vmem:[%s6525_s9 + $0x658] sm:$0xff]  }
 0x1d0   : > { %5106 = vmatpush3.bf16.msra.mxu0 %v5449_v17  ;;  %v5516_v17 = vld [vmem:[%s6525_s9 + $0x690] sm:$0xff]  }
 0x1d1   : > { %5107 = vmatprep.subr.bf16.mxu0 %v5452_v20  ;;  %v5519_v20 = vld [vmem:[%s6525_s9 + $0x698] sm:$0xff]  }
 0x1d2   : > { %5128 = vmatpush3.bf16.msra.mxu1 %v5451_v19  ;;  %v5518_v19 = vld [vmem:[%s6525_s9 + $0x618] sm:$0xff]  }
 0x1d3   : > { %5129 = vmatprep.subr.bf16.mxu1 %v5454_v22  ;;  %v5521_v22 = vld [vmem:[%s6525_s9 + $0x620] sm:$0xff]  }
 0x1d4   : > { %5108 = vmatpush3.bf16.msra.mxu0 %v5453_v21  ;;  %v5520_v21 = vld [vmem:[%s6525_s9 + $0x660] sm:$0xff]  }
 0x1d5   : > { %5109 = vmatprep.subr.bf16.mxu0 %v5456_v24  ;;  %v5523_v24 = vld [vmem:[%s6525_s9 + $0x668] sm:$0xff]  }
 0x1d6   : > { %5130 = vmatpush3.bf16.msra.mxu1 %v5455_v23  ;;  %v5522_v23 = vld [vmem:[%s6525_s9 + $0x6a0] sm:$0xff]  }
 0x1d7   : > { %5131 = vmatprep.subr.bf16.mxu1 %v5458_v26  ;;  %v5525_v26 = vld [vmem:[%s6525_s9 + $0x6a8] sm:$0xff]  }
 0x1d8   : > { %5110 = vmatpush3.bf16.msra.mxu0 %v5457_v25  ;;  %v5524_v25 = vld [vmem:[%s6525_s9 + $0x628] sm:$0xff]  }
 0x1d9   : > { %5111 = vmatprep.subr.bf16.mxu0 %v5460_v28  ;;  %v5527_v28 = vld [vmem:[%s6525_s9 + $0x630] sm:$0xff]  }
 0x1da   : > { %5132 = vmatpush3.bf16.msra.mxu1 %v5459_v27  ;;  %v5526_v27 = vld [vmem:[%s6525_s9 + $0x670] sm:$0xff]  }
 0x1db   : > { %5133 = vmatprep.subr.bf16.mxu1 %v5462_v30  ;;  %v5529_v30 = vld [vmem:[%s6525_s9 + $0x678] sm:$0xff]  }
 0x1dc   : > { %5112 = vmatpush3.bf16.msra.mxu0 %v5461_v29  ;;  %v5528_v29 = vld [vmem:[%s6525_s9 + $0x6b0] sm:$0xff]  }
 0x1dd   : > { %5141 = vmatprep.subr.bf16.mxu0 %v5467_v34  ;;  %v5531_v34 = vld [vmem:[%s6846_s0 + $0x60] ss:$108 sps:$4 sm:$0xff]  }
 0x1de   : > { %5134 = vmatpush3.bf16.msra.mxu1 %v5466_v33  ;;  %v5534_v33 = vld [vmem:[%s6525_s9 + $0x6b8] sm:$0xff]   ;;  %s4663_s9 = sshll.u32 %s1961_s30, 3 }
 0x1df   : > { %4274 = vmatmul.mubr.bf16.vlgmr.msra.gmra.mrb[16].mxu0 %v5463_v31  ;;  %5163 = vmatprep.subr.bf16.mxu1 %v5472_v38  ;;  %v5533_v31 = vld [vmem:[%s6846_s0 + $0x64] ss:$108 sps:$4 sm:$0xff]   ;;  %s1995_s19 = scalar_lea.vmem [#allocation3], %s4663_s9 }
 0x1e0   : > { %5142 = vmatpush3.bf16.msra.mxu0 %v5471_v37  ;;  %4355 = vmatprep.mubr.bf16.mxu0 %v5503_v4  ;;  %v4664_v37 = vld [vmem:[%s2011_s18] ss:$0 sm:$0xff] }
 0x1e1   : > { %4315 = vmatmul.mubr.bf16.vlgmr.msra.gmra.mrb[16].mxu1 %v5468_v35  ;;  %5143 = vmatprep.subr.bf16.mxu0 %v5474_v40  ;;  %v5535_v35 = vld [vmem:[%s6846_s0 + $0x68] ss:$108 sps:$4 sm:$0xff]  }
 0x1e2   : > { %5164 = vmatpush3.bf16.msra.mxu1 %v5473_v39  ;;  %4396 = vmatprep.mubr.bf16.mxu1 %v5508_v8 }
 0x1e3   : > { %5165 = vmatprep.subr.bf16.mxu1 %v5476_v42 }
 0x1e4   : > { %5144 = vmatpush3.bf16.msra.mxu0 %v5475_v41 }
 0x1e5   : > { %5145 = vmatprep.subr.bf16.mxu0 %v5478_v44 }
 0x1e6   : > { %5166 = vmatpush3.bf16.msra.mxu1 %v5477_v43 }
 0x1e7   : > { %5167 = vmatprep.subr.bf16.mxu1 %v5480_v46 }
 0x1e8   : > { %5146 = vmatpush3.bf16.msra.mxu0 %v5479_v45 }
 0x1e9   : > { %5147 = vmatprep.subr.bf16.mxu0 %v5482_v48 }
 0x1ea   : > { %5168 = vmatpush3.bf16.msra.mxu1 %v5481_v47 }
 0x1eb   : > { %5169 = vmatprep.subr.bf16.mxu1 %v5484_v50 }
 0x1ec   : > { %5148 = vmatpush3.bf16.msra.mxu0 %v5483_v49 }
 0x1ed   : > { %5149 = vmatprep.subr.bf16.mxu0 %v5486_v52 }
 0x1ee   : > { %5170 = vmatpush3.bf16.msra.mxu1 %v5485_v51 }
 0x1ef   : > { %5171 = vmatprep.subr.bf16.mxu1 %v5488_v54 }
 0x1f0   : > { %5150 = vmatpush3.bf16.msra.mxu0 %v5487_v53 }
 0x1f1   : > { %5151 = vmatprep.subr.bf16.mxu0 %v5490_v56 }
 0x1f2   : > { %5172 = vmatpush3.bf16.msra.mxu1 %v5489_v55 }
 0x1f3   : > { %5173 = vmatprep.subr.bf16.mxu1 %v5492_v58 }
 0x1f4   : > { %5152 = vmatpush3.bf16.msra.mxu0 %v5491_v57 }
 0x1f5   : > { %5153 = vmatprep.subr.bf16.mxu0 %v5494_v60 }
 0x1f6   : > { %5174 = vmatpush3.bf16.msra.mxu1 %v5493_v59 }
 0x1f7   : > { %5175 = vmatprep.subr.bf16.mxu1 %v5496_v62 }
 0x1f8   : > { %5154 = vmatpush3.bf16.msra.mxu0 %v5495_v61 }
 0x1f9   : > { %5155 = vmatprep.subr.bf16.mxu0 %v5498_v0 }
 0x1fa   : > { %5176 = vmatpush3.bf16.msra.mxu1 %v5497_v63 }
 0x1fb   : > { %5177 = vmatprep.subr.bf16.mxu1 %v5500_v2 }
 0x1fc   : > { %5156 = vmatpush3.bf16.msra.mxu0 %v5499_v1 }
 0x1fd   : > { %5185 = vmatprep.subr.bf16.mxu0 %v5505_v6 }
 0x1fe   : > { %5178 = vmatpush3.bf16.msra.mxu1 %v5504_v5 }
 0x1ff   : > { %4356 = vmatmul.mubr.bf16.vlgmr.msra.gmra.mrb[20].mxu0 %v5501_v3  ;;  %5216 = vmatprep.subr.bf16.mxu1 %v5576_v10 }
 0x200   : > { %5186 = vmatpush3.bf16.msra.mxu0 %v5509_v9  ;;  %4437 = vmatprep.mubr.bf16.mxu0 %v5533_v31 }
 0x201   : > { %4397 = vmatmul.mubr.bf16.vlgmr.msra.gmra.mrb[20].mxu1 %v5506_v7  ;;  %5187 = vmatprep.subr.bf16.mxu0 %v5511_v12 }
 0x202   : > { %5217 = vmatpush3.bf16.msra.mxu1 %v5510_v11  ;;  %5232 = vmatprep.mubr.msk.bf16.mxu1 %vm5577_vm0, %v5576_v10 }
 0x203   : > { %5218 = vmatprep.subr.bf16.mxu1 %v5576_v10 }
 0x204   : > { %5188 = vmatpush3.bf16.msra.mxu0 %v5512_v13 }
 0x205   : > { %5189 = vmatprep.subr.bf16.mxu0 %v5514_v15 }
 0x206   : > { %5219 = vmatpush3.bf16.msra.mxu1 %v5513_v14 }
 0x207   : > { %5220 = vmatprep.subr.bf16.mxu1 %v5576_v10 }
 0x208   : > { %5190 = vmatpush3.bf16.msra.mxu0 %v5515_v16 }
 0x209   : > { %5191 = vmatprep.subr.bf16.mxu0 %v5517_v18 }
 0x20a   : > { %5221 = vmatpush3.bf16.msra.mxu1 %v5516_v17 }
 0x20b   : > { %5222 = vmatprep.subr.bf16.mxu1 %v5576_v10 }
 0x20c   : > { %5192 = vmatpush3.bf16.msra.mxu0 %v5518_v19 }
 0x20d   : > { %5193 = vmatprep.subr.bf16.mxu0 %v5520_v21 }
 0x20e   : > { %5223 = vmatpush3.bf16.msra.mxu1 %v5519_v20 }
 0x20f   : > { %5224 = vmatprep.subr.bf16.mxu1 %v5576_v10 }
 0x210   : > { %5194 = vmatpush3.bf16.msra.mxu0 %v5521_v22 }
 0x211   : > { %5195 = vmatprep.subr.bf16.mxu0 %v5523_v24 }
 0x212   : > { %5225 = vmatpush3.bf16.msra.mxu1 %v5522_v23 }
 0x213   : > { %5226 = vmatprep.subr.bf16.mxu1 %v5576_v10 }
 0x214   : > { %5196 = vmatpush3.bf16.msra.mxu0 %v5524_v25 }
 0x215   : > { %5197 = vmatprep.subr.bf16.mxu0 %v5526_v27 }
 0x216   : > { %5227 = vmatpush3.bf16.msra.mxu1 %v5525_v26 }
 0x217   : > { %5228 = vmatprep.subr.bf16.mxu1 %v5576_v10 }
 0x218   : > { %5198 = vmatpush3.bf16.msra.mxu0 %v5527_v28 }
 0x219   : > { %5199 = vmatprep.subr.bf16.mxu0 %v5529_v30 }
 0x21a   : > { %5229 = vmatpush3.bf16.msra.mxu1 %v5528_v29 }
 0x21b   : > { %5230 = vmatprep.subr.bf16.mxu1 %v5576_v10 }
 0x21c   : > { %5200 = vmatpush3.bf16.msra.mxu0 %v5530_v32 }
 0x21e   : > { %5231 = vmatpush3.bf16.msra.mxu1 %v5534_v33 }
 0x21f   : > { %4438 = vmatmul.mubr.bf16.vlgmr.msra.gmra.mrb[24].mxu0 %v5531_v34 }
 0x221   : > { %5233 = vmatmul.mubr.bf16.vlgmr.msra.gmra.mrb[24].mxu1 %v5535_v35 }
 0x232   : > { %v4937_v36 = vpop.f32.mrb[0].mxu0 }
 0x233   : > { %v4938_v38 = vpop.f32.mrb[1].mxu0 }
 0x234   : > { %v4939_v39 = vadd.f32 %v4938_v38, %v4937_v36  ;;  %v4940_v40 = vpop.f32.mrb[2].mxu0  ;;  %v4959_v41 = vpop.f32.mrb[0].mxu1 }
 0x235   : > { %v4941_v42 = vpop.f32.mrb[3].mxu0  ;;  %v4960_v43 = vpop.f32.mrb[1].mxu1 }
 0x236   : > { %v3948_v44 = vadd.f32 %v4939_v39, %v4664_v37  ;;  %v4942_v45 = vadd.f32 %v4941_v42, %v4940_v40  ;;  %v4961_v46 = vadd.f32 %v4960_v43, %v4959_v41  ;;  %v4962_v47 = vpop.f32.mrb[2].mxu1 }
 0x237   : > { %v4963_v48 = vpop.f32.mrb[3].mxu1 }
 0x238   : > { %v3951_v49 = vadd.f32 %v4942_v45, %v4664_v37  ;;  %v3989_v50 = vadd.f32 %v4961_v46, %v3948_v44  ;;  %v4964_v51 = vadd.f32 %v4963_v48, %v4962_v47 }
 0x23a   : > { %v3992_v52 = vadd.f32 %v4964_v51, %v3951_v49 }
 0x252   : > { %v4981_v53 = vpop.f32.mrb[4].mxu0 }
 0x253   : > { %v4982_v54 = vpop.f32.mrb[5].mxu0 }
 0x254   : > { %v4983_v55 = vadd.f32 %v4982_v54, %v4981_v53  ;;  %v4984_v56 = vpop.f32.mrb[6].mxu0  ;;  %v5003_v57 = vpop.f32.mrb[4].mxu1 }
 0x255   : > { %v4985_v58 = vpop.f32.mrb[7].mxu0  ;;  %v5004_v61 = vpop.f32.mrb[5].mxu1 }
 0x256   : > { %v4030_v59 = vadd.f32 %v4983_v55, %v3989_v50  ;;  %v4986_v60 = vadd.f32 %v4985_v58, %v4984_v56  ;;  %v5005_v62 = vadd.f32 %v5004_v61, %v5003_v57  ;;  %v5006_v63 = vpop.f32.mrb[6].mxu1 }
 0x257   : > { %v5007_v1 = vpop.f32.mrb[7].mxu1 }
 0x258   : > { %v4033_v0 = vadd.f32 %v4986_v60, %v3992_v52  ;;  %v4071_v2 = vadd.f32 %v5005_v62, %v4030_v59  ;;  %v5008_v3 = vadd.f32 %v5007_v1, %v5006_v63 }
 0x25a   : > { %v4074_v4 = vadd.f32 %v5008_v3, %v4033_v0 }
 0x272   : > { %v5025_v5 = vpop.f32.mrb[8].mxu0 }
 0x273   : > { %v5026_v6 = vpop.f32.mrb[9].mxu0 }
 0x274   : > { %v5027_v7 = vadd.f32 %v5026_v6, %v5025_v5  ;;  %v5028_v8 = vpop.f32.mrb[10].mxu0  ;;  %v5047_v9 = vpop.f32.mrb[8].mxu1 }
 0x275   : > { %v5029_v10 = vpop.f32.mrb[11].mxu0  ;;  %v5048_v13 = vpop.f32.mrb[9].mxu1 }
 0x276   : > { %v4112_v11 = vadd.f32 %v5027_v7, %v4071_v2  ;;  %v5030_v12 = vadd.f32 %v5029_v10, %v5028_v8  ;;  %v5049_v14 = vadd.f32 %v5048_v13, %v5047_v9  ;;  %v5050_v15 = vpop.f32.mrb[10].mxu1 }
 0x277   : > { %v5051_v17 = vpop.f32.mrb[11].mxu1 }
 0x278   : > { %v4115_v16 = vadd.f32 %v5030_v12, %v4074_v4  ;;  %v4153_v18 = vadd.f32 %v5049_v14, %v4112_v11  ;;  %v5052_v19 = vadd.f32 %v5051_v17, %v5050_v15 }
 0x27a   : > { %v4156_v20 = vadd.f32 %v5052_v19, %v4115_v16 }
 0x292   : > { %v5069_v21 = vpop.f32.mrb[12].mxu0 }
 0x293   : > { %v5070_v22 = vpop.f32.mrb[13].mxu0 }
 0x294   : > { %v5071_v23 = vadd.f32 %v5070_v22, %v5069_v21  ;;  %v5072_v24 = vpop.f32.mrb[14].mxu0  ;;  %v5091_v25 = vpop.f32.mrb[12].mxu1 }
 0x295   : > { %v5073_v26 = vpop.f32.mrb[15].mxu0  ;;  %v5092_v29 = vpop.f32.mrb[13].mxu1 }
 0x296   : > { %v4194_v27 = vadd.f32 %v5071_v23, %v4153_v18  ;;  %v5074_v28 = vadd.f32 %v5073_v26, %v5072_v24  ;;  %v5093_v30 = vadd.f32 %v5092_v29, %v5091_v25  ;;  %v5094_v31 = vpop.f32.mrb[14].mxu1 }
 0x297   : > { %v5095_v33 = vpop.f32.mrb[15].mxu1 }
 0x298   : > { %v4197_v32 = vadd.f32 %v5074_v28, %v4156_v20  ;;  %v4235_v34 = vadd.f32 %v5093_v30, %v4194_v27  ;;  %v5096_v35 = vadd.f32 %v5095_v33, %v5094_v31 }
 0x29a   : > { %v4238_v36 = vadd.f32 %v5096_v35, %v4197_v32 }
 0x2b2   : > { %v5113_v37 = vpop.f32.mrb[16].mxu0 }
 0x2b3   : > { %v5114_v38 = vpop.f32.mrb[17].mxu0 }
 0x2b4   : > { %v5115_v39 = vadd.f32 %v5114_v38, %v5113_v37  ;;  %v5116_v40 = vpop.f32.mrb[18].mxu0  ;;  %v5135_v43 = vpop.f32.mrb[16].mxu1 }
 0x2b5   : > { %v5117_v41 = vpop.f32.mrb[19].mxu0  ;;  %v5136_v45 = vpop.f32.mrb[17].mxu1 }
 0x2b6   : > { %v4276_v42 = vadd.f32 %v5115_v39, %v4235_v34  ;;  %v5118_v44 = vadd.f32 %v5117_v41, %v5116_v40  ;;  %v5137_v47 = vadd.f32 %v5136_v45, %v5135_v43  ;;  %v5138_v48 = vpop.f32.mrb[18].mxu1 }
 0x2b7   : > { %v5139_v49 = vpop.f32.mrb[19].mxu1 }
 0x2b8   : > { %v4279_v46 = vadd.f32 %v5118_v44, %v4238_v36  ;;  %v4317_v50 = vadd.f32 %v5137_v47, %v4276_v42  ;;  %v5140_v51 = vadd.f32 %v5139_v49, %v5138_v48 }
 0x2ba   : > { %v4320_v52 = vadd.f32 %v5140_v51, %v4279_v46 }
 0x2d2   : > { %v5157_v53 = vpop.f32.mrb[20].mxu0 }
 0x2d3   : > { %v5158_v54 = vpop.f32.mrb[21].mxu0 }
 0x2d4   : > { %v5159_v55 = vadd.f32 %v5158_v54, %v5157_v53  ;;  %v5160_v56 = vpop.f32.mrb[22].mxu0  ;;  %v5179_v57 = vpop.f32.mrb[20].mxu1 }
 0x2d5   : > { %v5161_v58 = vpop.f32.mrb[23].mxu0  ;;  %v5180_v61 = vpop.f32.mrb[21].mxu1 }
 0x2d6   : > { %v4358_v59 = vadd.f32 %v5159_v55, %v4317_v50  ;;  %v5162_v60 = vadd.f32 %v5161_v58, %v5160_v56  ;;  %v5181_v62 = vadd.f32 %v5180_v61, %v5179_v57  ;;  %v5182_v63 = vpop.f32.mrb[22].mxu1 }
 0x2d7   : > { %v5183_v1 = vpop.f32.mrb[23].mxu1 }
 0x2d8   : > { %v4361_v0 = vadd.f32 %v5162_v60, %v4320_v52  ;;  %v4399_v2 = vadd.f32 %v5181_v62, %v4358_v59  ;;  %v5184_v3 = vadd.f32 %v5183_v1, %v5182_v63 }
 0x2da   : > { %v4402_v4 = vadd.f32 %v5184_v3, %v4361_v0 }
 0x2f2   : > { %v5201_v5 = vpop.f32.mrb[24].mxu0 }
 0x2f3   : > { %v5202_v6 = vpop.f32.mrb[25].mxu0 }
 0x2f4   : > { %v4480_v7 = vpop.f32.mrb[24].mxu1  ;;  %v5203_v8 = vadd.f32 %v5202_v6, %v5201_v5  ;;  %v5204_v9 = vpop.f32.mrb[26].mxu0 }
 0x2f5   : > { %v5234_v10 = vpop.f32.mrb[25].mxu1  ;;  %v5205_v11 = vpop.f32.mrb[27].mxu0 }
 0x2f6   : > { %v4483_v12 = vpop.f32.mrb[26].mxu1  ;;  %v4440_v13 = vadd.f32 %v5203_v8, %v4399_v2  ;;  %v5206_v14 = vadd.f32 %v5205_v11, %v5204_v9 }
 0x2f7   : > { %v5235_v15 = vpop.f32.mrb[27].mxu1 }
 0x2f8   : > { %v4481_v16 = vadd.f32 %v4480_v7, %v4440_v13  ;;  %v4443_v17 = vadd.f32 %v5206_v14, %v4402_v4 }
 0x2fa   : > { %v4484_v18 = vadd.f32 %v4483_v12, %v4443_v17  ;;  %v4487_v19 = vmax.f32 %v4481_v16, 0.0  ;;  %4505 = sbr.rel (!%p5633_p6) target bundleno = 777 (0x309), region = 77 }
 0x2fc   : > { %v4488_v20 = vmax.f32 %v4484_v18, 0.0 }
 0x2fe   : > { %v4919_v21 = vpack.c.bf16 %v4488_v20, %v4487_v19 }
 0x300   : > { %4920 = vst [vmem:[%s1995_s19] sm:$0xff] %v4919_v21  }
 0x307   : > { %v4526_v22 = vld [vmem:[%s1995_s19] sm:$0xf]  ;;  %v4528_v23 = vld [vmem:[%s1995_s19 + $0x4] sm:$0xf] }
 0x308   : > { %4527 = vst [vmem:[%s4510_s25] sm:$0xf] %v4526_v22  ;;  %4529 = vst [vmem:[%s4510_s25 + $0x8] sm:$0xf] %v4528_v23 }
 0x309 PF: > { %s13_s16 = sadd.s32 1, %s5574_s16   ;;  %s6851_s12 = smov %s5562_s13 }
 0x30a   : > { %p10_p12 = scmp.ge.s32.totalorder %s13_s16, 4   ;;  %s6852_s13 = smov %s5638_s22 }
 0x30b   : > { %s6853_s14 = smov %s5570_s15  ;;  %s6854_s15 = smov %s6856_s17 }
 0x30c   :  { %12 = sbr.rel (!%p10_p12) target bundleno = 3 (0x3), region = 155 }

// kernel: voxel_feature_extractor.9
= control target key start
LH: loop header
LB: loop body
LE: loop exit
PB: predicated region body
PF: predicated region fallthrough
CT: control target
= control target key end

     0   :  { %s4280_s12 = smov 0   ;;  %s4282_s13 = smov 0   ;;  %s5252_s0 = inlined_call_operand.vmem [shape: bf16[16,2048], index: 0, kind: input, shape index: {}]   ;;  %s5253_s1 = inlined_call_operand.vmem [shape: bf16[2048,512], index: 1, kind: input, shape index: {}]   ;;  %s5254_s2 = inlined_call_operand.vmem [shape: f32[1,512], index: 2, kind: input, shape index: {}]   ;;  %s5255_s3 = inlined_call_operand.vmem [shape: bf16[16,512], index: 3, kind: output, shape index: {}]  }
   0x1   :  { %s4284_s14 = smov 0   ;;  %s4286_s15 = smov 0  }
   0x2   :  { %s4288_s16 = smov 0  }
   0x3 LB: > { %s28_s17 = sadd.s32 1, %s4254_s15  ;;  %s3469_s18 = sadd.s32 4294967295, %s4258_s16   ;;  %s4258_s16 = sphi %s4288_s16, %s13_s16   ;;  %s4254_s15 = sphi %s4286_s15, %s5260_s15   ;;  %s4250_s14 = sphi %s4284_s14, %s5259_s14   ;;  %s4246_s13 = sphi %s4282_s13, %s5258_s13   ;;  %s4242_s12 = sphi %s4280_s12, %s5257_s12  }
   0x4   : > { %p30_p0 = scmp.ge.s32.totalorder %s28_s17, 2  ;;  %p76_p1 = scmp.ne.s32.totalorder %s4246_s13, %s4242_s12 }
   0x5   : > { %p77_p2 = scmp.eq.s32.totalorder %s4258_s16, 0  ;;  %p134_p4 = scmp.eq.s32.totalorder %s3469_s18, 1 }
   0x6   : > { %s5262_s17 = smov (%p30_p0, %s28_s17), 0  ;;  %s69_s20 = sadd.s32 1, %s4246_s13 }
   0x7   : > { %p78_p3 = por %p77_p2, %p76_p1  ;;  %s65_s19 = ssub.s32 %s4254_s15, %s5262_s17 }
   0x8   : > { %p67_p5 = scmp.eq.s32.totalorder %s65_s19, 0  ;;  %p4315_p6 = por %p134_p4, %p76_p1 }
   0x9   : > { %p3473_p7 = scmp.ge.s32.totalorder %s4258_s16, 2 }
   0xa   : > { %s4320_s22 = scalar_select %p67_p5, %s4246_s13, %s69_s20  }
   0xb   : > { %171 = sbr.rel (%p3473_p7) target bundleno = 150 (0x96), region = 20 }
  0x12   : > { %174 = sbr.rel (!%p78_p3) target bundleno = 150 (0x96), region = 24  ;;  %s176_s23 = sand.u32 (%p78_p3), 1, %s4246_s13  }
  0x13   : > { %s3760_s24 = sshll.u32 (%p78_p3), %s4254_s15, 3  ;;  %s3474_s25 = sshll.u32 (%p78_p3), %s176_s23, 11 }
  0x14   : > { %s4328_s28 = scalar_lea.vmem (%p78_p3), %s5253_s1, %s3760_s24  ;;  %s4333_s29 = scalar_lea.vmem (%p78_p3), [#allocation2], %s3474_s25 }
  0x15   : > { %v722_v0 = vld [vmem:[%s4328_s28] sm:$0xff] (%p78_p3)  ;;  %v724_v1 = vld [vmem:[%s4328_s28 + $0x10] sm:$0xff] (%p78_p3) }
  0x16   : > { %v726_v2 = vld [vmem:[%s4328_s28 + $0x20] sm:$0xff] (%p78_p3)  ;;  %723 = vst [vmem:[%s4333_s29] sm:$0xff] (%p78_p3), %v722_v0  ;;  %725 = vst [vmem:[%s4333_s29 + $0x8] sm:$0xff] (%p78_p3), %v724_v1  ;;  %v728_v3 = vld [vmem:[%s4328_s28 + $0x30] sm:$0xff] (%p78_p3) }
  0x17   : > { %727 = vst [vmem:[%s4333_s29 + $0x10] sm:$0xff] (%p78_p3), %v726_v2  ;;  %v730_v4 = vld [vmem:[%s4328_s28 + $0x40] sm:$0xff] (%p78_p3)  ;;  %v732_v5 = vld [vmem:[%s4328_s28 + $0x50] sm:$0xff] (%p78_p3)  ;;  %729 = vst [vmem:[%s4333_s29 + $0x18] sm:$0xff] (%p78_p3), %v728_v3 }
  0x18   : > { %731 = vst [vmem:[%s4333_s29 + $0x20] sm:$0xff] (%p78_p3), %v730_v4  ;;  %733 = vst [vmem:[%s4333_s29 + $0x28] sm:$0xff] (%p78_p3), %v732_v5  ;;  %v734_v6 = vld [vmem:[%s4328_s28 + $0x60] sm:$0xff] (%p78_p3)  ;;  %v736_v7 = vld [vmem:[%s4328_s28 + $0x70] sm:$0xff] (%p78_p3) }
  0x19   : > { %v738_v8 = vld [vmem:[%s4328_s28 + $0x80] sm:$0xff]  ;;  %735 = vst [vmem:[%s4333_s29 + $0x30] sm:$0xff] %v734_v6  ;;  %737 = vst [vmem:[%s4333_s29 + $0x38] sm:$0xff] %v736_v7  ;;  %v740_v9 = vld [vmem:[%s4328_s28 + $0x90] sm:$0xff] }
  0x1a   : > { %739 = vst [vmem:[%s4333_s29 + $0x40] sm:$0xff] %v738_v8  ;;  %v742_v10 = vld [vmem:[%s4328_s28 + $0xa0] sm:$0xff]  ;;  %v744_v11 = vld [vmem:[%s4328_s28 + $0xb0] sm:$0xff]  ;;  %741 = vst [vmem:[%s4333_s29 + $0x48] sm:$0xff] %v740_v9 }
  0x1b   : > { %743 = vst [vmem:[%s4333_s29 + $0x50] sm:$0xff] %v742_v10  ;;  %745 = vst [vmem:[%s4333_s29 + $0x58] sm:$0xff] %v744_v11  ;;  %v746_v12 = vld [vmem:[%s4328_s28 + $0xc0] sm:$0xff]  ;;  %v748_v13 = vld [vmem:[%s4328_s28 + $0xd0] sm:$0xff] }
  0x1c   : > { %v750_v14 = vld [vmem:[%s4328_s28 + $0xe0] sm:$0xff]  ;;  %747 = vst [vmem:[%s4333_s29 + $0x60] sm:$0xff] %v746_v12  ;;  %749 = vst [vmem:[%s4333_s29 + $0x68] sm:$0xff] %v748_v13  ;;  %v752_v15 = vld [vmem:[%s4328_s28 + $0xf0] sm:$0xff] }
  0x1d   : > { %751 = vst [vmem:[%s4333_s29 + $0x70] sm:$0xff] %v750_v14  ;;  %v754_v16 = vld [vmem:[%s4328_s28 + $0x100] sm:$0xff]  ;;  %v756_v17 = vld [vmem:[%s4328_s28 + $0x110] sm:$0xff]  ;;  %753 = vst [vmem:[%s4333_s29 + $0x78] sm:$0xff] %v752_v15 }
  0x1e   : > { %755 = vst [vmem:[%s4333_s29 + $0x80] sm:$0xff] %v754_v16  ;;  %757 = vst [vmem:[%s4333_s29 + $0x88] sm:$0xff] %v756_v17  ;;  %v758_v18 = vld [vmem:[%s4328_s28 + $0x120] sm:$0xff]  ;;  %v760_v19 = vld [vmem:[%s4328_s28 + $0x130] sm:$0xff] }
  0x1f   : > { %v762_v20 = vld [vmem:[%s4328_s28 + $0x140] sm:$0xff]  ;;  %759 = vst [vmem:[%s4333_s29 + $0x90] sm:$0xff] %v758_v18  ;;  %761 = vst [vmem:[%s4333_s29 + $0x98] sm:$0xff] %v760_v19  ;;  %v764_v21 = vld [vmem:[%s4328_s28 + $0x150] sm:$0xff] }
  0x20   : > { %763 = vst [vmem:[%s4333_s29 + $0xa0] sm:$0xff] %v762_v20  ;;  %v766_v22 = vld [vmem:[%s4328_s28 + $0x160] sm:$0xff]  ;;  %v768_v23 = vld [vmem:[%s4328_s28 + $0x170] sm:$0xff]  ;;  %765 = vst [vmem:[%s4333_s29 + $0xa8] sm:$0xff] %v764_v21 }
  0x21   : > { %767 = vst [vmem:[%s4333_s29 + $0xb0] sm:$0xff] %v766_v22  ;;  %769 = vst [vmem:[%s4333_s29 + $0xb8] sm:$0xff] %v768_v23  ;;  %v770_v24 = vld [vmem:[%s4328_s28 + $0x180] sm:$0xff]  ;;  %v772_v25 = vld [vmem:[%s4328_s28 + $0x190] sm:$0xff] }
  0x22   : > { %v774_v26 = vld [vmem:[%s4328_s28 + $0x1a0] sm:$0xff]  ;;  %771 = vst [vmem:[%s4333_s29 + $0xc0] sm:$0xff] %v770_v24  ;;  %773 = vst [vmem:[%s4333_s29 + $0xc8] sm:$0xff] %v772_v25  ;;  %v776_v27 = vld [vmem:[%s4328_s28 + $0x1b0] sm:$0xff] }
  0x23   : > { %775 = vst [vmem:[%s4333_s29 + $0xd0] sm:$0xff] %v774_v26  ;;  %v778_v28 = vld [vmem:[%s4328_s28 + $0x1c0] sm:$0xff]  ;;  %v780_v29 = vld [vmem:[%s4328_s28 + $0x1d0] sm:$0xff]  ;;  %777 = vst [vmem:[%s4333_s29 + $0xd8] sm:$0xff] %v776_v27 }
  0x24   : > { %779 = vst [vmem:[%s4333_s29 + $0xe0] sm:$0xff] %v778_v28  ;;  %781 = vst [vmem:[%s4333_s29 + $0xe8] sm:$0xff] %v780_v29  ;;  %v782_v30 = vld [vmem:[%s4328_s28 + $0x1e0] sm:$0xff]  ;;  %v784_v31 = vld [vmem:[%s4328_s28 + $0x1f0] sm:$0xff] }
  0x25   : > { %v786_v32 = vld [vmem:[%s4328_s28 + $0x200] sm:$0xff]  ;;  %783 = vst [vmem:[%s4333_s29 + $0xf0] sm:$0xff] %v782_v30  ;;  %785 = vst [vmem:[%s4333_s29 + $0xf8] sm:$0xff] %v784_v31  ;;  %v788_v33 = vld [vmem:[%s4328_s28 + $0x210] sm:$0xff] }
  0x26   : > { %787 = vst [vmem:[%s4333_s29 + $0x100] sm:$0xff] %v786_v32  ;;  %v790_v34 = vld [vmem:[%s4328_s28 + $0x220] sm:$0xff]  ;;  %v792_v35 = vld [vmem:[%s4328_s28 + $0x230] sm:$0xff]  ;;  %789 = vst [vmem:[%s4333_s29 + $0x108] sm:$0xff] %v788_v33 }
  0x27   : > { %791 = vst [vmem:[%s4333_s29 + $0x110] sm:$0xff] %v790_v34  ;;  %793 = vst [vmem:[%s4333_s29 + $0x118] sm:$0xff] %v792_v35  ;;  %v794_v36 = vld [vmem:[%s4328_s28 + $0x240] sm:$0xff]  ;;  %v796_v37 = vld [vmem:[%s4328_s28 + $0x250] sm:$0xff] }
  0x28   : > { %v798_v38 = vld [vmem:[%s4328_s28 + $0x260] sm:$0xff]  ;;  %795 = vst [vmem:[%s4333_s29 + $0x120] sm:$0xff] %v794_v36  ;;  %797 = vst [vmem:[%s4333_s29 + $0x128] sm:$0xff] %v796_v37  ;;  %v800_v39 = vld [vmem:[%s4328_s28 + $0x270] sm:$0xff] }
  0x29   : > { %799 = vst [vmem:[%s4333_s29 + $0x130] sm:$0xff] %v798_v38  ;;  %v802_v40 = vld [vmem:[%s4328_s28 + $0x280] sm:$0xff]  ;;  %v804_v41 = vld [vmem:[%s4328_s28 + $0x290] sm:$0xff]  ;;  %801 = vst [vmem:[%s4333_s29 + $0x138] sm:$0xff] %v800_v39 }
  0x2a   : > { %803 = vst [vmem:[%s4333_s29 + $0x140] sm:$0xff] %v802_v40  ;;  %805 = vst [vmem:[%s4333_s29 + $0x148] sm:$0xff] %v804_v41  ;;  %v806_v42 = vld [vmem:[%s4328_s28 + $0x2a0] sm:$0xff]  ;;  %v808_v43 = vld [vmem:[%s4328_s28 + $0x2b0] sm:$0xff] }
  0x2b   : > { %v810_v44 = vld [vmem:[%s4328_s28 + $0x2c0] sm:$0xff]  ;;  %807 = vst [vmem:[%s4333_s29 + $0x150] sm:$0xff] %v806_v42  ;;  %809 = vst [vmem:[%s4333_s29 + $0x158] sm:$0xff] %v808_v43  ;;  %v812_v45 = vld [vmem:[%s4328_s28 + $0x2d0] sm:$0xff] }
  0x2c   : > { %811 = vst [vmem:[%s4333_s29 + $0x160] sm:$0xff] %v810_v44  ;;  %v814_v46 = vld [vmem:[%s4328_s28 + $0x2e0] sm:$0xff]  ;;  %v816_v47 = vld [vmem:[%s4328_s28 + $0x2f0] sm:$0xff]  ;;  %813 = vst [vmem:[%s4333_s29 + $0x168] sm:$0xff] %v812_v45 }
  0x2d   : > { %815 = vst [vmem:[%s4333_s29 + $0x170] sm:$0xff] %v814_v46  ;;  %817 = vst [vmem:[%s4333_s29 + $0x178] sm:$0xff] %v816_v47  ;;  %v818_v48 = vld [vmem:[%s4328_s28 + $0x300] sm:$0xff]  ;;  %v820_v49 = vld [vmem:[%s4328_s28 + $0x310] sm:$0xff] }
  0x2e   : > { %v822_v50 = vld [vmem:[%s4328_s28 + $0x320] sm:$0xff]  ;;  %819 = vst [vmem:[%s4333_s29 + $0x180] sm:$0xff] %v818_v48  ;;  %821 = vst [vmem:[%s4333_s29 + $0x188] sm:$0xff] %v820_v49  ;;  %v824_v51 = vld [vmem:[%s4328_s28 + $0x330] sm:$0xff] }
  0x2f   : > { %823 = vst [vmem:[%s4333_s29 + $0x190] sm:$0xff] %v822_v50  ;;  %v826_v52 = vld [vmem:[%s4328_s28 + $0x340] sm:$0xff]  ;;  %v828_v53 = vld [vmem:[%s4328_s28 + $0x350] sm:$0xff]  ;;  %825 = vst [vmem:[%s4333_s29 + $0x198] sm:$0xff] %v824_v51 }
  0x30   : > { %827 = vst [vmem:[%s4333_s29 + $0x1a0] sm:$0xff] %v826_v52  ;;  %829 = vst [vmem:[%s4333_s29 + $0x1a8] sm:$0xff] %v828_v53  ;;  %v830_v54 = vld [vmem:[%s4328_s28 + $0x360] sm:$0xff]  ;;  %v832_v55 = vld [vmem:[%s4328_s28 + $0x370] sm:$0xff] }
  0x31   : > { %v834_v56 = vld [vmem:[%s4328_s28 + $0x380] sm:$0xff]  ;;  %831 = vst [vmem:[%s4333_s29 + $0x1b0] sm:$0xff] %v830_v54  ;;  %833 = vst [vmem:[%s4333_s29 + $0x1b8] sm:$0xff] %v832_v55  ;;  %v836_v57 = vld [vmem:[%s4328_s28 + $0x390] sm:$0xff] }
  0x32   : > { %835 = vst [vmem:[%s4333_s29 + $0x1c0] sm:$0xff] %v834_v56  ;;  %v838_v58 = vld [vmem:[%s4328_s28 + $0x3a0] sm:$0xff]  ;;  %v840_v59 = vld [vmem:[%s4328_s28 + $0x3b0] sm:$0xff]  ;;  %837 = vst [vmem:[%s4333_s29 + $0x1c8] sm:$0xff] %v836_v57 }
  0x33   : > { %839 = vst [vmem:[%s4333_s29 + $0x1d0] sm:$0xff] %v838_v58  ;;  %841 = vst [vmem:[%s4333_s29 + $0x1d8] sm:$0xff] %v840_v59  ;;  %v842_v60 = vld [vmem:[%s4328_s28 + $0x3c0] sm:$0xff]  ;;  %v844_v61 = vld [vmem:[%s4328_s28 + $0x3d0] sm:$0xff] }
  0x34   : > { %v846_v62 = vld [vmem:[%s4328_s28 + $0x3e0] sm:$0xff]  ;;  %843 = vst [vmem:[%s4333_s29 + $0x1e0] sm:$0xff] %v842_v60  ;;  %845 = vst [vmem:[%s4333_s29 + $0x1e8] sm:$0xff] %v844_v61  ;;  %v848_v63 = vld [vmem:[%s4328_s28 + $0x3f0] sm:$0xff] }
  0x35   : > { %847 = vst [vmem:[%s4333_s29 + $0x1f0] sm:$0xff] %v846_v62  ;;  %v850_v0 = vld [vmem:[%s4328_s28 + $0x400] sm:$0xff]  ;;  %v852_v1 = vld [vmem:[%s4328_s28 + $0x410] sm:$0xff]  ;;  %849 = vst [vmem:[%s4333_s29 + $0x1f8] sm:$0xff] %v848_v63 }
  0x36   : > { %851 = vst [vmem:[%s4333_s29 + $0x200] sm:$0xff] %v850_v0  ;;  %853 = vst [vmem:[%s4333_s29 + $0x208] sm:$0xff] %v852_v1  ;;  %v854_v2 = vld [vmem:[%s4328_s28 + $0x420] sm:$0xff]  ;;  %v856_v3 = vld [vmem:[%s4328_s28 + $0x430] sm:$0xff] }
  0x37   : > { %v858_v4 = vld [vmem:[%s4328_s28 + $0x440] sm:$0xff]  ;;  %855 = vst [vmem:[%s4333_s29 + $0x210] sm:$0xff] %v854_v2  ;;  %857 = vst [vmem:[%s4333_s29 + $0x218] sm:$0xff] %v856_v3  ;;  %v860_v5 = vld [vmem:[%s4328_s28 + $0x450] sm:$0xff] }
  0x38   : > { %859 = vst [vmem:[%s4333_s29 + $0x220] sm:$0xff] %v858_v4  ;;  %v862_v6 = vld [vmem:[%s4328_s28 + $0x460] sm:$0xff]  ;;  %v864_v7 = vld [vmem:[%s4328_s28 + $0x470] sm:$0xff]  ;;  %861 = vst [vmem:[%s4333_s29 + $0x228] sm:$0xff] %v860_v5 }
  0x39   : > { %863 = vst [vmem:[%s4333_s29 + $0x230] sm:$0xff] %v862_v6  ;;  %865 = vst [vmem:[%s4333_s29 + $0x238] sm:$0xff] %v864_v7  ;;  %v866_v8 = vld [vmem:[%s4328_s28 + $0x480] sm:$0xff]  ;;  %v868_v9 = vld [vmem:[%s4328_s28 + $0x490] sm:$0xff] }
  0x3a   : > { %v870_v10 = vld [vmem:[%s4328_s28 + $0x4a0] sm:$0xff]  ;;  %867 = vst [vmem:[%s4333_s29 + $0x240] sm:$0xff] %v866_v8  ;;  %869 = vst [vmem:[%s4333_s29 + $0x248] sm:$0xff] %v868_v9  ;;  %v872_v11 = vld [vmem:[%s4328_s28 + $0x4b0] sm:$0xff] }
  0x3b   : > { %871 = vst [vmem:[%s4333_s29 + $0x250] sm:$0xff] %v870_v10  ;;  %v874_v12 = vld [vmem:[%s4328_s28 + $0x4c0] sm:$0xff]  ;;  %v876_v13 = vld [vmem:[%s4328_s28 + $0x4d0] sm:$0xff]  ;;  %873 = vst [vmem:[%s4333_s29 + $0x258] sm:$0xff] %v872_v11 }
  0x3c   : > { %875 = vst [vmem:[%s4333_s29 + $0x260] sm:$0xff] %v874_v12  ;;  %877 = vst [vmem:[%s4333_s29 + $0x268] sm:$0xff] %v876_v13  ;;  %v878_v14 = vld [vmem:[%s4328_s28 + $0x4e0] sm:$0xff]  ;;  %v880_v15 = vld [vmem:[%s4328_s28 + $0x4f0] sm:$0xff] }
  0x3d   : > { %v882_v16 = vld [vmem:[%s4328_s28 + $0x500] sm:$0xff]  ;;  %879 = vst [vmem:[%s4333_s29 + $0x270] sm:$0xff] %v878_v14  ;;  %881 = vst [vmem:[%s4333_s29 + $0x278] sm:$0xff] %v880_v15  ;;  %v884_v17 = vld [vmem:[%s4328_s28 + $0x510] sm:$0xff] }
  0x3e   : > { %883 = vst [vmem:[%s4333_s29 + $0x280] sm:$0xff] %v882_v16  ;;  %v886_v18 = vld [vmem:[%s4328_s28 + $0x520] sm:$0xff]  ;;  %v888_v19 = vld [vmem:[%s4328_s28 + $0x530] sm:$0xff]  ;;  %885 = vst [vmem:[%s4333_s29 + $0x288] sm:$0xff] %v884_v17 }
  0x3f   : > { %887 = vst [vmem:[%s4333_s29 + $0x290] sm:$0xff] %v886_v18  ;;  %889 = vst [vmem:[%s4333_s29 + $0x298] sm:$0xff] %v888_v19  ;;  %v890_v20 = vld [vmem:[%s4328_s28 + $0x540] sm:$0xff]  ;;  %v892_v21 = vld [vmem:[%s4328_s28 + $0x550] sm:$0xff] }
  0x40   : > { %v894_v22 = vld [vmem:[%s4328_s28 + $0x560] sm:$0xff]  ;;  %891 = vst [vmem:[%s4333_s29 + $0x2a0] sm:$0xff] %v890_v20  ;;  %893 = vst [vmem:[%s4333_s29 + $0x2a8] sm:$0xff] %v892_v21  ;;  %v896_v23 = vld [vmem:[%s4328_s28 + $0x570] sm:$0xff] }
  0x41   : > { %895 = vst [vmem:[%s4333_s29 + $0x2b0] sm:$0xff] %v894_v22  ;;  %v898_v24 = vld [vmem:[%s4328_s28 + $0x580] sm:$0xff]  ;;  %v900_v25 = vld [vmem:[%s4328_s28 + $0x590] sm:$0xff]  ;;  %897 = vst [vmem:[%s4333_s29 + $0x2b8] sm:$0xff] %v896_v23 }
  0x42   : > { %899 = vst [vmem:[%s4333_s29 + $0x2c0] sm:$0xff] %v898_v24  ;;  %901 = vst [vmem:[%s4333_s29 + $0x2c8] sm:$0xff] %v900_v25  ;;  %v902_v26 = vld [vmem:[%s4328_s28 + $0x5a0] sm:$0xff]  ;;  %v904_v27 = vld [vmem:[%s4328_s28 + $0x5b0] sm:$0xff] }
  0x43   : > { %v906_v28 = vld [vmem:[%s4328_s28 + $0x5c0] sm:$0xff]  ;;  %903 = vst [vmem:[%s4333_s29 + $0x2d0] sm:$0xff] %v902_v26  ;;  %905 = vst [vmem:[%s4333_s29 + $0x2d8] sm:$0xff] %v904_v27  ;;  %v908_v29 = vld [vmem:[%s4328_s28 + $0x5d0] sm:$0xff] }
  0x44   : > { %907 = vst [vmem:[%s4333_s29 + $0x2e0] sm:$0xff] %v906_v28  ;;  %v910_v30 = vld [vmem:[%s4328_s28 + $0x5e0] sm:$0xff]  ;;  %v912_v31 = vld [vmem:[%s4328_s28 + $0x5f0] sm:$0xff]  ;;  %909 = vst [vmem:[%s4333_s29 + $0x2e8] sm:$0xff] %v908_v29 }
  0x45   : > { %911 = vst [vmem:[%s4333_s29 + $0x2f0] sm:$0xff] %v910_v30  ;;  %913 = vst [vmem:[%s4333_s29 + $0x2f8] sm:$0xff] %v912_v31  ;;  %v914_v32 = vld [vmem:[%s4328_s28 + $0x600] sm:$0xff]  ;;  %v916_v33 = vld [vmem:[%s4328_s28 + $0x610] sm:$0xff] }
  0x46   : > { %v918_v34 = vld [vmem:[%s4328_s28 + $0x620] sm:$0xff]  ;;  %915 = vst [vmem:[%s4333_s29 + $0x300] sm:$0xff] %v914_v32  ;;  %917 = vst [vmem:[%s4333_s29 + $0x308] sm:$0xff] %v916_v33  ;;  %v920_v35 = vld [vmem:[%s4328_s28 + $0x630] sm:$0xff] }
  0x47   : > { %919 = vst [vmem:[%s4333_s29 + $0x310] sm:$0xff] %v918_v34  ;;  %v922_v36 = vld [vmem:[%s4328_s28 + $0x640] sm:$0xff]  ;;  %v924_v37 = vld [vmem:[%s4328_s28 + $0x650] sm:$0xff]  ;;  %921 = vst [vmem:[%s4333_s29 + $0x318] sm:$0xff] %v920_v35 }
  0x48   : > { %923 = vst [vmem:[%s4333_s29 + $0x320] sm:$0xff] %v922_v36  ;;  %925 = vst [vmem:[%s4333_s29 + $0x328] sm:$0xff] %v924_v37  ;;  %v926_v38 = vld [vmem:[%s4328_s28 + $0x660] sm:$0xff]  ;;  %v928_v39 = vld [vmem:[%s4328_s28 + $0x670] sm:$0xff] }
  0x49   : > { %v930_v40 = vld [vmem:[%s4328_s28 + $0x680] sm:$0xff]  ;;  %927 = vst [vmem:[%s4333_s29 + $0x330] sm:$0xff] %v926_v38  ;;  %929 = vst [vmem:[%s4333_s29 + $0x338] sm:$0xff] %v928_v39  ;;  %v932_v41 = vld [vmem:[%s4328_s28 + $0x690] sm:$0xff] }
  0x4a   : > { %931 = vst [vmem:[%s4333_s29 + $0x340] sm:$0xff] %v930_v40  ;;  %v934_v42 = vld [vmem:[%s4328_s28 + $0x6a0] sm:$0xff]  ;;  %v936_v43 = vld [vmem:[%s4328_s28 + $0x6b0] sm:$0xff]  ;;  %933 = vst [vmem:[%s4333_s29 + $0x348] sm:$0xff] %v932_v41 }
  0x4b   : > { %935 = vst [vmem:[%s4333_s29 + $0x350] sm:$0xff] %v934_v42  ;;  %937 = vst [vmem:[%s4333_s29 + $0x358] sm:$0xff] %v936_v43  ;;  %v938_v44 = vld [vmem:[%s4328_s28 + $0x6c0] sm:$0xff]  ;;  %v940_v45 = vld [vmem:[%s4328_s28 + $0x6d0] sm:$0xff] }
  0x4c   : > { %v942_v46 = vld [vmem:[%s4328_s28 + $0x6e0] sm:$0xff]  ;;  %939 = vst [vmem:[%s4333_s29 + $0x360] sm:$0xff] %v938_v44  ;;  %941 = vst [vmem:[%s4333_s29 + $0x368] sm:$0xff] %v940_v45  ;;  %v944_v47 = vld [vmem:[%s4328_s28 + $0x6f0] sm:$0xff] }
  0x4d   : > { %943 = vst [vmem:[%s4333_s29 + $0x370] sm:$0xff] %v942_v46  ;;  %v946_v48 = vld [vmem:[%s4328_s28 + $0x700] sm:$0xff]  ;;  %v948_v49 = vld [vmem:[%s4328_s28 + $0x710] sm:$0xff]  ;;  %945 = vst [vmem:[%s4333_s29 + $0x378] sm:$0xff] %v944_v47 }
  0x4e   : > { %947 = vst [vmem:[%s4333_s29 + $0x380] sm:$0xff] %v946_v48  ;;  %949 = vst [vmem:[%s4333_s29 + $0x388] sm:$0xff] %v948_v49  ;;  %v950_v50 = vld [vmem:[%s4328_s28 + $0x720] sm:$0xff]  ;;  %v952_v51 = vld [vmem:[%s4328_s28 + $0x730] sm:$0xff] }
  0x4f   : > { %v954_v52 = vld [vmem:[%s4328_s28 + $0x740] sm:$0xff]  ;;  %951 = vst [vmem:[%s4333_s29 + $0x390] sm:$0xff] %v950_v50  ;;  %953 = vst [vmem:[%s4333_s29 + $0x398] sm:$0xff] %v952_v51  ;;  %v956_v53 = vld [vmem:[%s4328_s28 + $0x750] sm:$0xff] }
  0x50   : > { %955 = vst [vmem:[%s4333_s29 + $0x3a0] sm:$0xff] %v954_v52  ;;  %v958_v54 = vld [vmem:[%s4328_s28 + $0x760] sm:$0xff]  ;;  %v960_v55 = vld [vmem:[%s4328_s28 + $0x770] sm:$0xff]  ;;  %957 = vst [vmem:[%s4333_s29 + $0x3a8] sm:$0xff] %v956_v53 }
  0x51   : > { %959 = vst [vmem:[%s4333_s29 + $0x3b0] sm:$0xff] %v958_v54  ;;  %961 = vst [vmem:[%s4333_s29 + $0x3b8] sm:$0xff] %v960_v55  ;;  %v962_v56 = vld [vmem:[%s4328_s28 + $0x780] sm:$0xff]  ;;  %v964_v57 = vld [vmem:[%s4328_s28 + $0x790] sm:$0xff] }
  0x52   : > { %v966_v58 = vld [vmem:[%s4328_s28 + $0x7a0] sm:$0xff]  ;;  %963 = vst [vmem:[%s4333_s29 + $0x3c0] sm:$0xff] %v962_v56  ;;  %965 = vst [vmem:[%s4333_s29 + $0x3c8] sm:$0xff] %v964_v57  ;;  %v968_v59 = vld [vmem:[%s4328_s28 + $0x7b0] sm:$0xff] }
  0x53   : > { %967 = vst [vmem:[%s4333_s29 + $0x3d0] sm:$0xff] %v966_v58  ;;  %v970_v60 = vld [vmem:[%s4328_s28 + $0x7c0] sm:$0xff]  ;;  %v972_v61 = vld [vmem:[%s4328_s28 + $0x7d0] sm:$0xff]  ;;  %969 = vst [vmem:[%s4333_s29 + $0x3d8] sm:$0xff] %v968_v59 }
  0x54   : > { %971 = vst [vmem:[%s4333_s29 + $0x3e0] sm:$0xff] %v970_v60  ;;  %973 = vst [vmem:[%s4333_s29 + $0x3e8] sm:$0xff] %v972_v61  ;;  %v974_v62 = vld [vmem:[%s4328_s28 + $0x7e0] sm:$0xff]  ;;  %v976_v63 = vld [vmem:[%s4328_s28 + $0x7f0] sm:$0xff] }
  0x55   : > { %v978_v0 = vld [vmem:[%s4328_s28 + $0x800] sm:$0xff]  ;;  %975 = vst [vmem:[%s4333_s29 + $0x3f0] sm:$0xff] %v974_v62  ;;  %977 = vst [vmem:[%s4333_s29 + $0x3f8] sm:$0xff] %v976_v63  ;;  %v980_v1 = vld [vmem:[%s4328_s28 + $0x810] sm:$0xff] }
  0x56   : > { %979 = vst [vmem:[%s4333_s29 + $0x400] sm:$0xff] %v978_v0  ;;  %v982_v2 = vld [vmem:[%s4328_s28 + $0x820] sm:$0xff]  ;;  %v984_v3 = vld [vmem:[%s4328_s28 + $0x830] sm:$0xff]  ;;  %981 = vst [vmem:[%s4333_s29 + $0x408] sm:$0xff] %v980_v1 }
  0x57   : > { %983 = vst [vmem:[%s4333_s29 + $0x410] sm:$0xff] %v982_v2  ;;  %985 = vst [vmem:[%s4333_s29 + $0x418] sm:$0xff] %v984_v3  ;;  %v986_v4 = vld [vmem:[%s4328_s28 + $0x840] sm:$0xff]  ;;  %v988_v5 = vld [vmem:[%s4328_s28 + $0x850] sm:$0xff] }
  0x58   : > { %v990_v6 = vld [vmem:[%s4328_s28 + $0x860] sm:$0xff]  ;;  %987 = vst [vmem:[%s4333_s29 + $0x420] sm:$0xff] %v986_v4  ;;  %989 = vst [vmem:[%s4333_s29 + $0x428] sm:$0xff] %v988_v5  ;;  %v992_v7 = vld [vmem:[%s4328_s28 + $0x870] sm:$0xff] }
  0x59   : > { %991 = vst [vmem:[%s4333_s29 + $0x430] sm:$0xff] %v990_v6  ;;  %v994_v8 = vld [vmem:[%s4328_s28 + $0x880] sm:$0xff]  ;;  %v996_v9 = vld [vmem:[%s4328_s28 + $0x890] sm:$0xff]  ;;  %993 = vst [vmem:[%s4333_s29 + $0x438] sm:$0xff] %v992_v7 }
  0x5a   : > { %995 = vst [vmem:[%s4333_s29 + $0x440] sm:$0xff] %v994_v8  ;;  %997 = vst [vmem:[%s4333_s29 + $0x448] sm:$0xff] %v996_v9  ;;  %v998_v10 = vld [vmem:[%s4328_s28 + $0x8a0] sm:$0xff]  ;;  %v1000_v11 = vld [vmem:[%s4328_s28 + $0x8b0] sm:$0xff] }
  0x5b   : > { %v1002_v12 = vld [vmem:[%s4328_s28 + $0x8c0] sm:$0xff]  ;;  %999 = vst [vmem:[%s4333_s29 + $0x450] sm:$0xff] %v998_v10  ;;  %1001 = vst [vmem:[%s4333_s29 + $0x458] sm:$0xff] %v1000_v11  ;;  %v1004_v13 = vld [vmem:[%s4328_s28 + $0x8d0] sm:$0xff] }
  0x5c   : > { %1003 = vst [vmem:[%s4333_s29 + $0x460] sm:$0xff] %v1002_v12  ;;  %v1006_v14 = vld [vmem:[%s4328_s28 + $0x8e0] sm:$0xff]  ;;  %v1008_v15 = vld [vmem:[%s4328_s28 + $0x8f0] sm:$0xff]  ;;  %1005 = vst [vmem:[%s4333_s29 + $0x468] sm:$0xff] %v1004_v13 }
  0x5d   : > { %1007 = vst [vmem:[%s4333_s29 + $0x470] sm:$0xff] %v1006_v14  ;;  %1009 = vst [vmem:[%s4333_s29 + $0x478] sm:$0xff] %v1008_v15  ;;  %v1010_v16 = vld [vmem:[%s4328_s28 + $0x900] sm:$0xff]  ;;  %v1012_v17 = vld [vmem:[%s4328_s28 + $0x910] sm:$0xff] }
  0x5e   : > { %v1014_v18 = vld [vmem:[%s4328_s28 + $0x920] sm:$0xff]  ;;  %1011 = vst [vmem:[%s4333_s29 + $0x480] sm:$0xff] %v1010_v16  ;;  %1013 = vst [vmem:[%s4333_s29 + $0x488] sm:$0xff] %v1012_v17  ;;  %v1016_v19 = vld [vmem:[%s4328_s28 + $0x930] sm:$0xff] }
  0x5f   : > { %1015 = vst [vmem:[%s4333_s29 + $0x490] sm:$0xff] %v1014_v18  ;;  %v1018_v20 = vld [vmem:[%s4328_s28 + $0x940] sm:$0xff]  ;;  %v1020_v21 = vld [vmem:[%s4328_s28 + $0x950] sm:$0xff]  ;;  %1017 = vst [vmem:[%s4333_s29 + $0x498] sm:$0xff] %v1016_v19 }
  0x60   : > { %1019 = vst [vmem:[%s4333_s29 + $0x4a0] sm:$0xff] %v1018_v20  ;;  %1021 = vst [vmem:[%s4333_s29 + $0x4a8] sm:$0xff] %v1020_v21  ;;  %v1022_v22 = vld [vmem:[%s4328_s28 + $0x960] sm:$0xff]  ;;  %v1024_v23 = vld [vmem:[%s4328_s28 + $0x970] sm:$0xff] }
  0x61   : > { %v1026_v24 = vld [vmem:[%s4328_s28 + $0x980] sm:$0xff]  ;;  %1023 = vst [vmem:[%s4333_s29 + $0x4b0] sm:$0xff] %v1022_v22  ;;  %1025 = vst [vmem:[%s4333_s29 + $0x4b8] sm:$0xff] %v1024_v23  ;;  %v1028_v25 = vld [vmem:[%s4328_s28 + $0x990] sm:$0xff] }
  0x62   : > { %1027 = vst [vmem:[%s4333_s29 + $0x4c0] sm:$0xff] %v1026_v24  ;;  %v1030_v26 = vld [vmem:[%s4328_s28 + $0x9a0] sm:$0xff]  ;;  %v1032_v27 = vld [vmem:[%s4328_s28 + $0x9b0] sm:$0xff]  ;;  %1029 = vst [vmem:[%s4333_s29 + $0x4c8] sm:$0xff] %v1028_v25 }
  0x63   : > { %1031 = vst [vmem:[%s4333_s29 + $0x4d0] sm:$0xff] %v1030_v26  ;;  %1033 = vst [vmem:[%s4333_s29 + $0x4d8] sm:$0xff] %v1032_v27  ;;  %v1034_v28 = vld [vmem:[%s4328_s28 + $0x9c0] sm:$0xff]  ;;  %v1036_v29 = vld [vmem:[%s4328_s28 + $0x9d0] sm:$0xff] }
  0x64   : > { %v1038_v30 = vld [vmem:[%s4328_s28 + $0x9e0] sm:$0xff]  ;;  %1035 = vst [vmem:[%s4333_s29 + $0x4e0] sm:$0xff] %v1034_v28  ;;  %1037 = vst [vmem:[%s4333_s29 + $0x4e8] sm:$0xff] %v1036_v29  ;;  %v1040_v31 = vld [vmem:[%s4328_s28 + $0x9f0] sm:$0xff] }
  0x65   : > { %1039 = vst [vmem:[%s4333_s29 + $0x4f0] sm:$0xff] %v1038_v30  ;;  %v1042_v32 = vld [vmem:[%s4328_s28 + $0xa00] sm:$0xff]  ;;  %v1044_v33 = vld [vmem:[%s4328_s28 + $0xa10] sm:$0xff]  ;;  %1041 = vst [vmem:[%s4333_s29 + $0x4f8] sm:$0xff] %v1040_v31 }
  0x66   : > { %1043 = vst [vmem:[%s4333_s29 + $0x500] sm:$0xff] %v1042_v32  ;;  %1045 = vst [vmem:[%s4333_s29 + $0x508] sm:$0xff] %v1044_v33  ;;  %v1046_v34 = vld [vmem:[%s4328_s28 + $0xa20] sm:$0xff]  ;;  %v1048_v35 = vld [vmem:[%s4328_s28 + $0xa30] sm:$0xff] }
  0x67   : > { %v1050_v36 = vld [vmem:[%s4328_s28 + $0xa40] sm:$0xff]  ;;  %1047 = vst [vmem:[%s4333_s29 + $0x510] sm:$0xff] %v1046_v34  ;;  %1049 = vst [vmem:[%s4333_s29 + $0x518] sm:$0xff] %v1048_v35  ;;  %v1052_v37 = vld [vmem:[%s4328_s28 + $0xa50] sm:$0xff] }
  0x68   : > { %1051 = vst [vmem:[%s4333_s29 + $0x520] sm:$0xff] %v1050_v36  ;;  %v1054_v38 = vld [vmem:[%s4328_s28 + $0xa60] sm:$0xff]  ;;  %v1056_v39 = vld [vmem:[%s4328_s28 + $0xa70] sm:$0xff]  ;;  %1053 = vst [vmem:[%s4333_s29 + $0x528] sm:$0xff] %v1052_v37 }
  0x69   : > { %1055 = vst [vmem:[%s4333_s29 + $0x530] sm:$0xff] %v1054_v38  ;;  %1057 = vst [vmem:[%s4333_s29 + $0x538] sm:$0xff] %v1056_v39  ;;  %v1058_v40 = vld [vmem:[%s4328_s28 + $0xa80] sm:$0xff]  ;;  %v1060_v41 = vld [vmem:[%s4328_s28 + $0xa90] sm:$0xff] }
  0x6a   : > { %v1062_v42 = vld [vmem:[%s4328_s28 + $0xaa0] sm:$0xff]  ;;  %1059 = vst [vmem:[%s4333_s29 + $0x540] sm:$0xff] %v1058_v40  ;;  %1061 = vst [vmem:[%s4333_s29 + $0x548] sm:$0xff] %v1060_v41  ;;  %v1064_v43 = vld [vmem:[%s4328_s28 + $0xab0] sm:$0xff] }
  0x6b   : > { %1063 = vst [vmem:[%s4333_s29 + $0x550] sm:$0xff] %v1062_v42  ;;  %v1066_v44 = vld [vmem:[%s4328_s28 + $0xac0] sm:$0xff]  ;;  %v1068_v45 = vld [vmem:[%s4328_s28 + $0xad0] sm:$0xff]  ;;  %1065 = vst [vmem:[%s4333_s29 + $0x558] sm:$0xff] %v1064_v43 }
  0x6c   : > { %1067 = vst [vmem:[%s4333_s29 + $0x560] sm:$0xff] %v1066_v44  ;;  %1069 = vst [vmem:[%s4333_s29 + $0x568] sm:$0xff] %v1068_v45  ;;  %v1070_v46 = vld [vmem:[%s4328_s28 + $0xae0] sm:$0xff]  ;;  %v1072_v47 = vld [vmem:[%s4328_s28 + $0xaf0] sm:$0xff] }
  0x6d   : > { %v1074_v48 = vld [vmem:[%s4328_s28 + $0xb00] sm:$0xff]  ;;  %1071 = vst [vmem:[%s4333_s29 + $0x570] sm:$0xff] %v1070_v46  ;;  %1073 = vst [vmem:[%s4333_s29 + $0x578] sm:$0xff] %v1072_v47  ;;  %v1076_v49 = vld [vmem:[%s4328_s28 + $0xb10] sm:$0xff] }
  0x6e   : > { %1075 = vst [vmem:[%s4333_s29 + $0x580] sm:$0xff] %v1074_v48  ;;  %v1078_v50 = vld [vmem:[%s4328_s28 + $0xb20] sm:$0xff]  ;;  %v1080_v51 = vld [vmem:[%s4328_s28 + $0xb30] sm:$0xff]  ;;  %1077 = vst [vmem:[%s4333_s29 + $0x588] sm:$0xff] %v1076_v49 }
  0x6f   : > { %1079 = vst [vmem:[%s4333_s29 + $0x590] sm:$0xff] %v1078_v50  ;;  %1081 = vst [vmem:[%s4333_s29 + $0x598] sm:$0xff] %v1080_v51  ;;  %v1082_v52 = vld [vmem:[%s4328_s28 + $0xb40] sm:$0xff]  ;;  %v1084_v53 = vld [vmem:[%s4328_s28 + $0xb50] sm:$0xff] }
  0x70   : > { %v1086_v54 = vld [vmem:[%s4328_s28 + $0xb60] sm:$0xff]  ;;  %1083 = vst [vmem:[%s4333_s29 + $0x5a0] sm:$0xff] %v1082_v52  ;;  %1085 = vst [vmem:[%s4333_s29 + $0x5a8] sm:$0xff] %v1084_v53  ;;  %v1088_v55 = vld [vmem:[%s4328_s28 + $0xb70] sm:$0xff] }
  0x71   : > { %1087 = vst [vmem:[%s4333_s29 + $0x5b0] sm:$0xff] %v1086_v54  ;;  %v1090_v56 = vld [vmem:[%s4328_s28 + $0xb80] sm:$0xff]  ;;  %v1092_v57 = vld [vmem:[%s4328_s28 + $0xb90] sm:$0xff]  ;;  %1089 = vst [vmem:[%s4333_s29 + $0x5b8] sm:$0xff] %v1088_v55 }
  0x72   : > { %1091 = vst [vmem:[%s4333_s29 + $0x5c0] sm:$0xff] %v1090_v56  ;;  %1093 = vst [vmem:[%s4333_s29 + $0x5c8] sm:$0xff] %v1092_v57  ;;  %v1094_v58 = vld [vmem:[%s4328_s28 + $0xba0] sm:$0xff]  ;;  %v1096_v59 = vld [vmem:[%s4328_s28 + $0xbb0] sm:$0xff] }
  0x73   : > { %v1098_v60 = vld [vmem:[%s4328_s28 + $0xbc0] sm:$0xff]  ;;  %1095 = vst [vmem:[%s4333_s29 + $0x5d0] sm:$0xff] %v1094_v58  ;;  %1097 = vst [vmem:[%s4333_s29 + $0x5d8] sm:$0xff] %v1096_v59  ;;  %v1100_v61 = vld [vmem:[%s4328_s28 + $0xbd0] sm:$0xff] }
  0x74   : > { %1099 = vst [vmem:[%s4333_s29 + $0x5e0] sm:$0xff] %v1098_v60  ;;  %v1102_v62 = vld [vmem:[%s4328_s28 + $0xbe0] sm:$0xff]  ;;  %v1104_v63 = vld [vmem:[%s4328_s28 + $0xbf0] sm:$0xff]  ;;  %1101 = vst [vmem:[%s4333_s29 + $0x5e8] sm:$0xff] %v1100_v61 }
  0x75   : > { %1103 = vst [vmem:[%s4333_s29 + $0x5f0] sm:$0xff] %v1102_v62  ;;  %1105 = vst [vmem:[%s4333_s29 + $0x5f8] sm:$0xff] %v1104_v63  ;;  %v1106_v0 = vld [vmem:[%s4328_s28 + $0xc00] sm:$0xff]  ;;  %v1108_v1 = vld [vmem:[%s4328_s28 + $0xc10] sm:$0xff] }
  0x76   : > { %v1110_v2 = vld [vmem:[%s4328_s28 + $0xc20] sm:$0xff]  ;;  %1107 = vst [vmem:[%s4333_s29 + $0x600] sm:$0xff] %v1106_v0  ;;  %1109 = vst [vmem:[%s4333_s29 + $0x608] sm:$0xff] %v1108_v1  ;;  %v1112_v3 = vld [vmem:[%s4328_s28 + $0xc30] sm:$0xff] }
  0x77   : > { %1111 = vst [vmem:[%s4333_s29 + $0x610] sm:$0xff] %v1110_v2  ;;  %v1114_v4 = vld [vmem:[%s4328_s28 + $0xc40] sm:$0xff]  ;;  %v1116_v5 = vld [vmem:[%s4328_s28 + $0xc50] sm:$0xff]  ;;  %1113 = vst [vmem:[%s4333_s29 + $0x618] sm:$0xff] %v1112_v3 }
  0x78   : > { %1115 = vst [vmem:[%s4333_s29 + $0x620] sm:$0xff] %v1114_v4  ;;  %1117 = vst [vmem:[%s4333_s29 + $0x628] sm:$0xff] %v1116_v5  ;;  %v1118_v6 = vld [vmem:[%s4328_s28 + $0xc60] sm:$0xff]  ;;  %v1120_v7 = vld [vmem:[%s4328_s28 + $0xc70] sm:$0xff] }
  0x79   : > { %v1122_v8 = vld [vmem:[%s4328_s28 + $0xc80] sm:$0xff]  ;;  %1119 = vst [vmem:[%s4333_s29 + $0x630] sm:$0xff] %v1118_v6  ;;  %1121 = vst [vmem:[%s4333_s29 + $0x638] sm:$0xff] %v1120_v7  ;;  %v1124_v9 = vld [vmem:[%s4328_s28 + $0xc90] sm:$0xff] }
  0x7a   : > { %1123 = vst [vmem:[%s4333_s29 + $0x640] sm:$0xff] %v1122_v8  ;;  %v1126_v10 = vld [vmem:[%s4328_s28 + $0xca0] sm:$0xff]  ;;  %v1128_v11 = vld [vmem:[%s4328_s28 + $0xcb0] sm:$0xff]  ;;  %1125 = vst [vmem:[%s4333_s29 + $0x648] sm:$0xff] %v1124_v9 }
  0x7b   : > { %1127 = vst [vmem:[%s4333_s29 + $0x650] sm:$0xff] %v1126_v10  ;;  %1129 = vst [vmem:[%s4333_s29 + $0x658] sm:$0xff] %v1128_v11  ;;  %v1130_v12 = vld [vmem:[%s4328_s28 + $0xcc0] sm:$0xff]  ;;  %v1132_v13 = vld [vmem:[%s4328_s28 + $0xcd0] sm:$0xff] }
  0x7c   : > { %v1134_v14 = vld [vmem:[%s4328_s28 + $0xce0] sm:$0xff]  ;;  %1131 = vst [vmem:[%s4333_s29 + $0x660] sm:$0xff] %v1130_v12  ;;  %1133 = vst [vmem:[%s4333_s29 + $0x668] sm:$0xff] %v1132_v13  ;;  %v1136_v15 = vld [vmem:[%s4328_s28 + $0xcf0] sm:$0xff] }
  0x7d   : > { %1135 = vst [vmem:[%s4333_s29 + $0x670] sm:$0xff] %v1134_v14  ;;  %v1138_v16 = vld [vmem:[%s4328_s28 + $0xd00] sm:$0xff]  ;;  %v1140_v17 = vld [vmem:[%s4328_s28 + $0xd10] sm:$0xff]  ;;  %1137 = vst [vmem:[%s4333_s29 + $0x678] sm:$0xff] %v1136_v15 }
  0x7e   : > { %1139 = vst [vmem:[%s4333_s29 + $0x680] sm:$0xff] %v1138_v16  ;;  %1141 = vst [vmem:[%s4333_s29 + $0x688] sm:$0xff] %v1140_v17  ;;  %v1142_v18 = vld [vmem:[%s4328_s28 + $0xd20] sm:$0xff]  ;;  %v1144_v19 = vld [vmem:[%s4328_s28 + $0xd30] sm:$0xff] }
  0x7f   : > { %v1146_v20 = vld [vmem:[%s4328_s28 + $0xd40] sm:$0xff]  ;;  %1143 = vst [vmem:[%s4333_s29 + $0x690] sm:$0xff] %v1142_v18  ;;  %1145 = vst [vmem:[%s4333_s29 + $0x698] sm:$0xff] %v1144_v19  ;;  %v1148_v21 = vld [vmem:[%s4328_s28 + $0xd50] sm:$0xff] }
  0x80   : > { %1147 = vst [vmem:[%s4333_s29 + $0x6a0] sm:$0xff] %v1146_v20  ;;  %v1150_v22 = vld [vmem:[%s4328_s28 + $0xd60] sm:$0xff]  ;;  %v1152_v23 = vld [vmem:[%s4328_s28 + $0xd70] sm:$0xff]  ;;  %1149 = vst [vmem:[%s4333_s29 + $0x6a8] sm:$0xff] %v1148_v21 }
  0x81   : > { %1151 = vst [vmem:[%s4333_s29 + $0x6b0] sm:$0xff] %v1150_v22  ;;  %1153 = vst [vmem:[%s4333_s29 + $0x6b8] sm:$0xff] %v1152_v23  ;;  %v1154_v24 = vld [vmem:[%s4328_s28 + $0xd80] sm:$0xff]  ;;  %v1156_v25 = vld [vmem:[%s4328_s28 + $0xd90] sm:$0xff] }
  0x82   : > { %v1158_v26 = vld [vmem:[%s4328_s28 + $0xda0] sm:$0xff]  ;;  %1155 = vst [vmem:[%s4333_s29 + $0x6c0] sm:$0xff] %v1154_v24  ;;  %1157 = vst [vmem:[%s4333_s29 + $0x6c8] sm:$0xff] %v1156_v25  ;;  %v1160_v27 = vld [vmem:[%s4328_s28 + $0xdb0] sm:$0xff] }
  0x83   : > { %1159 = vst [vmem:[%s4333_s29 + $0x6d0] sm:$0xff] %v1158_v26  ;;  %v1162_v28 = vld [vmem:[%s4328_s28 + $0xdc0] sm:$0xff]  ;;  %v1164_v29 = vld [vmem:[%s4328_s28 + $0xdd0] sm:$0xff]  ;;  %1161 = vst [vmem:[%s4333_s29 + $0x6d8] sm:$0xff] %v1160_v27 }
  0x84   : > { %1163 = vst [vmem:[%s4333_s29 + $0x6e0] sm:$0xff] %v1162_v28  ;;  %1165 = vst [vmem:[%s4333_s29 + $0x6e8] sm:$0xff] %v1164_v29  ;;  %v1166_v30 = vld [vmem:[%s4328_s28 + $0xde0] sm:$0xff]  ;;  %v1168_v31 = vld [vmem:[%s4328_s28 + $0xdf0] sm:$0xff] }
  0x85   : > { %v1170_v32 = vld [vmem:[%s4328_s28 + $0xe00] sm:$0xff]  ;;  %1167 = vst [vmem:[%s4333_s29 + $0x6f0] sm:$0xff] %v1166_v30  ;;  %1169 = vst [vmem:[%s4333_s29 + $0x6f8] sm:$0xff] %v1168_v31  ;;  %v1172_v33 = vld [vmem:[%s4328_s28 + $0xe10] sm:$0xff] }
  0x86   : > { %1171 = vst [vmem:[%s4333_s29 + $0x700] sm:$0xff] %v1170_v32  ;;  %v1174_v34 = vld [vmem:[%s4328_s28 + $0xe20] sm:$0xff]  ;;  %v1176_v35 = vld [vmem:[%s4328_s28 + $0xe30] sm:$0xff]  ;;  %1173 = vst [vmem:[%s4333_s29 + $0x708] sm:$0xff] %v1172_v33 }
  0x87   : > { %1175 = vst [vmem:[%s4333_s29 + $0x710] sm:$0xff] %v1174_v34  ;;  %1177 = vst [vmem:[%s4333_s29 + $0x718] sm:$0xff] %v1176_v35  ;;  %v1178_v36 = vld [vmem:[%s4328_s28 + $0xe40] sm:$0xff]  ;;  %v1180_v37 = vld [vmem:[%s4328_s28 + $0xe50] sm:$0xff] }
  0x88   : > { %v1182_v38 = vld [vmem:[%s4328_s28 + $0xe60] sm:$0xff]  ;;  %1179 = vst [vmem:[%s4333_s29 + $0x720] sm:$0xff] %v1178_v36  ;;  %1181 = vst [vmem:[%s4333_s29 + $0x728] sm:$0xff] %v1180_v37  ;;  %v1184_v39 = vld [vmem:[%s4328_s28 + $0xe70] sm:$0xff] }
  0x89   : > { %1183 = vst [vmem:[%s4333_s29 + $0x730] sm:$0xff] %v1182_v38  ;;  %v1186_v40 = vld [vmem:[%s4328_s28 + $0xe80] sm:$0xff]  ;;  %v1188_v41 = vld [vmem:[%s4328_s28 + $0xe90] sm:$0xff]  ;;  %1185 = vst [vmem:[%s4333_s29 + $0x738] sm:$0xff] %v1184_v39 }
  0x8a   : > { %1187 = vst [vmem:[%s4333_s29 + $0x740] sm:$0xff] %v1186_v40  ;;  %1189 = vst [vmem:[%s4333_s29 + $0x748] sm:$0xff] %v1188_v41  ;;  %v1190_v42 = vld [vmem:[%s4328_s28 + $0xea0] sm:$0xff]  ;;  %v1192_v43 = vld [vmem:[%s4328_s28 + $0xeb0] sm:$0xff] }
  0x8b   : > { %v1194_v44 = vld [vmem:[%s4328_s28 + $0xec0] sm:$0xff]  ;;  %1191 = vst [vmem:[%s4333_s29 + $0x750] sm:$0xff] %v1190_v42  ;;  %1193 = vst [vmem:[%s4333_s29 + $0x758] sm:$0xff] %v1192_v43  ;;  %v1196_v45 = vld [vmem:[%s4328_s28 + $0xed0] sm:$0xff] }
  0x8c   : > { %1195 = vst [vmem:[%s4333_s29 + $0x760] sm:$0xff] %v1194_v44  ;;  %v1198_v46 = vld [vmem:[%s4328_s28 + $0xee0] sm:$0xff]  ;;  %v1200_v47 = vld [vmem:[%s4328_s28 + $0xef0] sm:$0xff]  ;;  %1197 = vst [vmem:[%s4333_s29 + $0x768] sm:$0xff] %v1196_v45 }
  0x8d   : > { %1199 = vst [vmem:[%s4333_s29 + $0x770] sm:$0xff] %v1198_v46  ;;  %1201 = vst [vmem:[%s4333_s29 + $0x778] sm:$0xff] %v1200_v47  ;;  %v1202_v48 = vld [vmem:[%s4328_s28 + $0xf00] sm:$0xff]  ;;  %v1204_v49 = vld [vmem:[%s4328_s28 + $0xf10] sm:$0xff] }
  0x8e   : > { %v1206_v50 = vld [vmem:[%s4328_s28 + $0xf20] sm:$0xff]  ;;  %1203 = vst [vmem:[%s4333_s29 + $0x780] sm:$0xff] %v1202_v48  ;;  %1205 = vst [vmem:[%s4333_s29 + $0x788] sm:$0xff] %v1204_v49  ;;  %v1208_v51 = vld [vmem:[%s4328_s28 + $0xf30] sm:$0xff] }
  0x8f   : > { %1207 = vst [vmem:[%s4333_s29 + $0x790] sm:$0xff] %v1206_v50  ;;  %v1210_v52 = vld [vmem:[%s4328_s28 + $0xf40] sm:$0xff]  ;;  %v1212_v53 = vld [vmem:[%s4328_s28 + $0xf50] sm:$0xff]  ;;  %1209 = vst [vmem:[%s4333_s29 + $0x798] sm:$0xff] %v1208_v51 }
  0x90   : > { %1211 = vst [vmem:[%s4333_s29 + $0x7a0] sm:$0xff] %v1210_v52  ;;  %1213 = vst [vmem:[%s4333_s29 + $0x7a8] sm:$0xff] %v1212_v53  ;;  %v1214_v54 = vld [vmem:[%s4328_s28 + $0xf60] sm:$0xff]  ;;  %v1216_v55 = vld [vmem:[%s4328_s28 + $0xf70] sm:$0xff] }
  0x91   : > { %v1218_v56 = vld [vmem:[%s4328_s28 + $0xf80] sm:$0xff]  ;;  %1215 = vst [vmem:[%s4333_s29 + $0x7b0] sm:$0xff] %v1214_v54  ;;  %1217 = vst [vmem:[%s4333_s29 + $0x7b8] sm:$0xff] %v1216_v55  ;;  %v1220_v57 = vld [vmem:[%s4328_s28 + $0xf90] sm:$0xff] }
  0x92   : > { %1219 = vst [vmem:[%s4333_s29 + $0x7c0] sm:$0xff] %v1218_v56  ;;  %v1222_v58 = vld [vmem:[%s4328_s28 + $0xfa0] sm:$0xff]  ;;  %v1224_v59 = vld [vmem:[%s4328_s28 + $0xfb0] sm:$0xff]  ;;  %1221 = vst [vmem:[%s4333_s29 + $0x7c8] sm:$0xff] %v1220_v57 }
  0x93   : > { %1223 = vst [vmem:[%s4333_s29 + $0x7d0] sm:$0xff] %v1222_v58  ;;  %1225 = vst [vmem:[%s4333_s29 + $0x7d8] sm:$0xff] %v1224_v59  ;;  %v1226_v60 = vld [vmem:[%s4328_s28 + $0xfc0] sm:$0xff]  ;;  %v1228_v61 = vld [vmem:[%s4328_s28 + $0xfd0] sm:$0xff] }
  0x94   : > { %v1230_v62 = vld [vmem:[%s4328_s28 + $0xfe0] sm:$0xff]  ;;  %1227 = vst [vmem:[%s4333_s29 + $0x7e0] sm:$0xff] %v1226_v60  ;;  %1229 = vst [vmem:[%s4333_s29 + $0x7e8] sm:$0xff] %v1228_v61  ;;  %v1232_v63 = vld [vmem:[%s4328_s28 + $0xff0] sm:$0xff] }
  0x95   : > { %1231 = vst [vmem:[%s4333_s29 + $0x7f0] sm:$0xff] %v1230_v62  ;;  %1233 = vst [vmem:[%s4333_s29 + $0x7f8] sm:$0xff] %v1232_v63 }
  0x96 PF: > { %p3477_p8 = scmp.ge.s32.totalorder %s4258_s16, 1  ;;  %p1246_p9 = scmp.lt.s32.totalorder %s4258_s16, 3 }
  0x98   : > { %p1247_p10 = pnand %p3477_p8, %p1246_p9 }
  0x99   : > { %s1253_s30 = sand.u32 (!%p1247_p10), 1, %s4242_s12   ;;  %v4850_v0 = vld [vmem:[%s5252_s0] sm:$0xff] (!%p1247_p10)  ;;  %s3480_s29 = sshll.u32 (!%p1247_p10), %s4250_s14, 1 }
  0x9a   : > { %1250 = sbr.rel (%p1247_p10) target bundleno = 647 (0x287), region = 66  ;;  %v4855_v1 = vld [vmem:[%s5252_s0 + $0x40] sm:$0xff] (!%p1247_p10)  ;;  %s3478_s10 = sshll.u32 (!%p1247_p10), %s1253_s30, 11 }
  0x9b   : > { %v4860_v2 = vld [vmem:[%s5252_s0 + $0x20] sm:$0xff] (!%p1247_p10)  ;;  %v3481_v3 = vcombine.low (!%p1247_p10), %v4850_v0, %v4855_v1  ;;  %v3482_v4 = vcombine.high (!%p1247_p10), %v4850_v0, %v4855_v1  ;;  %s4877_s19 = scalar_lea.vmem (!%p1247_p10), [#allocation2], %s3478_s10  ;;  %p1304_p11 = scmp.lt.s32.totalorder (!%p1247_p10), %s3480_s29, 3 }
  0x9c   : > { %v4871_v5 = vld [vmem:[%s5252_s0 + $0x60] sm:$0xff] (!%p1247_p10)  ;;  %v3842_v12 = vld [vmem:[%s4877_s19 + $0x14] ss:$8 sps:$4 sm:$0xff] (!%p1247_p10)   ;;  %v3846_v14 = vld [vmem:[%s4877_s19 + $0x10] ss:$8 sps:$4 sm:$0xff] (!%p1247_p10)   ;;  %s3479_s6 = sshll.u32 (!%p1247_p10), %s1253_s30, 4 }
  0x9d   : > { %v3489_v6 = vcombine.low (!%p1247_p10), %v4860_v2, %v4871_v5  ;;  %v3490_v7 = vcombine.high (!%p1247_p10), %v4860_v2, %v4871_v5  ;;  %v3836_v8 = vld [vmem:[%s4877_s19 + $0x4] ss:$8 sps:$4 sm:$0xff] (!%p1247_p10)   ;;  %2986 = vmatprep.mubr.bf16.mxu1 (!%p1247_p10), %v3482_v4  ;;  %v3840_v10 = vld [vmem:[%s4877_s19] ss:$8 sps:$4 sm:$0xff] (!%p1247_p10)   ;;  %v3844_v13 = vld [vmem:[%s4877_s19 + $0x414] ss:$8 sps:$4 sm:$0xff] (!%p1247_p10)  }
  0x9e   : > { %v3838_v9 = vld [vmem:[%s4877_s19 + $0x404] ss:$8 sps:$4 sm:$0xff] (!%p1247_p10)   ;;  %2954 = vmatprep.subr.bf16.mxu1 (!%p1247_p10), %v3836_v8  ;;  %v3841_v11 = vld [vmem:[%s4877_s19 + $0x400] ss:$8 sps:$4 sm:$0xff] (!%p1247_p10)   ;;  %v3847_v15 = vld [vmem:[%s4877_s19 + $0x410] ss:$8 sps:$4 sm:$0xff] (!%p1247_p10)  }
  0x9f   : > { %3158 = vmatprep.mubr.bf16.mxu0 (!%p1247_p10), %v3490_v7  ;;  %3126 = vmatprep.subr.bf16.mxu0 (!%p1247_p10), %v3838_v9  ;;  %v3848_v16 = vld [vmem:[%s4877_s19 + $0x24] ss:$8 sps:$4 sm:$0xff] (!%p1247_p10)   ;;  %v3852_v18 = vld [vmem:[%s4877_s19 + $0x20] ss:$8 sps:$4 sm:$0xff] (!%p1247_p10)   ;;  %v3854_v20 = vld [vmem:[%s4877_s19 + $0x34] ss:$8 sps:$4 sm:$0xff] (!%p1247_p10)  }
  0xa0   : > { %2955 = vmatpush1.bf16.msra.mxu1 (!%p1247_p10), %v3840_v10  ;;  %3127 = vmatpush1.bf16.msra.mxu0 (!%p1247_p10), %v3841_v11  ;;  %v3850_v17 = vld [vmem:[%s4877_s19 + $0x424] ss:$8 sps:$4 sm:$0xff] (!%p1247_p10)   ;;  %v3853_v19 = vld [vmem:[%s4877_s19 + $0x420] ss:$8 sps:$4 sm:$0xff] (!%p1247_p10)   ;;  %v3856_v21 = vld [vmem:[%s4877_s19 + $0x434] ss:$8 sps:$4 sm:$0xff] (!%p1247_p10)  }
  0xa1   : > { %2956 = vmatprep.subr.bf16.mxu1 %v3842_v12  ;;  %3128 = vmatprep.subr.bf16.mxu0 %v3844_v13  ;;  %v3858_v22 = vld [vmem:[%s4877_s19 + $0x30] ss:$8 sps:$4 sm:$0xff]   ;;  %v3860_v24 = vld [vmem:[%s4877_s19 + $0x44] ss:$8 sps:$4 sm:$0xff]   ;;  %v3864_v26 = vld [vmem:[%s4877_s19 + $0x40] ss:$8 sps:$4 sm:$0xff]  }
  0xa2   : > { %v3859_v23 = vld [vmem:[%s4877_s19 + $0x430] ss:$8 sps:$4 sm:$0xff]   ;;  %v3862_v25 = vld [vmem:[%s4877_s19 + $0x444] ss:$8 sps:$4 sm:$0xff]   ;;  %v3865_v27 = vld [vmem:[%s4877_s19 + $0x440] ss:$8 sps:$4 sm:$0xff]  }
  0xa3   : > { %v3866_v28 = vld [vmem:[%s4877_s19 + $0x54] ss:$8 sps:$4 sm:$0xff]   ;;  %v3870_v30 = vld [vmem:[%s4877_s19 + $0x50] ss:$8 sps:$4 sm:$0xff]   ;;  %v3872_v32 = vld [vmem:[%s4877_s19 + $0x64] ss:$8 sps:$4 sm:$0xff]  }
  0xa4   : > { %2957 = vmatpush1.bf16.msra.mxu1 %v3846_v14  ;;  %3129 = vmatpush1.bf16.msra.mxu0 %v3847_v15  ;;  %v3868_v29 = vld [vmem:[%s4877_s19 + $0x454] ss:$8 sps:$4 sm:$0xff]   ;;  %v3871_v31 = vld [vmem:[%s4877_s19 + $0x450] ss:$8 sps:$4 sm:$0xff]   ;;  %v3874_v33 = vld [vmem:[%s4877_s19 + $0x464] ss:$8 sps:$4 sm:$0xff]  }
  0xa5   : > { %2958 = vmatprep.subr.bf16.mxu1 %v3848_v16  ;;  %3130 = vmatprep.subr.bf16.mxu0 %v3850_v17  ;;  %v3876_v34 = vld [vmem:[%s4877_s19 + $0x60] ss:$8 sps:$4 sm:$0xff]   ;;  %v3878_v36 = vld [vmem:[%s4877_s19 + $0x74] ss:$8 sps:$4 sm:$0xff]   ;;  %v3882_v38 = vld [vmem:[%s4877_s19 + $0x70] ss:$8 sps:$4 sm:$0xff]  }
  0xa6   : > { %v3877_v35 = vld [vmem:[%s4877_s19 + $0x460] ss:$8 sps:$4 sm:$0xff]   ;;  %v3880_v37 = vld [vmem:[%s4877_s19 + $0x474] ss:$8 sps:$4 sm:$0xff]   ;;  %v3883_v39 = vld [vmem:[%s4877_s19 + $0x470] ss:$8 sps:$4 sm:$0xff]  }
  0xa7   : > { %v3884_v40 = vld [vmem:[%s4877_s19 + $0x84] ss:$8 sps:$4 sm:$0xff]   ;;  %v3888_v42 = vld [vmem:[%s4877_s19 + $0x80] ss:$8 sps:$4 sm:$0xff]   ;;  %v3890_v44 = vld [vmem:[%s4877_s19 + $0x94] ss:$8 sps:$4 sm:$0xff]  }
  0xa8   : > { %2959 = vmatpush1.bf16.msra.mxu1 %v3852_v18  ;;  %3131 = vmatpush1.bf16.msra.mxu0 %v3853_v19  ;;  %v3886_v41 = vld [vmem:[%s4877_s19 + $0x484] ss:$8 sps:$4 sm:$0xff]   ;;  %v3889_v43 = vld [vmem:[%s4877_s19 + $0x480] ss:$8 sps:$4 sm:$0xff]   ;;  %v3892_v45 = vld [vmem:[%s4877_s19 + $0x494] ss:$8 sps:$4 sm:$0xff]  }
  0xa9   : > { %2960 = vmatprep.subr.bf16.mxu1 %v3854_v20  ;;  %3132 = vmatprep.subr.bf16.mxu0 %v3856_v21  ;;  %v3894_v46 = vld [vmem:[%s4877_s19 + $0x90] ss:$8 sps:$4 sm:$0xff]   ;;  %v3896_v48 = vld [vmem:[%s4877_s19 + $0xa4] ss:$8 sps:$4 sm:$0xff]   ;;  %v3900_v50 = vld [vmem:[%s4877_s19 + $0xa0] ss:$8 sps:$4 sm:$0xff]  }
  0xaa   : > { %v3895_v47 = vld [vmem:[%s4877_s19 + $0x490] ss:$8 sps:$4 sm:$0xff]   ;;  %v3898_v49 = vld [vmem:[%s4877_s19 + $0x4a4] ss:$8 sps:$4 sm:$0xff]   ;;  %v3901_v51 = vld [vmem:[%s4877_s19 + $0x4a0] ss:$8 sps:$4 sm:$0xff]  }
  0xab   : > { %v3902_v52 = vld [vmem:[%s4877_s19 + $0xb4] ss:$8 sps:$4 sm:$0xff]   ;;  %v3906_v54 = vld [vmem:[%s4877_s19 + $0xb0] ss:$8 sps:$4 sm:$0xff]   ;;  %v3908_v56 = vld [vmem:[%s4877_s19 + $0xc4] ss:$8 sps:$4 sm:$0xff]  }
  0xac   : > { %2961 = vmatpush1.bf16.msra.mxu1 %v3858_v22  ;;  %3133 = vmatpush1.bf16.msra.mxu0 %v3859_v23  ;;  %v3904_v53 = vld [vmem:[%s4877_s19 + $0x4b4] ss:$8 sps:$4 sm:$0xff]   ;;  %v3907_v55 = vld [vmem:[%s4877_s19 + $0x4b0] ss:$8 sps:$4 sm:$0xff]   ;;  %v3910_v57 = vld [vmem:[%s4877_s19 + $0x4c4] ss:$8 sps:$4 sm:$0xff]  }
  0xad   : > { %2962 = vmatprep.subr.bf16.mxu1 %v3860_v24  ;;  %3134 = vmatprep.subr.bf16.mxu0 %v3862_v25  ;;  %v3912_v58 = vld [vmem:[%s4877_s19 + $0xc0] ss:$8 sps:$4 sm:$0xff]   ;;  %v3914_v60 = vld [vmem:[%s4877_s19 + $0xd4] ss:$8 sps:$4 sm:$0xff]   ;;  %v3918_v62 = vld [vmem:[%s4877_s19 + $0xd0] ss:$8 sps:$4 sm:$0xff]  }
  0xae   : > { %v3913_v59 = vld [vmem:[%s4877_s19 + $0x4c0] ss:$8 sps:$4 sm:$0xff]   ;;  %v3916_v61 = vld [vmem:[%s4877_s19 + $0x4d4] ss:$8 sps:$4 sm:$0xff]   ;;  %v3919_v63 = vld [vmem:[%s4877_s19 + $0x4d0] ss:$8 sps:$4 sm:$0xff]  }
  0xaf   : > { %v3920_v4 = vld [vmem:[%s4877_s19 + $0xe4] ss:$8 sps:$4 sm:$0xff]   ;;  %v3924_v8 = vld [vmem:[%s4877_s19 + $0xe0] ss:$8 sps:$4 sm:$0xff]   ;;  %v3926_v10 = vld [vmem:[%s4877_s19 + $0xf4] ss:$8 sps:$4 sm:$0xff]  }
  0xb0   : > { %2963 = vmatpush1.bf16.msra.mxu1 %v3864_v26  ;;  %3135 = vmatpush1.bf16.msra.mxu0 %v3865_v27  ;;  %v3922_v7 = vld [vmem:[%s4877_s19 + $0x4e4] ss:$8 sps:$4 sm:$0xff]   ;;  %v3925_v9 = vld [vmem:[%s4877_s19 + $0x4e0] ss:$8 sps:$4 sm:$0xff]   ;;  %v3928_v11 = vld [vmem:[%s4877_s19 + $0x4f4] ss:$8 sps:$4 sm:$0xff]  }
  0xb1   : > { %2964 = vmatprep.subr.bf16.mxu1 %v3866_v28  ;;  %3136 = vmatprep.subr.bf16.mxu0 %v3868_v29  ;;  %v3930_v12 = vld [vmem:[%s4877_s19 + $0xf0] ss:$8 sps:$4 sm:$0xff]   ;;  %v3934_v14 = vld [vmem:[%s4877_s19 + $0x104] ss:$8 sps:$4 sm:$0xff]   ;;  %v3932_v16 = vld [vmem:[%s4877_s19 + $0x100] ss:$8 sps:$4 sm:$0xff]  }
  0xb2   : > { %v3931_v13 = vld [vmem:[%s4877_s19 + $0x4f0] ss:$8 sps:$4 sm:$0xff]   ;;  %v3937_v15 = vld [vmem:[%s4877_s19 + $0x504] ss:$8 sps:$4 sm:$0xff]   ;;  %v3935_v17 = vld [vmem:[%s4877_s19 + $0x500] ss:$8 sps:$4 sm:$0xff]  }
  0xb3   : > { %v3940_v18 = vld [vmem:[%s4877_s19 + $0x114] ss:$8 sps:$4 sm:$0xff]   ;;  %v3938_v20 = vld [vmem:[%s4877_s19 + $0x110] ss:$8 sps:$4 sm:$0xff]   ;;  %v3946_v22 = vld [vmem:[%s4877_s19 + $0x124] ss:$8 sps:$4 sm:$0xff]  }
  0xb4   : > { %2965 = vmatpush1.bf16.msra.mxu1 %v3870_v30  ;;  %3137 = vmatpush1.bf16.msra.mxu0 %v3871_v31  ;;  %v3943_v19 = vld [vmem:[%s4877_s19 + $0x514] ss:$8 sps:$4 sm:$0xff]   ;;  %v3941_v21 = vld [vmem:[%s4877_s19 + $0x510] ss:$8 sps:$4 sm:$0xff]   ;;  %v3949_v23 = vld [vmem:[%s4877_s19 + $0x524] ss:$8 sps:$4 sm:$0xff]  }
  0xb5   : > { %2966 = vmatprep.subr.bf16.mxu1 %v3872_v32  ;;  %3138 = vmatprep.subr.bf16.mxu0 %v3874_v33  ;;  %v3944_v24 = vld [vmem:[%s4877_s19 + $0x120] ss:$8 sps:$4 sm:$0xff]   ;;  %v3952_v1 = vld [vmem:[%s4877_s19 + $0x134] ss:$8 sps:$4 sm:$0xff]   ;;  %v3953_v5 = vld [vmem:[%s4877_s19 + $0x530] ss:$8 sps:$4 sm:$0xff]  }
  0xb6   : > { %v3947_v0 = vld [vmem:[%s4877_s19 + $0x520] ss:$8 sps:$4 sm:$0xff]   ;;  %v3955_v2 = vld [vmem:[%s4877_s19 + $0x534] ss:$8 sps:$4 sm:$0xff]   ;;  %v3961_v25 = vld [vmem:[%s4877_s19 + $0x544] ss:$8 sps:$4 sm:$0xff]  }
  0xb7   : > { %v3956_v26 = vld [vmem:[%s4877_s19 + $0x140] ss:$8 sps:$4 sm:$0xff]   ;;  %v3964_v28 = vld [vmem:[%s4877_s19 + $0x154] ss:$8 sps:$4 sm:$0xff]   ;;  %v3962_v30 = vld [vmem:[%s4877_s19 + $0x150] ss:$8 sps:$4 sm:$0xff]  }
  0xb8   : > { %2967 = vmatpush1.bf16.msra.mxu1 %v3876_v34  ;;  %3139 = vmatpush1.bf16.msra.mxu0 %v3877_v35  ;;  %v3959_v27 = vld [vmem:[%s4877_s19 + $0x540] ss:$8 sps:$4 sm:$0xff]   ;;  %v3967_v29 = vld [vmem:[%s4877_s19 + $0x554] ss:$8 sps:$4 sm:$0xff]   ;;  %v3965_v31 = vld [vmem:[%s4877_s19 + $0x550] ss:$8 sps:$4 sm:$0xff]  }
  0xb9   : > { %2968 = vmatprep.subr.bf16.mxu1 %v3878_v36  ;;  %3140 = vmatprep.subr.bf16.mxu0 %v3880_v37  ;;  %v3970_v32 = vld [vmem:[%s4877_s19 + $0x164] ss:$8 sps:$4 sm:$0xff]   ;;  %v3968_v36 = vld [vmem:[%s4877_s19 + $0x160] ss:$8 sps:$4 sm:$0xff]   ;;  %s5264_s29 = smov (!%p1304_p11, %s3480_s29), 3  ;;  %s1288_s7 = scalar_lea.vmem [#allocation3], %s3479_s6 }
  0xba   : > { %v3973_v33 = vld [vmem:[%s4877_s19 + $0x564] ss:$8 sps:$4 sm:$0xff]   ;;  %s3763_s8 = sshll.u32 (%p4315_p6), %s4250_s14, 3 }
  0xbb   : > { %v4978_v34 = vld [vmem:[%s5252_s0 + $0x8] sm:$0xff]  ;;  %s3328_s9 = scalar_lea.vmem (%p4315_p6), %s5255_s3, %s3763_s8 }
  0xbc   : > { %2969 = vmatpush1.bf16.msra.mxu1 %v3882_v38  ;;  %3141 = vmatpush1.bf16.msra.mxu0 %v3883_v39  ;;  %v4983_v35 = vld [vmem:[%s5252_s0 + $0x48] sm:$0xff] }
  0xbd   : > { %2970 = vmatprep.subr.bf16.mxu1 %v3884_v40  ;;  %3142 = vmatprep.subr.bf16.mxu0 %v3886_v41  ;;  %v3484_v37 = vcombine.high %v4978_v34, %v4983_v35  ;;  %v3971_v38 = vld [vmem:[%s4877_s19 + $0x560] ss:$8 sps:$4 sm:$0xff]   ;;  %v3976_v41 = vld [vmem:[%s4877_s19 + $0x174] ss:$8 sps:$4 sm:$0xff]  }
  0xbe   : > { %v4992_v39 = vld [vmem:[%s5252_s0 + $0x28] sm:$0xff] }
  0xbf   : > { %v4997_v40 = vld [vmem:[%s5252_s0 + $0x68] sm:$0xff] }
  0xc0   : > { %2971 = vmatpush1.bf16.msra.mxu1 %v3888_v42  ;;  %3143 = vmatpush1.bf16.msra.mxu0 %v3889_v43  ;;  %v3492_v42 = vcombine.high %v4992_v39, %v4997_v40  ;;  %v3979_v43 = vld [vmem:[%s4877_s19 + $0x574] ss:$8 sps:$4 sm:$0xff]  }
  0xc1   : > { %2972 = vmatprep.subr.bf16.mxu1 %v3890_v44  ;;  %3144 = vmatprep.subr.bf16.mxu0 %v3892_v45  ;;  %v3974_v44 = vld [vmem:[%s4877_s19 + $0x170] ss:$8 sps:$4 sm:$0xff]  }
  0xc2   : > { %v3977_v45 = vld [vmem:[%s4877_s19 + $0x570] ss:$8 sps:$4 sm:$0xff]  }
  0xc4   : > { %2973 = vmatpush1.bf16.msra.mxu1 %v3894_v46  ;;  %3145 = vmatpush1.bf16.msra.mxu0 %v3895_v47  ;;  %v3982_v46 = vld [vmem:[%s4877_s19 + $0x184] ss:$8 sps:$4 sm:$0xff]  }
  0xc5   : > { %2974 = vmatprep.subr.bf16.mxu1 %v3896_v48  ;;  %3146 = vmatprep.subr.bf16.mxu0 %v3898_v49  ;;  %v3985_v47 = vld [vmem:[%s4877_s19 + $0x584] ss:$8 sps:$4 sm:$0xff]   ;;  %v3980_v48 = vld [vmem:[%s4877_s19 + $0x180] ss:$8 sps:$4 sm:$0xff]  }
  0xc6   : > { %v3983_v49 = vld [vmem:[%s4877_s19 + $0x580] ss:$8 sps:$4 sm:$0xff]  }
  0xc8   : > { %2975 = vmatpush1.bf16.msra.mxu1 %v3900_v50  ;;  %3147 = vmatpush1.bf16.msra.mxu0 %v3901_v51  ;;  %v3988_v50 = vld [vmem:[%s4877_s19 + $0x194] ss:$8 sps:$4 sm:$0xff]  }
  0xc9   : > { %2976 = vmatprep.subr.bf16.mxu1 %v3902_v52  ;;  %3148 = vmatprep.subr.bf16.mxu0 %v3904_v53  ;;  %v3991_v51 = vld [vmem:[%s4877_s19 + $0x594] ss:$8 sps:$4 sm:$0xff]   ;;  %v3986_v52 = vld [vmem:[%s4877_s19 + $0x190] ss:$8 sps:$4 sm:$0xff]  }
  0xca   : > { %v3989_v53 = vld [vmem:[%s4877_s19 + $0x590] ss:$8 sps:$4 sm:$0xff]  }
  0xcc   : > { %2977 = vmatpush1.bf16.msra.mxu1 %v3906_v54  ;;  %3149 = vmatpush1.bf16.msra.mxu0 %v3907_v55  ;;  %v3994_v54 = vld [vmem:[%s4877_s19 + $0x1a4] ss:$8 sps:$4 sm:$0xff]  }
  0xcd   : > { %2978 = vmatprep.subr.bf16.mxu1 %v3908_v56  ;;  %3150 = vmatprep.subr.bf16.mxu0 %v3910_v57  ;;  %v3997_v55 = vld [vmem:[%s4877_s19 + $0x5a4] ss:$8 sps:$4 sm:$0xff]   ;;  %v3992_v56 = vld [vmem:[%s4877_s19 + $0x1a0] ss:$8 sps:$4 sm:$0xff]  }
  0xce   : > { %v3995_v57 = vld [vmem:[%s4877_s19 + $0x5a0] ss:$8 sps:$4 sm:$0xff]  }
  0xd0   : > { %2979 = vmatpush1.bf16.msra.mxu1 %v3912_v58  ;;  %3151 = vmatpush1.bf16.msra.mxu0 %v3913_v59  ;;  %v4000_v58 = vld [vmem:[%s4877_s19 + $0x1b4] ss:$8 sps:$4 sm:$0xff]  }
  0xd1   : > { %2980 = vmatprep.subr.bf16.mxu1 %v3914_v60  ;;  %3152 = vmatprep.subr.bf16.mxu0 %v3916_v61  ;;  %v4003_v59 = vld [vmem:[%s4877_s19 + $0x5b4] ss:$8 sps:$4 sm:$0xff]   ;;  %v3998_v60 = vld [vmem:[%s4877_s19 + $0x1b0] ss:$8 sps:$4 sm:$0xff]  }
  0xd2   : > { %v4001_v61 = vld [vmem:[%s4877_s19 + $0x5b0] ss:$8 sps:$4 sm:$0xff]  }
  0xd4   : > { %2981 = vmatpush1.bf16.msra.mxu1 %v3918_v62  ;;  %3153 = vmatpush1.bf16.msra.mxu0 %v3919_v63  ;;  %v4006_v62 = vld [vmem:[%s4877_s19 + $0x1c4] ss:$8 sps:$4 sm:$0xff]  }
  0xd5   : > { %2982 = vmatprep.subr.bf16.mxu1 %v3920_v4  ;;  %3154 = vmatprep.subr.bf16.mxu0 %v3922_v7  ;;  %v4009_v63 = vld [vmem:[%s4877_s19 + $0x5c4] ss:$8 sps:$4 sm:$0xff]   ;;  %v4004_v4 = vld [vmem:[%s4877_s19 + $0x1c0] ss:$8 sps:$4 sm:$0xff]  }
  0xd6   : > { %v4007_v7 = vld [vmem:[%s4877_s19 + $0x5c0] ss:$8 sps:$4 sm:$0xff]  }
  0xd8   : > { %2983 = vmatpush1.bf16.msra.mxu1 %v3924_v8  ;;  %3155 = vmatpush1.bf16.msra.mxu0 %v3925_v9  ;;  %v4012_v8 = vld [vmem:[%s4877_s19 + $0x1d4] ss:$8 sps:$4 sm:$0xff]  }
  0xd9   : > { %2984 = vmatprep.subr.bf16.mxu1 %v3926_v10  ;;  %3156 = vmatprep.subr.bf16.mxu0 %v3928_v11  ;;  %v4015_v9 = vld [vmem:[%s4877_s19 + $0x5d4] ss:$8 sps:$4 sm:$0xff]   ;;  %v4010_v10 = vld [vmem:[%s4877_s19 + $0x1d0] ss:$8 sps:$4 sm:$0xff]  }
  0xda   : > { %v4013_v11 = vld [vmem:[%s4877_s19 + $0x5d0] ss:$8 sps:$4 sm:$0xff]  }
  0xdc   : > { %2985 = vmatpush1.bf16.msra.mxu1 %v3930_v12  ;;  %3157 = vmatpush1.bf16.msra.mxu0 %v3931_v13  ;;  %v4018_v12 = vld [vmem:[%s4877_s19 + $0x1e4] ss:$8 sps:$4 sm:$0xff]  }
  0xdd   : > { %2997 = vmatprep.subr.bf16.mxu1 %v3934_v14  ;;  %3169 = vmatprep.subr.bf16.mxu0 %v3937_v15  ;;  %v4021_v13 = vld [vmem:[%s4877_s19 + $0x5e4] ss:$8 sps:$4 sm:$0xff]   ;;  %v4016_v14 = vld [vmem:[%s4877_s19 + $0x1e0] ss:$8 sps:$4 sm:$0xff]  }
  0xde   : > { %v4019_v15 = vld [vmem:[%s4877_s19 + $0x5e0] ss:$8 sps:$4 sm:$0xff]  }
  0xdf   : > { %2987 = vmatmul.mubr.bf16.vlgmr.msra.gmra.mrb[0].mxu1 %v3481_v3  ;;  %3159 = vmatmul.mubr.bf16.vlgmr.msra.gmra.mrb[0].mxu0 %v3489_v6  ;;  %v3950_v3 = vld [vmem:[%s4877_s19 + $0x130] ss:$8 sps:$4 sm:$0xff]   ;;  %v3958_v6 = vld [vmem:[%s4877_s19 + $0x144] ss:$8 sps:$4 sm:$0xff]  }
  0xe0   : > { %2998 = vmatpush1.bf16.msra.mxu1 %v3932_v16  ;;  %3170 = vmatpush1.bf16.msra.mxu0 %v3935_v17  ;;  %v4024_v16 = vld [vmem:[%s4877_s19 + $0x1f4] ss:$8 sps:$4 sm:$0xff]  }
  0xe1   : > { %2999 = vmatprep.subr.bf16.mxu1 %v3940_v18  ;;  %3171 = vmatprep.subr.bf16.mxu0 %v3943_v19  ;;  %v4027_v17 = vld [vmem:[%s4877_s19 + $0x5f4] ss:$8 sps:$4 sm:$0xff]   ;;  %v4022_v18 = vld [vmem:[%s4877_s19 + $0x1f0] ss:$8 sps:$4 sm:$0xff]  }
  0xe2   : > { %3029 = vmatprep.mubr.bf16.mxu1 %v3484_v37  ;;  %3201 = vmatprep.mubr.bf16.mxu0 %v3492_v42  ;;  %v4025_v19 = vld [vmem:[%s4877_s19 + $0x5f0] ss:$8 sps:$4 sm:$0xff]   ;;  %v4060_v42 = vld [vmem:[%s4877_s19 + $0x254] ss:$8 sps:$4 sm:$0xff]  }
  0xe3   : > { %v4049_v37 = vld [vmem:[%s4877_s19 + $0x630] ss:$8 sps:$4 sm:$0xff]  }
  0xe4   : > { %3000 = vmatpush1.bf16.msra.mxu1 %v3938_v20  ;;  %3172 = vmatpush1.bf16.msra.mxu0 %v3941_v21  ;;  %v4030_v20 = vld [vmem:[%s4877_s19 + $0x204] ss:$8 sps:$4 sm:$0xff]  }
  0xe5   : > { %3001 = vmatprep.subr.bf16.mxu1 %v3946_v22  ;;  %3173 = vmatprep.subr.bf16.mxu0 %v3949_v23  ;;  %v4033_v21 = vld [vmem:[%s4877_s19 + $0x604] ss:$8 sps:$4 sm:$0xff]   ;;  %v3483_v22 = vcombine.low %v4978_v34, %v4983_v35  ;;  %v4028_v23 = vld [vmem:[%s4877_s19 + $0x200] ss:$8 sps:$4 sm:$0xff]   ;;  %v4048_v34 = vld [vmem:[%s4877_s19 + $0x234] ss:$8 sps:$4 sm:$0xff]  }
  0xe6   : > { %v4051_v35 = vld [vmem:[%s4877_s19 + $0x634] ss:$8 sps:$4 sm:$0xff]  }
  0xe8   : > { %3002 = vmatpush1.bf16.msra.mxu1 %v3944_v24  ;;  %3174 = vmatpush1.bf16.msra.mxu0 %v3947_v0  ;;  %v3491_v24 = vcombine.low %v4992_v39, %v4997_v40  ;;  %v4031_v0 = vld [vmem:[%s4877_s19 + $0x600] ss:$8 sps:$4 sm:$0xff]   ;;  %v4057_v39 = vld [vmem:[%s4877_s19 + $0x644] ss:$8 sps:$4 sm:$0xff]  }
  0xe9   : > { %3003 = vmatprep.subr.bf16.mxu1 %v3952_v1  ;;  %3175 = vmatprep.subr.bf16.mxu0 %v3955_v2  ;;  %v4036_v1 = vld [vmem:[%s4877_s19 + $0x214] ss:$8 sps:$4 sm:$0xff]   ;;  %v4052_v40 = vld [vmem:[%s4877_s19 + $0x240] ss:$8 sps:$4 sm:$0xff]  }
  0xea   : > { %v4039_v2 = vld [vmem:[%s4877_s19 + $0x614] ss:$8 sps:$4 sm:$0xff]  }
  0xec   : > { %3004 = vmatpush1.bf16.msra.mxu1 %v3950_v3  ;;  %3176 = vmatpush1.bf16.msra.mxu0 %v3953_v5  ;;  %v5050_v3 = vld [vmem:[%s5252_s0 + $0x10] sm:$0xff] }
  0xed   : > { %3005 = vmatprep.subr.bf16.mxu1 %v3958_v6  ;;  %3177 = vmatprep.subr.bf16.mxu0 %v3961_v25  ;;  %v5055_v5 = vld [vmem:[%s5252_s0 + $0x50] sm:$0xff] }
  0xee   : > { %v4034_v6 = vld [vmem:[%s4877_s19 + $0x210] ss:$8 sps:$4 sm:$0xff]   ;;  %v3486_v25 = vcombine.high %v5050_v3, %v5055_v5 }
  0xf0   : > { %3006 = vmatpush1.bf16.msra.mxu1 %v3956_v26  ;;  %3178 = vmatpush1.bf16.msra.mxu0 %v3959_v27  ;;  %v4037_v26 = vld [vmem:[%s4877_s19 + $0x610] ss:$8 sps:$4 sm:$0xff]  }
  0xf1   : > { %3007 = vmatprep.subr.bf16.mxu1 %v3964_v28  ;;  %3179 = vmatprep.subr.bf16.mxu0 %v3967_v29  ;;  %v5064_v27 = vld [vmem:[%s5252_s0 + $0x30] sm:$0xff]  ;;  %v4042_v29 = vld [vmem:[%s4877_s19 + $0x224] ss:$8 sps:$4 sm:$0xff]  }
  0xf2   : > { %v5069_v28 = vld [vmem:[%s5252_s0 + $0x70] sm:$0xff] }
  0xf4   : > { %3008 = vmatpush1.bf16.msra.mxu1 %v3962_v30  ;;  %3180 = vmatpush1.bf16.msra.mxu0 %v3965_v31  ;;  %v3494_v30 = vcombine.high %v5064_v27, %v5069_v28  ;;  %v4045_v31 = vld [vmem:[%s4877_s19 + $0x624] ss:$8 sps:$4 sm:$0xff]  }
  0xf5   : > { %3009 = vmatprep.subr.bf16.mxu1 %v3970_v32  ;;  %3181 = vmatprep.subr.bf16.mxu0 %v3973_v33  ;;  %v4040_v32 = vld [vmem:[%s4877_s19 + $0x220] ss:$8 sps:$4 sm:$0xff]  }
  0xf6   : > { %v4043_v33 = vld [vmem:[%s4877_s19 + $0x620] ss:$8 sps:$4 sm:$0xff]  }
  0xf8   : > { %3010 = vmatpush1.bf16.msra.mxu1 %v3968_v36  ;;  %3182 = vmatpush1.bf16.msra.mxu0 %v3971_v38  ;;  %v4046_v36 = vld [vmem:[%s4877_s19 + $0x230] ss:$8 sps:$4 sm:$0xff]   ;;  %v4054_v38 = vld [vmem:[%s4877_s19 + $0x244] ss:$8 sps:$4 sm:$0xff]  }
  0xf9   : > { %3011 = vmatprep.subr.bf16.mxu1 %v3976_v41  ;;  %3183 = vmatprep.subr.bf16.mxu0 %v3979_v43  ;;  %v4055_v41 = vld [vmem:[%s4877_s19 + $0x640] ss:$8 sps:$4 sm:$0xff]   ;;  %v4063_v43 = vld [vmem:[%s4877_s19 + $0x654] ss:$8 sps:$4 sm:$0xff]  }
  0xfc   : > { %3012 = vmatpush1.bf16.msra.mxu1 %v3974_v44  ;;  %3184 = vmatpush1.bf16.msra.mxu0 %v3977_v45  ;;  %v4058_v44 = vld [vmem:[%s4877_s19 + $0x250] ss:$8 sps:$4 sm:$0xff]  }
  0xfd   : > { %3013 = vmatprep.subr.bf16.mxu1 %v3982_v46  ;;  %3185 = vmatprep.subr.bf16.mxu0 %v3985_v47  ;;  %v4061_v45 = vld [vmem:[%s4877_s19 + $0x650] ss:$8 sps:$4 sm:$0xff]   ;;  %v4066_v46 = vld [vmem:[%s4877_s19 + $0x264] ss:$8 sps:$4 sm:$0xff]  }
  0xfe   : > { %v4069_v47 = vld [vmem:[%s4877_s19 + $0x664] ss:$8 sps:$4 sm:$0xff]  }
 0x100   : > { %3014 = vmatpush1.bf16.msra.mxu1 %v3980_v48  ;;  %3186 = vmatpush1.bf16.msra.mxu0 %v3983_v49  ;;  %v4064_v48 = vld [vmem:[%s4877_s19 + $0x260] ss:$8 sps:$4 sm:$0xff]  }
 0x101   : > { %3015 = vmatprep.subr.bf16.mxu1 %v3988_v50  ;;  %3187 = vmatprep.subr.bf16.mxu0 %v3991_v51  ;;  %v4067_v49 = vld [vmem:[%s4877_s19 + $0x660] ss:$8 sps:$4 sm:$0xff]   ;;  %v4072_v50 = vld [vmem:[%s4877_s19 + $0x274] ss:$8 sps:$4 sm:$0xff]  }
 0x102   : > { %v4075_v51 = vld [vmem:[%s4877_s19 + $0x674] ss:$8 sps:$4 sm:$0xff]  }
 0x104   : > { %3016 = vmatpush1.bf16.msra.mxu1 %v3986_v52  ;;  %3188 = vmatpush1.bf16.msra.mxu0 %v3989_v53  ;;  %v4070_v52 = vld [vmem:[%s4877_s19 + $0x270] ss:$8 sps:$4 sm:$0xff]  }
 0x105   : > { %3017 = vmatprep.subr.bf16.mxu1 %v3994_v54  ;;  %3189 = vmatprep.subr.bf16.mxu0 %v3997_v55  ;;  %v4073_v53 = vld [vmem:[%s4877_s19 + $0x670] ss:$8 sps:$4 sm:$0xff]   ;;  %v4078_v54 = vld [vmem:[%s4877_s19 + $0x284] ss:$8 sps:$4 sm:$0xff]  }
 0x106   : > { %v4081_v55 = vld [vmem:[%s4877_s19 + $0x684] ss:$8 sps:$4 sm:$0xff]  }
 0x108   : > { %3018 = vmatpush1.bf16.msra.mxu1 %v3992_v56  ;;  %3190 = vmatpush1.bf16.msra.mxu0 %v3995_v57  ;;  %v4076_v56 = vld [vmem:[%s4877_s19 + $0x280] ss:$8 sps:$4 sm:$0xff]  }
 0x109   : > { %3019 = vmatprep.subr.bf16.mxu1 %v4000_v58  ;;  %3191 = vmatprep.subr.bf16.mxu0 %v4003_v59  ;;  %v4079_v57 = vld [vmem:[%s4877_s19 + $0x680] ss:$8 sps:$4 sm:$0xff]   ;;  %v4084_v58 = vld [vmem:[%s4877_s19 + $0x294] ss:$8 sps:$4 sm:$0xff]  }
 0x10a   : > { %v4087_v59 = vld [vmem:[%s4877_s19 + $0x694] ss:$8 sps:$4 sm:$0xff]  }
 0x10c   : > { %3020 = vmatpush1.bf16.msra.mxu1 %v3998_v60  ;;  %3192 = vmatpush1.bf16.msra.mxu0 %v4001_v61  ;;  %v4082_v60 = vld [vmem:[%s4877_s19 + $0x290] ss:$8 sps:$4 sm:$0xff]  }
 0x10d   : > { %3021 = vmatprep.subr.bf16.mxu1 %v4006_v62  ;;  %3193 = vmatprep.subr.bf16.mxu0 %v4009_v63  ;;  %v4085_v61 = vld [vmem:[%s4877_s19 + $0x690] ss:$8 sps:$4 sm:$0xff]   ;;  %v4090_v62 = vld [vmem:[%s4877_s19 + $0x2a4] ss:$8 sps:$4 sm:$0xff]  }
 0x10e   : > { %v4093_v63 = vld [vmem:[%s4877_s19 + $0x6a4] ss:$8 sps:$4 sm:$0xff]  }
 0x110   : > { %3022 = vmatpush1.bf16.msra.mxu1 %v4004_v4  ;;  %3194 = vmatpush1.bf16.msra.mxu0 %v4007_v7  ;;  %v4088_v4 = vld [vmem:[%s4877_s19 + $0x2a0] ss:$8 sps:$4 sm:$0xff]  }
 0x111   : > { %3023 = vmatprep.subr.bf16.mxu1 %v4012_v8  ;;  %3195 = vmatprep.subr.bf16.mxu0 %v4015_v9  ;;  %v4091_v7 = vld [vmem:[%s4877_s19 + $0x6a0] ss:$8 sps:$4 sm:$0xff]   ;;  %v4096_v8 = vld [vmem:[%s4877_s19 + $0x2b4] ss:$8 sps:$4 sm:$0xff]  }
 0x112   : > { %v4099_v9 = vld [vmem:[%s4877_s19 + $0x6b4] ss:$8 sps:$4 sm:$0xff]  }
 0x114   : > { %3024 = vmatpush1.bf16.msra.mxu1 %v4010_v10  ;;  %3196 = vmatpush1.bf16.msra.mxu0 %v4013_v11  ;;  %v4094_v10 = vld [vmem:[%s4877_s19 + $0x2b0] ss:$8 sps:$4 sm:$0xff]  }
 0x115   : > { %3025 = vmatprep.subr.bf16.mxu1 %v4018_v12  ;;  %3197 = vmatprep.subr.bf16.mxu0 %v4021_v13  ;;  %v4097_v11 = vld [vmem:[%s4877_s19 + $0x6b0] ss:$8 sps:$4 sm:$0xff]   ;;  %v4102_v12 = vld [vmem:[%s4877_s19 + $0x2c4] ss:$8 sps:$4 sm:$0xff]  }
 0x116   : > { %v4105_v13 = vld [vmem:[%s4877_s19 + $0x6c4] ss:$8 sps:$4 sm:$0xff]  }
 0x118   : > { %3026 = vmatpush1.bf16.msra.mxu1 %v4016_v14  ;;  %3198 = vmatpush1.bf16.msra.mxu0 %v4019_v15  ;;  %v4100_v14 = vld [vmem:[%s4877_s19 + $0x2c0] ss:$8 sps:$4 sm:$0xff]  }
 0x119   : > { %3027 = vmatprep.subr.bf16.mxu1 %v4024_v16  ;;  %3199 = vmatprep.subr.bf16.mxu0 %v4027_v17  ;;  %v4103_v15 = vld [vmem:[%s4877_s19 + $0x6c0] ss:$8 sps:$4 sm:$0xff]   ;;  %v4108_v16 = vld [vmem:[%s4877_s19 + $0x2d4] ss:$8 sps:$4 sm:$0xff]  }
 0x11a   : > { %v4111_v17 = vld [vmem:[%s4877_s19 + $0x6d4] ss:$8 sps:$4 sm:$0xff]  }
 0x11c   : > { %3028 = vmatpush1.bf16.msra.mxu1 %v4022_v18  ;;  %3200 = vmatpush1.bf16.msra.mxu0 %v4025_v19  ;;  %v4106_v18 = vld [vmem:[%s4877_s19 + $0x2d0] ss:$8 sps:$4 sm:$0xff]  }
 0x11d   : > { %3040 = vmatprep.subr.bf16.mxu1 %v4030_v20  ;;  %3212 = vmatprep.subr.bf16.mxu0 %v4033_v21  ;;  %v4109_v19 = vld [vmem:[%s4877_s19 + $0x6d0] ss:$8 sps:$4 sm:$0xff]   ;;  %v4114_v20 = vld [vmem:[%s4877_s19 + $0x2e4] ss:$8 sps:$4 sm:$0xff]  }
 0x11e   : > { %v4117_v21 = vld [vmem:[%s4877_s19 + $0x6e4] ss:$8 sps:$4 sm:$0xff]  }
 0x11f   : > { %3030 = vmatmul.mubr.bf16.vlgmr.msra.gmra.mrb[0].mxu1 %v3483_v22  ;;  %3202 = vmatmul.mubr.bf16.vlgmr.msra.gmra.mrb[0].mxu0 %v3491_v24  ;;  %v4112_v22 = vld [vmem:[%s4877_s19 + $0x2e0] ss:$8 sps:$4 sm:$0xff]   ;;  %v4120_v24 = vld [vmem:[%s4877_s19 + $0x2f4] ss:$8 sps:$4 sm:$0xff]  }
 0x120   : > { %3041 = vmatpush1.bf16.msra.mxu1 %v4028_v23  ;;  %3213 = vmatpush1.bf16.msra.mxu0 %v4031_v0  ;;  %v4115_v23 = vld [vmem:[%s4877_s19 + $0x6e0] ss:$8 sps:$4 sm:$0xff]   ;;  %v4123_v0 = vld [vmem:[%s4877_s19 + $0x6f4] ss:$8 sps:$4 sm:$0xff]  }
 0x121   : > { %3042 = vmatprep.subr.bf16.mxu1 %v4036_v1  ;;  %3214 = vmatprep.subr.bf16.mxu0 %v4039_v2  ;;  %v4118_v1 = vld [vmem:[%s4877_s19 + $0x2f0] ss:$8 sps:$4 sm:$0xff]  }
 0x122   : > { %3072 = vmatprep.mubr.bf16.mxu1 %v3486_v25  ;;  %3244 = vmatprep.mubr.bf16.mxu0 %v3494_v30  ;;  %v4121_v2 = vld [vmem:[%s4877_s19 + $0x6f0] ss:$8 sps:$4 sm:$0xff]   ;;  %v4129_v25 = vld [vmem:[%s4877_s19 + $0x704] ss:$8 sps:$4 sm:$0xff]   ;;  %v3493_v30 = vcombine.low %v5064_v27, %v5069_v28  ;;  %v4132_v27 = vld [vmem:[%s4877_s19 + $0x314] ss:$8 sps:$4 sm:$0xff]  }
 0x123   : > { %v4135_v28 = vld [vmem:[%s4877_s19 + $0x714] ss:$8 sps:$4 sm:$0xff]  }
 0x124   : > { %3043 = vmatpush1.bf16.msra.mxu1 %v4034_v6  ;;  %3215 = vmatpush1.bf16.msra.mxu0 %v4037_v26  ;;  %v4126_v6 = vld [vmem:[%s4877_s19 + $0x304] ss:$8 sps:$4 sm:$0xff]   ;;  %v5134_v26 = vld [vmem:[%s5252_s0 + $0x18] sm:$0xff] }
 0x125   : > { %3044 = vmatprep.subr.bf16.mxu1 %v4042_v29  ;;  %3216 = vmatprep.subr.bf16.mxu0 %v4045_v31  ;;  %v3485_v29 = vcombine.low %v5050_v3, %v5055_v5  ;;  %v5143_v31 = vld [vmem:[%s5252_s0 + $0x58] sm:$0xff]  ;;  %v4124_v3 = vld [vmem:[%s4877_s19 + $0x300] ss:$8 sps:$4 sm:$0xff]  }
 0x126   : > { %v4127_v5 = vld [vmem:[%s4877_s19 + $0x700] ss:$8 sps:$4 sm:$0xff]  }
 0x128   : > { %3045 = vmatpush1.bf16.msra.mxu1 %v4040_v32  ;;  %3217 = vmatpush1.bf16.msra.mxu0 %v4043_v33  ;;  %v5148_v32 = vld [vmem:[%s5252_s0 + $0x38] sm:$0xff] }
 0x129   : > { %3046 = vmatprep.subr.bf16.mxu1 %v4048_v34  ;;  %3218 = vmatprep.subr.bf16.mxu0 %v4051_v35  ;;  %v5153_v33 = vld [vmem:[%s5252_s0 + $0x78] sm:$0xff]  ;;  %v3488_v34 = vcombine.high %v5134_v26, %v5143_v31 }
 0x12a   : > { %v3496_v35 = vcombine.high %v5148_v32, %v5153_v33 }
 0x12c   : > { %3047 = vmatpush1.bf16.msra.mxu1 %v4046_v36  ;;  %3219 = vmatpush1.bf16.msra.mxu0 %v4049_v37  ;;  %v4130_v36 = vld [vmem:[%s4877_s19 + $0x310] ss:$8 sps:$4 sm:$0xff]  }
 0x12d   : > { %3048 = vmatprep.subr.bf16.mxu1 %v4054_v38  ;;  %3220 = vmatprep.subr.bf16.mxu0 %v4057_v39  ;;  %v4133_v37 = vld [vmem:[%s4877_s19 + $0x710] ss:$8 sps:$4 sm:$0xff]   ;;  %v4138_v38 = vld [vmem:[%s4877_s19 + $0x324] ss:$8 sps:$4 sm:$0xff]  }
 0x12e   : > { %v4141_v39 = vld [vmem:[%s4877_s19 + $0x724] ss:$8 sps:$4 sm:$0xff]  }
 0x130   : > { %3049 = vmatpush1.bf16.msra.mxu1 %v4052_v40  ;;  %3221 = vmatpush1.bf16.msra.mxu0 %v4055_v41  ;;  %v4136_v40 = vld [vmem:[%s4877_s19 + $0x320] ss:$8 sps:$4 sm:$0xff]  }
 0x131   : > { %3050 = vmatprep.subr.bf16.mxu1 %v4060_v42  ;;  %3222 = vmatprep.subr.bf16.mxu0 %v4063_v43  ;;  %v4139_v41 = vld [vmem:[%s4877_s19 + $0x720] ss:$8 sps:$4 sm:$0xff]   ;;  %v4144_v42 = vld [vmem:[%s4877_s19 + $0x334] ss:$8 sps:$4 sm:$0xff]  }
 0x132   : > { %v4147_v43 = vld [vmem:[%s4877_s19 + $0x734] ss:$8 sps:$4 sm:$0xff]  }
 0x134   : > { %3051 = vmatpush1.bf16.msra.mxu1 %v4058_v44  ;;  %3223 = vmatpush1.bf16.msra.mxu0 %v4061_v45  ;;  %v4142_v44 = vld [vmem:[%s4877_s19 + $0x330] ss:$8 sps:$4 sm:$0xff]  }
 0x135   : > { %3052 = vmatprep.subr.bf16.mxu1 %v4066_v46  ;;  %3224 = vmatprep.subr.bf16.mxu0 %v4069_v47  ;;  %v4145_v45 = vld [vmem:[%s4877_s19 + $0x730] ss:$8 sps:$4 sm:$0xff]   ;;  %v4150_v46 = vld [vmem:[%s4877_s19 + $0x344] ss:$8 sps:$4 sm:$0xff]  }
 0x136   : > { %v4153_v47 = vld [vmem:[%s4877_s19 + $0x744] ss:$8 sps:$4 sm:$0xff]  }
 0x138   : > { %3053 = vmatpush1.bf16.msra.mxu1 %v4064_v48  ;;  %3225 = vmatpush1.bf16.msra.mxu0 %v4067_v49  ;;  %v4148_v48 = vld [vmem:[%s4877_s19 + $0x340] ss:$8 sps:$4 sm:$0xff]  }
 0x139   : > { %3054 = vmatprep.subr.bf16.mxu1 %v4072_v50  ;;  %3226 = vmatprep.subr.bf16.mxu0 %v4075_v51  ;;  %v4151_v49 = vld [vmem:[%s4877_s19 + $0x740] ss:$8 sps:$4 sm:$0xff]   ;;  %v4156_v50 = vld [vmem:[%s4877_s19 + $0x354] ss:$8 sps:$4 sm:$0xff]  }
 0x13a   : > { %v4159_v51 = vld [vmem:[%s4877_s19 + $0x754] ss:$8 sps:$4 sm:$0xff]  }
 0x13c   : > { %3055 = vmatpush1.bf16.msra.mxu1 %v4070_v52  ;;  %3227 = vmatpush1.bf16.msra.mxu0 %v4073_v53  ;;  %v4154_v52 = vld [vmem:[%s4877_s19 + $0x350] ss:$8 sps:$4 sm:$0xff]  }
 0x13d   : > { %3056 = vmatprep.subr.bf16.mxu1 %v4078_v54  ;;  %3228 = vmatprep.subr.bf16.mxu0 %v4081_v55  ;;  %v4157_v53 = vld [vmem:[%s4877_s19 + $0x750] ss:$8 sps:$4 sm:$0xff]   ;;  %v4162_v54 = vld [vmem:[%s4877_s19 + $0x364] ss:$8 sps:$4 sm:$0xff]  }
 0x13e   : > { %v4165_v55 = vld [vmem:[%s4877_s19 + $0x764] ss:$8 sps:$4 sm:$0xff]  }
 0x140   : > { %3057 = vmatpush1.bf16.msra.mxu1 %v4076_v56  ;;  %3229 = vmatpush1.bf16.msra.mxu0 %v4079_v57  ;;  %v4160_v56 = vld [vmem:[%s4877_s19 + $0x360] ss:$8 sps:$4 sm:$0xff]  }
 0x141   : > { %3058 = vmatprep.subr.bf16.mxu1 %v4084_v58  ;;  %3230 = vmatprep.subr.bf16.mxu0 %v4087_v59  ;;  %v4163_v57 = vld [vmem:[%s4877_s19 + $0x760] ss:$8 sps:$4 sm:$0xff]   ;;  %v4168_v58 = vld [vmem:[%s4877_s19 + $0x374] ss:$8 sps:$4 sm:$0xff]  }
 0x142   : > { %v4171_v59 = vld [vmem:[%s4877_s19 + $0x774] ss:$8 sps:$4 sm:$0xff]  }
 0x144   : > { %3059 = vmatpush1.bf16.msra.mxu1 %v4082_v60  ;;  %3231 = vmatpush1.bf16.msra.mxu0 %v4085_v61  ;;  %v4166_v60 = vld [vmem:[%s4877_s19 + $0x370] ss:$8 sps:$4 sm:$0xff]  }
 0x145   : > { %3060 = vmatprep.subr.bf16.mxu1 %v4090_v62  ;;  %3232 = vmatprep.subr.bf16.mxu0 %v4093_v63  ;;  %v4169_v61 = vld [vmem:[%s4877_s19 + $0x770] ss:$8 sps:$4 sm:$0xff]   ;;  %v4174_v62 = vld [vmem:[%s4877_s19 + $0x384] ss:$8 sps:$4 sm:$0xff]  }
 0x146   : > { %v4177_v63 = vld [vmem:[%s4877_s19 + $0x784] ss:$8 sps:$4 sm:$0xff]  }
 0x148   : > { %3061 = vmatpush1.bf16.msra.mxu1 %v4088_v4  ;;  %3233 = vmatpush1.bf16.msra.mxu0 %v4091_v7  ;;  %v4172_v4 = vld [vmem:[%s4877_s19 + $0x380] ss:$8 sps:$4 sm:$0xff]  }
 0x149   : > { %3062 = vmatprep.subr.bf16.mxu1 %v4096_v8  ;;  %3234 = vmatprep.subr.bf16.mxu0 %v4099_v9  ;;  %v4175_v7 = vld [vmem:[%s4877_s19 + $0x780] ss:$8 sps:$4 sm:$0xff]   ;;  %v4180_v8 = vld [vmem:[%s4877_s19 + $0x394] ss:$8 sps:$4 sm:$0xff]  }
 0x14a   : > { %v4183_v9 = vld [vmem:[%s4877_s19 + $0x794] ss:$8 sps:$4 sm:$0xff]  }
 0x14c   : > { %3063 = vmatpush1.bf16.msra.mxu1 %v4094_v10  ;;  %3235 = vmatpush1.bf16.msra.mxu0 %v4097_v11  ;;  %v4178_v10 = vld [vmem:[%s4877_s19 + $0x390] ss:$8 sps:$4 sm:$0xff]  }
 0x14d   : > { %3064 = vmatprep.subr.bf16.mxu1 %v4102_v12  ;;  %3236 = vmatprep.subr.bf16.mxu0 %v4105_v13  ;;  %v4181_v11 = vld [vmem:[%s4877_s19 + $0x790] ss:$8 sps:$4 sm:$0xff]   ;;  %v4186_v12 = vld [vmem:[%s4877_s19 + $0x3a4] ss:$8 sps:$4 sm:$0xff]  }
 0x14e   : > { %v4189_v13 = vld [vmem:[%s4877_s19 + $0x7a4] ss:$8 sps:$4 sm:$0xff]  }
 0x150   : > { %3065 = vmatpush1.bf16.msra.mxu1 %v4100_v14  ;;  %3237 = vmatpush1.bf16.msra.mxu0 %v4103_v15  ;;  %v4184_v14 = vld [vmem:[%s4877_s19 + $0x3a0] ss:$8 sps:$4 sm:$0xff]  }
 0x151   : > { %3066 = vmatprep.subr.bf16.mxu1 %v4108_v16  ;;  %3238 = vmatprep.subr.bf16.mxu0 %v4111_v17  ;;  %v4187_v15 = vld [vmem:[%s4877_s19 + $0x7a0] ss:$8 sps:$4 sm:$0xff]   ;;  %v4192_v16 = vld [vmem:[%s4877_s19 + $0x3b4] ss:$8 sps:$4 sm:$0xff]  }
 0x152   : > { %v4195_v17 = vld [vmem:[%s4877_s19 + $0x7b4] ss:$8 sps:$4 sm:$0xff]  }
 0x154   : > { %3067 = vmatpush1.bf16.msra.mxu1 %v4106_v18  ;;  %3239 = vmatpush1.bf16.msra.mxu0 %v4109_v19  ;;  %v4190_v18 = vld [vmem:[%s4877_s19 + $0x3b0] ss:$8 sps:$4 sm:$0xff]  }
 0x155   : > { %3068 = vmatprep.subr.bf16.mxu1 %v4114_v20  ;;  %3240 = vmatprep.subr.bf16.mxu0 %v4117_v21  ;;  %v4193_v19 = vld [vmem:[%s4877_s19 + $0x7b0] ss:$8 sps:$4 sm:$0xff]   ;;  %v4198_v20 = vld [vmem:[%s4877_s19 + $0x3c4] ss:$8 sps:$4 sm:$0xff]  }
 0x156   : > { %v4201_v21 = vld [vmem:[%s4877_s19 + $0x7c4] ss:$8 sps:$4 sm:$0xff]  }
 0x158   : > { %3069 = vmatpush1.bf16.msra.mxu1 %v4112_v22  ;;  %3241 = vmatpush1.bf16.msra.mxu0 %v4115_v23  ;;  %v4196_v22 = vld [vmem:[%s4877_s19 + $0x3c0] ss:$8 sps:$4 sm:$0xff]  }
 0x159   : > { %3070 = vmatprep.subr.bf16.mxu1 %v4120_v24  ;;  %3242 = vmatprep.subr.bf16.mxu0 %v4123_v0  ;;  %v4199_v23 = vld [vmem:[%s4877_s19 + $0x7c0] ss:$8 sps:$4 sm:$0xff]   ;;  %v4204_v24 = vld [vmem:[%s4877_s19 + $0x3d4] ss:$8 sps:$4 sm:$0xff]  }
 0x15a   : > { %v4207_v0 = vld [vmem:[%s4877_s19 + $0x7d4] ss:$8 sps:$4 sm:$0xff]  }
 0x15c   : > { %3071 = vmatpush1.bf16.msra.mxu1 %v4118_v1  ;;  %3243 = vmatpush1.bf16.msra.mxu0 %v4121_v2  ;;  %v4202_v1 = vld [vmem:[%s4877_s19 + $0x3d0] ss:$8 sps:$4 sm:$0xff]  }
 0x15d   : > { %3083 = vmatprep.subr.bf16.mxu1 %v4126_v6  ;;  %3255 = vmatprep.subr.bf16.mxu0 %v4129_v25  ;;  %v4205_v2 = vld [vmem:[%s4877_s19 + $0x7d0] ss:$8 sps:$4 sm:$0xff]   ;;  %v4210_v6 = vld [vmem:[%s4877_s19 + $0x3e4] ss:$8 sps:$4 sm:$0xff]  }
 0x15e   : > { %v4213_v25 = vld [vmem:[%s4877_s19 + $0x7e4] ss:$8 sps:$4 sm:$0xff]  }
 0x15f   : > { %3073 = vmatmul.mubr.bf16.vlgmr.msra.gmra.mrb[0].mxu1 %v3485_v29  ;;  %3245 = vmatmul.mubr.bf16.vlgmr.msra.gmra.mrb[0].mxu0 %v3493_v30  ;;  %v4208_v29 = vld [vmem:[%s4877_s19 + $0x3e0] ss:$8 sps:$4 sm:$0xff]  }
 0x160   : > { %3084 = vmatpush1.bf16.msra.mxu1 %v4124_v3  ;;  %3256 = vmatpush1.bf16.msra.mxu0 %v4127_v5  ;;  %v4211_v30 = vld [vmem:[%s4877_s19 + $0x7e0] ss:$8 sps:$4 sm:$0xff]   ;;  %v4216_v3 = vld [vmem:[%s4877_s19 + $0x3f4] ss:$8 sps:$4 sm:$0xff]  }
 0x161   : > { %3085 = vmatprep.subr.bf16.mxu1 %v4132_v27  ;;  %3257 = vmatprep.subr.bf16.mxu0 %v4135_v28  ;;  %v4219_v5 = vld [vmem:[%s4877_s19 + $0x7f4] ss:$8 sps:$4 sm:$0xff]   ;;  %v4214_v27 = vld [vmem:[%s4877_s19 + $0x3f0] ss:$8 sps:$4 sm:$0xff]  }
 0x162   : > { %3115 = vmatprep.mubr.bf16.mxu1 %v3488_v34  ;;  %3287 = vmatprep.mubr.bf16.mxu0 %v3496_v35  ;;  %v4217_v28 = vld [vmem:[%s4877_s19 + $0x7f0] ss:$8 sps:$4 sm:$0xff]   ;;  %v3487_v34 = vcombine.low %v5134_v26, %v5143_v31  ;;  %v3495_v35 = vcombine.low %v5148_v32, %v5153_v33  ;;  %s1306_s19 = scalar_lea.vmem %s5254_s2, %s5264_s29 }
 0x164   : > { %3086 = vmatpush1.bf16.msra.mxu1 %v4130_v36  ;;  %3258 = vmatpush1.bf16.msra.mxu0 %v4133_v37  ;;  %v1584_v36 = vlaneseq }
 0x165   : > { %3087 = vmatprep.subr.bf16.mxu1 %v4138_v38  ;;  %3259 = vmatprep.subr.bf16.mxu0 %v4141_v39  ;;  %v1582_v39 = vld [vmem:[%s1306_s19] sm:$0x3] }
 0x166   : > { %v1585_v37 = vshrl.u32 %v1584_v36, 7 }
 0x168   : > { %3088 = vmatpush1.bf16.msra.mxu1 %v4136_v40  ;;  %3260 = vmatpush1.bf16.msra.mxu0 %v4139_v41  ;;  %v1586_v38 = vsub.s32 0, %v1585_v37  ;;  %v1590_v26 = vsub.s32 1, %v1585_v37 }
 0x169   : > { %3089 = vmatprep.subr.bf16.mxu1 %v4144_v42  ;;  %3261 = vmatprep.subr.bf16.mxu0 %v4147_v43 }
 0x16a   : > { %v1587_v31 = vrot.slane %v1582_v39, %v1586_v38  ;;  %v1591_v40 = vrot.slane %v1582_v39, %v1590_v26 }
 0x16c   : > { %3090 = vmatpush1.bf16.msra.mxu1 %v4142_v44  ;;  %3262 = vmatpush1.bf16.msra.mxu0 %v4145_v45 }
 0x16d   : > { %3091 = vmatprep.subr.bf16.mxu1 %v4150_v46  ;;  %3263 = vmatprep.subr.bf16.mxu0 %v4153_v47 }
 0x170   : > { %3092 = vmatpush1.bf16.msra.mxu1 %v4148_v48  ;;  %3264 = vmatpush1.bf16.msra.mxu0 %v4151_v49 }
 0x171   : > { %3093 = vmatprep.subr.bf16.mxu1 %v4156_v50  ;;  %3265 = vmatprep.subr.bf16.mxu0 %v4159_v51 }
 0x174   : > { %3094 = vmatpush1.bf16.msra.mxu1 %v4154_v52  ;;  %3266 = vmatpush1.bf16.msra.mxu0 %v4157_v53 }
 0x175   : > { %3095 = vmatprep.subr.bf16.mxu1 %v4162_v54  ;;  %3267 = vmatprep.subr.bf16.mxu0 %v4165_v55 }
 0x178   : > { %3096 = vmatpush1.bf16.msra.mxu1 %v4160_v56  ;;  %3268 = vmatpush1.bf16.msra.mxu0 %v4163_v57 }
 0x179   : > { %3097 = vmatprep.subr.bf16.mxu1 %v4168_v58  ;;  %3269 = vmatprep.subr.bf16.mxu0 %v4171_v59 }
 0x17c   : > { %3098 = vmatpush1.bf16.msra.mxu1 %v4166_v60  ;;  %3270 = vmatpush1.bf16.msra.mxu0 %v4169_v61 }
 0x17d   : > { %3099 = vmatprep.subr.bf16.mxu1 %v4174_v62  ;;  %3271 = vmatprep.subr.bf16.mxu0 %v4177_v63 }
 0x180   : > { %3100 = vmatpush1.bf16.msra.mxu1 %v4172_v4  ;;  %3272 = vmatpush1.bf16.msra.mxu0 %v4175_v7 }
 0x181   : > { %3101 = vmatprep.subr.bf16.mxu1 %v4180_v8  ;;  %3273 = vmatprep.subr.bf16.mxu0 %v4183_v9 }
 0x184   : > { %3102 = vmatpush1.bf16.msra.mxu1 %v4178_v10  ;;  %3274 = vmatpush1.bf16.msra.mxu0 %v4181_v11 }
 0x185   : > { %3103 = vmatprep.subr.bf16.mxu1 %v4186_v12  ;;  %3275 = vmatprep.subr.bf16.mxu0 %v4189_v13 }
 0x188   : > { %3104 = vmatpush1.bf16.msra.mxu1 %v4184_v14  ;;  %3276 = vmatpush1.bf16.msra.mxu0 %v4187_v15 }
 0x189   : > { %3105 = vmatprep.subr.bf16.mxu1 %v4192_v16  ;;  %3277 = vmatprep.subr.bf16.mxu0 %v4195_v17 }
 0x18c   : > { %3106 = vmatpush1.bf16.msra.mxu1 %v4190_v18  ;;  %3278 = vmatpush1.bf16.msra.mxu0 %v4193_v19 }
 0x18d   : > { %3107 = vmatprep.subr.bf16.mxu1 %v4198_v20  ;;  %3279 = vmatprep.subr.bf16.mxu0 %v4201_v21 }
 0x190   : > { %3108 = vmatpush1.bf16.msra.mxu1 %v4196_v22  ;;  %3280 = vmatpush1.bf16.msra.mxu0 %v4199_v23 }
 0x191   : > { %3109 = vmatprep.subr.bf16.mxu1 %v4204_v24  ;;  %3281 = vmatprep.subr.bf16.mxu0 %v4207_v0 }
 0x194   : > { %3110 = vmatpush1.bf16.msra.mxu1 %v4202_v1  ;;  %3282 = vmatpush1.bf16.msra.mxu0 %v4205_v2 }
 0x195   : > { %3111 = vmatprep.subr.bf16.mxu1 %v4210_v6  ;;  %3283 = vmatprep.subr.bf16.mxu0 %v4213_v25 }
 0x198   : > { %3112 = vmatpush1.bf16.msra.mxu1 %v4208_v29  ;;  %3284 = vmatpush1.bf16.msra.mxu0 %v4211_v30 }
 0x199   : > { %3113 = vmatprep.subr.bf16.mxu1 %v4216_v3  ;;  %3285 = vmatprep.subr.bf16.mxu0 %v4219_v5 }
 0x19c   : > { %3114 = vmatpush1.bf16.msra.mxu1 %v4214_v27  ;;  %3286 = vmatpush1.bf16.msra.mxu0 %v4217_v28 }
 0x19f   : > { %3116 = vmatmul.mubr.bf16.vlgmr.msra.gmra.mrb[0].mxu1 %v3487_v34  ;;  %3288 = vmatmul.mubr.bf16.vlgmr.msra.gmra.mrb[0].mxu0 %v3495_v35 }
 0x272   : > { %v3117_v32 = vpop.f32.mrb[0].mxu1  ;;  %v3289_v33 = vpop.f32.mrb[0].mxu0 }
 0x273   : > { %v3764_v41 = vadd.f32 %v3117_v32, %v1587_v31  ;;  %v3119_v42 = vpop.f32.mrb[1].mxu1  ;;  %v3291_v43 = vpop.f32.mrb[1].mxu0 }
 0x274   : > { %v3766_v44 = vadd.f32 %v3119_v42, %v1591_v40  ;;  %v3121_v45 = vpop.f32.mrb[2].mxu1  ;;  %v3293_v46 = vpop.f32.mrb[2].mxu0 }
 0x275   : > { %v3765_v47 = vadd.f32 %v3764_v41, %v3289_v33  ;;  %v3768_v48 = vadd.f32 %v3121_v45, %v1587_v31  ;;  %v3123_v49 = vpop.f32.mrb[3].mxu1  ;;  %v3295_v50 = vpop.f32.mrb[3].mxu0 }
 0x276   : > { %v3767_v51 = vadd.f32 %v3766_v44, %v3291_v43  ;;  %v3770_v52 = vadd.f32 %v3123_v49, %v1591_v40 }
 0x277   : > { %v3298_v53 = vmax.f32 %v3765_v47, 0.0  ;;  %v3769_v54 = vadd.f32 %v3768_v48, %v3293_v46 }
 0x278   : > { %v3299_v55 = vmax.f32 %v3767_v51, 0.0  ;;  %v3771_v56 = vadd.f32 %v3770_v52, %v3295_v50  ;;  %3322 = sbr.rel (!%p4315_p6) target bundleno = 647 (0x287), region = 74 }
 0x279   : > { %v3300_v57 = vmax.f32 %v3769_v54, 0.0 }
 0x27a   : > { %v3761_v58 = vpack.c.bf16 %v3299_v55, %v3298_v53  ;;  %v3301_v59 = vmax.f32 %v3771_v56, 0.0 }
 0x27c   : > { %3314 = vst [vmem:[%s1288_s7] sm:$0xff] %v3761_v58  ;;  %v3762_v60 = vpack.c.bf16 %v3301_v59, %v3300_v57 }
 0x27e   : > { %3315 = vst [vmem:[%s1288_s7 + $0x8] sm:$0xff] %v3762_v60 }
 0x283   : > { %v3358_v61 = vld [vmem:[%s1288_s7] sm:$0xff] }
 0x284   : > { %3359 = vst [vmem:[%s3328_s9] sm:$0xff] %v3358_v61 }
 0x285   : > { %v3360_v62 = vld [vmem:[%s1288_s7 + $0x8] sm:$0xff] }
 0x286   : > { %3361 = vst [vmem:[%s3328_s9 + $0x10] sm:$0xff] %v3360_v62 }
 0x287 PF: > { %s13_s16 = sadd.s32 1, %s4258_s16   ;;  %s5257_s12 = smov %s4246_s13 }
 0x288   : > { %p10_p12 = scmp.ge.s32.totalorder %s13_s16, 4   ;;  %s5258_s13 = smov %s4320_s22 }
 0x289   : > { %s5259_s14 = smov %s4254_s15  ;;  %s5260_s15 = smov %s5262_s17 }
 0x28a   :  { %12 = sbr.rel (!%p10_p12) target bundleno = 3 (0x3), region = 149 }

// kernel: voxel_feature_extractor.10
= control target key start
LH: loop header
LB: loop body
LE: loop exit
PB: predicated region body
PF: predicated region fallthrough
CT: control target
= control target key end

     0   :  { %s2164_s12 = smov 0   ;;  %s2166_s13 = smov 0   ;;  %s2646_s0 = inlined_call_operand.vmem [shape: bf16[16,512], index: 0, kind: input, shape index: {}]   ;;  %s2647_s1 = inlined_call_operand.vmem [shape: bf16[512,1024], index: 1, kind: input, shape index: {}]   ;;  %s2648_s2 = inlined_call_operand.vmem [shape: f32[1,1024], index: 2, kind: input, shape index: {}]   ;;  %s2649_s3 = inlined_call_operand.vmem [shape: bf16[16,1024], index: 3, kind: output, shape index: {}]  }
   0x1   :  { %s2168_s14 = smov 0   ;;  %s2170_s15 = smov 0  }
   0x2   :  { %s2172_s16 = smov 0  }
   0x3 LB: > { %s28_s17 = sadd.s32 1, %s2138_s15  ;;  %s1691_s18 = sadd.s32 4294967295, %s2142_s16   ;;  %s2142_s16 = sphi %s2172_s16, %s13_s16   ;;  %s2138_s15 = sphi %s2170_s15, %s2654_s15   ;;  %s2134_s14 = sphi %s2168_s14, %s2653_s14   ;;  %s2130_s13 = sphi %s2166_s13, %s2652_s13   ;;  %s2126_s12 = sphi %s2164_s12, %s2651_s12  }
   0x4   : > { %p30_p0 = scmp.ge.s32.totalorder %s28_s17, 2  ;;  %p76_p1 = scmp.ne.s32.totalorder %s2130_s13, %s2126_s12 }
   0x5   : > { %p77_p2 = scmp.eq.s32.totalorder %s2142_s16, 0  ;;  %p134_p4 = scmp.eq.s32.totalorder %s1691_s18, 1 }
   0x6   : > { %s2656_s17 = smov (%p30_p0, %s28_s17), 0  ;;  %s69_s20 = sadd.s32 1, %s2130_s13 }
   0x7   : > { %p78_p3 = por %p77_p2, %p76_p1  ;;  %s65_s19 = ssub.s32 %s2138_s15, %s2656_s17 }
   0x8   : > { %p67_p5 = scmp.eq.s32.totalorder %s65_s19, 0  ;;  %p2199_p6 = por %p134_p4, %p76_p1 }
   0x9   : > { %p1695_p7 = scmp.ge.s32.totalorder %s2142_s16, 2 }
   0xa   : > { %s2204_s22 = scalar_select %p67_p5, %s2130_s13, %s69_s20  }
   0xb   : > { %171 = sbr.rel (%p1695_p7) target bundleno = 86 (0x56), region = 20 }
  0x12   : > { %174 = sbr.rel (!%p78_p3) target bundleno = 86 (0x56), region = 24  ;;  %s176_s23 = sand.u32 (%p78_p3), 1, %s2130_s13  }
  0x13   : > { %s1844_s24 = sshll.u32 (%p78_p3), %s2138_s15, 4  ;;  %s1696_s25 = sshll.u32 (%p78_p3), %s176_s23, 10 }
  0x14   : > { %s2212_s28 = scalar_lea.vmem (%p78_p3), %s2647_s1, %s1844_s24  ;;  %s2217_s29 = scalar_lea.vmem (%p78_p3), [#allocation2], %s1696_s25 }
  0x15   : > { %v197_v0 = vld [vmem:[%s2212_s28] sm:$0xff] (%p78_p3)  ;;  %v199_v1 = vld [vmem:[%s2212_s28 + $0x8] sm:$0xff] (%p78_p3) }
  0x16   : > { %v201_v2 = vld [vmem:[%s2212_s28 + $0x20] sm:$0xff] (%p78_p3)  ;;  %198 = vst [vmem:[%s2217_s29] sm:$0xff] (%p78_p3), %v197_v0  ;;  %200 = vst [vmem:[%s2217_s29 + $0x8] sm:$0xff] (%p78_p3), %v199_v1  ;;  %v203_v3 = vld [vmem:[%s2212_s28 + $0x28] sm:$0xff] (%p78_p3) }
  0x17   : > { %202 = vst [vmem:[%s2217_s29 + $0x10] sm:$0xff] (%p78_p3), %v201_v2  ;;  %v205_v4 = vld [vmem:[%s2212_s28 + $0x40] sm:$0xff] (%p78_p3)  ;;  %v207_v5 = vld [vmem:[%s2212_s28 + $0x48] sm:$0xff] (%p78_p3)  ;;  %204 = vst [vmem:[%s2217_s29 + $0x18] sm:$0xff] (%p78_p3), %v203_v3 }
  0x18   : > { %206 = vst [vmem:[%s2217_s29 + $0x20] sm:$0xff] (%p78_p3), %v205_v4  ;;  %208 = vst [vmem:[%s2217_s29 + $0x28] sm:$0xff] (%p78_p3), %v207_v5  ;;  %v209_v6 = vld [vmem:[%s2212_s28 + $0x60] sm:$0xff] (%p78_p3)  ;;  %v211_v7 = vld [vmem:[%s2212_s28 + $0x68] sm:$0xff] (%p78_p3) }
  0x19   : > { %v213_v8 = vld [vmem:[%s2212_s28 + $0x80] sm:$0xff]  ;;  %210 = vst [vmem:[%s2217_s29 + $0x30] sm:$0xff] %v209_v6  ;;  %212 = vst [vmem:[%s2217_s29 + $0x38] sm:$0xff] %v211_v7  ;;  %v215_v9 = vld [vmem:[%s2212_s28 + $0x88] sm:$0xff] }
  0x1a   : > { %214 = vst [vmem:[%s2217_s29 + $0x40] sm:$0xff] %v213_v8  ;;  %v217_v10 = vld [vmem:[%s2212_s28 + $0xa0] sm:$0xff]  ;;  %v219_v11 = vld [vmem:[%s2212_s28 + $0xa8] sm:$0xff]  ;;  %216 = vst [vmem:[%s2217_s29 + $0x48] sm:$0xff] %v215_v9 }
  0x1b   : > { %218 = vst [vmem:[%s2217_s29 + $0x50] sm:$0xff] %v217_v10  ;;  %220 = vst [vmem:[%s2217_s29 + $0x58] sm:$0xff] %v219_v11  ;;  %v221_v12 = vld [vmem:[%s2212_s28 + $0xc0] sm:$0xff]  ;;  %v223_v13 = vld [vmem:[%s2212_s28 + $0xc8] sm:$0xff] }
  0x1c   : > { %v225_v14 = vld [vmem:[%s2212_s28 + $0xe0] sm:$0xff]  ;;  %222 = vst [vmem:[%s2217_s29 + $0x60] sm:$0xff] %v221_v12  ;;  %224 = vst [vmem:[%s2217_s29 + $0x68] sm:$0xff] %v223_v13  ;;  %v227_v15 = vld [vmem:[%s2212_s28 + $0xe8] sm:$0xff] }
  0x1d   : > { %226 = vst [vmem:[%s2217_s29 + $0x70] sm:$0xff] %v225_v14  ;;  %v229_v16 = vld [vmem:[%s2212_s28 + $0x100] sm:$0xff]  ;;  %v231_v17 = vld [vmem:[%s2212_s28 + $0x108] sm:$0xff]  ;;  %228 = vst [vmem:[%s2217_s29 + $0x78] sm:$0xff] %v227_v15 }
  0x1e   : > { %230 = vst [vmem:[%s2217_s29 + $0x80] sm:$0xff] %v229_v16  ;;  %232 = vst [vmem:[%s2217_s29 + $0x88] sm:$0xff] %v231_v17  ;;  %v233_v18 = vld [vmem:[%s2212_s28 + $0x120] sm:$0xff]  ;;  %v235_v19 = vld [vmem:[%s2212_s28 + $0x128] sm:$0xff] }
  0x1f   : > { %v237_v20 = vld [vmem:[%s2212_s28 + $0x140] sm:$0xff]  ;;  %234 = vst [vmem:[%s2217_s29 + $0x90] sm:$0xff] %v233_v18  ;;  %236 = vst [vmem:[%s2217_s29 + $0x98] sm:$0xff] %v235_v19  ;;  %v239_v21 = vld [vmem:[%s2212_s28 + $0x148] sm:$0xff] }
  0x20   : > { %238 = vst [vmem:[%s2217_s29 + $0xa0] sm:$0xff] %v237_v20  ;;  %v241_v22 = vld [vmem:[%s2212_s28 + $0x160] sm:$0xff]  ;;  %v243_v23 = vld [vmem:[%s2212_s28 + $0x168] sm:$0xff]  ;;  %240 = vst [vmem:[%s2217_s29 + $0xa8] sm:$0xff] %v239_v21 }
  0x21   : > { %242 = vst [vmem:[%s2217_s29 + $0xb0] sm:$0xff] %v241_v22  ;;  %244 = vst [vmem:[%s2217_s29 + $0xb8] sm:$0xff] %v243_v23  ;;  %v245_v24 = vld [vmem:[%s2212_s28 + $0x180] sm:$0xff]  ;;  %v247_v25 = vld [vmem:[%s2212_s28 + $0x188] sm:$0xff] }
  0x22   : > { %v249_v26 = vld [vmem:[%s2212_s28 + $0x1a0] sm:$0xff]  ;;  %246 = vst [vmem:[%s2217_s29 + $0xc0] sm:$0xff] %v245_v24  ;;  %248 = vst [vmem:[%s2217_s29 + $0xc8] sm:$0xff] %v247_v25  ;;  %v251_v27 = vld [vmem:[%s2212_s28 + $0x1a8] sm:$0xff] }
  0x23   : > { %250 = vst [vmem:[%s2217_s29 + $0xd0] sm:$0xff] %v249_v26  ;;  %v253_v28 = vld [vmem:[%s2212_s28 + $0x1c0] sm:$0xff]  ;;  %v255_v29 = vld [vmem:[%s2212_s28 + $0x1c8] sm:$0xff]  ;;  %252 = vst [vmem:[%s2217_s29 + $0xd8] sm:$0xff] %v251_v27 }
  0x24   : > { %254 = vst [vmem:[%s2217_s29 + $0xe0] sm:$0xff] %v253_v28  ;;  %256 = vst [vmem:[%s2217_s29 + $0xe8] sm:$0xff] %v255_v29  ;;  %v257_v30 = vld [vmem:[%s2212_s28 + $0x1e0] sm:$0xff]  ;;  %v259_v31 = vld [vmem:[%s2212_s28 + $0x1e8] sm:$0xff] }
  0x25   : > { %v261_v32 = vld [vmem:[%s2212_s28 + $0x200] sm:$0xff]  ;;  %258 = vst [vmem:[%s2217_s29 + $0xf0] sm:$0xff] %v257_v30  ;;  %260 = vst [vmem:[%s2217_s29 + $0xf8] sm:$0xff] %v259_v31  ;;  %v263_v33 = vld [vmem:[%s2212_s28 + $0x208] sm:$0xff] }
  0x26   : > { %262 = vst [vmem:[%s2217_s29 + $0x100] sm:$0xff] %v261_v32  ;;  %v265_v34 = vld [vmem:[%s2212_s28 + $0x220] sm:$0xff]  ;;  %v267_v35 = vld [vmem:[%s2212_s28 + $0x228] sm:$0xff]  ;;  %264 = vst [vmem:[%s2217_s29 + $0x108] sm:$0xff] %v263_v33 }
  0x27   : > { %266 = vst [vmem:[%s2217_s29 + $0x110] sm:$0xff] %v265_v34  ;;  %268 = vst [vmem:[%s2217_s29 + $0x118] sm:$0xff] %v267_v35  ;;  %v269_v36 = vld [vmem:[%s2212_s28 + $0x240] sm:$0xff]  ;;  %v271_v37 = vld [vmem:[%s2212_s28 + $0x248] sm:$0xff] }
  0x28   : > { %v273_v38 = vld [vmem:[%s2212_s28 + $0x260] sm:$0xff]  ;;  %270 = vst [vmem:[%s2217_s29 + $0x120] sm:$0xff] %v269_v36  ;;  %272 = vst [vmem:[%s2217_s29 + $0x128] sm:$0xff] %v271_v37  ;;  %v275_v39 = vld [vmem:[%s2212_s28 + $0x268] sm:$0xff] }
  0x29   : > { %274 = vst [vmem:[%s2217_s29 + $0x130] sm:$0xff] %v273_v38  ;;  %v277_v40 = vld [vmem:[%s2212_s28 + $0x280] sm:$0xff]  ;;  %v279_v41 = vld [vmem:[%s2212_s28 + $0x288] sm:$0xff]  ;;  %276 = vst [vmem:[%s2217_s29 + $0x138] sm:$0xff] %v275_v39 }
  0x2a   : > { %278 = vst [vmem:[%s2217_s29 + $0x140] sm:$0xff] %v277_v40  ;;  %280 = vst [vmem:[%s2217_s29 + $0x148] sm:$0xff] %v279_v41  ;;  %v281_v42 = vld [vmem:[%s2212_s28 + $0x2a0] sm:$0xff]  ;;  %v283_v43 = vld [vmem:[%s2212_s28 + $0x2a8] sm:$0xff] }
  0x2b   : > { %v285_v44 = vld [vmem:[%s2212_s28 + $0x2c0] sm:$0xff]  ;;  %282 = vst [vmem:[%s2217_s29 + $0x150] sm:$0xff] %v281_v42  ;;  %284 = vst [vmem:[%s2217_s29 + $0x158] sm:$0xff] %v283_v43  ;;  %v287_v45 = vld [vmem:[%s2212_s28 + $0x2c8] sm:$0xff] }
  0x2c   : > { %286 = vst [vmem:[%s2217_s29 + $0x160] sm:$0xff] %v285_v44  ;;  %v289_v46 = vld [vmem:[%s2212_s28 + $0x2e0] sm:$0xff]  ;;  %v291_v47 = vld [vmem:[%s2212_s28 + $0x2e8] sm:$0xff]  ;;  %288 = vst [vmem:[%s2217_s29 + $0x168] sm:$0xff] %v287_v45 }
  0x2d   : > { %290 = vst [vmem:[%s2217_s29 + $0x170] sm:$0xff] %v289_v46  ;;  %292 = vst [vmem:[%s2217_s29 + $0x178] sm:$0xff] %v291_v47  ;;  %v293_v48 = vld [vmem:[%s2212_s28 + $0x300] sm:$0xff]  ;;  %v295_v49 = vld [vmem:[%s2212_s28 + $0x308] sm:$0xff] }
  0x2e   : > { %v297_v50 = vld [vmem:[%s2212_s28 + $0x320] sm:$0xff]  ;;  %294 = vst [vmem:[%s2217_s29 + $0x180] sm:$0xff] %v293_v48  ;;  %296 = vst [vmem:[%s2217_s29 + $0x188] sm:$0xff] %v295_v49  ;;  %v299_v51 = vld [vmem:[%s2212_s28 + $0x328] sm:$0xff] }
  0x2f   : > { %298 = vst [vmem:[%s2217_s29 + $0x190] sm:$0xff] %v297_v50  ;;  %v301_v52 = vld [vmem:[%s2212_s28 + $0x340] sm:$0xff]  ;;  %v303_v53 = vld [vmem:[%s2212_s28 + $0x348] sm:$0xff]  ;;  %300 = vst [vmem:[%s2217_s29 + $0x198] sm:$0xff] %v299_v51 }
  0x30   : > { %302 = vst [vmem:[%s2217_s29 + $0x1a0] sm:$0xff] %v301_v52  ;;  %304 = vst [vmem:[%s2217_s29 + $0x1a8] sm:$0xff] %v303_v53  ;;  %v305_v54 = vld [vmem:[%s2212_s28 + $0x360] sm:$0xff]  ;;  %v307_v55 = vld [vmem:[%s2212_s28 + $0x368] sm:$0xff] }
  0x31   : > { %v309_v56 = vld [vmem:[%s2212_s28 + $0x380] sm:$0xff]  ;;  %306 = vst [vmem:[%s2217_s29 + $0x1b0] sm:$0xff] %v305_v54  ;;  %308 = vst [vmem:[%s2217_s29 + $0x1b8] sm:$0xff] %v307_v55  ;;  %v311_v57 = vld [vmem:[%s2212_s28 + $0x388] sm:$0xff] }
  0x32   : > { %310 = vst [vmem:[%s2217_s29 + $0x1c0] sm:$0xff] %v309_v56  ;;  %v313_v58 = vld [vmem:[%s2212_s28 + $0x3a0] sm:$0xff]  ;;  %v315_v59 = vld [vmem:[%s2212_s28 + $0x3a8] sm:$0xff]  ;;  %312 = vst [vmem:[%s2217_s29 + $0x1c8] sm:$0xff] %v311_v57 }
  0x33   : > { %314 = vst [vmem:[%s2217_s29 + $0x1d0] sm:$0xff] %v313_v58  ;;  %316 = vst [vmem:[%s2217_s29 + $0x1d8] sm:$0xff] %v315_v59  ;;  %v317_v60 = vld [vmem:[%s2212_s28 + $0x3c0] sm:$0xff]  ;;  %v319_v61 = vld [vmem:[%s2212_s28 + $0x3c8] sm:$0xff] }
  0x34   : > { %v321_v62 = vld [vmem:[%s2212_s28 + $0x3e0] sm:$0xff]  ;;  %318 = vst [vmem:[%s2217_s29 + $0x1e0] sm:$0xff] %v317_v60  ;;  %320 = vst [vmem:[%s2217_s29 + $0x1e8] sm:$0xff] %v319_v61  ;;  %v323_v63 = vld [vmem:[%s2212_s28 + $0x3e8] sm:$0xff] }
  0x35   : > { %322 = vst [vmem:[%s2217_s29 + $0x1f0] sm:$0xff] %v321_v62  ;;  %v325_v0 = vld [vmem:[%s2212_s28 + $0x400] sm:$0xff]  ;;  %v327_v1 = vld [vmem:[%s2212_s28 + $0x408] sm:$0xff]  ;;  %324 = vst [vmem:[%s2217_s29 + $0x1f8] sm:$0xff] %v323_v63 }
  0x36   : > { %326 = vst [vmem:[%s2217_s29 + $0x200] sm:$0xff] %v325_v0  ;;  %328 = vst [vmem:[%s2217_s29 + $0x208] sm:$0xff] %v327_v1  ;;  %v329_v2 = vld [vmem:[%s2212_s28 + $0x420] sm:$0xff]  ;;  %v331_v3 = vld [vmem:[%s2212_s28 + $0x428] sm:$0xff] }
  0x37   : > { %v333_v4 = vld [vmem:[%s2212_s28 + $0x440] sm:$0xff]  ;;  %330 = vst [vmem:[%s2217_s29 + $0x210] sm:$0xff] %v329_v2  ;;  %332 = vst [vmem:[%s2217_s29 + $0x218] sm:$0xff] %v331_v3  ;;  %v335_v5 = vld [vmem:[%s2212_s28 + $0x448] sm:$0xff] }
  0x38   : > { %334 = vst [vmem:[%s2217_s29 + $0x220] sm:$0xff] %v333_v4  ;;  %v337_v6 = vld [vmem:[%s2212_s28 + $0x460] sm:$0xff]  ;;  %v339_v7 = vld [vmem:[%s2212_s28 + $0x468] sm:$0xff]  ;;  %336 = vst [vmem:[%s2217_s29 + $0x228] sm:$0xff] %v335_v5 }
  0x39   : > { %338 = vst [vmem:[%s2217_s29 + $0x230] sm:$0xff] %v337_v6  ;;  %340 = vst [vmem:[%s2217_s29 + $0x238] sm:$0xff] %v339_v7  ;;  %v341_v8 = vld [vmem:[%s2212_s28 + $0x480] sm:$0xff]  ;;  %v343_v9 = vld [vmem:[%s2212_s28 + $0x488] sm:$0xff] }
  0x3a   : > { %v345_v10 = vld [vmem:[%s2212_s28 + $0x4a0] sm:$0xff]  ;;  %342 = vst [vmem:[%s2217_s29 + $0x240] sm:$0xff] %v341_v8  ;;  %344 = vst [vmem:[%s2217_s29 + $0x248] sm:$0xff] %v343_v9  ;;  %v347_v11 = vld [vmem:[%s2212_s28 + $0x4a8] sm:$0xff] }
  0x3b   : > { %346 = vst [vmem:[%s2217_s29 + $0x250] sm:$0xff] %v345_v10  ;;  %v349_v12 = vld [vmem:[%s2212_s28 + $0x4c0] sm:$0xff]  ;;  %v351_v13 = vld [vmem:[%s2212_s28 + $0x4c8] sm:$0xff]  ;;  %348 = vst [vmem:[%s2217_s29 + $0x258] sm:$0xff] %v347_v11 }
  0x3c   : > { %350 = vst [vmem:[%s2217_s29 + $0x260] sm:$0xff] %v349_v12  ;;  %352 = vst [vmem:[%s2217_s29 + $0x268] sm:$0xff] %v351_v13  ;;  %v353_v14 = vld [vmem:[%s2212_s28 + $0x4e0] sm:$0xff]  ;;  %v355_v15 = vld [vmem:[%s2212_s28 + $0x4e8] sm:$0xff] }
  0x3d   : > { %v357_v16 = vld [vmem:[%s2212_s28 + $0x500] sm:$0xff]  ;;  %354 = vst [vmem:[%s2217_s29 + $0x270] sm:$0xff] %v353_v14  ;;  %356 = vst [vmem:[%s2217_s29 + $0x278] sm:$0xff] %v355_v15  ;;  %v359_v17 = vld [vmem:[%s2212_s28 + $0x508] sm:$0xff] }
  0x3e   : > { %358 = vst [vmem:[%s2217_s29 + $0x280] sm:$0xff] %v357_v16  ;;  %v361_v18 = vld [vmem:[%s2212_s28 + $0x520] sm:$0xff]  ;;  %v363_v19 = vld [vmem:[%s2212_s28 + $0x528] sm:$0xff]  ;;  %360 = vst [vmem:[%s2217_s29 + $0x288] sm:$0xff] %v359_v17 }
  0x3f   : > { %362 = vst [vmem:[%s2217_s29 + $0x290] sm:$0xff] %v361_v18  ;;  %364 = vst [vmem:[%s2217_s29 + $0x298] sm:$0xff] %v363_v19  ;;  %v365_v20 = vld [vmem:[%s2212_s28 + $0x540] sm:$0xff]  ;;  %v367_v21 = vld [vmem:[%s2212_s28 + $0x548] sm:$0xff] }
  0x40   : > { %v369_v22 = vld [vmem:[%s2212_s28 + $0x560] sm:$0xff]  ;;  %366 = vst [vmem:[%s2217_s29 + $0x2a0] sm:$0xff] %v365_v20  ;;  %368 = vst [vmem:[%s2217_s29 + $0x2a8] sm:$0xff] %v367_v21  ;;  %v371_v23 = vld [vmem:[%s2212_s28 + $0x568] sm:$0xff] }
  0x41   : > { %370 = vst [vmem:[%s2217_s29 + $0x2b0] sm:$0xff] %v369_v22  ;;  %v373_v24 = vld [vmem:[%s2212_s28 + $0x580] sm:$0xff]  ;;  %v375_v25 = vld [vmem:[%s2212_s28 + $0x588] sm:$0xff]  ;;  %372 = vst [vmem:[%s2217_s29 + $0x2b8] sm:$0xff] %v371_v23 }
  0x42   : > { %374 = vst [vmem:[%s2217_s29 + $0x2c0] sm:$0xff] %v373_v24  ;;  %376 = vst [vmem:[%s2217_s29 + $0x2c8] sm:$0xff] %v375_v25  ;;  %v377_v26 = vld [vmem:[%s2212_s28 + $0x5a0] sm:$0xff]  ;;  %v379_v27 = vld [vmem:[%s2212_s28 + $0x5a8] sm:$0xff] }
  0x43   : > { %v381_v28 = vld [vmem:[%s2212_s28 + $0x5c0] sm:$0xff]  ;;  %378 = vst [vmem:[%s2217_s29 + $0x2d0] sm:$0xff] %v377_v26  ;;  %380 = vst [vmem:[%s2217_s29 + $0x2d8] sm:$0xff] %v379_v27  ;;  %v383_v29 = vld [vmem:[%s2212_s28 + $0x5c8] sm:$0xff] }
  0x44   : > { %382 = vst [vmem:[%s2217_s29 + $0x2e0] sm:$0xff] %v381_v28  ;;  %v385_v30 = vld [vmem:[%s2212_s28 + $0x5e0] sm:$0xff]  ;;  %v387_v31 = vld [vmem:[%s2212_s28 + $0x5e8] sm:$0xff]  ;;  %384 = vst [vmem:[%s2217_s29 + $0x2e8] sm:$0xff] %v383_v29 }
  0x45   : > { %386 = vst [vmem:[%s2217_s29 + $0x2f0] sm:$0xff] %v385_v30  ;;  %388 = vst [vmem:[%s2217_s29 + $0x2f8] sm:$0xff] %v387_v31  ;;  %v389_v32 = vld [vmem:[%s2212_s28 + $0x600] sm:$0xff]  ;;  %v391_v33 = vld [vmem:[%s2212_s28 + $0x608] sm:$0xff] }
  0x46   : > { %v393_v34 = vld [vmem:[%s2212_s28 + $0x620] sm:$0xff]  ;;  %390 = vst [vmem:[%s2217_s29 + $0x300] sm:$0xff] %v389_v32  ;;  %392 = vst [vmem:[%s2217_s29 + $0x308] sm:$0xff] %v391_v33  ;;  %v395_v35 = vld [vmem:[%s2212_s28 + $0x628] sm:$0xff] }
  0x47   : > { %394 = vst [vmem:[%s2217_s29 + $0x310] sm:$0xff] %v393_v34  ;;  %v397_v36 = vld [vmem:[%s2212_s28 + $0x640] sm:$0xff]  ;;  %v399_v37 = vld [vmem:[%s2212_s28 + $0x648] sm:$0xff]  ;;  %396 = vst [vmem:[%s2217_s29 + $0x318] sm:$0xff] %v395_v35 }
  0x48   : > { %398 = vst [vmem:[%s2217_s29 + $0x320] sm:$0xff] %v397_v36  ;;  %400 = vst [vmem:[%s2217_s29 + $0x328] sm:$0xff] %v399_v37  ;;  %v401_v38 = vld [vmem:[%s2212_s28 + $0x660] sm:$0xff]  ;;  %v403_v39 = vld [vmem:[%s2212_s28 + $0x668] sm:$0xff] }
  0x49   : > { %v405_v40 = vld [vmem:[%s2212_s28 + $0x680] sm:$0xff]  ;;  %402 = vst [vmem:[%s2217_s29 + $0x330] sm:$0xff] %v401_v38  ;;  %404 = vst [vmem:[%s2217_s29 + $0x338] sm:$0xff] %v403_v39  ;;  %v407_v41 = vld [vmem:[%s2212_s28 + $0x688] sm:$0xff] }
  0x4a   : > { %406 = vst [vmem:[%s2217_s29 + $0x340] sm:$0xff] %v405_v40  ;;  %v409_v42 = vld [vmem:[%s2212_s28 + $0x6a0] sm:$0xff]  ;;  %v411_v43 = vld [vmem:[%s2212_s28 + $0x6a8] sm:$0xff]  ;;  %408 = vst [vmem:[%s2217_s29 + $0x348] sm:$0xff] %v407_v41 }
  0x4b   : > { %410 = vst [vmem:[%s2217_s29 + $0x350] sm:$0xff] %v409_v42  ;;  %412 = vst [vmem:[%s2217_s29 + $0x358] sm:$0xff] %v411_v43  ;;  %v413_v44 = vld [vmem:[%s2212_s28 + $0x6c0] sm:$0xff]  ;;  %v415_v45 = vld [vmem:[%s2212_s28 + $0x6c8] sm:$0xff] }
  0x4c   : > { %v417_v46 = vld [vmem:[%s2212_s28 + $0x6e0] sm:$0xff]  ;;  %414 = vst [vmem:[%s2217_s29 + $0x360] sm:$0xff] %v413_v44  ;;  %416 = vst [vmem:[%s2217_s29 + $0x368] sm:$0xff] %v415_v45  ;;  %v419_v47 = vld [vmem:[%s2212_s28 + $0x6e8] sm:$0xff] }
  0x4d   : > { %418 = vst [vmem:[%s2217_s29 + $0x370] sm:$0xff] %v417_v46  ;;  %v421_v48 = vld [vmem:[%s2212_s28 + $0x700] sm:$0xff]  ;;  %v423_v49 = vld [vmem:[%s2212_s28 + $0x708] sm:$0xff]  ;;  %420 = vst [vmem:[%s2217_s29 + $0x378] sm:$0xff] %v419_v47 }
  0x4e   : > { %422 = vst [vmem:[%s2217_s29 + $0x380] sm:$0xff] %v421_v48  ;;  %424 = vst [vmem:[%s2217_s29 + $0x388] sm:$0xff] %v423_v49  ;;  %v425_v50 = vld [vmem:[%s2212_s28 + $0x720] sm:$0xff]  ;;  %v427_v51 = vld [vmem:[%s2212_s28 + $0x728] sm:$0xff] }
  0x4f   : > { %v429_v52 = vld [vmem:[%s2212_s28 + $0x740] sm:$0xff]  ;;  %426 = vst [vmem:[%s2217_s29 + $0x390] sm:$0xff] %v425_v50  ;;  %428 = vst [vmem:[%s2217_s29 + $0x398] sm:$0xff] %v427_v51  ;;  %v431_v53 = vld [vmem:[%s2212_s28 + $0x748] sm:$0xff] }
  0x50   : > { %430 = vst [vmem:[%s2217_s29 + $0x3a0] sm:$0xff] %v429_v52  ;;  %v433_v54 = vld [vmem:[%s2212_s28 + $0x760] sm:$0xff]  ;;  %v435_v55 = vld [vmem:[%s2212_s28 + $0x768] sm:$0xff]  ;;  %432 = vst [vmem:[%s2217_s29 + $0x3a8] sm:$0xff] %v431_v53 }
  0x51   : > { %434 = vst [vmem:[%s2217_s29 + $0x3b0] sm:$0xff] %v433_v54  ;;  %436 = vst [vmem:[%s2217_s29 + $0x3b8] sm:$0xff] %v435_v55  ;;  %v437_v56 = vld [vmem:[%s2212_s28 + $0x780] sm:$0xff]  ;;  %v439_v57 = vld [vmem:[%s2212_s28 + $0x788] sm:$0xff] }
  0x52   : > { %v441_v58 = vld [vmem:[%s2212_s28 + $0x7a0] sm:$0xff]  ;;  %438 = vst [vmem:[%s2217_s29 + $0x3c0] sm:$0xff] %v437_v56  ;;  %440 = vst [vmem:[%s2217_s29 + $0x3c8] sm:$0xff] %v439_v57  ;;  %v443_v59 = vld [vmem:[%s2212_s28 + $0x7a8] sm:$0xff] }
  0x53   : > { %442 = vst [vmem:[%s2217_s29 + $0x3d0] sm:$0xff] %v441_v58  ;;  %v445_v60 = vld [vmem:[%s2212_s28 + $0x7c0] sm:$0xff]  ;;  %v447_v61 = vld [vmem:[%s2212_s28 + $0x7c8] sm:$0xff]  ;;  %444 = vst [vmem:[%s2217_s29 + $0x3d8] sm:$0xff] %v443_v59 }
  0x54   : > { %446 = vst [vmem:[%s2217_s29 + $0x3e0] sm:$0xff] %v445_v60  ;;  %448 = vst [vmem:[%s2217_s29 + $0x3e8] sm:$0xff] %v447_v61  ;;  %v449_v62 = vld [vmem:[%s2212_s28 + $0x7e0] sm:$0xff]  ;;  %v451_v63 = vld [vmem:[%s2212_s28 + $0x7e8] sm:$0xff] }
  0x55   : > { %450 = vst [vmem:[%s2217_s29 + $0x3f0] sm:$0xff] %v449_v62  ;;  %452 = vst [vmem:[%s2217_s29 + $0x3f8] sm:$0xff] %v451_v63 }
  0x56 PF: > { %p1699_p8 = scmp.ge.s32.totalorder %s2142_s16, 1  ;;  %p465_p9 = scmp.lt.s32.totalorder %s2142_s16, 3 }
  0x58   : > { %p466_p10 = pnand %p1699_p8, %p465_p9 }
  0x59   : > { %s472_s30 = sand.u32 (!%p466_p10), 1, %s2126_s12   ;;  %v2004_v0 = vld [vmem:[%s2646_s0 + $0x4] ss:$16 sps:$4 sm:$0xff] (!%p466_p10)   ;;  %s1702_s20 = sshll.u32 (!%p466_p10), %s2134_s14, 2 }
  0x5a   : > { %469 = sbr.rel (%p466_p10) target bundleno = 451 (0x1c3), region = 51  ;;  %s1700_s4 = sshll.u32 (!%p466_p10), %s472_s30, 10  ;;  %1375 = vmatprep.mubr.bf16.mxu0 (!%p466_p10), %v2004_v0  ;;  %1461 = vmatprep.mubr.bf16.mxu1 (!%p466_p10), %v2004_v0 }
  0x5b   : > { %s2480_s7 = scalar_lea.vmem (!%p466_p10), [#allocation2], %s1700_s4  ;;  %p523_p11 = scmp.lt.s32.totalorder (!%p466_p10), %s1702_s20, 7 }
  0x5c   : > { %v1906_v1 = vld [vmem:[%s2480_s7 + $0x4] ss:$16 sps:$4 sm:$0xff] (!%p466_p10)   ;;  %v1908_v2 = vld [vmem:[%s2480_s7 + $0xc] ss:$16 sps:$4 sm:$0xff] (!%p466_p10)   ;;  %v1910_v3 = vld [vmem:[%s2480_s7] ss:$16 sps:$4 sm:$0xff] (!%p466_p10)  }
  0x5d   : > { %1343 = vmatprep.subr.bf16.mxu0 (!%p466_p10), %v1906_v1  ;;  %v1911_v4 = vld [vmem:[%s2480_s7 + $0x8] ss:$16 sps:$4 sm:$0xff] (!%p466_p10)   ;;  %1429 = vmatprep.subr.bf16.mxu1 (!%p466_p10), %v1908_v2  ;;  %v1912_v5 = vld [vmem:[%s2480_s7 + $0x24] ss:$16 sps:$4 sm:$0xff] (!%p466_p10)   ;;  %v1914_v6 = vld [vmem:[%s2480_s7 + $0x2c] ss:$16 sps:$4 sm:$0xff] (!%p466_p10)  }
  0x5e   : > { %1344 = vmatpush1.bf16.msra.mxu0 (!%p466_p10), %v1910_v3  ;;  %1430 = vmatpush1.bf16.msra.mxu1 (!%p466_p10), %v1911_v4  ;;  %v1916_v7 = vld [vmem:[%s2480_s7 + $0x20] ss:$16 sps:$4 sm:$0xff] (!%p466_p10)   ;;  %v1917_v8 = vld [vmem:[%s2480_s7 + $0x28] ss:$16 sps:$4 sm:$0xff] (!%p466_p10)   ;;  %v1918_v9 = vld [vmem:[%s2480_s7 + $0x44] ss:$16 sps:$4 sm:$0xff] (!%p466_p10)  }
  0x5f   : > { %1345 = vmatprep.subr.bf16.mxu0 (!%p466_p10), %v1912_v5  ;;  %1431 = vmatprep.subr.bf16.mxu1 (!%p466_p10), %v1914_v6  ;;  %v1920_v10 = vld [vmem:[%s2480_s7 + $0x4c] ss:$16 sps:$4 sm:$0xff] (!%p466_p10)   ;;  %v1922_v11 = vld [vmem:[%s2480_s7 + $0x40] ss:$16 sps:$4 sm:$0xff] (!%p466_p10)   ;;  %v1923_v12 = vld [vmem:[%s2480_s7 + $0x48] ss:$16 sps:$4 sm:$0xff] (!%p466_p10)  }
  0x60   : > { %v1924_v13 = vld [vmem:[%s2480_s7 + $0x64] ss:$16 sps:$4 sm:$0xff] (!%p466_p10)   ;;  %v1926_v14 = vld [vmem:[%s2480_s7 + $0x6c] ss:$16 sps:$4 sm:$0xff] (!%p466_p10)   ;;  %v1928_v15 = vld [vmem:[%s2480_s7 + $0x60] ss:$16 sps:$4 sm:$0xff] (!%p466_p10)  }
  0x61   : > { %v1929_v16 = vld [vmem:[%s2480_s7 + $0x68] ss:$16 sps:$4 sm:$0xff]   ;;  %v1930_v17 = vld [vmem:[%s2480_s7 + $0x84] ss:$16 sps:$4 sm:$0xff]   ;;  %v1932_v18 = vld [vmem:[%s2480_s7 + $0x8c] ss:$16 sps:$4 sm:$0xff]  }
  0x62   : > { %1346 = vmatpush1.bf16.msra.mxu0 %v1916_v7  ;;  %1432 = vmatpush1.bf16.msra.mxu1 %v1917_v8  ;;  %v1934_v19 = vld [vmem:[%s2480_s7 + $0x80] ss:$16 sps:$4 sm:$0xff]   ;;  %v1935_v20 = vld [vmem:[%s2480_s7 + $0x88] ss:$16 sps:$4 sm:$0xff]   ;;  %v1936_v21 = vld [vmem:[%s2480_s7 + $0xa4] ss:$16 sps:$4 sm:$0xff]  }
  0x63   : > { %1347 = vmatprep.subr.bf16.mxu0 %v1918_v9  ;;  %1433 = vmatprep.subr.bf16.mxu1 %v1920_v10  ;;  %v1938_v22 = vld [vmem:[%s2480_s7 + $0xac] ss:$16 sps:$4 sm:$0xff]   ;;  %v1940_v23 = vld [vmem:[%s2480_s7 + $0xa0] ss:$16 sps:$4 sm:$0xff]   ;;  %v1941_v24 = vld [vmem:[%s2480_s7 + $0xa8] ss:$16 sps:$4 sm:$0xff]  }
  0x64   : > { %v1942_v25 = vld [vmem:[%s2480_s7 + $0xc4] ss:$16 sps:$4 sm:$0xff]   ;;  %v1944_v26 = vld [vmem:[%s2480_s7 + $0xcc] ss:$16 sps:$4 sm:$0xff]   ;;  %v1946_v27 = vld [vmem:[%s2480_s7 + $0xc0] ss:$16 sps:$4 sm:$0xff]  }
  0x65   : > { %v1947_v28 = vld [vmem:[%s2480_s7 + $0xc8] ss:$16 sps:$4 sm:$0xff]   ;;  %v1948_v29 = vld [vmem:[%s2480_s7 + $0xe4] ss:$16 sps:$4 sm:$0xff]   ;;  %v1950_v30 = vld [vmem:[%s2480_s7 + $0xec] ss:$16 sps:$4 sm:$0xff]  }
  0x66   : > { %1348 = vmatpush1.bf16.msra.mxu0 %v1922_v11  ;;  %1434 = vmatpush1.bf16.msra.mxu1 %v1923_v12  ;;  %v1952_v31 = vld [vmem:[%s2480_s7 + $0xe0] ss:$16 sps:$4 sm:$0xff]   ;;  %v1953_v32 = vld [vmem:[%s2480_s7 + $0xe8] ss:$16 sps:$4 sm:$0xff]   ;;  %v1954_v33 = vld [vmem:[%s2480_s7 + $0x104] ss:$16 sps:$4 sm:$0xff]  }
  0x67   : > { %1349 = vmatprep.subr.bf16.mxu0 %v1924_v13  ;;  %1435 = vmatprep.subr.bf16.mxu1 %v1926_v14  ;;  %v1956_v34 = vld [vmem:[%s2480_s7 + $0x10c] ss:$16 sps:$4 sm:$0xff]   ;;  %v1958_v35 = vld [vmem:[%s2480_s7 + $0x100] ss:$16 sps:$4 sm:$0xff]   ;;  %v1959_v36 = vld [vmem:[%s2480_s7 + $0x108] ss:$16 sps:$4 sm:$0xff]  }
  0x68   : > { %v1960_v37 = vld [vmem:[%s2480_s7 + $0x124] ss:$16 sps:$4 sm:$0xff]   ;;  %v1962_v38 = vld [vmem:[%s2480_s7 + $0x12c] ss:$16 sps:$4 sm:$0xff]   ;;  %v1964_v39 = vld [vmem:[%s2480_s7 + $0x120] ss:$16 sps:$4 sm:$0xff]  }
  0x69   : > { %v1965_v40 = vld [vmem:[%s2480_s7 + $0x128] ss:$16 sps:$4 sm:$0xff]   ;;  %v1966_v41 = vld [vmem:[%s2480_s7 + $0x144] ss:$16 sps:$4 sm:$0xff]   ;;  %v1968_v42 = vld [vmem:[%s2480_s7 + $0x14c] ss:$16 sps:$4 sm:$0xff]  }
  0x6a   : > { %1350 = vmatpush1.bf16.msra.mxu0 %v1928_v15  ;;  %1436 = vmatpush1.bf16.msra.mxu1 %v1929_v16  ;;  %v1970_v43 = vld [vmem:[%s2480_s7 + $0x140] ss:$16 sps:$4 sm:$0xff]   ;;  %v1971_v44 = vld [vmem:[%s2480_s7 + $0x148] ss:$16 sps:$4 sm:$0xff]   ;;  %v1972_v45 = vld [vmem:[%s2480_s7 + $0x164] ss:$16 sps:$4 sm:$0xff]  }
  0x6b   : > { %1351 = vmatprep.subr.bf16.mxu0 %v1930_v17  ;;  %1437 = vmatprep.subr.bf16.mxu1 %v1932_v18  ;;  %v1974_v46 = vld [vmem:[%s2480_s7 + $0x16c] ss:$16 sps:$4 sm:$0xff]   ;;  %v1976_v47 = vld [vmem:[%s2480_s7 + $0x160] ss:$16 sps:$4 sm:$0xff]   ;;  %v1977_v48 = vld [vmem:[%s2480_s7 + $0x168] ss:$16 sps:$4 sm:$0xff]  }
  0x6c   : > { %v1978_v49 = vld [vmem:[%s2480_s7 + $0x184] ss:$16 sps:$4 sm:$0xff]   ;;  %v1980_v50 = vld [vmem:[%s2480_s7 + $0x18c] ss:$16 sps:$4 sm:$0xff]   ;;  %v1982_v51 = vld [vmem:[%s2480_s7 + $0x180] ss:$16 sps:$4 sm:$0xff]  }
  0x6d   : > { %v1983_v52 = vld [vmem:[%s2480_s7 + $0x188] ss:$16 sps:$4 sm:$0xff]   ;;  %v1984_v53 = vld [vmem:[%s2480_s7 + $0x1a4] ss:$16 sps:$4 sm:$0xff]   ;;  %v1986_v54 = vld [vmem:[%s2480_s7 + $0x1ac] ss:$16 sps:$4 sm:$0xff]  }
  0x6e   : > { %1352 = vmatpush1.bf16.msra.mxu0 %v1934_v19  ;;  %1438 = vmatpush1.bf16.msra.mxu1 %v1935_v20  ;;  %v1988_v55 = vld [vmem:[%s2480_s7 + $0x1a0] ss:$16 sps:$4 sm:$0xff]   ;;  %v1989_v56 = vld [vmem:[%s2480_s7 + $0x1a8] ss:$16 sps:$4 sm:$0xff]   ;;  %v1990_v57 = vld [vmem:[%s2480_s7 + $0x1c4] ss:$16 sps:$4 sm:$0xff]  }
  0x6f   : > { %1353 = vmatprep.subr.bf16.mxu0 %v1936_v21  ;;  %1439 = vmatprep.subr.bf16.mxu1 %v1938_v22  ;;  %v1992_v58 = vld [vmem:[%s2480_s7 + $0x1cc] ss:$16 sps:$4 sm:$0xff]   ;;  %v1994_v59 = vld [vmem:[%s2480_s7 + $0x1c0] ss:$16 sps:$4 sm:$0xff]   ;;  %v1995_v60 = vld [vmem:[%s2480_s7 + $0x1c8] ss:$16 sps:$4 sm:$0xff]  }
  0x70   : > { %v1996_v61 = vld [vmem:[%s2480_s7 + $0x1e4] ss:$16 sps:$4 sm:$0xff]   ;;  %v1998_v62 = vld [vmem:[%s2480_s7 + $0x1ec] ss:$16 sps:$4 sm:$0xff]   ;;  %v2000_v63 = vld [vmem:[%s2480_s7 + $0x1e0] ss:$16 sps:$4 sm:$0xff]  }
  0x71   : > { %v2001_v0 = vld [vmem:[%s2480_s7 + $0x1e8] ss:$16 sps:$4 sm:$0xff]   ;;  %v2007_v1 = vld [vmem:[%s2480_s7 + $0x204] ss:$16 sps:$4 sm:$0xff]   ;;  %v2010_v2 = vld [vmem:[%s2480_s7 + $0x20c] ss:$16 sps:$4 sm:$0xff]  }
  0x72   : > { %1354 = vmatpush1.bf16.msra.mxu0 %v1940_v23  ;;  %1440 = vmatpush1.bf16.msra.mxu1 %v1941_v24  ;;  %v2002_v3 = vld [vmem:[%s2646_s0] ss:$16 sps:$4 sm:$0xff]   ;;  %v2008_v5 = vld [vmem:[%s2480_s7 + $0x208] ss:$16 sps:$4 sm:$0xff]   ;;  %v2013_v6 = vld [vmem:[%s2480_s7 + $0x224] ss:$16 sps:$4 sm:$0xff]  }
  0x73   : > { %1355 = vmatprep.subr.bf16.mxu0 %v1942_v25  ;;  %1441 = vmatprep.subr.bf16.mxu1 %v1944_v26  ;;  %v2005_v4 = vld [vmem:[%s2480_s7 + $0x200] ss:$16 sps:$4 sm:$0xff]   ;;  %v2016_v7 = vld [vmem:[%s2480_s7 + $0x22c] ss:$16 sps:$4 sm:$0xff]   ;;  %v2014_v9 = vld [vmem:[%s2480_s7 + $0x228] ss:$16 sps:$4 sm:$0xff]  }
  0x74   : > { %v2011_v8 = vld [vmem:[%s2480_s7 + $0x220] ss:$16 sps:$4 sm:$0xff]   ;;  %v2019_v10 = vld [vmem:[%s2480_s7 + $0x244] ss:$16 sps:$4 sm:$0xff]   ;;  %v2022_v11 = vld [vmem:[%s2480_s7 + $0x24c] ss:$16 sps:$4 sm:$0xff]  }
  0x75   : > { %v2017_v12 = vld [vmem:[%s2480_s7 + $0x240] ss:$16 sps:$4 sm:$0xff]   ;;  %v2020_v13 = vld [vmem:[%s2480_s7 + $0x248] ss:$16 sps:$4 sm:$0xff]   ;;  %v2025_v14 = vld [vmem:[%s2480_s7 + $0x264] ss:$16 sps:$4 sm:$0xff]  }
  0x76   : > { %1356 = vmatpush1.bf16.msra.mxu0 %v1946_v27  ;;  %1442 = vmatpush1.bf16.msra.mxu1 %v1947_v28  ;;  %v2028_v15 = vld [vmem:[%s2480_s7 + $0x26c] ss:$16 sps:$4 sm:$0xff]   ;;  %v2023_v16 = vld [vmem:[%s2480_s7 + $0x260] ss:$16 sps:$4 sm:$0xff]   ;;  %v2026_v17 = vld [vmem:[%s2480_s7 + $0x268] ss:$16 sps:$4 sm:$0xff]  }
  0x77   : > { %1357 = vmatprep.subr.bf16.mxu0 %v1948_v29  ;;  %1443 = vmatprep.subr.bf16.mxu1 %v1950_v30  ;;  %v2031_v18 = vld [vmem:[%s2480_s7 + $0x284] ss:$16 sps:$4 sm:$0xff]   ;;  %v2034_v19 = vld [vmem:[%s2480_s7 + $0x28c] ss:$16 sps:$4 sm:$0xff]   ;;  %v2029_v20 = vld [vmem:[%s2480_s7 + $0x280] ss:$16 sps:$4 sm:$0xff]  }
  0x78   : > { %v2032_v21 = vld [vmem:[%s2480_s7 + $0x288] ss:$16 sps:$4 sm:$0xff]   ;;  %v2037_v22 = vld [vmem:[%s2480_s7 + $0x2a4] ss:$16 sps:$4 sm:$0xff]   ;;  %v2040_v23 = vld [vmem:[%s2480_s7 + $0x2ac] ss:$16 sps:$4 sm:$0xff]  }
  0x79   : > { %v2035_v24 = vld [vmem:[%s2480_s7 + $0x2a0] ss:$16 sps:$4 sm:$0xff]   ;;  %v2038_v25 = vld [vmem:[%s2480_s7 + $0x2a8] ss:$16 sps:$4 sm:$0xff]   ;;  %v2043_v26 = vld [vmem:[%s2480_s7 + $0x2c4] ss:$16 sps:$4 sm:$0xff]  }
  0x7a   : > { %1358 = vmatpush1.bf16.msra.mxu0 %v1952_v31  ;;  %1444 = vmatpush1.bf16.msra.mxu1 %v1953_v32  ;;  %v2046_v27 = vld [vmem:[%s2480_s7 + $0x2cc] ss:$16 sps:$4 sm:$0xff]   ;;  %v2041_v29 = vld [vmem:[%s2480_s7 + $0x2c0] ss:$16 sps:$4 sm:$0xff]   ;;  %v2044_v30 = vld [vmem:[%s2480_s7 + $0x2c8] ss:$16 sps:$4 sm:$0xff]  }
  0x7b   : > { %1359 = vmatprep.subr.bf16.mxu0 %v1954_v33  ;;  %1445 = vmatprep.subr.bf16.mxu1 %v1956_v34  ;;  %v2103_v28 = vld [vmem:[%s2646_s0 + $0xc] ss:$16 sps:$4 sm:$0xff]   ;;  %v2049_v31 = vld [vmem:[%s2480_s7 + $0x2e4] ss:$16 sps:$4 sm:$0xff]   ;;  %v2047_v33 = vld [vmem:[%s2480_s7 + $0x2e0] ss:$16 sps:$4 sm:$0xff]  }
  0x7c   : > { %v2052_v32 = vld [vmem:[%s2480_s7 + $0x2ec] ss:$16 sps:$4 sm:$0xff]   ;;  %v2050_v34 = vld [vmem:[%s2480_s7 + $0x2e8] ss:$16 sps:$4 sm:$0xff]   ;;  %s2658_s20 = smov (!%p523_p11, %s1702_s20), 7  ;;  %s1701_s26 = sshll.u32 %s472_s30, 5 }
  0x7d   : > { %s525_s25 = scalar_lea.vmem %s2648_s2, %s2658_s20  ;;  %s507_s12 = scalar_lea.vmem [#allocation3], %s1701_s26 }
  0x7e   : > { %1360 = vmatpush1.bf16.msra.mxu0 %v1958_v35  ;;  %1446 = vmatpush1.bf16.msra.mxu1 %v1959_v36  ;;  %v2055_v35 = vld [vmem:[%s2480_s7 + $0x304] ss:$16 sps:$4 sm:$0xff]   ;;  %v2058_v36 = vld [vmem:[%s2480_s7 + $0x30c] ss:$16 sps:$4 sm:$0xff]   ;;  %s1849_s27 = sshll.u32 (%p2199_p6), %s2134_s14, 4 }
  0x7f   : > { %1361 = vmatprep.subr.bf16.mxu0 %v1960_v37  ;;  %1447 = vmatprep.subr.bf16.mxu1 %v1962_v38  ;;  %v2053_v37 = vld [vmem:[%s2480_s7 + $0x300] ss:$16 sps:$4 sm:$0xff]   ;;  %v2056_v38 = vld [vmem:[%s2480_s7 + $0x308] ss:$16 sps:$4 sm:$0xff]   ;;  %s1563_s30 = scalar_lea.vmem (%p2199_p6), %s2649_s3, %s1849_s27 }
  0x82   : > { %1362 = vmatpush1.bf16.msra.mxu0 %v1964_v39  ;;  %1448 = vmatpush1.bf16.msra.mxu1 %v1965_v40  ;;  %v2061_v39 = vld [vmem:[%s2480_s7 + $0x324] ss:$16 sps:$4 sm:$0xff]   ;;  %v2064_v40 = vld [vmem:[%s2480_s7 + $0x32c] ss:$16 sps:$4 sm:$0xff]  }
  0x83   : > { %1363 = vmatprep.subr.bf16.mxu0 %v1966_v41  ;;  %1449 = vmatprep.subr.bf16.mxu1 %v1968_v42  ;;  %v2059_v41 = vld [vmem:[%s2480_s7 + $0x320] ss:$16 sps:$4 sm:$0xff]   ;;  %v2062_v42 = vld [vmem:[%s2480_s7 + $0x328] ss:$16 sps:$4 sm:$0xff]  }
  0x86   : > { %1364 = vmatpush1.bf16.msra.mxu0 %v1970_v43  ;;  %1450 = vmatpush1.bf16.msra.mxu1 %v1971_v44  ;;  %v2067_v43 = vld [vmem:[%s2480_s7 + $0x344] ss:$16 sps:$4 sm:$0xff]   ;;  %v2070_v44 = vld [vmem:[%s2480_s7 + $0x34c] ss:$16 sps:$4 sm:$0xff]  }
  0x87   : > { %1365 = vmatprep.subr.bf16.mxu0 %v1972_v45  ;;  %1451 = vmatprep.subr.bf16.mxu1 %v1974_v46  ;;  %v2065_v45 = vld [vmem:[%s2480_s7 + $0x340] ss:$16 sps:$4 sm:$0xff]   ;;  %v2068_v46 = vld [vmem:[%s2480_s7 + $0x348] ss:$16 sps:$4 sm:$0xff]  }
  0x8a   : > { %1366 = vmatpush1.bf16.msra.mxu0 %v1976_v47  ;;  %1452 = vmatpush1.bf16.msra.mxu1 %v1977_v48  ;;  %v2073_v47 = vld [vmem:[%s2480_s7 + $0x364] ss:$16 sps:$4 sm:$0xff]   ;;  %v2076_v48 = vld [vmem:[%s2480_s7 + $0x36c] ss:$16 sps:$4 sm:$0xff]  }
  0x8b   : > { %1367 = vmatprep.subr.bf16.mxu0 %v1978_v49  ;;  %1453 = vmatprep.subr.bf16.mxu1 %v1980_v50  ;;  %v2071_v49 = vld [vmem:[%s2480_s7 + $0x360] ss:$16 sps:$4 sm:$0xff]   ;;  %v2074_v50 = vld [vmem:[%s2480_s7 + $0x368] ss:$16 sps:$4 sm:$0xff]  }
  0x8e   : > { %1368 = vmatpush1.bf16.msra.mxu0 %v1982_v51  ;;  %1454 = vmatpush1.bf16.msra.mxu1 %v1983_v52  ;;  %v2079_v51 = vld [vmem:[%s2480_s7 + $0x384] ss:$16 sps:$4 sm:$0xff]   ;;  %v2082_v52 = vld [vmem:[%s2480_s7 + $0x38c] ss:$16 sps:$4 sm:$0xff]  }
  0x8f   : > { %1369 = vmatprep.subr.bf16.mxu0 %v1984_v53  ;;  %1455 = vmatprep.subr.bf16.mxu1 %v1986_v54  ;;  %v2077_v53 = vld [vmem:[%s2480_s7 + $0x380] ss:$16 sps:$4 sm:$0xff]   ;;  %v2080_v54 = vld [vmem:[%s2480_s7 + $0x388] ss:$16 sps:$4 sm:$0xff]  }
  0x92   : > { %1370 = vmatpush1.bf16.msra.mxu0 %v1988_v55  ;;  %1456 = vmatpush1.bf16.msra.mxu1 %v1989_v56  ;;  %v2085_v55 = vld [vmem:[%s2480_s7 + $0x3a4] ss:$16 sps:$4 sm:$0xff]   ;;  %v2088_v56 = vld [vmem:[%s2480_s7 + $0x3ac] ss:$16 sps:$4 sm:$0xff]  }
  0x93   : > { %1371 = vmatprep.subr.bf16.mxu0 %v1990_v57  ;;  %1457 = vmatprep.subr.bf16.mxu1 %v1992_v58  ;;  %v2083_v57 = vld [vmem:[%s2480_s7 + $0x3a0] ss:$16 sps:$4 sm:$0xff]   ;;  %v2086_v58 = vld [vmem:[%s2480_s7 + $0x3a8] ss:$16 sps:$4 sm:$0xff]  }
  0x96   : > { %1372 = vmatpush1.bf16.msra.mxu0 %v1994_v59  ;;  %1458 = vmatpush1.bf16.msra.mxu1 %v1995_v60  ;;  %v2091_v59 = vld [vmem:[%s2480_s7 + $0x3c4] ss:$16 sps:$4 sm:$0xff]   ;;  %v2094_v60 = vld [vmem:[%s2480_s7 + $0x3cc] ss:$16 sps:$4 sm:$0xff]  }
  0x97   : > { %1373 = vmatprep.subr.bf16.mxu0 %v1996_v61  ;;  %1459 = vmatprep.subr.bf16.mxu1 %v1998_v62  ;;  %v2089_v61 = vld [vmem:[%s2480_s7 + $0x3c0] ss:$16 sps:$4 sm:$0xff]   ;;  %v2092_v62 = vld [vmem:[%s2480_s7 + $0x3c8] ss:$16 sps:$4 sm:$0xff]  }
  0x9a   : > { %1374 = vmatpush1.bf16.msra.mxu0 %v2000_v63  ;;  %1460 = vmatpush1.bf16.msra.mxu1 %v2001_v0  ;;  %v2097_v63 = vld [vmem:[%s2480_s7 + $0x3e4] ss:$16 sps:$4 sm:$0xff]   ;;  %v2100_v0 = vld [vmem:[%s2480_s7 + $0x3ec] ss:$16 sps:$4 sm:$0xff]  }
  0x9b   : > { %1386 = vmatprep.subr.bf16.mxu0 %v2007_v1  ;;  %1472 = vmatprep.subr.bf16.mxu1 %v2010_v2  ;;  %v2095_v1 = vld [vmem:[%s2480_s7 + $0x3e0] ss:$16 sps:$4 sm:$0xff]   ;;  %v2098_v2 = vld [vmem:[%s2480_s7 + $0x3e8] ss:$16 sps:$4 sm:$0xff]  }
  0x9d   : > { %1376 = vmatmul.mubr.bf16.vlgmr.msra.gmra.mrb[0].mxu0 %v2002_v3  ;;  %1462 = vmatmul.mubr.bf16.vlgmr.msra.gmra.mrb[0].mxu1 %v2002_v3  ;;  %v2101_v3 = vld [vmem:[%s2646_s0 + $0x8] ss:$16 sps:$4 sm:$0xff]  }
  0x9e   : > { %1387 = vmatpush1.bf16.msra.mxu0 %v2005_v4  ;;  %1473 = vmatpush1.bf16.msra.mxu1 %v2008_v5  ;;  %v663_v4 = vlaneseq }
  0x9f   : > { %1388 = vmatprep.subr.bf16.mxu0 %v2013_v6  ;;  %1474 = vmatprep.subr.bf16.mxu1 %v2016_v7 }
  0xa0   : > { %1418 = vmatprep.mubr.bf16.mxu0 %v2103_v28  ;;  %1504 = vmatprep.mubr.bf16.mxu1 %v2103_v28  ;;  %v664_v5 = vshrl.u32 %v663_v4, 7 }
  0xa2   : > { %1389 = vmatpush1.bf16.msra.mxu0 %v2011_v8  ;;  %1475 = vmatpush1.bf16.msra.mxu1 %v2014_v9  ;;  %v665_v6 = vsub.s32 0, %v664_v5  ;;  %v673_v7 = vsub.s32 2, %v664_v5  ;;  %v661_v8 = vld [vmem:[%s525_s25] sm:$0xf]  ;;  %v669_v9 = vsub.s32 1, %v664_v5 }
  0xa3   : > { %1390 = vmatprep.subr.bf16.mxu0 %v2019_v10  ;;  %1476 = vmatprep.subr.bf16.mxu1 %v2022_v11  ;;  %v677_v10 = vsub.s32 3, %v664_v5 }
  0xa4   : > { %v666_v11 = vrot.slane %v661_v8, %v665_v6 }
  0xa6   : > { %1391 = vmatpush1.bf16.msra.mxu0 %v2017_v12  ;;  %1477 = vmatpush1.bf16.msra.mxu1 %v2020_v13  ;;  %v674_v12 = vrot.slane %v661_v8, %v673_v7  ;;  %v670_v13 = vrot.slane %v661_v8, %v669_v9 }
  0xa7   : > { %1392 = vmatprep.subr.bf16.mxu0 %v2025_v14  ;;  %1478 = vmatprep.subr.bf16.mxu1 %v2028_v15  ;;  %v678_v14 = vrot.slane %v661_v8, %v677_v10 }
  0xaa   : > { %1393 = vmatpush1.bf16.msra.mxu0 %v2023_v16  ;;  %1479 = vmatpush1.bf16.msra.mxu1 %v2026_v17 }
  0xab   : > { %1394 = vmatprep.subr.bf16.mxu0 %v2031_v18  ;;  %1480 = vmatprep.subr.bf16.mxu1 %v2034_v19 }
  0xae   : > { %1395 = vmatpush1.bf16.msra.mxu0 %v2029_v20  ;;  %1481 = vmatpush1.bf16.msra.mxu1 %v2032_v21 }
  0xaf   : > { %1396 = vmatprep.subr.bf16.mxu0 %v2037_v22  ;;  %1482 = vmatprep.subr.bf16.mxu1 %v2040_v23 }
  0xb2   : > { %1397 = vmatpush1.bf16.msra.mxu0 %v2035_v24  ;;  %1483 = vmatpush1.bf16.msra.mxu1 %v2038_v25 }
  0xb3   : > { %1398 = vmatprep.subr.bf16.mxu0 %v2043_v26  ;;  %1484 = vmatprep.subr.bf16.mxu1 %v2046_v27 }
  0xb6   : > { %1399 = vmatpush1.bf16.msra.mxu0 %v2041_v29  ;;  %1485 = vmatpush1.bf16.msra.mxu1 %v2044_v30 }
  0xb7   : > { %1400 = vmatprep.subr.bf16.mxu0 %v2049_v31  ;;  %1486 = vmatprep.subr.bf16.mxu1 %v2052_v32 }
  0xba   : > { %1401 = vmatpush1.bf16.msra.mxu0 %v2047_v33  ;;  %1487 = vmatpush1.bf16.msra.mxu1 %v2050_v34 }
  0xbb   : > { %1402 = vmatprep.subr.bf16.mxu0 %v2055_v35  ;;  %1488 = vmatprep.subr.bf16.mxu1 %v2058_v36 }
  0xbe   : > { %1403 = vmatpush1.bf16.msra.mxu0 %v2053_v37  ;;  %1489 = vmatpush1.bf16.msra.mxu1 %v2056_v38 }
  0xbf   : > { %1404 = vmatprep.subr.bf16.mxu0 %v2061_v39  ;;  %1490 = vmatprep.subr.bf16.mxu1 %v2064_v40 }
  0xc2   : > { %1405 = vmatpush1.bf16.msra.mxu0 %v2059_v41  ;;  %1491 = vmatpush1.bf16.msra.mxu1 %v2062_v42 }
  0xc3   : > { %1406 = vmatprep.subr.bf16.mxu0 %v2067_v43  ;;  %1492 = vmatprep.subr.bf16.mxu1 %v2070_v44 }
  0xc6   : > { %1407 = vmatpush1.bf16.msra.mxu0 %v2065_v45  ;;  %1493 = vmatpush1.bf16.msra.mxu1 %v2068_v46 }
  0xc7   : > { %1408 = vmatprep.subr.bf16.mxu0 %v2073_v47  ;;  %1494 = vmatprep.subr.bf16.mxu1 %v2076_v48 }
  0xca   : > { %1409 = vmatpush1.bf16.msra.mxu0 %v2071_v49  ;;  %1495 = vmatpush1.bf16.msra.mxu1 %v2074_v50 }
  0xcb   : > { %1410 = vmatprep.subr.bf16.mxu0 %v2079_v51  ;;  %1496 = vmatprep.subr.bf16.mxu1 %v2082_v52 }
  0xce   : > { %1411 = vmatpush1.bf16.msra.mxu0 %v2077_v53  ;;  %1497 = vmatpush1.bf16.msra.mxu1 %v2080_v54 }
  0xcf   : > { %1412 = vmatprep.subr.bf16.mxu0 %v2085_v55  ;;  %1498 = vmatprep.subr.bf16.mxu1 %v2088_v56 }
  0xd2   : > { %1413 = vmatpush1.bf16.msra.mxu0 %v2083_v57  ;;  %1499 = vmatpush1.bf16.msra.mxu1 %v2086_v58 }
  0xd3   : > { %1414 = vmatprep.subr.bf16.mxu0 %v2091_v59  ;;  %1500 = vmatprep.subr.bf16.mxu1 %v2094_v60 }
  0xd6   : > { %1415 = vmatpush1.bf16.msra.mxu0 %v2089_v61  ;;  %1501 = vmatpush1.bf16.msra.mxu1 %v2092_v62 }
  0xd7   : > { %1416 = vmatprep.subr.bf16.mxu0 %v2097_v63  ;;  %1502 = vmatprep.subr.bf16.mxu1 %v2100_v0 }
  0xda   : > { %1417 = vmatpush1.bf16.msra.mxu0 %v2095_v1  ;;  %1503 = vmatpush1.bf16.msra.mxu1 %v2098_v2 }
  0xdd   : > { %1419 = vmatmul.mubr.bf16.vlgmr.msra.gmra.mrb[0].mxu0 %v2101_v3  ;;  %1505 = vmatmul.mubr.bf16.vlgmr.msra.gmra.mrb[0].mxu1 %v2101_v3 }
 0x1b0   : > { %v1420_v15 = vpop.f32.mrb[0].mxu0  ;;  %v1506_v16 = vpop.f32.mrb[0].mxu1 }
 0x1b1   : > { %v1850_v17 = vadd.f32 %v1420_v15, %v666_v11  ;;  %v1854_v18 = vadd.f32 %v1506_v16, %v674_v12  ;;  %v1422_v19 = vpop.f32.mrb[1].mxu0  ;;  %v1508_v20 = vpop.f32.mrb[1].mxu1 }
 0x1b2   : > { %v1851_v21 = vadd.f32 %v1422_v19, %v670_v13  ;;  %v1855_v22 = vadd.f32 %v1508_v20, %v678_v14  ;;  %v1424_v23 = vpop.f32.mrb[2].mxu0  ;;  %v1510_v24 = vpop.f32.mrb[2].mxu1 }
 0x1b3   : > { %v1515_v25 = vmax.f32 %v1850_v17, 0.0  ;;  %v1517_v26 = vmax.f32 %v1854_v18, 0.0  ;;  %v1852_v27 = vadd.f32 %v1424_v23, %v666_v11  ;;  %v1856_v28 = vadd.f32 %v1510_v24, %v674_v12  ;;  %v1426_v29 = vpop.f32.mrb[3].mxu0  ;;  %v1512_v30 = vpop.f32.mrb[3].mxu1 }
 0x1b4   : > { %v1516_v31 = vmax.f32 %v1851_v21, 0.0  ;;  %v1518_v32 = vmax.f32 %v1855_v22, 0.0  ;;  %v1853_v33 = vadd.f32 %v1426_v29, %v670_v13  ;;  %v1857_v34 = vadd.f32 %v1512_v30, %v678_v14  ;;  %1557 = sbr.rel (!%p2199_p6) target bundleno = 451 (0x1c3), region = 59 }
 0x1b5   : > { %v1519_v35 = vmax.f32 %v1852_v27, 0.0  ;;  %v1521_v36 = vmax.f32 %v1856_v28, 0.0 }
 0x1b6   : > { %v1845_v37 = vpack.c.bf16 %v1516_v31, %v1515_v25  ;;  %v1846_v38 = vpack.c.bf16 %v1518_v32, %v1517_v26  ;;  %v1520_v39 = vmax.f32 %v1853_v33, 0.0  ;;  %v1522_v40 = vmax.f32 %v1857_v34, 0.0 }
 0x1b8   : > { %1547 = vst [vmem:[%s507_s12] sm:$0xff] %v1845_v37  ;;  %1548 = vst [vmem:[%s507_s12 + $0x8] sm:$0xff] %v1846_v38  ;;  %v1847_v41 = vpack.c.bf16 %v1520_v39, %v1519_v35  ;;  %v1848_v42 = vpack.c.bf16 %v1522_v40, %v1521_v36 }
 0x1ba   : > { %1549 = vst [vmem:[%s507_s12 + $0x10] sm:$0xff] %v1847_v41  ;;  %1550 = vst [vmem:[%s507_s12 + $0x18] sm:$0xff] %v1848_v42 }
 0x1bf   : > { %v1576_v43 = vld [vmem:[%s507_s12] sm:$0xff]  ;;  %v1578_v44 = vld [vmem:[%s507_s12 + $0x8] sm:$0xff] }
 0x1c0   : > { %1577 = vst [vmem:[%s1563_s30] sm:$0xff] %v1576_v43  ;;  %1579 = vst [vmem:[%s1563_s30 + $0x8] sm:$0xff] %v1578_v44 }
 0x1c1   : > { %v1580_v45 = vld [vmem:[%s507_s12 + $0x10] sm:$0xff]  ;;  %v1582_v46 = vld [vmem:[%s507_s12 + $0x18] sm:$0xff] }
 0x1c2   : > { %1581 = vst [vmem:[%s1563_s30 + $0x20] sm:$0xff] %v1580_v45  ;;  %1583 = vst [vmem:[%s1563_s30 + $0x28] sm:$0xff] %v1582_v46 }
 0x1c3 PF: > { %s13_s16 = sadd.s32 1, %s2142_s16   ;;  %s2651_s12 = smov %s2130_s13 }
 0x1c4   : > { %p10_p12 = scmp.ge.s32.totalorder %s13_s16, 4   ;;  %s2652_s13 = smov %s2204_s22 }
 0x1c5   : > { %s2653_s14 = smov %s2138_s15  ;;  %s2654_s15 = smov %s2656_s17 }
 0x1c6   :  { %12 = sbr.rel (!%p10_p12) target bundleno = 3 (0x3), region = 119 }

// kernel: voxel_feature_extractor.11
= control target key start
LH: loop header
LB: loop body
LE: loop exit
PB: predicated region body
PF: predicated region fallthrough
CT: control target
= control target key end

     0   :  { %s6862_s1 = inlined_call_operand.vmem [shape: bf16[2048,512], index: 1, kind: input, shape index: {}]   ;;  %s6863_s0 = inlined_call_operand.vmem [shape: bf16[8,2048], index: 0, kind: input, shape index: {}]   ;;  %s6864_s2 = inlined_call_operand.vmem [shape: f32[1,512], index: 2, kind: input, shape index: {}]   ;;  %s6865_s3 = inlined_call_operand.vmem [shape: f32[8,512], index: 3, kind: output, shape index: {}]  }
   0x1   :  { %v4439_v0 = vld [vmem:[%s6862_s1 + $0x4] ss:$16 sps:$4 sm:$0xff]   ;;  %v4441_v1 = vld [vmem:[%s6862_s1 + $0xc] ss:$16 sps:$4 sm:$0xff]   ;;  %v4443_v2 = vld [vmem:[%s6862_s1] ss:$16 sps:$4 sm:$0xff]  }
   0x2   :  { %3172 = vmatprep.subr.bf16.mxu0 %v4439_v0  ;;  %v4444_v3 = vld [vmem:[%s6862_s1 + $0x8] ss:$16 sps:$4 sm:$0xff]   ;;  %3500 = vmatprep.subr.bf16.mxu1 %v4441_v1  ;;  %v4445_v4 = vld [vmem:[%s6862_s1 + $0x24] ss:$16 sps:$4 sm:$0xff]   ;;  %v4447_v5 = vld [vmem:[%s6862_s1 + $0x2c] ss:$16 sps:$4 sm:$0xff]  }
   0x3   :  { %3173 = vmatpush1.bf16.msra.mxu0 %v4443_v2  ;;  %3501 = vmatpush1.bf16.msra.mxu1 %v4444_v3  ;;  %v4449_v6 = vld [vmem:[%s6862_s1 + $0x20] ss:$16 sps:$4 sm:$0xff]   ;;  %v4450_v7 = vld [vmem:[%s6862_s1 + $0x28] ss:$16 sps:$4 sm:$0xff]   ;;  %v4451_v8 = vld [vmem:[%s6862_s1 + $0x44] ss:$16 sps:$4 sm:$0xff]  }
   0x4   :  { %3174 = vmatprep.subr.bf16.mxu0 %v4445_v4  ;;  %3502 = vmatprep.subr.bf16.mxu1 %v4447_v5  ;;  %v4453_v9 = vld [vmem:[%s6862_s1 + $0x4c] ss:$16 sps:$4 sm:$0xff]   ;;  %v4455_v10 = vld [vmem:[%s6862_s1 + $0x40] ss:$16 sps:$4 sm:$0xff]   ;;  %v4456_v11 = vld [vmem:[%s6862_s1 + $0x48] ss:$16 sps:$4 sm:$0xff]  }
   0x5   :  { %v4457_v12 = vld [vmem:[%s6862_s1 + $0x64] ss:$16 sps:$4 sm:$0xff]   ;;  %v4459_v13 = vld [vmem:[%s6862_s1 + $0x6c] ss:$16 sps:$4 sm:$0xff]   ;;  %v4461_v14 = vld [vmem:[%s6862_s1 + $0x60] ss:$16 sps:$4 sm:$0xff]  }
   0x6   :  { %v4462_v15 = vld [vmem:[%s6862_s1 + $0x68] ss:$16 sps:$4 sm:$0xff]   ;;  %v4463_v16 = vld [vmem:[%s6862_s1 + $0x84] ss:$16 sps:$4 sm:$0xff]   ;;  %v4465_v17 = vld [vmem:[%s6862_s1 + $0x8c] ss:$16 sps:$4 sm:$0xff]  }
   0x7   :  { %3175 = vmatpush1.bf16.msra.mxu0 %v4449_v6  ;;  %3503 = vmatpush1.bf16.msra.mxu1 %v4450_v7  ;;  %v4467_v18 = vld [vmem:[%s6862_s1 + $0x80] ss:$16 sps:$4 sm:$0xff]   ;;  %v4468_v19 = vld [vmem:[%s6862_s1 + $0x88] ss:$16 sps:$4 sm:$0xff]   ;;  %v4469_v20 = vld [vmem:[%s6862_s1 + $0xa4] ss:$16 sps:$4 sm:$0xff]  }
   0x8   :  { %3176 = vmatprep.subr.bf16.mxu0 %v4451_v8  ;;  %3504 = vmatprep.subr.bf16.mxu1 %v4453_v9  ;;  %v4471_v21 = vld [vmem:[%s6862_s1 + $0xac] ss:$16 sps:$4 sm:$0xff]   ;;  %v4473_v22 = vld [vmem:[%s6862_s1 + $0xa0] ss:$16 sps:$4 sm:$0xff]   ;;  %v4474_v23 = vld [vmem:[%s6862_s1 + $0xa8] ss:$16 sps:$4 sm:$0xff]  }
   0x9   :  { %v4475_v24 = vld [vmem:[%s6862_s1 + $0xc4] ss:$16 sps:$4 sm:$0xff]   ;;  %v4477_v25 = vld [vmem:[%s6862_s1 + $0xcc] ss:$16 sps:$4 sm:$0xff]   ;;  %v4479_v26 = vld [vmem:[%s6862_s1 + $0xc0] ss:$16 sps:$4 sm:$0xff]  }
   0xa   :  { %v4480_v27 = vld [vmem:[%s6862_s1 + $0xc8] ss:$16 sps:$4 sm:$0xff]   ;;  %v4481_v28 = vld [vmem:[%s6862_s1 + $0xe4] ss:$16 sps:$4 sm:$0xff]   ;;  %v4483_v29 = vld [vmem:[%s6862_s1 + $0xec] ss:$16 sps:$4 sm:$0xff]  }
   0xb   :  { %3177 = vmatpush1.bf16.msra.mxu0 %v4455_v10  ;;  %3505 = vmatpush1.bf16.msra.mxu1 %v4456_v11  ;;  %v4485_v30 = vld [vmem:[%s6862_s1 + $0xe0] ss:$16 sps:$4 sm:$0xff]   ;;  %v4486_v31 = vld [vmem:[%s6862_s1 + $0xe8] ss:$16 sps:$4 sm:$0xff]   ;;  %v4487_v32 = vld [vmem:[%s6862_s1 + $0x104] ss:$16 sps:$4 sm:$0xff]  }
   0xc   :  { %3178 = vmatprep.subr.bf16.mxu0 %v4457_v12  ;;  %3506 = vmatprep.subr.bf16.mxu1 %v4459_v13  ;;  %v4489_v33 = vld [vmem:[%s6862_s1 + $0x10c] ss:$16 sps:$4 sm:$0xff]   ;;  %v4491_v34 = vld [vmem:[%s6862_s1 + $0x100] ss:$16 sps:$4 sm:$0xff]   ;;  %v4492_v35 = vld [vmem:[%s6862_s1 + $0x108] ss:$16 sps:$4 sm:$0xff]  }
   0xd   :  { %v4493_v36 = vld [vmem:[%s6862_s1 + $0x124] ss:$16 sps:$4 sm:$0xff]   ;;  %v4495_v37 = vld [vmem:[%s6862_s1 + $0x12c] ss:$16 sps:$4 sm:$0xff]   ;;  %v4497_v38 = vld [vmem:[%s6862_s1 + $0x120] ss:$16 sps:$4 sm:$0xff]  }
   0xe   :  { %v4498_v39 = vld [vmem:[%s6862_s1 + $0x128] ss:$16 sps:$4 sm:$0xff]   ;;  %v4499_v40 = vld [vmem:[%s6862_s1 + $0x144] ss:$16 sps:$4 sm:$0xff]   ;;  %v4501_v41 = vld [vmem:[%s6862_s1 + $0x14c] ss:$16 sps:$4 sm:$0xff]  }
   0xf   :  { %3179 = vmatpush1.bf16.msra.mxu0 %v4461_v14  ;;  %3507 = vmatpush1.bf16.msra.mxu1 %v4462_v15  ;;  %v4503_v42 = vld [vmem:[%s6862_s1 + $0x140] ss:$16 sps:$4 sm:$0xff]   ;;  %v4504_v43 = vld [vmem:[%s6862_s1 + $0x148] ss:$16 sps:$4 sm:$0xff]   ;;  %v4505_v44 = vld [vmem:[%s6862_s1 + $0x164] ss:$16 sps:$4 sm:$0xff]  }
  0x10   :  { %3180 = vmatprep.subr.bf16.mxu0 %v4463_v16  ;;  %3508 = vmatprep.subr.bf16.mxu1 %v4465_v17  ;;  %v4507_v45 = vld [vmem:[%s6862_s1 + $0x16c] ss:$16 sps:$4 sm:$0xff]   ;;  %v14_v46 = vld [vmem:[%s6863_s0] sm:$0xff]  ;;  %v4510_v49 = vld [vmem:[%s6862_s1 + $0x168] ss:$16 sps:$4 sm:$0xff]  }
  0x11   :  { %v4509_v47 = vld [vmem:[%s6862_s1 + $0x160] ss:$16 sps:$4 sm:$0xff]   ;;  %v3852_v48 = vcombine.high %v14_v46, %v14_v46  ;;  %v4511_v50 = vld [vmem:[%s6862_s1 + $0x184] ss:$16 sps:$4 sm:$0xff]   ;;  %v4513_v51 = vld [vmem:[%s6862_s1 + $0x18c] ss:$16 sps:$4 sm:$0xff]   ;;  %v3851_v4 = vcombine.low %v14_v46, %v14_v46 }
  0x12   :  { %v4515_v52 = vld [vmem:[%s6862_s1 + $0x180] ss:$16 sps:$4 sm:$0xff]   ;;  %v4516_v53 = vld [vmem:[%s6862_s1 + $0x188] ss:$16 sps:$4 sm:$0xff]   ;;  %v4517_v54 = vld [vmem:[%s6862_s1 + $0x1a4] ss:$16 sps:$4 sm:$0xff]  }
  0x13   :  { %3181 = vmatpush1.bf16.msra.mxu0 %v4467_v18  ;;  %3509 = vmatpush1.bf16.msra.mxu1 %v4468_v19  ;;  %v4519_v55 = vld [vmem:[%s6862_s1 + $0x1ac] ss:$16 sps:$4 sm:$0xff]   ;;  %v4521_v56 = vld [vmem:[%s6862_s1 + $0x1a0] ss:$16 sps:$4 sm:$0xff]   ;;  %v4522_v57 = vld [vmem:[%s6862_s1 + $0x1a8] ss:$16 sps:$4 sm:$0xff]  }
  0x14   :  { %3182 = vmatprep.subr.bf16.mxu0 %v4469_v20  ;;  %3510 = vmatprep.subr.bf16.mxu1 %v4471_v21  ;;  %v4523_v58 = vld [vmem:[%s6862_s1 + $0x1c4] ss:$16 sps:$4 sm:$0xff]   ;;  %v4525_v59 = vld [vmem:[%s6862_s1 + $0x1cc] ss:$16 sps:$4 sm:$0xff]   ;;  %v4527_v60 = vld [vmem:[%s6862_s1 + $0x1c0] ss:$16 sps:$4 sm:$0xff]  }
  0x15   :  { %3204 = vmatprep.mubr.bf16.mxu0 %v3852_v48  ;;  %3532 = vmatprep.mubr.bf16.mxu1 %v3852_v48  ;;  %v4528_v61 = vld [vmem:[%s6862_s1 + $0x1c8] ss:$16 sps:$4 sm:$0xff]   ;;  %v4529_v62 = vld [vmem:[%s6862_s1 + $0x1e4] ss:$16 sps:$4 sm:$0xff]   ;;  %v4531_v63 = vld [vmem:[%s6862_s1 + $0x1ec] ss:$16 sps:$4 sm:$0xff]  }
  0x16   :  { %v4533_v0 = vld [vmem:[%s6862_s1 + $0x1e0] ss:$16 sps:$4 sm:$0xff]   ;;  %v4534_v1 = vld [vmem:[%s6862_s1 + $0x1e8] ss:$16 sps:$4 sm:$0xff]   ;;  %v4539_v2 = vld [vmem:[%s6862_s1 + $0x204] ss:$16 sps:$4 sm:$0xff]  }
  0x17   :  { %3183 = vmatpush1.bf16.msra.mxu0 %v4473_v22  ;;  %3511 = vmatpush1.bf16.msra.mxu1 %v4474_v23  ;;  %v4542_v3 = vld [vmem:[%s6862_s1 + $0x20c] ss:$16 sps:$4 sm:$0xff]   ;;  %v4537_v5 = vld [vmem:[%s6862_s1 + $0x200] ss:$16 sps:$4 sm:$0xff]   ;;  %v4540_v6 = vld [vmem:[%s6862_s1 + $0x208] ss:$16 sps:$4 sm:$0xff]  }
  0x18   :  { %3184 = vmatprep.subr.bf16.mxu0 %v4475_v24  ;;  %3512 = vmatprep.subr.bf16.mxu1 %v4477_v25  ;;  %v4545_v7 = vld [vmem:[%s6862_s1 + $0x224] ss:$16 sps:$4 sm:$0xff]   ;;  %v4548_v8 = vld [vmem:[%s6862_s1 + $0x22c] ss:$16 sps:$4 sm:$0xff]   ;;  %v4543_v9 = vld [vmem:[%s6862_s1 + $0x220] ss:$16 sps:$4 sm:$0xff]  }
  0x19   :  { %v4546_v10 = vld [vmem:[%s6862_s1 + $0x228] ss:$16 sps:$4 sm:$0xff]   ;;  %v4551_v11 = vld [vmem:[%s6862_s1 + $0x244] ss:$16 sps:$4 sm:$0xff]   ;;  %v4554_v12 = vld [vmem:[%s6862_s1 + $0x24c] ss:$16 sps:$4 sm:$0xff]  }
  0x1a   :  { %v4549_v13 = vld [vmem:[%s6862_s1 + $0x240] ss:$16 sps:$4 sm:$0xff]   ;;  %v4552_v14 = vld [vmem:[%s6862_s1 + $0x248] ss:$16 sps:$4 sm:$0xff]   ;;  %v4557_v15 = vld [vmem:[%s6862_s1 + $0x264] ss:$16 sps:$4 sm:$0xff]  }
  0x1b   :  { %3185 = vmatpush1.bf16.msra.mxu0 %v4479_v26  ;;  %3513 = vmatpush1.bf16.msra.mxu1 %v4480_v27  ;;  %v4560_v16 = vld [vmem:[%s6862_s1 + $0x26c] ss:$16 sps:$4 sm:$0xff]   ;;  %v4555_v17 = vld [vmem:[%s6862_s1 + $0x260] ss:$16 sps:$4 sm:$0xff]   ;;  %v4558_v18 = vld [vmem:[%s6862_s1 + $0x268] ss:$16 sps:$4 sm:$0xff]  }
  0x1c   :  { %3186 = vmatprep.subr.bf16.mxu0 %v4481_v28  ;;  %3514 = vmatprep.subr.bf16.mxu1 %v4483_v29  ;;  %v4563_v19 = vld [vmem:[%s6862_s1 + $0x284] ss:$16 sps:$4 sm:$0xff]   ;;  %v4566_v20 = vld [vmem:[%s6862_s1 + $0x28c] ss:$16 sps:$4 sm:$0xff]   ;;  %v4561_v21 = vld [vmem:[%s6862_s1 + $0x280] ss:$16 sps:$4 sm:$0xff]  }
  0x1d   :  { %v4564_v22 = vld [vmem:[%s6862_s1 + $0x288] ss:$16 sps:$4 sm:$0xff]   ;;  %v4569_v23 = vld [vmem:[%s6862_s1 + $0x2a4] ss:$16 sps:$4 sm:$0xff]   ;;  %v4572_v24 = vld [vmem:[%s6862_s1 + $0x2ac] ss:$16 sps:$4 sm:$0xff]  }
  0x1e   :  { %v4567_v25 = vld [vmem:[%s6862_s1 + $0x2a0] ss:$16 sps:$4 sm:$0xff]   ;;  %v4570_v26 = vld [vmem:[%s6862_s1 + $0x2a8] ss:$16 sps:$4 sm:$0xff]   ;;  %v4575_v27 = vld [vmem:[%s6862_s1 + $0x2c4] ss:$16 sps:$4 sm:$0xff]  }
  0x1f   :  { %3187 = vmatpush1.bf16.msra.mxu0 %v4485_v30  ;;  %3515 = vmatpush1.bf16.msra.mxu1 %v4486_v31  ;;  %v4578_v28 = vld [vmem:[%s6862_s1 + $0x2cc] ss:$16 sps:$4 sm:$0xff]   ;;  %v4573_v31 = vld [vmem:[%s6862_s1 + $0x2c0] ss:$16 sps:$4 sm:$0xff]   ;;  %v4600_v48 = vld [vmem:[%s6862_s1 + $0x348] ss:$16 sps:$4 sm:$0xff]  }
  0x20   :  { %3188 = vmatprep.subr.bf16.mxu0 %v4487_v32  ;;  %3516 = vmatprep.subr.bf16.mxu1 %v4489_v33  ;;  %v5521_v29 = vld [vmem:[%s6863_s0 + $0x8] sm:$0xff]  ;;  %v4581_v33 = vld [vmem:[%s6862_s1 + $0x2e4] ss:$16 sps:$4 sm:$0xff]  }
  0x21   :  { %v3854_v30 = vcombine.high %v5521_v29, %v5521_v29  ;;  %v4576_v32 = vld [vmem:[%s6862_s1 + $0x2c8] ss:$16 sps:$4 sm:$0xff]   ;;  %v4602_v46 = vld [vmem:[%s6862_s1 + $0x34c] ss:$16 sps:$4 sm:$0xff]  }
  0x23   :  { %3189 = vmatpush1.bf16.msra.mxu0 %v4491_v34  ;;  %3517 = vmatpush1.bf16.msra.mxu1 %v4492_v35  ;;  %v4584_v34 = vld [vmem:[%s6862_s1 + $0x2ec] ss:$16 sps:$4 sm:$0xff]   ;;  %v4579_v35 = vld [vmem:[%s6862_s1 + $0x2e0] ss:$16 sps:$4 sm:$0xff]  }
  0x24   :  { %3190 = vmatprep.subr.bf16.mxu0 %v4493_v36  ;;  %3518 = vmatprep.subr.bf16.mxu1 %v4495_v37  ;;  %v4582_v36 = vld [vmem:[%s6862_s1 + $0x2e8] ss:$16 sps:$4 sm:$0xff]   ;;  %v4587_v37 = vld [vmem:[%s6862_s1 + $0x304] ss:$16 sps:$4 sm:$0xff]  }
  0x27   :  { %3191 = vmatpush1.bf16.msra.mxu0 %v4497_v38  ;;  %3519 = vmatpush1.bf16.msra.mxu1 %v4498_v39  ;;  %v4590_v38 = vld [vmem:[%s6862_s1 + $0x30c] ss:$16 sps:$4 sm:$0xff]   ;;  %v4585_v39 = vld [vmem:[%s6862_s1 + $0x300] ss:$16 sps:$4 sm:$0xff]  }
  0x28   :  { %3192 = vmatprep.subr.bf16.mxu0 %v4499_v40  ;;  %3520 = vmatprep.subr.bf16.mxu1 %v4501_v41  ;;  %v4588_v40 = vld [vmem:[%s6862_s1 + $0x308] ss:$16 sps:$4 sm:$0xff]   ;;  %v4593_v41 = vld [vmem:[%s6862_s1 + $0x324] ss:$16 sps:$4 sm:$0xff]  }
  0x2b   :  { %3193 = vmatpush1.bf16.msra.mxu0 %v4503_v42  ;;  %3521 = vmatpush1.bf16.msra.mxu1 %v4504_v43  ;;  %v4596_v42 = vld [vmem:[%s6862_s1 + $0x32c] ss:$16 sps:$4 sm:$0xff]   ;;  %v4591_v43 = vld [vmem:[%s6862_s1 + $0x320] ss:$16 sps:$4 sm:$0xff]  }
  0x2c   :  { %3194 = vmatprep.subr.bf16.mxu0 %v4505_v44  ;;  %3522 = vmatprep.subr.bf16.mxu1 %v4507_v45  ;;  %v4594_v44 = vld [vmem:[%s6862_s1 + $0x328] ss:$16 sps:$4 sm:$0xff]   ;;  %v4599_v45 = vld [vmem:[%s6862_s1 + $0x344] ss:$16 sps:$4 sm:$0xff]  }
  0x2f   :  { %3195 = vmatpush1.bf16.msra.mxu0 %v4509_v47  ;;  %3523 = vmatpush1.bf16.msra.mxu1 %v4510_v49  ;;  %v4597_v47 = vld [vmem:[%s6862_s1 + $0x340] ss:$16 sps:$4 sm:$0xff]   ;;  %v4605_v49 = vld [vmem:[%s6862_s1 + $0x364] ss:$16 sps:$4 sm:$0xff]  }
  0x30   :  { %3196 = vmatprep.subr.bf16.mxu0 %v4511_v50  ;;  %3524 = vmatprep.subr.bf16.mxu1 %v4513_v51  ;;  %v4608_v50 = vld [vmem:[%s6862_s1 + $0x36c] ss:$16 sps:$4 sm:$0xff]   ;;  %v4603_v51 = vld [vmem:[%s6862_s1 + $0x360] ss:$16 sps:$4 sm:$0xff]  }
  0x33   :  { %3197 = vmatpush1.bf16.msra.mxu0 %v4515_v52  ;;  %3525 = vmatpush1.bf16.msra.mxu1 %v4516_v53  ;;  %v4606_v52 = vld [vmem:[%s6862_s1 + $0x368] ss:$16 sps:$4 sm:$0xff]   ;;  %v4611_v53 = vld [vmem:[%s6862_s1 + $0x384] ss:$16 sps:$4 sm:$0xff]  }
  0x34   :  { %3198 = vmatprep.subr.bf16.mxu0 %v4517_v54  ;;  %3526 = vmatprep.subr.bf16.mxu1 %v4519_v55  ;;  %v4614_v54 = vld [vmem:[%s6862_s1 + $0x38c] ss:$16 sps:$4 sm:$0xff]   ;;  %v4609_v55 = vld [vmem:[%s6862_s1 + $0x380] ss:$16 sps:$4 sm:$0xff]  }
  0x37   :  { %3199 = vmatpush1.bf16.msra.mxu0 %v4521_v56  ;;  %3527 = vmatpush1.bf16.msra.mxu1 %v4522_v57  ;;  %v4612_v56 = vld [vmem:[%s6862_s1 + $0x388] ss:$16 sps:$4 sm:$0xff]   ;;  %v4617_v57 = vld [vmem:[%s6862_s1 + $0x3a4] ss:$16 sps:$4 sm:$0xff]  }
  0x38   :  { %3200 = vmatprep.subr.bf16.mxu0 %v4523_v58  ;;  %3528 = vmatprep.subr.bf16.mxu1 %v4525_v59  ;;  %v4620_v58 = vld [vmem:[%s6862_s1 + $0x3ac] ss:$16 sps:$4 sm:$0xff]   ;;  %v4615_v59 = vld [vmem:[%s6862_s1 + $0x3a0] ss:$16 sps:$4 sm:$0xff]  }
  0x3b   :  { %3201 = vmatpush1.bf16.msra.mxu0 %v4527_v60  ;;  %3529 = vmatpush1.bf16.msra.mxu1 %v4528_v61  ;;  %v4618_v60 = vld [vmem:[%s6862_s1 + $0x3a8] ss:$16 sps:$4 sm:$0xff]   ;;  %v4623_v61 = vld [vmem:[%s6862_s1 + $0x3c4] ss:$16 sps:$4 sm:$0xff]  }
  0x3c   :  { %3202 = vmatprep.subr.bf16.mxu0 %v4529_v62  ;;  %3530 = vmatprep.subr.bf16.mxu1 %v4531_v63  ;;  %v4626_v62 = vld [vmem:[%s6862_s1 + $0x3cc] ss:$16 sps:$4 sm:$0xff]   ;;  %v4621_v63 = vld [vmem:[%s6862_s1 + $0x3c0] ss:$16 sps:$4 sm:$0xff]  }
  0x3f   :  { %3203 = vmatpush1.bf16.msra.mxu0 %v4533_v0  ;;  %3531 = vmatpush1.bf16.msra.mxu1 %v4534_v1  ;;  %v4624_v0 = vld [vmem:[%s6862_s1 + $0x3c8] ss:$16 sps:$4 sm:$0xff]   ;;  %v4629_v1 = vld [vmem:[%s6862_s1 + $0x3e4] ss:$16 sps:$4 sm:$0xff]  }
  0x40   :  { %3213 = vmatprep.subr.bf16.mxu0 %v4539_v2  ;;  %3541 = vmatprep.subr.bf16.mxu1 %v4542_v3  ;;  %v4632_v2 = vld [vmem:[%s6862_s1 + $0x3ec] ss:$16 sps:$4 sm:$0xff]   ;;  %v4627_v3 = vld [vmem:[%s6862_s1 + $0x3e0] ss:$16 sps:$4 sm:$0xff]  }
  0x42   :  { %3205 = vmatmul.mubr.bf16.vlgmr.msra.gmra.mrb[0].mxu0 %v3851_v4  ;;  %3533 = vmatmul.mubr.bf16.vlgmr.msra.gmra.mrb[0].mxu1 %v3851_v4  ;;  %v4630_v4 = vld [vmem:[%s6862_s1 + $0x3e8] ss:$16 sps:$4 sm:$0xff]  }
  0x43   :  { %3214 = vmatpush1.bf16.msra.mxu0 %v4537_v5  ;;  %3542 = vmatpush1.bf16.msra.mxu1 %v4540_v6  ;;  %v4637_v5 = vld [vmem:[%s6862_s1 + $0x404] ss:$16 sps:$4 sm:$0xff]   ;;  %v4640_v6 = vld [vmem:[%s6862_s1 + $0x40c] ss:$16 sps:$4 sm:$0xff]  }
  0x44   :  { %3215 = vmatprep.subr.bf16.mxu0 %v4545_v7  ;;  %3543 = vmatprep.subr.bf16.mxu1 %v4548_v8  ;;  %v3853_v7 = vcombine.low %v5521_v29, %v5521_v29  ;;  %v4635_v8 = vld [vmem:[%s6862_s1 + $0x400] ss:$16 sps:$4 sm:$0xff]   ;;  %v4670_v29 = vld [vmem:[%s6862_s1 + $0x4ac] ss:$16 sps:$4 sm:$0xff]  }
  0x45   :  { %3245 = vmatprep.mubr.bf16.mxu0 %v3854_v30  ;;  %3573 = vmatprep.mubr.bf16.mxu1 %v3854_v30  ;;  %v4665_v30 = vld [vmem:[%s6862_s1 + $0x4a0] ss:$16 sps:$4 sm:$0xff]  }
  0x47   :  { %3216 = vmatpush1.bf16.msra.mxu0 %v4543_v9  ;;  %3544 = vmatpush1.bf16.msra.mxu1 %v4546_v10  ;;  %v4638_v9 = vld [vmem:[%s6862_s1 + $0x408] ss:$16 sps:$4 sm:$0xff]   ;;  %v4643_v10 = vld [vmem:[%s6862_s1 + $0x424] ss:$16 sps:$4 sm:$0xff]  }
  0x48   :  { %3217 = vmatprep.subr.bf16.mxu0 %v4551_v11  ;;  %3545 = vmatprep.subr.bf16.mxu1 %v4554_v12  ;;  %v5659_v11 = vld [vmem:[%s6863_s0 + $0x10] sm:$0xff]  ;;  %v4646_v12 = vld [vmem:[%s6862_s1 + $0x42c] ss:$16 sps:$4 sm:$0xff]  }
  0x4b   :  { %3218 = vmatpush1.bf16.msra.mxu0 %v4549_v13  ;;  %3546 = vmatpush1.bf16.msra.mxu1 %v4552_v14  ;;  %v3856_v13 = vcombine.high %v5659_v11, %v5659_v11  ;;  %v4641_v14 = vld [vmem:[%s6862_s1 + $0x420] ss:$16 sps:$4 sm:$0xff]  }
  0x4c   :  { %3219 = vmatprep.subr.bf16.mxu0 %v4557_v15  ;;  %3547 = vmatprep.subr.bf16.mxu1 %v4560_v16  ;;  %v4644_v15 = vld [vmem:[%s6862_s1 + $0x428] ss:$16 sps:$4 sm:$0xff]   ;;  %v4649_v16 = vld [vmem:[%s6862_s1 + $0x444] ss:$16 sps:$4 sm:$0xff]  }
  0x4f   :  { %3220 = vmatpush1.bf16.msra.mxu0 %v4555_v17  ;;  %3548 = vmatpush1.bf16.msra.mxu1 %v4558_v18  ;;  %v4652_v17 = vld [vmem:[%s6862_s1 + $0x44c] ss:$16 sps:$4 sm:$0xff]   ;;  %v4647_v18 = vld [vmem:[%s6862_s1 + $0x440] ss:$16 sps:$4 sm:$0xff]  }
  0x50   :  { %3221 = vmatprep.subr.bf16.mxu0 %v4563_v19  ;;  %3549 = vmatprep.subr.bf16.mxu1 %v4566_v20  ;;  %v4650_v19 = vld [vmem:[%s6862_s1 + $0x448] ss:$16 sps:$4 sm:$0xff]   ;;  %v4655_v20 = vld [vmem:[%s6862_s1 + $0x464] ss:$16 sps:$4 sm:$0xff]  }
  0x53   :  { %3222 = vmatpush1.bf16.msra.mxu0 %v4561_v21  ;;  %3550 = vmatpush1.bf16.msra.mxu1 %v4564_v22  ;;  %v4658_v21 = vld [vmem:[%s6862_s1 + $0x46c] ss:$16 sps:$4 sm:$0xff]   ;;  %v4653_v22 = vld [vmem:[%s6862_s1 + $0x460] ss:$16 sps:$4 sm:$0xff]  }
  0x54   :  { %3223 = vmatprep.subr.bf16.mxu0 %v4569_v23  ;;  %3551 = vmatprep.subr.bf16.mxu1 %v4572_v24  ;;  %v4656_v23 = vld [vmem:[%s6862_s1 + $0x468] ss:$16 sps:$4 sm:$0xff]   ;;  %v4661_v24 = vld [vmem:[%s6862_s1 + $0x484] ss:$16 sps:$4 sm:$0xff]  }
  0x57   :  { %3224 = vmatpush1.bf16.msra.mxu0 %v4567_v25  ;;  %3552 = vmatpush1.bf16.msra.mxu1 %v4570_v26  ;;  %v4664_v25 = vld [vmem:[%s6862_s1 + $0x48c] ss:$16 sps:$4 sm:$0xff]   ;;  %v4659_v26 = vld [vmem:[%s6862_s1 + $0x480] ss:$16 sps:$4 sm:$0xff]  }
  0x58   :  { %3225 = vmatprep.subr.bf16.mxu0 %v4575_v27  ;;  %3553 = vmatprep.subr.bf16.mxu1 %v4578_v28  ;;  %v4662_v27 = vld [vmem:[%s6862_s1 + $0x488] ss:$16 sps:$4 sm:$0xff]   ;;  %v4667_v28 = vld [vmem:[%s6862_s1 + $0x4a4] ss:$16 sps:$4 sm:$0xff]  }
  0x5b   :  { %3226 = vmatpush1.bf16.msra.mxu0 %v4573_v31  ;;  %3554 = vmatpush1.bf16.msra.mxu1 %v4576_v32  ;;  %v4668_v31 = vld [vmem:[%s6862_s1 + $0x4a8] ss:$16 sps:$4 sm:$0xff]   ;;  %v4673_v32 = vld [vmem:[%s6862_s1 + $0x4c4] ss:$16 sps:$4 sm:$0xff]  }
  0x5c   :  { %3227 = vmatprep.subr.bf16.mxu0 %v4581_v33  ;;  %3555 = vmatprep.subr.bf16.mxu1 %v4584_v34  ;;  %v4676_v33 = vld [vmem:[%s6862_s1 + $0x4cc] ss:$16 sps:$4 sm:$0xff]   ;;  %v4671_v34 = vld [vmem:[%s6862_s1 + $0x4c0] ss:$16 sps:$4 sm:$0xff]  }
  0x5f   :  { %3228 = vmatpush1.bf16.msra.mxu0 %v4579_v35  ;;  %3556 = vmatpush1.bf16.msra.mxu1 %v4582_v36  ;;  %v4674_v35 = vld [vmem:[%s6862_s1 + $0x4c8] ss:$16 sps:$4 sm:$0xff]   ;;  %v4679_v36 = vld [vmem:[%s6862_s1 + $0x4e4] ss:$16 sps:$4 sm:$0xff]  }
  0x60   :  { %3229 = vmatprep.subr.bf16.mxu0 %v4587_v37  ;;  %3557 = vmatprep.subr.bf16.mxu1 %v4590_v38  ;;  %v4682_v37 = vld [vmem:[%s6862_s1 + $0x4ec] ss:$16 sps:$4 sm:$0xff]   ;;  %v4677_v38 = vld [vmem:[%s6862_s1 + $0x4e0] ss:$16 sps:$4 sm:$0xff]  }
  0x63   :  { %3230 = vmatpush1.bf16.msra.mxu0 %v4585_v39  ;;  %3558 = vmatpush1.bf16.msra.mxu1 %v4588_v40  ;;  %v4680_v39 = vld [vmem:[%s6862_s1 + $0x4e8] ss:$16 sps:$4 sm:$0xff]   ;;  %v4685_v40 = vld [vmem:[%s6862_s1 + $0x504] ss:$16 sps:$4 sm:$0xff]  }
  0x64   :  { %3231 = vmatprep.subr.bf16.mxu0 %v4593_v41  ;;  %3559 = vmatprep.subr.bf16.mxu1 %v4596_v42  ;;  %v4688_v41 = vld [vmem:[%s6862_s1 + $0x50c] ss:$16 sps:$4 sm:$0xff]   ;;  %v4683_v42 = vld [vmem:[%s6862_s1 + $0x500] ss:$16 sps:$4 sm:$0xff]  }
  0x67   :  { %3232 = vmatpush1.bf16.msra.mxu0 %v4591_v43  ;;  %3560 = vmatpush1.bf16.msra.mxu1 %v4594_v44  ;;  %v4686_v43 = vld [vmem:[%s6862_s1 + $0x508] ss:$16 sps:$4 sm:$0xff]   ;;  %v4691_v44 = vld [vmem:[%s6862_s1 + $0x524] ss:$16 sps:$4 sm:$0xff]  }
  0x68   :  { %3233 = vmatprep.subr.bf16.mxu0 %v4599_v45  ;;  %3561 = vmatprep.subr.bf16.mxu1 %v4602_v46  ;;  %v4694_v45 = vld [vmem:[%s6862_s1 + $0x52c] ss:$16 sps:$4 sm:$0xff]   ;;  %v4689_v46 = vld [vmem:[%s6862_s1 + $0x520] ss:$16 sps:$4 sm:$0xff]  }
  0x6b   :  { %3234 = vmatpush1.bf16.msra.mxu0 %v4597_v47  ;;  %3562 = vmatpush1.bf16.msra.mxu1 %v4600_v48  ;;  %v4692_v47 = vld [vmem:[%s6862_s1 + $0x528] ss:$16 sps:$4 sm:$0xff]   ;;  %v4697_v48 = vld [vmem:[%s6862_s1 + $0x544] ss:$16 sps:$4 sm:$0xff]  }
  0x6c   :  { %3235 = vmatprep.subr.bf16.mxu0 %v4605_v49  ;;  %3563 = vmatprep.subr.bf16.mxu1 %v4608_v50  ;;  %v4700_v49 = vld [vmem:[%s6862_s1 + $0x54c] ss:$16 sps:$4 sm:$0xff]   ;;  %v4695_v50 = vld [vmem:[%s6862_s1 + $0x540] ss:$16 sps:$4 sm:$0xff]  }
  0x6f   :  { %3236 = vmatpush1.bf16.msra.mxu0 %v4603_v51  ;;  %3564 = vmatpush1.bf16.msra.mxu1 %v4606_v52  ;;  %v4698_v51 = vld [vmem:[%s6862_s1 + $0x548] ss:$16 sps:$4 sm:$0xff]   ;;  %v4703_v52 = vld [vmem:[%s6862_s1 + $0x564] ss:$16 sps:$4 sm:$0xff]  }
  0x70   :  { %3237 = vmatprep.subr.bf16.mxu0 %v4611_v53  ;;  %3565 = vmatprep.subr.bf16.mxu1 %v4614_v54  ;;  %v4706_v53 = vld [vmem:[%s6862_s1 + $0x56c] ss:$16 sps:$4 sm:$0xff]   ;;  %v4701_v54 = vld [vmem:[%s6862_s1 + $0x560] ss:$16 sps:$4 sm:$0xff]  }
  0x73   :  { %3238 = vmatpush1.bf16.msra.mxu0 %v4609_v55  ;;  %3566 = vmatpush1.bf16.msra.mxu1 %v4612_v56  ;;  %v4704_v55 = vld [vmem:[%s6862_s1 + $0x568] ss:$16 sps:$4 sm:$0xff]   ;;  %v4709_v56 = vld [vmem:[%s6862_s1 + $0x584] ss:$16 sps:$4 sm:$0xff]  }
  0x74   :  { %3239 = vmatprep.subr.bf16.mxu0 %v4617_v57  ;;  %3567 = vmatprep.subr.bf16.mxu1 %v4620_v58  ;;  %v4712_v57 = vld [vmem:[%s6862_s1 + $0x58c] ss:$16 sps:$4 sm:$0xff]   ;;  %v4707_v58 = vld [vmem:[%s6862_s1 + $0x580] ss:$16 sps:$4 sm:$0xff]  }
  0x77   :  { %3240 = vmatpush1.bf16.msra.mxu0 %v4615_v59  ;;  %3568 = vmatpush1.bf16.msra.mxu1 %v4618_v60  ;;  %v4710_v59 = vld [vmem:[%s6862_s1 + $0x588] ss:$16 sps:$4 sm:$0xff]   ;;  %v4715_v60 = vld [vmem:[%s6862_s1 + $0x5a4] ss:$16 sps:$4 sm:$0xff]  }
  0x78   :  { %3241 = vmatprep.subr.bf16.mxu0 %v4623_v61  ;;  %3569 = vmatprep.subr.bf16.mxu1 %v4626_v62  ;;  %v4718_v61 = vld [vmem:[%s6862_s1 + $0x5ac] ss:$16 sps:$4 sm:$0xff]   ;;  %v4713_v62 = vld [vmem:[%s6862_s1 + $0x5a0] ss:$16 sps:$4 sm:$0xff]  }
  0x7b   :  { %3242 = vmatpush1.bf16.msra.mxu0 %v4621_v63  ;;  %3570 = vmatpush1.bf16.msra.mxu1 %v4624_v0  ;;  %v4716_v63 = vld [vmem:[%s6862_s1 + $0x5a8] ss:$16 sps:$4 sm:$0xff]   ;;  %v4721_v0 = vld [vmem:[%s6862_s1 + $0x5c4] ss:$16 sps:$4 sm:$0xff]  }
  0x7c   :  { %3243 = vmatprep.subr.bf16.mxu0 %v4629_v1  ;;  %3571 = vmatprep.subr.bf16.mxu1 %v4632_v2  ;;  %v4724_v1 = vld [vmem:[%s6862_s1 + $0x5cc] ss:$16 sps:$4 sm:$0xff]   ;;  %v4719_v2 = vld [vmem:[%s6862_s1 + $0x5c0] ss:$16 sps:$4 sm:$0xff]  }
  0x7f   :  { %3244 = vmatpush1.bf16.msra.mxu0 %v4627_v3  ;;  %3572 = vmatpush1.bf16.msra.mxu1 %v4630_v4  ;;  %v4722_v3 = vld [vmem:[%s6862_s1 + $0x5c8] ss:$16 sps:$4 sm:$0xff]   ;;  %v4727_v4 = vld [vmem:[%s6862_s1 + $0x5e4] ss:$16 sps:$4 sm:$0xff]  }
  0x80   :  { %3254 = vmatprep.subr.bf16.mxu0 %v4637_v5  ;;  %3582 = vmatprep.subr.bf16.mxu1 %v4640_v6  ;;  %v4730_v5 = vld [vmem:[%s6862_s1 + $0x5ec] ss:$16 sps:$4 sm:$0xff]   ;;  %v4725_v6 = vld [vmem:[%s6862_s1 + $0x5e0] ss:$16 sps:$4 sm:$0xff]  }
  0x82   :  { %3246 = vmatmul.mubr.bf16.vlgmr.msra.gmra.mrb[0].mxu0 %v3853_v7  ;;  %3574 = vmatmul.mubr.bf16.vlgmr.msra.gmra.mrb[0].mxu1 %v3853_v7  ;;  %v4728_v7 = vld [vmem:[%s6862_s1 + $0x5e8] ss:$16 sps:$4 sm:$0xff]  }
  0x83   :  { %3255 = vmatpush1.bf16.msra.mxu0 %v4635_v8  ;;  %3583 = vmatpush1.bf16.msra.mxu1 %v4638_v9  ;;  %v4735_v8 = vld [vmem:[%s6862_s1 + $0x604] ss:$16 sps:$4 sm:$0xff]   ;;  %v4738_v9 = vld [vmem:[%s6862_s1 + $0x60c] ss:$16 sps:$4 sm:$0xff]  }
  0x84   :  { %3256 = vmatprep.subr.bf16.mxu0 %v4643_v10  ;;  %3584 = vmatprep.subr.bf16.mxu1 %v4646_v12  ;;  %v4733_v10 = vld [vmem:[%s6862_s1 + $0x600] ss:$16 sps:$4 sm:$0xff]   ;;  %v3855_v12 = vcombine.low %v5659_v11, %v5659_v11  ;;  %v4744_v11 = vld [vmem:[%s6862_s1 + $0x62c] ss:$16 sps:$4 sm:$0xff]  }
  0x85   :  { %3286 = vmatprep.mubr.bf16.mxu0 %v3856_v13  ;;  %3614 = vmatprep.mubr.bf16.mxu1 %v3856_v13  ;;  %v4736_v13 = vld [vmem:[%s6862_s1 + $0x608] ss:$16 sps:$4 sm:$0xff]  }
  0x87   :  { %3257 = vmatpush1.bf16.msra.mxu0 %v4641_v14  ;;  %3585 = vmatpush1.bf16.msra.mxu1 %v4644_v15  ;;  %v5857_v14 = vld [vmem:[%s6863_s0 + $0x18] sm:$0xff]  ;;  %v4741_v15 = vld [vmem:[%s6862_s1 + $0x624] ss:$16 sps:$4 sm:$0xff]  }
  0x88   :  { %3258 = vmatprep.subr.bf16.mxu0 %v4649_v16  ;;  %3586 = vmatprep.subr.bf16.mxu1 %v4652_v17  ;;  %v3858_v16 = vcombine.high %v5857_v14, %v5857_v14  ;;  %v4739_v17 = vld [vmem:[%s6862_s1 + $0x620] ss:$16 sps:$4 sm:$0xff]  }
  0x8b   :  { %3259 = vmatpush1.bf16.msra.mxu0 %v4647_v18  ;;  %3587 = vmatpush1.bf16.msra.mxu1 %v4650_v19  ;;  %v4742_v18 = vld [vmem:[%s6862_s1 + $0x628] ss:$16 sps:$4 sm:$0xff]   ;;  %v4747_v19 = vld [vmem:[%s6862_s1 + $0x644] ss:$16 sps:$4 sm:$0xff]  }
  0x8c   :  { %3260 = vmatprep.subr.bf16.mxu0 %v4655_v20  ;;  %3588 = vmatprep.subr.bf16.mxu1 %v4658_v21  ;;  %v4750_v20 = vld [vmem:[%s6862_s1 + $0x64c] ss:$16 sps:$4 sm:$0xff]   ;;  %v4745_v21 = vld [vmem:[%s6862_s1 + $0x640] ss:$16 sps:$4 sm:$0xff]  }
  0x8f   :  { %3261 = vmatpush1.bf16.msra.mxu0 %v4653_v22  ;;  %3589 = vmatpush1.bf16.msra.mxu1 %v4656_v23  ;;  %v4748_v22 = vld [vmem:[%s6862_s1 + $0x648] ss:$16 sps:$4 sm:$0xff]   ;;  %v4753_v23 = vld [vmem:[%s6862_s1 + $0x664] ss:$16 sps:$4 sm:$0xff]  }
  0x90   :  { %3262 = vmatprep.subr.bf16.mxu0 %v4661_v24  ;;  %3590 = vmatprep.subr.bf16.mxu1 %v4664_v25  ;;  %v4756_v24 = vld [vmem:[%s6862_s1 + $0x66c] ss:$16 sps:$4 sm:$0xff]   ;;  %v4751_v25 = vld [vmem:[%s6862_s1 + $0x660] ss:$16 sps:$4 sm:$0xff]  }
  0x93   :  { %3263 = vmatpush1.bf16.msra.mxu0 %v4659_v26  ;;  %3591 = vmatpush1.bf16.msra.mxu1 %v4662_v27  ;;  %v4754_v26 = vld [vmem:[%s6862_s1 + $0x668] ss:$16 sps:$4 sm:$0xff]   ;;  %v4759_v27 = vld [vmem:[%s6862_s1 + $0x684] ss:$16 sps:$4 sm:$0xff]  }
  0x94   :  { %3264 = vmatprep.subr.bf16.mxu0 %v4667_v28  ;;  %3592 = vmatprep.subr.bf16.mxu1 %v4670_v29  ;;  %v4762_v28 = vld [vmem:[%s6862_s1 + $0x68c] ss:$16 sps:$4 sm:$0xff]   ;;  %v4757_v29 = vld [vmem:[%s6862_s1 + $0x680] ss:$16 sps:$4 sm:$0xff]  }
  0x97   :  { %3265 = vmatpush1.bf16.msra.mxu0 %v4665_v30  ;;  %3593 = vmatpush1.bf16.msra.mxu1 %v4668_v31  ;;  %v4760_v30 = vld [vmem:[%s6862_s1 + $0x688] ss:$16 sps:$4 sm:$0xff]   ;;  %v4765_v31 = vld [vmem:[%s6862_s1 + $0x6a4] ss:$16 sps:$4 sm:$0xff]  }
  0x98   :  { %3266 = vmatprep.subr.bf16.mxu0 %v4673_v32  ;;  %3594 = vmatprep.subr.bf16.mxu1 %v4676_v33  ;;  %v4768_v32 = vld [vmem:[%s6862_s1 + $0x6ac] ss:$16 sps:$4 sm:$0xff]   ;;  %v4763_v33 = vld [vmem:[%s6862_s1 + $0x6a0] ss:$16 sps:$4 sm:$0xff]  }
  0x9b   :  { %3267 = vmatpush1.bf16.msra.mxu0 %v4671_v34  ;;  %3595 = vmatpush1.bf16.msra.mxu1 %v4674_v35  ;;  %v4766_v34 = vld [vmem:[%s6862_s1 + $0x6a8] ss:$16 sps:$4 sm:$0xff]   ;;  %v4771_v35 = vld [vmem:[%s6862_s1 + $0x6c4] ss:$16 sps:$4 sm:$0xff]  }
  0x9c   :  { %3268 = vmatprep.subr.bf16.mxu0 %v4679_v36  ;;  %3596 = vmatprep.subr.bf16.mxu1 %v4682_v37  ;;  %v4774_v36 = vld [vmem:[%s6862_s1 + $0x6cc] ss:$16 sps:$4 sm:$0xff]   ;;  %v4769_v37 = vld [vmem:[%s6862_s1 + $0x6c0] ss:$16 sps:$4 sm:$0xff]  }
  0x9f   :  { %3269 = vmatpush1.bf16.msra.mxu0 %v4677_v38  ;;  %3597 = vmatpush1.bf16.msra.mxu1 %v4680_v39  ;;  %v4772_v38 = vld [vmem:[%s6862_s1 + $0x6c8] ss:$16 sps:$4 sm:$0xff]   ;;  %v4777_v39 = vld [vmem:[%s6862_s1 + $0x6e4] ss:$16 sps:$4 sm:$0xff]  }
  0xa0   :  { %3270 = vmatprep.subr.bf16.mxu0 %v4685_v40  ;;  %3598 = vmatprep.subr.bf16.mxu1 %v4688_v41  ;;  %v4780_v40 = vld [vmem:[%s6862_s1 + $0x6ec] ss:$16 sps:$4 sm:$0xff]   ;;  %v4775_v41 = vld [vmem:[%s6862_s1 + $0x6e0] ss:$16 sps:$4 sm:$0xff]  }
  0xa3   :  { %3271 = vmatpush1.bf16.msra.mxu0 %v4683_v42  ;;  %3599 = vmatpush1.bf16.msra.mxu1 %v4686_v43  ;;  %v4778_v42 = vld [vmem:[%s6862_s1 + $0x6e8] ss:$16 sps:$4 sm:$0xff]   ;;  %v4783_v43 = vld [vmem:[%s6862_s1 + $0x704] ss:$16 sps:$4 sm:$0xff]  }
  0xa4   :  { %3272 = vmatprep.subr.bf16.mxu0 %v4691_v44  ;;  %3600 = vmatprep.subr.bf16.mxu1 %v4694_v45  ;;  %v4786_v44 = vld [vmem:[%s6862_s1 + $0x70c] ss:$16 sps:$4 sm:$0xff]   ;;  %v4781_v45 = vld [vmem:[%s6862_s1 + $0x700] ss:$16 sps:$4 sm:$0xff]  }
  0xa7   :  { %3273 = vmatpush1.bf16.msra.mxu0 %v4689_v46  ;;  %3601 = vmatpush1.bf16.msra.mxu1 %v4692_v47  ;;  %v4784_v46 = vld [vmem:[%s6862_s1 + $0x708] ss:$16 sps:$4 sm:$0xff]   ;;  %v4789_v47 = vld [vmem:[%s6862_s1 + $0x724] ss:$16 sps:$4 sm:$0xff]  }
  0xa8   :  { %3274 = vmatprep.subr.bf16.mxu0 %v4697_v48  ;;  %3602 = vmatprep.subr.bf16.mxu1 %v4700_v49  ;;  %v4792_v48 = vld [vmem:[%s6862_s1 + $0x72c] ss:$16 sps:$4 sm:$0xff]   ;;  %v4787_v49 = vld [vmem:[%s6862_s1 + $0x720] ss:$16 sps:$4 sm:$0xff]  }
  0xab   :  { %3275 = vmatpush1.bf16.msra.mxu0 %v4695_v50  ;;  %3603 = vmatpush1.bf16.msra.mxu1 %v4698_v51  ;;  %v4790_v50 = vld [vmem:[%s6862_s1 + $0x728] ss:$16 sps:$4 sm:$0xff]   ;;  %v4795_v51 = vld [vmem:[%s6862_s1 + $0x744] ss:$16 sps:$4 sm:$0xff]  }
  0xac   :  { %3276 = vmatprep.subr.bf16.mxu0 %v4703_v52  ;;  %3604 = vmatprep.subr.bf16.mxu1 %v4706_v53  ;;  %v4798_v52 = vld [vmem:[%s6862_s1 + $0x74c] ss:$16 sps:$4 sm:$0xff]   ;;  %v4793_v53 = vld [vmem:[%s6862_s1 + $0x740] ss:$16 sps:$4 sm:$0xff]  }
  0xaf   :  { %3277 = vmatpush1.bf16.msra.mxu0 %v4701_v54  ;;  %3605 = vmatpush1.bf16.msra.mxu1 %v4704_v55  ;;  %v4796_v54 = vld [vmem:[%s6862_s1 + $0x748] ss:$16 sps:$4 sm:$0xff]   ;;  %v4801_v55 = vld [vmem:[%s6862_s1 + $0x764] ss:$16 sps:$4 sm:$0xff]  }
  0xb0   :  { %3278 = vmatprep.subr.bf16.mxu0 %v4709_v56  ;;  %3606 = vmatprep.subr.bf16.mxu1 %v4712_v57  ;;  %v4804_v56 = vld [vmem:[%s6862_s1 + $0x76c] ss:$16 sps:$4 sm:$0xff]   ;;  %v4799_v57 = vld [vmem:[%s6862_s1 + $0x760] ss:$16 sps:$4 sm:$0xff]  }
  0xb3   :  { %3279 = vmatpush1.bf16.msra.mxu0 %v4707_v58  ;;  %3607 = vmatpush1.bf16.msra.mxu1 %v4710_v59  ;;  %v4802_v58 = vld [vmem:[%s6862_s1 + $0x768] ss:$16 sps:$4 sm:$0xff]   ;;  %v4807_v59 = vld [vmem:[%s6862_s1 + $0x784] ss:$16 sps:$4 sm:$0xff]  }
  0xb4   :  { %3280 = vmatprep.subr.bf16.mxu0 %v4715_v60  ;;  %3608 = vmatprep.subr.bf16.mxu1 %v4718_v61  ;;  %v4810_v60 = vld [vmem:[%s6862_s1 + $0x78c] ss:$16 sps:$4 sm:$0xff]   ;;  %v4805_v61 = vld [vmem:[%s6862_s1 + $0x780] ss:$16 sps:$4 sm:$0xff]  }
  0xb7   :  { %3281 = vmatpush1.bf16.msra.mxu0 %v4713_v62  ;;  %3609 = vmatpush1.bf16.msra.mxu1 %v4716_v63  ;;  %v4808_v62 = vld [vmem:[%s6862_s1 + $0x788] ss:$16 sps:$4 sm:$0xff]   ;;  %v4813_v63 = vld [vmem:[%s6862_s1 + $0x7a4] ss:$16 sps:$4 sm:$0xff]  }
  0xb8   :  { %3282 = vmatprep.subr.bf16.mxu0 %v4721_v0  ;;  %3610 = vmatprep.subr.bf16.mxu1 %v4724_v1  ;;  %v4816_v0 = vld [vmem:[%s6862_s1 + $0x7ac] ss:$16 sps:$4 sm:$0xff]   ;;  %v4811_v1 = vld [vmem:[%s6862_s1 + $0x7a0] ss:$16 sps:$4 sm:$0xff]  }
  0xbb   :  { %3283 = vmatpush1.bf16.msra.mxu0 %v4719_v2  ;;  %3611 = vmatpush1.bf16.msra.mxu1 %v4722_v3  ;;  %v4814_v2 = vld [vmem:[%s6862_s1 + $0x7a8] ss:$16 sps:$4 sm:$0xff]   ;;  %v4819_v3 = vld [vmem:[%s6862_s1 + $0x7c4] ss:$16 sps:$4 sm:$0xff]  }
  0xbc   :  { %3284 = vmatprep.subr.bf16.mxu0 %v4727_v4  ;;  %3612 = vmatprep.subr.bf16.mxu1 %v4730_v5  ;;  %v4822_v4 = vld [vmem:[%s6862_s1 + $0x7cc] ss:$16 sps:$4 sm:$0xff]   ;;  %v4817_v5 = vld [vmem:[%s6862_s1 + $0x7c0] ss:$16 sps:$4 sm:$0xff]  }
  0xbf   :  { %3285 = vmatpush1.bf16.msra.mxu0 %v4725_v6  ;;  %3613 = vmatpush1.bf16.msra.mxu1 %v4728_v7  ;;  %v4820_v6 = vld [vmem:[%s6862_s1 + $0x7c8] ss:$16 sps:$4 sm:$0xff]   ;;  %v4825_v7 = vld [vmem:[%s6862_s1 + $0x7e4] ss:$16 sps:$4 sm:$0xff]  }
  0xc0   :  { %3295 = vmatprep.subr.bf16.mxu0 %v4735_v8  ;;  %3623 = vmatprep.subr.bf16.mxu1 %v4738_v9  ;;  %v4828_v8 = vld [vmem:[%s6862_s1 + $0x7ec] ss:$16 sps:$4 sm:$0xff]   ;;  %v4823_v9 = vld [vmem:[%s6862_s1 + $0x7e0] ss:$16 sps:$4 sm:$0xff]  }
  0xc2   :  { %3287 = vmatmul.mubr.bf16.vlgmr.msra.gmra.mrb[0].mxu0 %v3855_v12  ;;  %3615 = vmatmul.mubr.bf16.vlgmr.msra.gmra.mrb[0].mxu1 %v3855_v12  ;;  %v4833_v12 = vld [vmem:[%s6862_s1 + $0x804] ss:$16 sps:$4 sm:$0xff]  }
  0xc3   :  { %3296 = vmatpush1.bf16.msra.mxu0 %v4733_v10  ;;  %3624 = vmatpush1.bf16.msra.mxu1 %v4736_v13  ;;  %v4826_v10 = vld [vmem:[%s6862_s1 + $0x7e8] ss:$16 sps:$4 sm:$0xff]   ;;  %v4836_v13 = vld [vmem:[%s6862_s1 + $0x80c] ss:$16 sps:$4 sm:$0xff]  }
  0xc4   :  { %3297 = vmatprep.subr.bf16.mxu0 %v4741_v15  ;;  %3625 = vmatprep.subr.bf16.mxu1 %v4744_v11  ;;  %v4831_v15 = vld [vmem:[%s6862_s1 + $0x800] ss:$16 sps:$4 sm:$0xff]   ;;  %v3857_v11 = vcombine.low %v5857_v14, %v5857_v14  ;;  %v4842_v14 = vld [vmem:[%s6862_s1 + $0x82c] ss:$16 sps:$4 sm:$0xff]  }
  0xc5   :  { %3327 = vmatprep.mubr.bf16.mxu0 %v3858_v16  ;;  %3655 = vmatprep.mubr.bf16.mxu1 %v3858_v16  ;;  %v6055_v16 = vld [vmem:[%s6863_s0 + $0x20] sm:$0xff] }
  0xc7   :  { %3298 = vmatpush1.bf16.msra.mxu0 %v4739_v17  ;;  %3626 = vmatpush1.bf16.msra.mxu1 %v4742_v18  ;;  %v4834_v17 = vld [vmem:[%s6862_s1 + $0x808] ss:$16 sps:$4 sm:$0xff]   ;;  %v4839_v18 = vld [vmem:[%s6862_s1 + $0x824] ss:$16 sps:$4 sm:$0xff]  }
  0xc8   :  { %3299 = vmatprep.subr.bf16.mxu0 %v4747_v19  ;;  %3627 = vmatprep.subr.bf16.mxu1 %v4750_v20  ;;  %v3860_v19 = vcombine.high %v6055_v16, %v6055_v16  ;;  %v4837_v20 = vld [vmem:[%s6862_s1 + $0x820] ss:$16 sps:$4 sm:$0xff]  }
  0xcb   :  { %3300 = vmatpush1.bf16.msra.mxu0 %v4745_v21  ;;  %3628 = vmatpush1.bf16.msra.mxu1 %v4748_v22  ;;  %v4840_v21 = vld [vmem:[%s6862_s1 + $0x828] ss:$16 sps:$4 sm:$0xff]   ;;  %v4845_v22 = vld [vmem:[%s6862_s1 + $0x844] ss:$16 sps:$4 sm:$0xff]  }
  0xcc   :  { %3301 = vmatprep.subr.bf16.mxu0 %v4753_v23  ;;  %3629 = vmatprep.subr.bf16.mxu1 %v4756_v24  ;;  %v4848_v23 = vld [vmem:[%s6862_s1 + $0x84c] ss:$16 sps:$4 sm:$0xff]   ;;  %v4843_v24 = vld [vmem:[%s6862_s1 + $0x840] ss:$16 sps:$4 sm:$0xff]  }
  0xcf   :  { %3302 = vmatpush1.bf16.msra.mxu0 %v4751_v25  ;;  %3630 = vmatpush1.bf16.msra.mxu1 %v4754_v26  ;;  %v4846_v25 = vld [vmem:[%s6862_s1 + $0x848] ss:$16 sps:$4 sm:$0xff]   ;;  %v4851_v26 = vld [vmem:[%s6862_s1 + $0x864] ss:$16 sps:$4 sm:$0xff]  }
  0xd0   :  { %3303 = vmatprep.subr.bf16.mxu0 %v4759_v27  ;;  %3631 = vmatprep.subr.bf16.mxu1 %v4762_v28  ;;  %v4854_v27 = vld [vmem:[%s6862_s1 + $0x86c] ss:$16 sps:$4 sm:$0xff]   ;;  %v4849_v28 = vld [vmem:[%s6862_s1 + $0x860] ss:$16 sps:$4 sm:$0xff]  }
  0xd3   :  { %3304 = vmatpush1.bf16.msra.mxu0 %v4757_v29  ;;  %3632 = vmatpush1.bf16.msra.mxu1 %v4760_v30  ;;  %v4852_v29 = vld [vmem:[%s6862_s1 + $0x868] ss:$16 sps:$4 sm:$0xff]   ;;  %v4857_v30 = vld [vmem:[%s6862_s1 + $0x884] ss:$16 sps:$4 sm:$0xff]  }
  0xd4   :  { %3305 = vmatprep.subr.bf16.mxu0 %v4765_v31  ;;  %3633 = vmatprep.subr.bf16.mxu1 %v4768_v32  ;;  %v4860_v31 = vld [vmem:[%s6862_s1 + $0x88c] ss:$16 sps:$4 sm:$0xff]   ;;  %v4855_v32 = vld [vmem:[%s6862_s1 + $0x880] ss:$16 sps:$4 sm:$0xff]  }
  0xd7   :  { %3306 = vmatpush1.bf16.msra.mxu0 %v4763_v33  ;;  %3634 = vmatpush1.bf16.msra.mxu1 %v4766_v34  ;;  %v4858_v33 = vld [vmem:[%s6862_s1 + $0x888] ss:$16 sps:$4 sm:$0xff]   ;;  %v4863_v34 = vld [vmem:[%s6862_s1 + $0x8a4] ss:$16 sps:$4 sm:$0xff]  }
  0xd8   :  { %3307 = vmatprep.subr.bf16.mxu0 %v4771_v35  ;;  %3635 = vmatprep.subr.bf16.mxu1 %v4774_v36  ;;  %v4866_v35 = vld [vmem:[%s6862_s1 + $0x8ac] ss:$16 sps:$4 sm:$0xff]   ;;  %v4861_v36 = vld [vmem:[%s6862_s1 + $0x8a0] ss:$16 sps:$4 sm:$0xff]  }
  0xdb   :  { %3308 = vmatpush1.bf16.msra.mxu0 %v4769_v37  ;;  %3636 = vmatpush1.bf16.msra.mxu1 %v4772_v38  ;;  %v4864_v37 = vld [vmem:[%s6862_s1 + $0x8a8] ss:$16 sps:$4 sm:$0xff]   ;;  %v4869_v38 = vld [vmem:[%s6862_s1 + $0x8c4] ss:$16 sps:$4 sm:$0xff]  }
  0xdc   :  { %3309 = vmatprep.subr.bf16.mxu0 %v4777_v39  ;;  %3637 = vmatprep.subr.bf16.mxu1 %v4780_v40  ;;  %v4872_v39 = vld [vmem:[%s6862_s1 + $0x8cc] ss:$16 sps:$4 sm:$0xff]   ;;  %v4867_v40 = vld [vmem:[%s6862_s1 + $0x8c0] ss:$16 sps:$4 sm:$0xff]  }
  0xdf   :  { %3310 = vmatpush1.bf16.msra.mxu0 %v4775_v41  ;;  %3638 = vmatpush1.bf16.msra.mxu1 %v4778_v42  ;;  %v4870_v41 = vld [vmem:[%s6862_s1 + $0x8c8] ss:$16 sps:$4 sm:$0xff]   ;;  %v4875_v42 = vld [vmem:[%s6862_s1 + $0x8e4] ss:$16 sps:$4 sm:$0xff]  }
  0xe0   :  { %3311 = vmatprep.subr.bf16.mxu0 %v4783_v43  ;;  %3639 = vmatprep.subr.bf16.mxu1 %v4786_v44  ;;  %v4878_v43 = vld [vmem:[%s6862_s1 + $0x8ec] ss:$16 sps:$4 sm:$0xff]   ;;  %v4873_v44 = vld [vmem:[%s6862_s1 + $0x8e0] ss:$16 sps:$4 sm:$0xff]  }
  0xe3   :  { %3312 = vmatpush1.bf16.msra.mxu0 %v4781_v45  ;;  %3640 = vmatpush1.bf16.msra.mxu1 %v4784_v46  ;;  %v4876_v45 = vld [vmem:[%s6862_s1 + $0x8e8] ss:$16 sps:$4 sm:$0xff]   ;;  %v4881_v46 = vld [vmem:[%s6862_s1 + $0x904] ss:$16 sps:$4 sm:$0xff]  }
  0xe4   :  { %3313 = vmatprep.subr.bf16.mxu0 %v4789_v47  ;;  %3641 = vmatprep.subr.bf16.mxu1 %v4792_v48  ;;  %v4884_v47 = vld [vmem:[%s6862_s1 + $0x90c] ss:$16 sps:$4 sm:$0xff]   ;;  %v4879_v48 = vld [vmem:[%s6862_s1 + $0x900] ss:$16 sps:$4 sm:$0xff]  }
  0xe7   :  { %3314 = vmatpush1.bf16.msra.mxu0 %v4787_v49  ;;  %3642 = vmatpush1.bf16.msra.mxu1 %v4790_v50  ;;  %v4882_v49 = vld [vmem:[%s6862_s1 + $0x908] ss:$16 sps:$4 sm:$0xff]   ;;  %v4887_v50 = vld [vmem:[%s6862_s1 + $0x924] ss:$16 sps:$4 sm:$0xff]  }
  0xe8   :  { %3315 = vmatprep.subr.bf16.mxu0 %v4795_v51  ;;  %3643 = vmatprep.subr.bf16.mxu1 %v4798_v52  ;;  %v4890_v51 = vld [vmem:[%s6862_s1 + $0x92c] ss:$16 sps:$4 sm:$0xff]   ;;  %v4885_v52 = vld [vmem:[%s6862_s1 + $0x920] ss:$16 sps:$4 sm:$0xff]  }
  0xeb   :  { %3316 = vmatpush1.bf16.msra.mxu0 %v4793_v53  ;;  %3644 = vmatpush1.bf16.msra.mxu1 %v4796_v54  ;;  %v4888_v53 = vld [vmem:[%s6862_s1 + $0x928] ss:$16 sps:$4 sm:$0xff]   ;;  %v4893_v54 = vld [vmem:[%s6862_s1 + $0x944] ss:$16 sps:$4 sm:$0xff]  }
  0xec   :  { %3317 = vmatprep.subr.bf16.mxu0 %v4801_v55  ;;  %3645 = vmatprep.subr.bf16.mxu1 %v4804_v56  ;;  %v4896_v55 = vld [vmem:[%s6862_s1 + $0x94c] ss:$16 sps:$4 sm:$0xff]   ;;  %v4891_v56 = vld [vmem:[%s6862_s1 + $0x940] ss:$16 sps:$4 sm:$0xff]  }
  0xef   :  { %3318 = vmatpush1.bf16.msra.mxu0 %v4799_v57  ;;  %3646 = vmatpush1.bf16.msra.mxu1 %v4802_v58  ;;  %v4894_v57 = vld [vmem:[%s6862_s1 + $0x948] ss:$16 sps:$4 sm:$0xff]   ;;  %v4899_v58 = vld [vmem:[%s6862_s1 + $0x964] ss:$16 sps:$4 sm:$0xff]  }
  0xf0   :  { %3319 = vmatprep.subr.bf16.mxu0 %v4807_v59  ;;  %3647 = vmatprep.subr.bf16.mxu1 %v4810_v60  ;;  %v4902_v59 = vld [vmem:[%s6862_s1 + $0x96c] ss:$16 sps:$4 sm:$0xff]   ;;  %v4897_v60 = vld [vmem:[%s6862_s1 + $0x960] ss:$16 sps:$4 sm:$0xff]  }
  0xf3   :  { %3320 = vmatpush1.bf16.msra.mxu0 %v4805_v61  ;;  %3648 = vmatpush1.bf16.msra.mxu1 %v4808_v62  ;;  %v4900_v61 = vld [vmem:[%s6862_s1 + $0x968] ss:$16 sps:$4 sm:$0xff]   ;;  %v4905_v62 = vld [vmem:[%s6862_s1 + $0x984] ss:$16 sps:$4 sm:$0xff]  }
  0xf4   :  { %3321 = vmatprep.subr.bf16.mxu0 %v4813_v63  ;;  %3649 = vmatprep.subr.bf16.mxu1 %v4816_v0  ;;  %v4908_v63 = vld [vmem:[%s6862_s1 + $0x98c] ss:$16 sps:$4 sm:$0xff]   ;;  %v4903_v0 = vld [vmem:[%s6862_s1 + $0x980] ss:$16 sps:$4 sm:$0xff]  }
  0xf7   :  { %3322 = vmatpush1.bf16.msra.mxu0 %v4811_v1  ;;  %3650 = vmatpush1.bf16.msra.mxu1 %v4814_v2  ;;  %v4906_v1 = vld [vmem:[%s6862_s1 + $0x988] ss:$16 sps:$4 sm:$0xff]   ;;  %v4911_v2 = vld [vmem:[%s6862_s1 + $0x9a4] ss:$16 sps:$4 sm:$0xff]  }
  0xf8   :  { %3323 = vmatprep.subr.bf16.mxu0 %v4819_v3  ;;  %3651 = vmatprep.subr.bf16.mxu1 %v4822_v4  ;;  %v4914_v3 = vld [vmem:[%s6862_s1 + $0x9ac] ss:$16 sps:$4 sm:$0xff]   ;;  %v4909_v4 = vld [vmem:[%s6862_s1 + $0x9a0] ss:$16 sps:$4 sm:$0xff]  }
  0xfb   :  { %3324 = vmatpush1.bf16.msra.mxu0 %v4817_v5  ;;  %3652 = vmatpush1.bf16.msra.mxu1 %v4820_v6  ;;  %v4912_v5 = vld [vmem:[%s6862_s1 + $0x9a8] ss:$16 sps:$4 sm:$0xff]   ;;  %v4917_v6 = vld [vmem:[%s6862_s1 + $0x9c4] ss:$16 sps:$4 sm:$0xff]  }
  0xfc   :  { %3325 = vmatprep.subr.bf16.mxu0 %v4825_v7  ;;  %3653 = vmatprep.subr.bf16.mxu1 %v4828_v8  ;;  %v4920_v7 = vld [vmem:[%s6862_s1 + $0x9cc] ss:$16 sps:$4 sm:$0xff]   ;;  %v4915_v8 = vld [vmem:[%s6862_s1 + $0x9c0] ss:$16 sps:$4 sm:$0xff]  }
  0xff   :  { %3326 = vmatpush1.bf16.msra.mxu0 %v4823_v9  ;;  %3654 = vmatpush1.bf16.msra.mxu1 %v4826_v10  ;;  %v4918_v9 = vld [vmem:[%s6862_s1 + $0x9c8] ss:$16 sps:$4 sm:$0xff]   ;;  %v4923_v10 = vld [vmem:[%s6862_s1 + $0x9e4] ss:$16 sps:$4 sm:$0xff]  }
 0x100   :  { %3336 = vmatprep.subr.bf16.mxu0 %v4833_v12  ;;  %3664 = vmatprep.subr.bf16.mxu1 %v4836_v13  ;;  %v4926_v12 = vld [vmem:[%s6862_s1 + $0x9ec] ss:$16 sps:$4 sm:$0xff]   ;;  %v4921_v13 = vld [vmem:[%s6862_s1 + $0x9e0] ss:$16 sps:$4 sm:$0xff]  }
 0x102   :  { %3328 = vmatmul.mubr.bf16.vlgmr.msra.gmra.mrb[0].mxu0 %v3857_v11  ;;  %3656 = vmatmul.mubr.bf16.vlgmr.msra.gmra.mrb[0].mxu1 %v3857_v11  ;;  %v4931_v11 = vld [vmem:[%s6862_s1 + $0xa04] ss:$16 sps:$4 sm:$0xff]  }
 0x103   :  { %3337 = vmatpush1.bf16.msra.mxu0 %v4831_v15  ;;  %3665 = vmatpush1.bf16.msra.mxu1 %v4834_v17  ;;  %v4924_v15 = vld [vmem:[%s6862_s1 + $0x9e8] ss:$16 sps:$4 sm:$0xff]   ;;  %v4934_v17 = vld [vmem:[%s6862_s1 + $0xa0c] ss:$16 sps:$4 sm:$0xff]  }
 0x104   :  { %3338 = vmatprep.subr.bf16.mxu0 %v4839_v18  ;;  %3666 = vmatprep.subr.bf16.mxu1 %v4842_v14  ;;  %v6251_v18 = vld [vmem:[%s6863_s0 + $0x28] sm:$0xff]  ;;  %v3859_v14 = vcombine.low %v6055_v16, %v6055_v16 }
 0x105   :  { %3368 = vmatprep.mubr.bf16.mxu0 %v3860_v19  ;;  %3696 = vmatprep.mubr.bf16.mxu1 %v3860_v19  ;;  %v4929_v19 = vld [vmem:[%s6862_s1 + $0xa00] ss:$16 sps:$4 sm:$0xff]   ;;  %v4940_v16 = vld [vmem:[%s6862_s1 + $0xa2c] ss:$16 sps:$4 sm:$0xff]  }
 0x107   :  { %3339 = vmatpush1.bf16.msra.mxu0 %v4837_v20  ;;  %3667 = vmatpush1.bf16.msra.mxu1 %v4840_v21  ;;  %v4932_v20 = vld [vmem:[%s6862_s1 + $0xa08] ss:$16 sps:$4 sm:$0xff]   ;;  %v4937_v21 = vld [vmem:[%s6862_s1 + $0xa24] ss:$16 sps:$4 sm:$0xff]  }
 0x108   :  { %3340 = vmatprep.subr.bf16.mxu0 %v4845_v22  ;;  %3668 = vmatprep.subr.bf16.mxu1 %v4848_v23  ;;  %v3862_v22 = vcombine.high %v6251_v18, %v6251_v18  ;;  %v4935_v23 = vld [vmem:[%s6862_s1 + $0xa20] ss:$16 sps:$4 sm:$0xff]  }
 0x10b   :  { %3341 = vmatpush1.bf16.msra.mxu0 %v4843_v24  ;;  %3669 = vmatpush1.bf16.msra.mxu1 %v4846_v25  ;;  %v4938_v24 = vld [vmem:[%s6862_s1 + $0xa28] ss:$16 sps:$4 sm:$0xff]   ;;  %v4943_v25 = vld [vmem:[%s6862_s1 + $0xa44] ss:$16 sps:$4 sm:$0xff]  }
 0x10c   :  { %3342 = vmatprep.subr.bf16.mxu0 %v4851_v26  ;;  %3670 = vmatprep.subr.bf16.mxu1 %v4854_v27  ;;  %v4946_v26 = vld [vmem:[%s6862_s1 + $0xa4c] ss:$16 sps:$4 sm:$0xff]   ;;  %v4941_v27 = vld [vmem:[%s6862_s1 + $0xa40] ss:$16 sps:$4 sm:$0xff]  }
 0x10f   :  { %3343 = vmatpush1.bf16.msra.mxu0 %v4849_v28  ;;  %3671 = vmatpush1.bf16.msra.mxu1 %v4852_v29  ;;  %v4944_v28 = vld [vmem:[%s6862_s1 + $0xa48] ss:$16 sps:$4 sm:$0xff]   ;;  %v4949_v29 = vld [vmem:[%s6862_s1 + $0xa64] ss:$16 sps:$4 sm:$0xff]  }
 0x110   :  { %3344 = vmatprep.subr.bf16.mxu0 %v4857_v30  ;;  %3672 = vmatprep.subr.bf16.mxu1 %v4860_v31  ;;  %v4952_v30 = vld [vmem:[%s6862_s1 + $0xa6c] ss:$16 sps:$4 sm:$0xff]   ;;  %v4947_v31 = vld [vmem:[%s6862_s1 + $0xa60] ss:$16 sps:$4 sm:$0xff]  }
 0x113   :  { %3345 = vmatpush1.bf16.msra.mxu0 %v4855_v32  ;;  %3673 = vmatpush1.bf16.msra.mxu1 %v4858_v33  ;;  %v4950_v32 = vld [vmem:[%s6862_s1 + $0xa68] ss:$16 sps:$4 sm:$0xff]   ;;  %v4955_v33 = vld [vmem:[%s6862_s1 + $0xa84] ss:$16 sps:$4 sm:$0xff]  }
 0x114   :  { %3346 = vmatprep.subr.bf16.mxu0 %v4863_v34  ;;  %3674 = vmatprep.subr.bf16.mxu1 %v4866_v35  ;;  %v4958_v34 = vld [vmem:[%s6862_s1 + $0xa8c] ss:$16 sps:$4 sm:$0xff]   ;;  %v4953_v35 = vld [vmem:[%s6862_s1 + $0xa80] ss:$16 sps:$4 sm:$0xff]  }
 0x117   :  { %3347 = vmatpush1.bf16.msra.mxu0 %v4861_v36  ;;  %3675 = vmatpush1.bf16.msra.mxu1 %v4864_v37  ;;  %v4956_v36 = vld [vmem:[%s6862_s1 + $0xa88] ss:$16 sps:$4 sm:$0xff]   ;;  %v4961_v37 = vld [vmem:[%s6862_s1 + $0xaa4] ss:$16 sps:$4 sm:$0xff]  }
 0x118   :  { %3348 = vmatprep.subr.bf16.mxu0 %v4869_v38  ;;  %3676 = vmatprep.subr.bf16.mxu1 %v4872_v39  ;;  %v4964_v38 = vld [vmem:[%s6862_s1 + $0xaac] ss:$16 sps:$4 sm:$0xff]   ;;  %v4959_v39 = vld [vmem:[%s6862_s1 + $0xaa0] ss:$16 sps:$4 sm:$0xff]  }
 0x11b   :  { %3349 = vmatpush1.bf16.msra.mxu0 %v4867_v40  ;;  %3677 = vmatpush1.bf16.msra.mxu1 %v4870_v41  ;;  %v4962_v40 = vld [vmem:[%s6862_s1 + $0xaa8] ss:$16 sps:$4 sm:$0xff]   ;;  %v4967_v41 = vld [vmem:[%s6862_s1 + $0xac4] ss:$16 sps:$4 sm:$0xff]  }
 0x11c   :  { %3350 = vmatprep.subr.bf16.mxu0 %v4875_v42  ;;  %3678 = vmatprep.subr.bf16.mxu1 %v4878_v43  ;;  %v4970_v42 = vld [vmem:[%s6862_s1 + $0xacc] ss:$16 sps:$4 sm:$0xff]   ;;  %v4965_v43 = vld [vmem:[%s6862_s1 + $0xac0] ss:$16 sps:$4 sm:$0xff]  }
 0x11f   :  { %3351 = vmatpush1.bf16.msra.mxu0 %v4873_v44  ;;  %3679 = vmatpush1.bf16.msra.mxu1 %v4876_v45  ;;  %v4968_v44 = vld [vmem:[%s6862_s1 + $0xac8] ss:$16 sps:$4 sm:$0xff]   ;;  %v4973_v45 = vld [vmem:[%s6862_s1 + $0xae4] ss:$16 sps:$4 sm:$0xff]  }
 0x120   :  { %3352 = vmatprep.subr.bf16.mxu0 %v4881_v46  ;;  %3680 = vmatprep.subr.bf16.mxu1 %v4884_v47  ;;  %v4976_v46 = vld [vmem:[%s6862_s1 + $0xaec] ss:$16 sps:$4 sm:$0xff]   ;;  %v4971_v47 = vld [vmem:[%s6862_s1 + $0xae0] ss:$16 sps:$4 sm:$0xff]  }
 0x123   :  { %3353 = vmatpush1.bf16.msra.mxu0 %v4879_v48  ;;  %3681 = vmatpush1.bf16.msra.mxu1 %v4882_v49  ;;  %v4974_v48 = vld [vmem:[%s6862_s1 + $0xae8] ss:$16 sps:$4 sm:$0xff]   ;;  %v4979_v49 = vld [vmem:[%s6862_s1 + $0xb04] ss:$16 sps:$4 sm:$0xff]  }
 0x124   :  { %3354 = vmatprep.subr.bf16.mxu0 %v4887_v50  ;;  %3682 = vmatprep.subr.bf16.mxu1 %v4890_v51  ;;  %v4982_v50 = vld [vmem:[%s6862_s1 + $0xb0c] ss:$16 sps:$4 sm:$0xff]   ;;  %v4977_v51 = vld [vmem:[%s6862_s1 + $0xb00] ss:$16 sps:$4 sm:$0xff]  }
 0x127   :  { %3355 = vmatpush1.bf16.msra.mxu0 %v4885_v52  ;;  %3683 = vmatpush1.bf16.msra.mxu1 %v4888_v53  ;;  %v4980_v52 = vld [vmem:[%s6862_s1 + $0xb08] ss:$16 sps:$4 sm:$0xff]   ;;  %v4985_v53 = vld [vmem:[%s6862_s1 + $0xb24] ss:$16 sps:$4 sm:$0xff]  }
 0x128   :  { %3356 = vmatprep.subr.bf16.mxu0 %v4893_v54  ;;  %3684 = vmatprep.subr.bf16.mxu1 %v4896_v55  ;;  %v4988_v54 = vld [vmem:[%s6862_s1 + $0xb2c] ss:$16 sps:$4 sm:$0xff]   ;;  %v4983_v55 = vld [vmem:[%s6862_s1 + $0xb20] ss:$16 sps:$4 sm:$0xff]  }
 0x12b   :  { %3357 = vmatpush1.bf16.msra.mxu0 %v4891_v56  ;;  %3685 = vmatpush1.bf16.msra.mxu1 %v4894_v57  ;;  %v4986_v56 = vld [vmem:[%s6862_s1 + $0xb28] ss:$16 sps:$4 sm:$0xff]   ;;  %v4991_v57 = vld [vmem:[%s6862_s1 + $0xb44] ss:$16 sps:$4 sm:$0xff]  }
 0x12c   :  { %3358 = vmatprep.subr.bf16.mxu0 %v4899_v58  ;;  %3686 = vmatprep.subr.bf16.mxu1 %v4902_v59  ;;  %v4994_v58 = vld [vmem:[%s6862_s1 + $0xb4c] ss:$16 sps:$4 sm:$0xff]   ;;  %v4989_v59 = vld [vmem:[%s6862_s1 + $0xb40] ss:$16 sps:$4 sm:$0xff]  }
 0x12f   :  { %3359 = vmatpush1.bf16.msra.mxu0 %v4897_v60  ;;  %3687 = vmatpush1.bf16.msra.mxu1 %v4900_v61  ;;  %v4992_v60 = vld [vmem:[%s6862_s1 + $0xb48] ss:$16 sps:$4 sm:$0xff]   ;;  %v4997_v61 = vld [vmem:[%s6862_s1 + $0xb64] ss:$16 sps:$4 sm:$0xff]  }
 0x130   :  { %3360 = vmatprep.subr.bf16.mxu0 %v4905_v62  ;;  %3688 = vmatprep.subr.bf16.mxu1 %v4908_v63  ;;  %v5000_v62 = vld [vmem:[%s6862_s1 + $0xb6c] ss:$16 sps:$4 sm:$0xff]   ;;  %v4995_v63 = vld [vmem:[%s6862_s1 + $0xb60] ss:$16 sps:$4 sm:$0xff]  }
 0x133   :  { %3361 = vmatpush1.bf16.msra.mxu0 %v4903_v0  ;;  %3689 = vmatpush1.bf16.msra.mxu1 %v4906_v1  ;;  %v4998_v0 = vld [vmem:[%s6862_s1 + $0xb68] ss:$16 sps:$4 sm:$0xff]   ;;  %v5003_v1 = vld [vmem:[%s6862_s1 + $0xb84] ss:$16 sps:$4 sm:$0xff]  }
 0x134   :  { %3362 = vmatprep.subr.bf16.mxu0 %v4911_v2  ;;  %3690 = vmatprep.subr.bf16.mxu1 %v4914_v3  ;;  %v5006_v2 = vld [vmem:[%s6862_s1 + $0xb8c] ss:$16 sps:$4 sm:$0xff]   ;;  %v5001_v3 = vld [vmem:[%s6862_s1 + $0xb80] ss:$16 sps:$4 sm:$0xff]  }
 0x137   :  { %3363 = vmatpush1.bf16.msra.mxu0 %v4909_v4  ;;  %3691 = vmatpush1.bf16.msra.mxu1 %v4912_v5  ;;  %v5004_v4 = vld [vmem:[%s6862_s1 + $0xb88] ss:$16 sps:$4 sm:$0xff]   ;;  %v5009_v5 = vld [vmem:[%s6862_s1 + $0xba4] ss:$16 sps:$4 sm:$0xff]  }
 0x138   :  { %3364 = vmatprep.subr.bf16.mxu0 %v4917_v6  ;;  %3692 = vmatprep.subr.bf16.mxu1 %v4920_v7  ;;  %v5012_v6 = vld [vmem:[%s6862_s1 + $0xbac] ss:$16 sps:$4 sm:$0xff]   ;;  %v5007_v7 = vld [vmem:[%s6862_s1 + $0xba0] ss:$16 sps:$4 sm:$0xff]  }
 0x13b   :  { %3365 = vmatpush1.bf16.msra.mxu0 %v4915_v8  ;;  %3693 = vmatpush1.bf16.msra.mxu1 %v4918_v9  ;;  %v5010_v8 = vld [vmem:[%s6862_s1 + $0xba8] ss:$16 sps:$4 sm:$0xff]   ;;  %v5015_v9 = vld [vmem:[%s6862_s1 + $0xbc4] ss:$16 sps:$4 sm:$0xff]  }
 0x13c   :  { %3366 = vmatprep.subr.bf16.mxu0 %v4923_v10  ;;  %3694 = vmatprep.subr.bf16.mxu1 %v4926_v12  ;;  %v5018_v10 = vld [vmem:[%s6862_s1 + $0xbcc] ss:$16 sps:$4 sm:$0xff]   ;;  %v5013_v12 = vld [vmem:[%s6862_s1 + $0xbc0] ss:$16 sps:$4 sm:$0xff]  }
 0x13f   :  { %3367 = vmatpush1.bf16.msra.mxu0 %v4921_v13  ;;  %3695 = vmatpush1.bf16.msra.mxu1 %v4924_v15  ;;  %v5016_v13 = vld [vmem:[%s6862_s1 + $0xbc8] ss:$16 sps:$4 sm:$0xff]   ;;  %v5021_v15 = vld [vmem:[%s6862_s1 + $0xbe4] ss:$16 sps:$4 sm:$0xff]  }
 0x140   :  { %3377 = vmatprep.subr.bf16.mxu0 %v4931_v11  ;;  %3705 = vmatprep.subr.bf16.mxu1 %v4934_v17  ;;  %v5024_v11 = vld [vmem:[%s6862_s1 + $0xbec] ss:$16 sps:$4 sm:$0xff]   ;;  %v5019_v17 = vld [vmem:[%s6862_s1 + $0xbe0] ss:$16 sps:$4 sm:$0xff]  }
 0x142   :  { %3369 = vmatmul.mubr.bf16.vlgmr.msra.gmra.mrb[0].mxu0 %v3859_v14  ;;  %3697 = vmatmul.mubr.bf16.vlgmr.msra.gmra.mrb[0].mxu1 %v3859_v14  ;;  %v5022_v14 = vld [vmem:[%s6862_s1 + $0xbe8] ss:$16 sps:$4 sm:$0xff]  }
 0x143   :  { %3378 = vmatpush1.bf16.msra.mxu0 %v4929_v19  ;;  %3706 = vmatpush1.bf16.msra.mxu1 %v4932_v20  ;;  %v5029_v19 = vld [vmem:[%s6862_s1 + $0xc04] ss:$16 sps:$4 sm:$0xff]   ;;  %v5032_v20 = vld [vmem:[%s6862_s1 + $0xc0c] ss:$16 sps:$4 sm:$0xff]  }
 0x144   :  { %3379 = vmatprep.subr.bf16.mxu0 %v4937_v21  ;;  %3707 = vmatprep.subr.bf16.mxu1 %v4940_v16  ;;  %v3861_v21 = vcombine.low %v6251_v18, %v6251_v18  ;;  %v6454_v16 = vld [vmem:[%s6863_s0 + $0x30] sm:$0xff] }
 0x145   :  { %3409 = vmatprep.mubr.bf16.mxu0 %v3862_v22  ;;  %3737 = vmatprep.mubr.bf16.mxu1 %v3862_v22  ;;  %v5027_v22 = vld [vmem:[%s6862_s1 + $0xc00] ss:$16 sps:$4 sm:$0xff]   ;;  %v5035_v18 = vld [vmem:[%s6862_s1 + $0xc24] ss:$16 sps:$4 sm:$0xff]  }
 0x147   :  { %3380 = vmatpush1.bf16.msra.mxu0 %v4935_v23  ;;  %3708 = vmatpush1.bf16.msra.mxu1 %v4938_v24  ;;  %v5030_v23 = vld [vmem:[%s6862_s1 + $0xc08] ss:$16 sps:$4 sm:$0xff]   ;;  %v5038_v24 = vld [vmem:[%s6862_s1 + $0xc2c] ss:$16 sps:$4 sm:$0xff]  }
 0x148   :  { %3381 = vmatprep.subr.bf16.mxu0 %v4943_v25  ;;  %3709 = vmatprep.subr.bf16.mxu1 %v4946_v26  ;;  %v3864_v25 = vcombine.high %v6454_v16, %v6454_v16  ;;  %v5033_v26 = vld [vmem:[%s6862_s1 + $0xc20] ss:$16 sps:$4 sm:$0xff]  }
 0x14b   :  { %3382 = vmatpush1.bf16.msra.mxu0 %v4941_v27  ;;  %3710 = vmatpush1.bf16.msra.mxu1 %v4944_v28  ;;  %v5036_v27 = vld [vmem:[%s6862_s1 + $0xc28] ss:$16 sps:$4 sm:$0xff]   ;;  %v5041_v28 = vld [vmem:[%s6862_s1 + $0xc44] ss:$16 sps:$4 sm:$0xff]  }
 0x14c   :  { %3383 = vmatprep.subr.bf16.mxu0 %v4949_v29  ;;  %3711 = vmatprep.subr.bf16.mxu1 %v4952_v30  ;;  %v5044_v29 = vld [vmem:[%s6862_s1 + $0xc4c] ss:$16 sps:$4 sm:$0xff]   ;;  %v5039_v30 = vld [vmem:[%s6862_s1 + $0xc40] ss:$16 sps:$4 sm:$0xff]  }
 0x14f   :  { %3384 = vmatpush1.bf16.msra.mxu0 %v4947_v31  ;;  %3712 = vmatpush1.bf16.msra.mxu1 %v4950_v32  ;;  %v5042_v31 = vld [vmem:[%s6862_s1 + $0xc48] ss:$16 sps:$4 sm:$0xff]   ;;  %v5047_v32 = vld [vmem:[%s6862_s1 + $0xc64] ss:$16 sps:$4 sm:$0xff]  }
 0x150   :  { %3385 = vmatprep.subr.bf16.mxu0 %v4955_v33  ;;  %3713 = vmatprep.subr.bf16.mxu1 %v4958_v34  ;;  %v5050_v33 = vld [vmem:[%s6862_s1 + $0xc6c] ss:$16 sps:$4 sm:$0xff]   ;;  %v5045_v34 = vld [vmem:[%s6862_s1 + $0xc60] ss:$16 sps:$4 sm:$0xff]  }
 0x153   :  { %3386 = vmatpush1.bf16.msra.mxu0 %v4953_v35  ;;  %3714 = vmatpush1.bf16.msra.mxu1 %v4956_v36  ;;  %v5048_v35 = vld [vmem:[%s6862_s1 + $0xc68] ss:$16 sps:$4 sm:$0xff]   ;;  %v5053_v36 = vld [vmem:[%s6862_s1 + $0xc84] ss:$16 sps:$4 sm:$0xff]  }
 0x154   :  { %3387 = vmatprep.subr.bf16.mxu0 %v4961_v37  ;;  %3715 = vmatprep.subr.bf16.mxu1 %v4964_v38  ;;  %v5056_v37 = vld [vmem:[%s6862_s1 + $0xc8c] ss:$16 sps:$4 sm:$0xff]   ;;  %v5051_v38 = vld [vmem:[%s6862_s1 + $0xc80] ss:$16 sps:$4 sm:$0xff]  }
 0x157   :  { %3388 = vmatpush1.bf16.msra.mxu0 %v4959_v39  ;;  %3716 = vmatpush1.bf16.msra.mxu1 %v4962_v40  ;;  %v5054_v39 = vld [vmem:[%s6862_s1 + $0xc88] ss:$16 sps:$4 sm:$0xff]   ;;  %v5059_v40 = vld [vmem:[%s6862_s1 + $0xca4] ss:$16 sps:$4 sm:$0xff]  }
 0x158   :  { %3389 = vmatprep.subr.bf16.mxu0 %v4967_v41  ;;  %3717 = vmatprep.subr.bf16.mxu1 %v4970_v42  ;;  %v5062_v41 = vld [vmem:[%s6862_s1 + $0xcac] ss:$16 sps:$4 sm:$0xff]   ;;  %v5057_v42 = vld [vmem:[%s6862_s1 + $0xca0] ss:$16 sps:$4 sm:$0xff]  }
 0x15b   :  { %3390 = vmatpush1.bf16.msra.mxu0 %v4965_v43  ;;  %3718 = vmatpush1.bf16.msra.mxu1 %v4968_v44  ;;  %v5060_v43 = vld [vmem:[%s6862_s1 + $0xca8] ss:$16 sps:$4 sm:$0xff]   ;;  %v5065_v44 = vld [vmem:[%s6862_s1 + $0xcc4] ss:$16 sps:$4 sm:$0xff]  }
 0x15c   :  { %3391 = vmatprep.subr.bf16.mxu0 %v4973_v45  ;;  %3719 = vmatprep.subr.bf16.mxu1 %v4976_v46  ;;  %v5068_v45 = vld [vmem:[%s6862_s1 + $0xccc] ss:$16 sps:$4 sm:$0xff]   ;;  %v5063_v46 = vld [vmem:[%s6862_s1 + $0xcc0] ss:$16 sps:$4 sm:$0xff]  }
 0x15f   :  { %3392 = vmatpush1.bf16.msra.mxu0 %v4971_v47  ;;  %3720 = vmatpush1.bf16.msra.mxu1 %v4974_v48  ;;  %v5066_v47 = vld [vmem:[%s6862_s1 + $0xcc8] ss:$16 sps:$4 sm:$0xff]   ;;  %v5071_v48 = vld [vmem:[%s6862_s1 + $0xce4] ss:$16 sps:$4 sm:$0xff]  }
 0x160   :  { %3393 = vmatprep.subr.bf16.mxu0 %v4979_v49  ;;  %3721 = vmatprep.subr.bf16.mxu1 %v4982_v50  ;;  %v5074_v49 = vld [vmem:[%s6862_s1 + $0xcec] ss:$16 sps:$4 sm:$0xff]   ;;  %v5069_v50 = vld [vmem:[%s6862_s1 + $0xce0] ss:$16 sps:$4 sm:$0xff]  }
 0x163   :  { %3394 = vmatpush1.bf16.msra.mxu0 %v4977_v51  ;;  %3722 = vmatpush1.bf16.msra.mxu1 %v4980_v52  ;;  %v5072_v51 = vld [vmem:[%s6862_s1 + $0xce8] ss:$16 sps:$4 sm:$0xff]   ;;  %v5077_v52 = vld [vmem:[%s6862_s1 + $0xd04] ss:$16 sps:$4 sm:$0xff]  }
 0x164   :  { %3395 = vmatprep.subr.bf16.mxu0 %v4985_v53  ;;  %3723 = vmatprep.subr.bf16.mxu1 %v4988_v54  ;;  %v5080_v53 = vld [vmem:[%s6862_s1 + $0xd0c] ss:$16 sps:$4 sm:$0xff]   ;;  %v5075_v54 = vld [vmem:[%s6862_s1 + $0xd00] ss:$16 sps:$4 sm:$0xff]  }
 0x167   :  { %3396 = vmatpush1.bf16.msra.mxu0 %v4983_v55  ;;  %3724 = vmatpush1.bf16.msra.mxu1 %v4986_v56  ;;  %v5078_v55 = vld [vmem:[%s6862_s1 + $0xd08] ss:$16 sps:$4 sm:$0xff]   ;;  %v5083_v56 = vld [vmem:[%s6862_s1 + $0xd24] ss:$16 sps:$4 sm:$0xff]  }
 0x168   :  { %3397 = vmatprep.subr.bf16.mxu0 %v4991_v57  ;;  %3725 = vmatprep.subr.bf16.mxu1 %v4994_v58  ;;  %v5086_v57 = vld [vmem:[%s6862_s1 + $0xd2c] ss:$16 sps:$4 sm:$0xff]   ;;  %v5081_v58 = vld [vmem:[%s6862_s1 + $0xd20] ss:$16 sps:$4 sm:$0xff]  }
 0x16b   :  { %3398 = vmatpush1.bf16.msra.mxu0 %v4989_v59  ;;  %3726 = vmatpush1.bf16.msra.mxu1 %v4992_v60  ;;  %v5084_v59 = vld [vmem:[%s6862_s1 + $0xd28] ss:$16 sps:$4 sm:$0xff]   ;;  %v5089_v60 = vld [vmem:[%s6862_s1 + $0xd44] ss:$16 sps:$4 sm:$0xff]  }
 0x16c   :  { %3399 = vmatprep.subr.bf16.mxu0 %v4997_v61  ;;  %3727 = vmatprep.subr.bf16.mxu1 %v5000_v62  ;;  %v5092_v61 = vld [vmem:[%s6862_s1 + $0xd4c] ss:$16 sps:$4 sm:$0xff]   ;;  %v5087_v62 = vld [vmem:[%s6862_s1 + $0xd40] ss:$16 sps:$4 sm:$0xff]  }
 0x16f   :  { %3400 = vmatpush1.bf16.msra.mxu0 %v4995_v63  ;;  %3728 = vmatpush1.bf16.msra.mxu1 %v4998_v0  ;;  %v5090_v63 = vld [vmem:[%s6862_s1 + $0xd48] ss:$16 sps:$4 sm:$0xff]   ;;  %v5095_v0 = vld [vmem:[%s6862_s1 + $0xd64] ss:$16 sps:$4 sm:$0xff]  }
 0x170   :  { %3401 = vmatprep.subr.bf16.mxu0 %v5003_v1  ;;  %3729 = vmatprep.subr.bf16.mxu1 %v5006_v2  ;;  %v5098_v1 = vld [vmem:[%s6862_s1 + $0xd6c] ss:$16 sps:$4 sm:$0xff]   ;;  %v5093_v2 = vld [vmem:[%s6862_s1 + $0xd60] ss:$16 sps:$4 sm:$0xff]  }
 0x173   :  { %3402 = vmatpush1.bf16.msra.mxu0 %v5001_v3  ;;  %3730 = vmatpush1.bf16.msra.mxu1 %v5004_v4  ;;  %v5096_v3 = vld [vmem:[%s6862_s1 + $0xd68] ss:$16 sps:$4 sm:$0xff]   ;;  %v5101_v4 = vld [vmem:[%s6862_s1 + $0xd84] ss:$16 sps:$4 sm:$0xff]  }
 0x174   :  { %3403 = vmatprep.subr.bf16.mxu0 %v5009_v5  ;;  %3731 = vmatprep.subr.bf16.mxu1 %v5012_v6  ;;  %v5104_v5 = vld [vmem:[%s6862_s1 + $0xd8c] ss:$16 sps:$4 sm:$0xff]   ;;  %v5099_v6 = vld [vmem:[%s6862_s1 + $0xd80] ss:$16 sps:$4 sm:$0xff]  }
 0x177   :  { %3404 = vmatpush1.bf16.msra.mxu0 %v5007_v7  ;;  %3732 = vmatpush1.bf16.msra.mxu1 %v5010_v8  ;;  %v5102_v7 = vld [vmem:[%s6862_s1 + $0xd88] ss:$16 sps:$4 sm:$0xff]   ;;  %v5107_v8 = vld [vmem:[%s6862_s1 + $0xda4] ss:$16 sps:$4 sm:$0xff]  }
 0x178   :  { %3405 = vmatprep.subr.bf16.mxu0 %v5015_v9  ;;  %3733 = vmatprep.subr.bf16.mxu1 %v5018_v10  ;;  %v5110_v9 = vld [vmem:[%s6862_s1 + $0xdac] ss:$16 sps:$4 sm:$0xff]   ;;  %v5105_v10 = vld [vmem:[%s6862_s1 + $0xda0] ss:$16 sps:$4 sm:$0xff]  }
 0x17b   :  { %3406 = vmatpush1.bf16.msra.mxu0 %v5013_v12  ;;  %3734 = vmatpush1.bf16.msra.mxu1 %v5016_v13  ;;  %v5108_v12 = vld [vmem:[%s6862_s1 + $0xda8] ss:$16 sps:$4 sm:$0xff]   ;;  %v5113_v13 = vld [vmem:[%s6862_s1 + $0xdc4] ss:$16 sps:$4 sm:$0xff]  }
 0x17c   :  { %3407 = vmatprep.subr.bf16.mxu0 %v5021_v15  ;;  %3735 = vmatprep.subr.bf16.mxu1 %v5024_v11  ;;  %v5116_v15 = vld [vmem:[%s6862_s1 + $0xdcc] ss:$16 sps:$4 sm:$0xff]   ;;  %v5111_v11 = vld [vmem:[%s6862_s1 + $0xdc0] ss:$16 sps:$4 sm:$0xff]  }
 0x17f   :  { %3408 = vmatpush1.bf16.msra.mxu0 %v5019_v17  ;;  %3736 = vmatpush1.bf16.msra.mxu1 %v5022_v14  ;;  %v5114_v17 = vld [vmem:[%s6862_s1 + $0xdc8] ss:$16 sps:$4 sm:$0xff]   ;;  %v5119_v14 = vld [vmem:[%s6862_s1 + $0xde4] ss:$16 sps:$4 sm:$0xff]  }
 0x180   :  { %3418 = vmatprep.subr.bf16.mxu0 %v5029_v19  ;;  %3746 = vmatprep.subr.bf16.mxu1 %v5032_v20  ;;  %v5122_v19 = vld [vmem:[%s6862_s1 + $0xdec] ss:$16 sps:$4 sm:$0xff]   ;;  %v5117_v20 = vld [vmem:[%s6862_s1 + $0xde0] ss:$16 sps:$4 sm:$0xff]  }
 0x182   :  { %3410 = vmatmul.mubr.bf16.vlgmr.msra.gmra.mrb[0].mxu0 %v3861_v21  ;;  %3738 = vmatmul.mubr.bf16.vlgmr.msra.gmra.mrb[0].mxu1 %v3861_v21  ;;  %v5120_v21 = vld [vmem:[%s6862_s1 + $0xde8] ss:$16 sps:$4 sm:$0xff]  }
 0x183   :  { %3419 = vmatpush1.bf16.msra.mxu0 %v5027_v22  ;;  %3747 = vmatpush1.bf16.msra.mxu1 %v5030_v23  ;;  %v5127_v22 = vld [vmem:[%s6862_s1 + $0xe04] ss:$16 sps:$4 sm:$0xff]   ;;  %v5130_v23 = vld [vmem:[%s6862_s1 + $0xe0c] ss:$16 sps:$4 sm:$0xff]  }
 0x184   :  { %3420 = vmatprep.subr.bf16.mxu0 %v5035_v18  ;;  %3748 = vmatprep.subr.bf16.mxu1 %v5038_v24  ;;  %v3863_v18 = vcombine.low %v6454_v16, %v6454_v16  ;;  %v6655_v24 = vld [vmem:[%s6863_s0 + $0x38] sm:$0xff]  ;;  %v5133_v16 = vld [vmem:[%s6862_s1 + $0xe24] ss:$16 sps:$4 sm:$0xff]  }
 0x185   :  { %3450 = vmatprep.mubr.bf16.mxu0 %v3864_v25  ;;  %3778 = vmatprep.mubr.bf16.mxu1 %v3864_v25  ;;  %v5125_v25 = vld [vmem:[%s6862_s1 + $0xe00] ss:$16 sps:$4 sm:$0xff]  }
 0x187   :  { %3421 = vmatpush1.bf16.msra.mxu0 %v5033_v26  ;;  %3749 = vmatpush1.bf16.msra.mxu1 %v5036_v27  ;;  %v5128_v26 = vld [vmem:[%s6862_s1 + $0xe08] ss:$16 sps:$4 sm:$0xff]   ;;  %v5136_v27 = vld [vmem:[%s6862_s1 + $0xe2c] ss:$16 sps:$4 sm:$0xff]  }
 0x188   :  { %3422 = vmatprep.subr.bf16.mxu0 %v5041_v28  ;;  %3750 = vmatprep.subr.bf16.mxu1 %v5044_v29  ;;  %v3866_v28 = vcombine.high %v6655_v24, %v6655_v24  ;;  %v5131_v29 = vld [vmem:[%s6862_s1 + $0xe20] ss:$16 sps:$4 sm:$0xff]  }
 0x18b   :  { %3423 = vmatpush1.bf16.msra.mxu0 %v5039_v30  ;;  %3751 = vmatpush1.bf16.msra.mxu1 %v5042_v31  ;;  %v5134_v30 = vld [vmem:[%s6862_s1 + $0xe28] ss:$16 sps:$4 sm:$0xff]   ;;  %v5139_v31 = vld [vmem:[%s6862_s1 + $0xe44] ss:$16 sps:$4 sm:$0xff]  }
 0x18c   :  { %3424 = vmatprep.subr.bf16.mxu0 %v5047_v32  ;;  %3752 = vmatprep.subr.bf16.mxu1 %v5050_v33  ;;  %v5142_v32 = vld [vmem:[%s6862_s1 + $0xe4c] ss:$16 sps:$4 sm:$0xff]   ;;  %v5137_v33 = vld [vmem:[%s6862_s1 + $0xe40] ss:$16 sps:$4 sm:$0xff]  }
 0x18f   :  { %3425 = vmatpush1.bf16.msra.mxu0 %v5045_v34  ;;  %3753 = vmatpush1.bf16.msra.mxu1 %v5048_v35  ;;  %v5140_v34 = vld [vmem:[%s6862_s1 + $0xe48] ss:$16 sps:$4 sm:$0xff]   ;;  %v5145_v35 = vld [vmem:[%s6862_s1 + $0xe64] ss:$16 sps:$4 sm:$0xff]  }
 0x190   :  { %3426 = vmatprep.subr.bf16.mxu0 %v5053_v36  ;;  %3754 = vmatprep.subr.bf16.mxu1 %v5056_v37  ;;  %v5148_v36 = vld [vmem:[%s6862_s1 + $0xe6c] ss:$16 sps:$4 sm:$0xff]   ;;  %v5143_v37 = vld [vmem:[%s6862_s1 + $0xe60] ss:$16 sps:$4 sm:$0xff]  }
 0x193   :  { %3427 = vmatpush1.bf16.msra.mxu0 %v5051_v38  ;;  %3755 = vmatpush1.bf16.msra.mxu1 %v5054_v39  ;;  %v5146_v38 = vld [vmem:[%s6862_s1 + $0xe68] ss:$16 sps:$4 sm:$0xff]   ;;  %v5151_v39 = vld [vmem:[%s6862_s1 + $0xe84] ss:$16 sps:$4 sm:$0xff]  }
 0x194   :  { %3428 = vmatprep.subr.bf16.mxu0 %v5059_v40  ;;  %3756 = vmatprep.subr.bf16.mxu1 %v5062_v41  ;;  %v5154_v40 = vld [vmem:[%s6862_s1 + $0xe8c] ss:$16 sps:$4 sm:$0xff]   ;;  %v5149_v41 = vld [vmem:[%s6862_s1 + $0xe80] ss:$16 sps:$4 sm:$0xff]  }
 0x197   :  { %3429 = vmatpush1.bf16.msra.mxu0 %v5057_v42  ;;  %3757 = vmatpush1.bf16.msra.mxu1 %v5060_v43  ;;  %v5152_v42 = vld [vmem:[%s6862_s1 + $0xe88] ss:$16 sps:$4 sm:$0xff]   ;;  %v5157_v43 = vld [vmem:[%s6862_s1 + $0xea4] ss:$16 sps:$4 sm:$0xff]  }
 0x198   :  { %3430 = vmatprep.subr.bf16.mxu0 %v5065_v44  ;;  %3758 = vmatprep.subr.bf16.mxu1 %v5068_v45  ;;  %v5160_v44 = vld [vmem:[%s6862_s1 + $0xeac] ss:$16 sps:$4 sm:$0xff]   ;;  %v5155_v45 = vld [vmem:[%s6862_s1 + $0xea0] ss:$16 sps:$4 sm:$0xff]  }
 0x19b   :  { %3431 = vmatpush1.bf16.msra.mxu0 %v5063_v46  ;;  %3759 = vmatpush1.bf16.msra.mxu1 %v5066_v47  ;;  %v5158_v46 = vld [vmem:[%s6862_s1 + $0xea8] ss:$16 sps:$4 sm:$0xff]   ;;  %v5163_v47 = vld [vmem:[%s6862_s1 + $0xec4] ss:$16 sps:$4 sm:$0xff]  }
 0x19c   :  { %3432 = vmatprep.subr.bf16.mxu0 %v5071_v48  ;;  %3760 = vmatprep.subr.bf16.mxu1 %v5074_v49  ;;  %v5166_v48 = vld [vmem:[%s6862_s1 + $0xecc] ss:$16 sps:$4 sm:$0xff]   ;;  %v5161_v49 = vld [vmem:[%s6862_s1 + $0xec0] ss:$16 sps:$4 sm:$0xff]  }
 0x19f   :  { %3433 = vmatpush1.bf16.msra.mxu0 %v5069_v50  ;;  %3761 = vmatpush1.bf16.msra.mxu1 %v5072_v51  ;;  %v5164_v50 = vld [vmem:[%s6862_s1 + $0xec8] ss:$16 sps:$4 sm:$0xff]   ;;  %v5169_v51 = vld [vmem:[%s6862_s1 + $0xee4] ss:$16 sps:$4 sm:$0xff]  }
 0x1a0   :  { %3434 = vmatprep.subr.bf16.mxu0 %v5077_v52  ;;  %3762 = vmatprep.subr.bf16.mxu1 %v5080_v53  ;;  %v5172_v52 = vld [vmem:[%s6862_s1 + $0xeec] ss:$16 sps:$4 sm:$0xff]   ;;  %v5167_v53 = vld [vmem:[%s6862_s1 + $0xee0] ss:$16 sps:$4 sm:$0xff]  }
 0x1a3   :  { %3435 = vmatpush1.bf16.msra.mxu0 %v5075_v54  ;;  %3763 = vmatpush1.bf16.msra.mxu1 %v5078_v55  ;;  %v5170_v54 = vld [vmem:[%s6862_s1 + $0xee8] ss:$16 sps:$4 sm:$0xff]   ;;  %v5175_v55 = vld [vmem:[%s6862_s1 + $0xf04] ss:$16 sps:$4 sm:$0xff]  }
 0x1a4   :  { %3436 = vmatprep.subr.bf16.mxu0 %v5083_v56  ;;  %3764 = vmatprep.subr.bf16.mxu1 %v5086_v57  ;;  %v5178_v56 = vld [vmem:[%s6862_s1 + $0xf0c] ss:$16 sps:$4 sm:$0xff]   ;;  %v5173_v57 = vld [vmem:[%s6862_s1 + $0xf00] ss:$16 sps:$4 sm:$0xff]  }
 0x1a7   :  { %3437 = vmatpush1.bf16.msra.mxu0 %v5081_v58  ;;  %3765 = vmatpush1.bf16.msra.mxu1 %v5084_v59  ;;  %v5176_v58 = vld [vmem:[%s6862_s1 + $0xf08] ss:$16 sps:$4 sm:$0xff]   ;;  %v5181_v59 = vld [vmem:[%s6862_s1 + $0xf24] ss:$16 sps:$4 sm:$0xff]  }
 0x1a8   :  { %3438 = vmatprep.subr.bf16.mxu0 %v5089_v60  ;;  %3766 = vmatprep.subr.bf16.mxu1 %v5092_v61  ;;  %v5184_v60 = vld [vmem:[%s6862_s1 + $0xf2c] ss:$16 sps:$4 sm:$0xff]   ;;  %v5179_v61 = vld [vmem:[%s6862_s1 + $0xf20] ss:$16 sps:$4 sm:$0xff]  }
 0x1ab   :  { %3439 = vmatpush1.bf16.msra.mxu0 %v5087_v62  ;;  %3767 = vmatpush1.bf16.msra.mxu1 %v5090_v63  ;;  %v5182_v62 = vld [vmem:[%s6862_s1 + $0xf28] ss:$16 sps:$4 sm:$0xff]   ;;  %v5187_v63 = vld [vmem:[%s6862_s1 + $0xf44] ss:$16 sps:$4 sm:$0xff]  }
 0x1ac   :  { %3440 = vmatprep.subr.bf16.mxu0 %v5095_v0  ;;  %3768 = vmatprep.subr.bf16.mxu1 %v5098_v1  ;;  %v5190_v0 = vld [vmem:[%s6862_s1 + $0xf4c] ss:$16 sps:$4 sm:$0xff]   ;;  %v5185_v1 = vld [vmem:[%s6862_s1 + $0xf40] ss:$16 sps:$4 sm:$0xff]  }
 0x1af   :  { %3441 = vmatpush1.bf16.msra.mxu0 %v5093_v2  ;;  %3769 = vmatpush1.bf16.msra.mxu1 %v5096_v3  ;;  %v5188_v2 = vld [vmem:[%s6862_s1 + $0xf48] ss:$16 sps:$4 sm:$0xff]   ;;  %v5193_v3 = vld [vmem:[%s6862_s1 + $0xf64] ss:$16 sps:$4 sm:$0xff]  }
 0x1b0   :  { %3442 = vmatprep.subr.bf16.mxu0 %v5101_v4  ;;  %3770 = vmatprep.subr.bf16.mxu1 %v5104_v5  ;;  %v5196_v4 = vld [vmem:[%s6862_s1 + $0xf6c] ss:$16 sps:$4 sm:$0xff]   ;;  %v5191_v5 = vld [vmem:[%s6862_s1 + $0xf60] ss:$16 sps:$4 sm:$0xff]  }
 0x1b3   :  { %3443 = vmatpush1.bf16.msra.mxu0 %v5099_v6  ;;  %3771 = vmatpush1.bf16.msra.mxu1 %v5102_v7  ;;  %v5194_v6 = vld [vmem:[%s6862_s1 + $0xf68] ss:$16 sps:$4 sm:$0xff]   ;;  %v5199_v7 = vld [vmem:[%s6862_s1 + $0xf84] ss:$16 sps:$4 sm:$0xff]  }
 0x1b4   :  { %3444 = vmatprep.subr.bf16.mxu0 %v5107_v8  ;;  %3772 = vmatprep.subr.bf16.mxu1 %v5110_v9  ;;  %v5202_v8 = vld [vmem:[%s6862_s1 + $0xf8c] ss:$16 sps:$4 sm:$0xff]   ;;  %v5197_v9 = vld [vmem:[%s6862_s1 + $0xf80] ss:$16 sps:$4 sm:$0xff]  }
 0x1b7   :  { %3445 = vmatpush1.bf16.msra.mxu0 %v5105_v10  ;;  %3773 = vmatpush1.bf16.msra.mxu1 %v5108_v12  ;;  %v5200_v10 = vld [vmem:[%s6862_s1 + $0xf88] ss:$16 sps:$4 sm:$0xff]   ;;  %v5205_v12 = vld [vmem:[%s6862_s1 + $0xfa4] ss:$16 sps:$4 sm:$0xff]  }
 0x1b8   :  { %3446 = vmatprep.subr.bf16.mxu0 %v5113_v13  ;;  %3774 = vmatprep.subr.bf16.mxu1 %v5116_v15  ;;  %v5208_v13 = vld [vmem:[%s6862_s1 + $0xfac] ss:$16 sps:$4 sm:$0xff]   ;;  %v5203_v15 = vld [vmem:[%s6862_s1 + $0xfa0] ss:$16 sps:$4 sm:$0xff]  }
 0x1bb   :  { %3447 = vmatpush1.bf16.msra.mxu0 %v5111_v11  ;;  %3775 = vmatpush1.bf16.msra.mxu1 %v5114_v17  ;;  %v5206_v11 = vld [vmem:[%s6862_s1 + $0xfa8] ss:$16 sps:$4 sm:$0xff]   ;;  %v5211_v17 = vld [vmem:[%s6862_s1 + $0xfc4] ss:$16 sps:$4 sm:$0xff]  }
 0x1bc   :  { %3448 = vmatprep.subr.bf16.mxu0 %v5119_v14  ;;  %3776 = vmatprep.subr.bf16.mxu1 %v5122_v19  ;;  %v5214_v14 = vld [vmem:[%s6862_s1 + $0xfcc] ss:$16 sps:$4 sm:$0xff]   ;;  %v5209_v19 = vld [vmem:[%s6862_s1 + $0xfc0] ss:$16 sps:$4 sm:$0xff]  }
 0x1bf   :  { %3449 = vmatpush1.bf16.msra.mxu0 %v5117_v20  ;;  %3777 = vmatpush1.bf16.msra.mxu1 %v5120_v21  ;;  %v5212_v20 = vld [vmem:[%s6862_s1 + $0xfc8] ss:$16 sps:$4 sm:$0xff]   ;;  %v5217_v21 = vld [vmem:[%s6862_s1 + $0xfe4] ss:$16 sps:$4 sm:$0xff]  }
 0x1c0   :  { %3459 = vmatprep.subr.bf16.mxu0 %v5127_v22  ;;  %3787 = vmatprep.subr.bf16.mxu1 %v5130_v23  ;;  %v5220_v22 = vld [vmem:[%s6862_s1 + $0xfec] ss:$16 sps:$4 sm:$0xff]   ;;  %v5215_v23 = vld [vmem:[%s6862_s1 + $0xfe0] ss:$16 sps:$4 sm:$0xff]  }
 0x1c2   :  { %3451 = vmatmul.mubr.bf16.vlgmr.msra.gmra.mrb[0].mxu0 %v3863_v18  ;;  %3779 = vmatmul.mubr.bf16.vlgmr.msra.gmra.mrb[0].mxu1 %v3863_v18  ;;  %v5218_v18 = vld [vmem:[%s6862_s1 + $0xfe8] ss:$16 sps:$4 sm:$0xff]  }
 0x1c3   :  { %3460 = vmatpush1.bf16.msra.mxu0 %v5125_v25  ;;  %3788 = vmatpush1.bf16.msra.mxu1 %v5128_v26  ;;  %v3865_v25 = vcombine.low %v6655_v24, %v6655_v24  ;;  %v536_v26 = vlaneseq }
 0x1c4   :  { %3461 = vmatprep.subr.bf16.mxu0 %v5133_v16  ;;  %3789 = vmatprep.subr.bf16.mxu1 %v5136_v27 }
 0x1c5   :  { %3491 = vmatprep.mubr.bf16.mxu0 %v3866_v28  ;;  %3819 = vmatprep.mubr.bf16.mxu1 %v3866_v28  ;;  %v537_v16 = vshrl.u32 %v536_v26, 7  ;;  %v534_v28 = vld [vmem:[%s6864_s2] sm:$0xf] }
 0x1c7   :  { %3462 = vmatpush1.bf16.msra.mxu0 %v5131_v29  ;;  %3790 = vmatpush1.bf16.msra.mxu1 %v5134_v30  ;;  %v538_v27 = vsub.s32 0, %v537_v16  ;;  %v546_v29 = vsub.s32 2, %v537_v16  ;;  %v542_v30 = vsub.s32 1, %v537_v16 }
 0x1c8   :  { %3463 = vmatprep.subr.bf16.mxu0 %v5139_v31  ;;  %3791 = vmatprep.subr.bf16.mxu1 %v5142_v32  ;;  %v550_v31 = vsub.s32 3, %v537_v16 }
 0x1c9   :  { %v539_v32 = vrot.slane %v534_v28, %v538_v27 }
 0x1ca   :  { %v551_v24 = vrot.slane %v534_v28, %v550_v31 }
 0x1cb   :  { %3464 = vmatpush1.bf16.msra.mxu0 %v5137_v33  ;;  %3792 = vmatpush1.bf16.msra.mxu1 %v5140_v34  ;;  %v547_v33 = vrot.slane %v534_v28, %v546_v29  ;;  %v543_v34 = vrot.slane %v534_v28, %v542_v30 }
 0x1cc   :  { %3465 = vmatprep.subr.bf16.mxu0 %v5145_v35  ;;  %3793 = vmatprep.subr.bf16.mxu1 %v5148_v36 }
 0x1cf   :  { %3466 = vmatpush1.bf16.msra.mxu0 %v5143_v37  ;;  %3794 = vmatpush1.bf16.msra.mxu1 %v5146_v38 }
 0x1d0   :  { %3467 = vmatprep.subr.bf16.mxu0 %v5151_v39  ;;  %3795 = vmatprep.subr.bf16.mxu1 %v5154_v40 }
 0x1d3   :  { %3468 = vmatpush1.bf16.msra.mxu0 %v5149_v41  ;;  %3796 = vmatpush1.bf16.msra.mxu1 %v5152_v42 }
 0x1d4   :  { %3469 = vmatprep.subr.bf16.mxu0 %v5157_v43  ;;  %3797 = vmatprep.subr.bf16.mxu1 %v5160_v44 }
 0x1d7   :  { %3470 = vmatpush1.bf16.msra.mxu0 %v5155_v45  ;;  %3798 = vmatpush1.bf16.msra.mxu1 %v5158_v46 }
 0x1d8   :  { %3471 = vmatprep.subr.bf16.mxu0 %v5163_v47  ;;  %3799 = vmatprep.subr.bf16.mxu1 %v5166_v48 }
 0x1db   :  { %3472 = vmatpush1.bf16.msra.mxu0 %v5161_v49  ;;  %3800 = vmatpush1.bf16.msra.mxu1 %v5164_v50 }
 0x1dc   :  { %3473 = vmatprep.subr.bf16.mxu0 %v5169_v51  ;;  %3801 = vmatprep.subr.bf16.mxu1 %v5172_v52 }
 0x1df   :  { %3474 = vmatpush1.bf16.msra.mxu0 %v5167_v53  ;;  %3802 = vmatpush1.bf16.msra.mxu1 %v5170_v54 }
 0x1e0   :  { %3475 = vmatprep.subr.bf16.mxu0 %v5175_v55  ;;  %3803 = vmatprep.subr.bf16.mxu1 %v5178_v56 }
 0x1e3   :  { %3476 = vmatpush1.bf16.msra.mxu0 %v5173_v57  ;;  %3804 = vmatpush1.bf16.msra.mxu1 %v5176_v58 }
 0x1e4   :  { %3477 = vmatprep.subr.bf16.mxu0 %v5181_v59  ;;  %3805 = vmatprep.subr.bf16.mxu1 %v5184_v60 }
 0x1e7   :  { %3478 = vmatpush1.bf16.msra.mxu0 %v5179_v61  ;;  %3806 = vmatpush1.bf16.msra.mxu1 %v5182_v62 }
 0x1e8   :  { %3479 = vmatprep.subr.bf16.mxu0 %v5187_v63  ;;  %3807 = vmatprep.subr.bf16.mxu1 %v5190_v0 }
 0x1eb   :  { %3480 = vmatpush1.bf16.msra.mxu0 %v5185_v1  ;;  %3808 = vmatpush1.bf16.msra.mxu1 %v5188_v2 }
 0x1ec   :  { %3481 = vmatprep.subr.bf16.mxu0 %v5193_v3  ;;  %3809 = vmatprep.subr.bf16.mxu1 %v5196_v4 }
 0x1ef   :  { %3482 = vmatpush1.bf16.msra.mxu0 %v5191_v5  ;;  %3810 = vmatpush1.bf16.msra.mxu1 %v5194_v6 }
 0x1f0   :  { %3483 = vmatprep.subr.bf16.mxu0 %v5199_v7  ;;  %3811 = vmatprep.subr.bf16.mxu1 %v5202_v8 }
 0x1f3   :  { %3484 = vmatpush1.bf16.msra.mxu0 %v5197_v9  ;;  %3812 = vmatpush1.bf16.msra.mxu1 %v5200_v10 }
 0x1f4   :  { %3485 = vmatprep.subr.bf16.mxu0 %v5205_v12  ;;  %3813 = vmatprep.subr.bf16.mxu1 %v5208_v13 }
 0x1f7   :  { %3486 = vmatpush1.bf16.msra.mxu0 %v5203_v15  ;;  %3814 = vmatpush1.bf16.msra.mxu1 %v5206_v11 }
 0x1f8   :  { %3487 = vmatprep.subr.bf16.mxu0 %v5211_v17  ;;  %3815 = vmatprep.subr.bf16.mxu1 %v5214_v14 }
 0x1fb   :  { %3488 = vmatpush1.bf16.msra.mxu0 %v5209_v19  ;;  %3816 = vmatpush1.bf16.msra.mxu1 %v5212_v20 }
 0x1fc   :  { %3489 = vmatprep.subr.bf16.mxu0 %v5217_v21  ;;  %3817 = vmatprep.subr.bf16.mxu1 %v5220_v22 }
 0x1ff   :  { %3490 = vmatpush1.bf16.msra.mxu0 %v5215_v23  ;;  %3818 = vmatpush1.bf16.msra.mxu1 %v5218_v18 }
 0x202   :  { %3492 = vmatmul.mubr.bf16.vlgmr.msra.gmra.mrb[0].mxu0 %v3865_v25  ;;  %3820 = vmatmul.mubr.bf16.vlgmr.msra.gmra.mrb[0].mxu1 %v3865_v25 }
 0x2d5   :  { %v3493_v35 = vpop.f32.mrb[0].mxu0  ;;  %v3821_v36 = vpop.f32.mrb[0].mxu1 }
 0x2d6   :  { %v4379_v37 = vadd.f32 %v3493_v35, %v539_v32  ;;  %v3495_v38 = vpop.f32.mrb[1].mxu0  ;;  %v3823_v39 = vpop.f32.mrb[1].mxu1  ;;  %v4381_v40 = vadd.f32 %v3821_v36, %v547_v33 }
 0x2d7   :  { %v4380_v41 = vadd.f32 %v3495_v38, %v543_v34  ;;  %v3497_v42 = vpop.f32.mrb[2].mxu0  ;;  %v3825_v43 = vpop.f32.mrb[2].mxu1  ;;  %v4382_v48 = vadd.f32 %v3823_v39, %v551_v24 }
 0x2d8   :  { %v3828_v44 = vmul.f32 %v4379_v37, %v4379_v37  ;;  %v3498_v45 = vpop.f32.mrb[3].mxu0  ;;  %v3826_v46 = vpop.f32.mrb[3].mxu1  ;;  %v3830_v49 = vmul.f32 %v4381_v40, %v4381_v40 }
 0x2d9   :  { %v3829_v47 = vmul.f32 %v4380_v41, %v4380_v41  ;;  %v3831_v51 = vmul.f32 %v4382_v48, %v4382_v48 }
 0x2db   :  { %v3832_v50 = vadd.f32 %v3829_v47, %v3828_v44 }
 0x2dd   :  { %v3833_v52 = vadd.f32 %v3832_v50, %v3830_v49 }
 0x2df   :  { %v3834_v53 = vadd.f32 %v3833_v52, %v3831_v51 }
 0x2e1   :  { %3835 = vadd.xlane.f32.xlu0 %v3834_v53 }
 0x36e   :  { %v3836_v54 = vpop.xlane.xlu0 %3835 }
 0x36f   :  { %v3837_v55 = vadd.f32 1e-24, %v3836_v54 }
 0x371   :  { %5223 = vrsqrt.f32 %v3837_v55 }
 0x37b   :  { %v5224_v56 = vpop.eup %5223 }
 0x37c   :  { %v3839_v57 = vmul.f32 %v5224_v56, %v4379_v37  ;;  %v3840_v58 = vmul.f32 %v5224_v56, %v4380_v41  ;;  %v3841_v59 = vmul.f32 %v5224_v56, %v4381_v40  ;;  %v3842_v60 = vmul.f32 %v5224_v56, %v4382_v48 }
 0x37e   :  { %3843 = vst [vmem:[%s6865_s3] sm:$0xff] %v3839_v57  ;;  %3844 = vst [vmem:[%s6865_s3 + $0x8] sm:$0xff] %v3840_v58 }
 0x37f   :  { %3845 = vst [vmem:[%s6865_s3 + $0x10] sm:$0xff] %v3841_v59  ;;  %3846 = vst [vmem:[%s6865_s3 + $0x18] sm:$0xff] %v3842_v60 }

</bundles_post_ra>
